<compile_context>
chip_gen: v7x
topology: tpu7x:2x2x1
jax: 0.10.0
libtpu: 0.0.40
codegen_flags: <defaults>
</compile_context>

<pallas_src>
import math
from functools import partial

import jax
import jax.numpy as jnp
import numpy as np
from jax.experimental import pallas as pl
from jax.experimental.pallas import tpu as pltpu


# ----------------------------------------------------------------------------
# Static bilinear taps (align_corners=True) -- computed with numpy at trace time
# ----------------------------------------------------------------------------
def _interp_taps(in_size, out_size):
    if out_size == 1:
        src = np.zeros((1,), np.float64)
    else:
        src = np.arange(out_size, dtype=np.float64) * (in_size - 1) / (out_size - 1)
    i0 = np.clip(np.floor(src).astype(np.int64), 0, in_size - 1)
    i1 = np.minimum(i0 + 1, in_size - 1)
    w1 = src - i0
    w0 = 1.0 - w1
    return (tuple(int(v) for v in i0), tuple(int(v) for v in i1),
            tuple(float(v) for v in w0), tuple(float(v) for v in w1))


# ----------------------------------------------------------------------------
# The fused decoder kernel (one grid step = one image)
# ----------------------------------------------------------------------------
def _decoder_kernel(fl_ref, fa_ref, w_low_ref, ss_low_ref,
                    w0l_ref, w0u_ref, ss0_ref, w1_ref, ss1_ref, w_out_ref,
                    o_ref,
                    low_pad, up_pad, y_pad,
                    *, H, W, taps_y, taps_x):
    f32 = jnp.float32
    bf16 = jnp.bfloat16
    HW = H * W
    C_low = low_pad.shape[-1]      # 48
    C_up = up_pad.shape[-1]        # aspp channels (256)
    C_mid = y_pad.shape[-1]        # 256

    # Zero the padded scratch (cheap; establishes the conv zero-padding border).
    low_pad[...] = jnp.zeros(low_pad.shape, low_pad.dtype)
    up_pad[...] = jnp.zeros(up_pad.shape, up_pad.dtype)
    y_pad[...] = jnp.zeros(y_pad.shape, y_pad.dtype)

    # ---- conv_low: 1x1 conv (bf16 MXU) + folded BN + ReLU -------------------
    acc = jnp.dot(fl_ref[0], w_low_ref[...],
                  preferred_element_type=f32)                    # (HW, 48) f32
    low = jnp.maximum(acc * ss_low_ref[0:1, :] + ss_low_ref[1:2, :], 0.0)
    low_pad[1:H + 1, 1:W + 1, :] = low.reshape(H, W, C_low)

    # ---- bilinear upsample (align_corners=True), separable static taps ------
    iy0, iy1, wy0, wy1 = taps_y
    ix0, ix1, wx0, wx1 = taps_x
    fa = fa_ref[0]                                               # (h, w, C_up) f32
    rows = [wy0[y] * fa[iy0[y]:iy0[y] + 1] + wy1[y] * fa[iy1[y]:iy1[y] + 1]
            for y in range(H)]
    a = jnp.concatenate(rows, axis=0)                            # (H, w, C_up)
    for x in range(W):
        col = (wx0[x] * a[:, ix0[x]:ix0[x] + 1, :]
               + wx1[x] * a[:, ix1[x]:ix1[x] + 1, :])            # (H, 1, C_up)
        up_pad[1:H + 1, 1 + x:2 + x, :] = col

    # ---- conv_cat[0]: 3x3 conv over [low || up] as 9 tap matmuls + BN + ReLU
    acc = jnp.zeros((HW, C_mid), f32)
    for t in range(9):
        dy, dx = divmod(t, 3)
        xl = low_pad[dy:dy + H, dx:dx + W, :].reshape(HW, C_low).astype(bf16)
        xu = up_pad[dy:dy + H, dx:dx + W, :].reshape(HW, C_up).astype(bf16)
        acc = acc + jnp.dot(xl, w0l_ref[t], preferred_element_type=f32)
        acc = acc + jnp.dot(xu, w0u_ref[t], preferred_element_type=f32)
    y0 = jnp.maximum(acc * ss0_ref[0:1, :] + ss0_ref[1:2, :], 0.0)
    y_pad[1:H + 1, 1:W + 1, :] = y0.reshape(H, W, C_mid)

    # ---- conv_cat[1]: 3x3 conv as 9 tap matmuls + BN + ReLU -----------------
    acc = jnp.zeros((HW, C_mid), f32)
    for t in range(9):
        dy, dx = divmod(t, 3)
        xv = y_pad[dy:dy + H, dx:dx + W, :].reshape(HW, C_mid).astype(bf16)
        acc = acc + jnp.dot(xv, w1_ref[t], preferred_element_type=f32)
    y1 = jnp.maximum(acc * ss1_ref[0:1, :] + ss1_ref[1:2, :], 0.0)

    # ---- conv_out: 1x1 conv, lane-dense (classes zero-padded to 128) --------
    logits = jnp.dot(y1.astype(bf16), w_out_ref[...],
                     preferred_element_type=f32)                 # (HW, 128) f32
    o_ref[...] = logits.reshape(1, HW, logits.shape[-1])


# ----------------------------------------------------------------------------
# Parameter folding helpers (plain JAX glue)
# ----------------------------------------------------------------------------
def conv_w_to_matrix(w_pt):
    """PyTorch (O, I, KH, KW) -> matmul weight (KH*KW*I, O)."""
    O, I, KH, KW = w_pt.shape
    return jnp.transpose(w_pt, (2, 3, 1, 0)).reshape(KH * KW * I, O)


def fold_bn(conv_bias, gamma, beta, mean, var, eps=1e-5):
    scale = gamma / jnp.sqrt(var + eps)
    shift = beta + scale * (conv_bias - mean)
    return scale, shift


# ----------------------------------------------------------------------------
# Decoder forward (single fused Pallas call)
# ----------------------------------------------------------------------------
def decoder_forward(params, feat_low_nchw, feat_aspp_nchw):
    N, Cl, H, W = feat_low_nchw.shape
    _, Ca, h, w = feat_aspp_nchw.shape
    nc = params['conv_out']['w'].shape[0]
    ncp = ((nc + 127) // 128) * 128                 # lane-dense output width
    C_low = params['conv_low']['w'].shape[0]        # 48
    C_mid = params['cat0']['w'].shape[0]            # 256

    # NHWC with channels on the 128-lane axis; low feature pre-flattened to rows.
    fl = jnp.transpose(feat_low_nchw, (0, 2, 3, 1)).reshape(N, H * W, Cl)
    fl = fl.astype(jnp.bfloat16)
    fa = jnp.transpose(feat_aspp_nchw, (0, 2, 3, 1)).astype(jnp.float32)

    # conv_low (1x1): fold conv bias + BN into per-channel scale/shift.
    q = params['conv_low']
    s, t = fold_bn(q['b'], q['gamma'], q['beta'], q['mean'], q['var'])
    w_low = conv_w_to_matrix(q['w']).astype(jnp.bfloat16)        # (Cl, 48)
    ss_low = jnp.stack([s, t]).astype(jnp.float32)               # (2, 48)

    # conv_cat[0] (3x3 over 48+Ca channels): per-tap matrices, split low/up part.
    q = params['cat0']
    s, t = fold_bn(q['b'], q['gamma'], q['beta'], q['mean'], q['var'])
    wm0 = jnp.transpose(q['w'], (2, 3, 1, 0)).reshape(9, C_low + Ca, C_mid)
    w0l = wm0[:, :C_low, :].astype(jnp.bfloat16)                 # (9, 48, 256)
    w0u = wm0[:, C_low:, :].astype(jnp.bfloat16)                 # (9, Ca, 256)
    ss0 = jnp.stack([s, t]).astype(jnp.float32)                  # (2, 256)

    # conv_cat[1] (3x3).
    q = params['cat1']
    s, t = fold_bn(q['b'], q['gamma'], q['beta'], q['mean'], q['var'])
    w1 = jnp.transpose(q['w'], (2, 3, 1, 0)).reshape(9, C_mid, C_mid)
    w1 = w1.astype(jnp.bfloat16)                                 # (9, 256, 256)
    ss1 = jnp.stack([s, t]).astype(jnp.float32)                  # (2, 256)

    # conv_out (1x1, no bias/BN/ReLU): zero-pad out channels to 128 lanes.
    w_out = conv_w_to_matrix(params['conv_out']['w'])            # (256, nc)
    w_out_p = jnp.zeros((C_mid, ncp), jnp.float32).at[:, :nc].set(w_out)
    w_out_p = w_out_p.astype(jnp.bfloat16)

    taps_y = _interp_taps(h, H)
    taps_x = _interp_taps(w, W)

    kernel = partial(_decoder_kernel, H=H, W=W, taps_y=taps_y, taps_x=taps_x)

    out = pl.pallas_call(
        kernel,
        out_shape=jax.ShapeDtypeStruct((N, H * W, ncp), jnp.float32),
        grid_spec=pltpu.PrefetchScalarGridSpec(
            num_scalar_prefetch=0,
            grid=(N,),
            in_specs=[
                pl.BlockSpec((1, H * W, Cl), lambda b: (b, 0, 0)),
                pl.BlockSpec((1, h, w, Ca), lambda b: (b, 0, 0, 0)),
                pl.BlockSpec((Cl, C_low), lambda b: (0, 0)),
                pl.BlockSpec((2, C_low), lambda b: (0, 0)),
                pl.BlockSpec((9, C_low, C_mid), lambda b: (0, 0, 0)),
                pl.BlockSpec((9, Ca, C_mid), lambda b: (0, 0, 0)),
                pl.BlockSpec((2, C_mid), lambda b: (0, 0)),
                pl.BlockSpec((9, C_mid, C_mid), lambda b: (0, 0, 0)),
                pl.BlockSpec((2, C_mid), lambda b: (0, 0)),
                pl.BlockSpec((C_mid, ncp), lambda b: (0, 0)),
            ],
            out_specs=pl.BlockSpec((1, H * W, ncp), lambda b: (b, 0, 0)),
            scratch_shapes=[
                pltpu.VMEM((H + 2, W + 2, C_low), jnp.float32),   # padded low
                pltpu.VMEM((H + 2, W + 2, Ca), jnp.float32),      # padded upsample
                pltpu.VMEM((H + 2, W + 2, C_mid), jnp.float32),   # padded cat0 out
            ],
        ),
        compiler_params=pltpu.CompilerParams(
            dimension_semantics=("parallel",)),
    )(fl, fa, w_low, ss_low, w0l, w0u, ss0, w1, ss1, w_out_p)

    logits = out[:, :, :nc].reshape(N, H, W, nc)
    return jnp.transpose(logits, (0, 3, 1, 2))                   # back to NCHW


# ----------------------------------------------------------------------------
# Parameter init (deterministic, synthetic; shapes from Decoder.__init__)
# ----------------------------------------------------------------------------
def _kaiming_a1(key, shape_oihw):
    o, i, kh, kw = shape_oihw
    fan_in = i * kh * kw
    std = math.sqrt(2.0 / ((1.0 + 1.0 ** 2) * fan_in))   # kaiming_normal_, a=1
    return std * jax.random.normal(key, shape_oihw, jnp.float32)


def _bn_init(key, c):
    k1, k2, k3, k4 = jax.random.split(key, 4)
    gamma = 1.0 + 0.1 * jax.random.normal(k1, (c,), jnp.float32)
    beta = 0.1 * jax.random.normal(k2, (c,), jnp.float32)
    mean = 0.1 * jax.random.normal(k3, (c,), jnp.float32)
    var = 1.0 + 0.1 * jnp.abs(jax.random.normal(k4, (c,), jnp.float32))
    return dict(gamma=gamma, beta=beta, mean=mean, var=var)


def init_params(key, n_classes, low_chan=256):
    ks = jax.random.split(key, 8)
    p = {}
    p['conv_low'] = dict(w=_kaiming_a1(ks[0], (48, low_chan, 1, 1)),
                         b=jnp.zeros((48,), jnp.float32),
                         **_bn_init(ks[1], 48))
    p['cat0'] = dict(w=_kaiming_a1(ks[2], (256, 304, 3, 3)),
                     b=jnp.zeros((256,), jnp.float32),
                     **_bn_init(ks[3], 256))
    p['cat1'] = dict(w=_kaiming_a1(ks[4], (256, 256, 3, 3)),
                     b=jnp.zeros((256,), jnp.float32),
                     **_bn_init(ks[5], 256))
    p['conv_out'] = dict(w=_kaiming_a1(ks[6], (n_classes, 256, 1, 1)))
    return p


# ----------------------------------------------------------------------------
# Pure-JAX f32 reference (lax.conv) for a correctness check
# ----------------------------------------------------------------------------
def interp_matrix(in_size, out_size):
    if out_size == 1:
        src = jnp.zeros((1,), jnp.float32)
    else:
        src = jnp.arange(out_size, dtype=jnp.float32) * (in_size - 1) / (out_size - 1)
    i0 = jnp.clip(jnp.floor(src).astype(jnp.int32), 0, in_size - 1)
    i1 = jnp.clip(i0 + 1, 0, in_size - 1)
    w1 = src - i0.astype(jnp.float32)
    w0 = 1.0 - w1
    return (w0[:, None] * jax.nn.one_hot(i0, in_size, dtype=jnp.float32)
            + w1[:, None] * jax.nn.one_hot(i1, in_size, dtype=jnp.float32))


def ref_forward(params, feat_low, feat_aspp, eps=1e-5):
    def conv(x, w, b=None, pad=0):
        y = jax.lax.conv_general_dilated(
            x, w, (1, 1), [(pad, pad), (pad, pad)],
            dimension_numbers=('NCHW', 'OIHW', 'NCHW'))
        if b is not None:
            y = y + b[None, :, None, None]
        return y

    def bnrelu(x, q):
        s = q['gamma'] / jnp.sqrt(q['var'] + eps)
        y = s[None, :, None, None] * (x - q['mean'][None, :, None, None]) \
            + q['beta'][None, :, None, None]
        return jnp.maximum(y, 0.0)

    N, _, H, W = feat_low.shape
    _, _, h, w = feat_aspp.shape
    low = bnrelu(conv(feat_low, params['conv_low']['w'],
                      params['conv_low']['b'], 0), params['conv_low'])
    Ry = interp_matrix(h, H)
    Rx = interp_matrix(w, W)
    up = jnp.einsum('Hh,Ww,nchw->ncHW', Ry, Rx, feat_aspp)
    cat = jnp.concatenate([low, up], axis=1)
    y = bnrelu(conv(cat, params['cat0']['w'], params['cat0']['b'], 1),
               params['cat0'])
    y = bnrelu(conv(y, params['cat1']['w'], params['cat1']['b'], 1),
               params['cat1'])
    return conv(y, params['conv_out']['w'], None, 0)


if __name__ == "__main__":
    key = jax.random.PRNGKey(0)
    k_low, k_aspp, k_par = jax.random.split(key, 3)

    n_classes = 4
    low_chan = 256
    # feat_low: (N, 256, 8, 8); feat_aspp: (N, 256, 4, 4) -> upsampled to 8x8
    feat_low = jax.random.normal(k_low, (2, low_chan, 8, 8), jnp.float32)
    feat_aspp = jax.random.normal(k_aspp, (2, 256, 4, 4), jnp.float32)

    params = init_params(k_par, n_classes, low_chan)

    fwd = jax.jit(decoder_forward)
    logits = jax.block_until_ready(fwd(params, feat_low, feat_aspp))
    assert logits.shape == (2, n_classes, 8, 8)

    ref = jax.block_until_ready(ref_forward(params, feat_low, feat_aspp))
    # bf16 MXU inputs with f32 accumulation -> loosened tolerance vs f32 ref.
    np.testing.assert_allclose(np.asarray(logits), np.asarray(ref),
                               rtol=3e-2, atol=3e-2)

    print("KERNEL_OK")
</pallas_src>

<mosaic_0001>
module attributes {stable_mosaic.version = 11 : i64} {
  func.func @_decoder_kernel(%arg0: i32, %arg1: memref<1x64x256xbf16, #tpu.memory_space<vmem>>, %arg2: memref<1x4x4x256xf32, #tpu.memory_space<vmem>>, %arg3: memref<256x48xbf16, #tpu.memory_space<vmem>>, %arg4: memref<2x48xf32, #tpu.memory_space<vmem>>, %arg5: memref<9x48x256xbf16, #tpu.memory_space<vmem>>, %arg6: memref<9x256x256xbf16, #tpu.memory_space<vmem>>, %arg7: memref<2x256xf32, #tpu.memory_space<vmem>>, %arg8: memref<9x256x256xbf16, #tpu.memory_space<vmem>>, %arg9: memref<2x256xf32, #tpu.memory_space<vmem>>, %arg10: memref<256x128xbf16, #tpu.memory_space<vmem>>, %arg11: memref<1x64x128xf32, #tpu.memory_space<vmem>>, %arg12: memref<10x10x48xf32, #tpu.memory_space<vmem>>, %arg13: memref<10x10x256xf32, #tpu.memory_space<vmem>>, %arg14: memref<10x10x256xf32, #tpu.memory_space<vmem>>) attributes {dimension_semantics = [#tpu.dimension_semantics<parallel>], iteration_bounds = array<i64: 2>, scalar_prefetch = 0 : i64, scratch_operands = 3 : i64, tpu.core_type = #tpu.core_type<tc>, window_params = [{transform_indices = @transform_0, window_bounds = array<i64: 1, 64, 256>}, {transform_indices = @transform_1, window_bounds = array<i64: 1, 4, 4, 256>}, {pipeline_mode = #tpu.pipeline_mode<synchronous>, transform_indices = @transform_2, window_bounds = array<i64: 256, 48>}, {pipeline_mode = #tpu.pipeline_mode<synchronous>, transform_indices = @transform_3, window_bounds = array<i64: 2, 48>}, {pipeline_mode = #tpu.pipeline_mode<synchronous>, transform_indices = @transform_4, window_bounds = array<i64: 9, 48, 256>}, {pipeline_mode = #tpu.pipeline_mode<synchronous>, transform_indices = @transform_5, window_bounds = array<i64: 9, 256, 256>}, {pipeline_mode = #tpu.pipeline_mode<synchronous>, transform_indices = @transform_6, window_bounds = array<i64: 2, 256>}, {pipeline_mode = #tpu.pipeline_mode<synchronous>, transform_indices = @transform_7, window_bounds = array<i64: 9, 256, 256>}, {pipeline_mode = #tpu.pipeline_mode<synchronous>, transform_indices = @transform_8, window_bounds = array<i64: 2, 256>}, {pipeline_mode = #tpu.pipeline_mode<synchronous>, transform_indices = @transform_9, window_bounds = array<i64: 256, 128>}, {transform_indices = @transform_10, window_bounds = array<i64: 1, 64, 128>}]} {
    %cst = arith.constant 0.000000e+00 : f32
    %0 = vector.broadcast %cst : f32 to vector<10x10x48xf32>
    %c0 = arith.constant 0 : index
    %c0_0 = arith.constant 0 : index
    %c0_1 = arith.constant 0 : index
    %1 = vector.load %arg12[%c0, %c0_0, %c0_1] : memref<10x10x48xf32, #tpu.memory_space<vmem>>, vector<10x10x48xf32>
    tpu.vector_store %arg12[%c0, %c0_0, %c0_1], %0 {strides = array<i32>} : memref<10x10x48xf32, #tpu.memory_space<vmem>>, vector<10x10x48xf32>,
    %cst_2 = arith.constant 0.000000e+00 : f32
    %2 = vector.broadcast %cst_2 : f32 to vector<10x10x256xf32>
    %c0_3 = arith.constant 0 : index
    %c0_4 = arith.constant 0 : index
    %c0_5 = arith.constant 0 : index
    %3 = vector.load %arg13[%c0_3, %c0_4, %c0_5] : memref<10x10x256xf32, #tpu.memory_space<vmem>>, vector<10x10x256xf32>
    tpu.vector_store %arg13[%c0_3, %c0_4, %c0_5], %2 {strides = array<i32>} : memref<10x10x256xf32, #tpu.memory_space<vmem>>, vector<10x10x256xf32>,
    %cst_6 = arith.constant 0.000000e+00 : f32
    %4 = vector.broadcast %cst_6 : f32 to vector<10x10x256xf32>
    %c0_7 = arith.constant 0 : index
    %c0_8 = arith.constant 0 : index
    %c0_9 = arith.constant 0 : index
    %5 = vector.load %arg14[%c0_7, %c0_8, %c0_9] : memref<10x10x256xf32, #tpu.memory_space<vmem>>, vector<10x10x256xf32>
    tpu.vector_store %arg14[%c0_7, %c0_8, %c0_9], %4 {strides = array<i32>} : memref<10x10x256xf32, #tpu.memory_space<vmem>>, vector<10x10x256xf32>,
    %c0_10 = arith.constant 0 : index
    %c0_11 = arith.constant 0 : index
    %c0_12 = arith.constant 0 : index
    %6 = vector.load %arg1[%c0_10, %c0_11, %c0_12] : memref<1x64x256xbf16, #tpu.memory_space<vmem>>, vector<1x64x256xbf16>
    %7 = vector.shape_cast %6 : vector<1x64x256xbf16> to vector<64x256xbf16>
    %c0_13 = arith.constant 0 : index
    %c0_14 = arith.constant 0 : index
    %8 = vector.load %arg3[%c0_13, %c0_14] : memref<256x48xbf16, #tpu.memory_space<vmem>>, vector<256x48xbf16>
    %cst_15 = arith.constant dense<0.000000e+00> : vector<64x48xf32>
    %9 = tpu.matmul %7, %8, %cst_15 {dimension_numbers = #tpu.dot_dimension_numbers<[1], [0], [0], [1], [0, 0, 1, 1], [], []>} : vector<64x256xbf16>, vector<256x48xbf16>, vector<64x48xf32> -> vector<64x48xf32>
    %c0_16 = arith.constant 0 : index
    %c0_17 = arith.constant 0 : index
    %10 = vector.load %arg4[%c0_16, %c0_17] : memref<2x48xf32, #tpu.memory_space<vmem>>, vector<1x48xf32>
    %11 = vector.broadcast %10 : vector<1x48xf32> to vector<64x48xf32>
    %12 = arith.mulf %9, %11 : vector<64x48xf32>
    %c1 = arith.constant 1 : index
    %c0_18 = arith.constant 0 : index
    %13 = vector.load %arg4[%c1, %c0_18] : memref<2x48xf32, #tpu.memory_space<vmem>>, vector<1x48xf32>
    %14 = vector.broadcast %13 : vector<1x48xf32> to vector<64x48xf32>
    %15 = arith.addf %12, %14 : vector<64x48xf32>
    %cst_19 = arith.constant 0.000000e+00 : f32
    %16 = vector.broadcast %cst_19 : f32 to vector<64x48xf32>
    %17 = arith.maximumf %15, %16 : vector<64x48xf32>
    %18 = vector.shape_cast %17 : vector<64x48xf32> to vector<8x8x48xf32>
    %c1_20 = arith.constant 1 : index
    %c1_21 = arith.constant 1 : index
    %c0_22 = arith.constant 0 : index
    %19 = vector.load %arg12[%c1_20, %c1_21, %c0_22] : memref<10x10x48xf32, #tpu.memory_space<vmem>>, vector<8x8x48xf32>
    tpu.vector_store %arg12[%c1_20, %c1_21, %c0_22], %18 {strides = array<i32>} : memref<10x10x48xf32, #tpu.memory_space<vmem>>, vector<8x8x48xf32>,
    %c0_23 = arith.constant 0 : index
    %c0_24 = arith.constant 0 : index
    %c0_25 = arith.constant 0 : index
    %c0_26 = arith.constant 0 : index
    %20 = vector.load %arg2[%c0_23, %c0_24, %c0_25, %c0_26] : memref<1x4x4x256xf32, #tpu.memory_space<vmem>>, vector<1x4x4x256xf32>
    %21 = vector.shape_cast %20 : vector<1x4x4x256xf32> to vector<4x4x256xf32>
    %22 = vector.extract_strided_slice %21 {offsets = [0, 0, 0], sizes = [1, 4, 256], strides = [1, 1, 1]} : vector<4x4x256xf32> to vector<1x4x256xf32>
    %cst_27 = arith.constant 1.000000e+00 : f32
    %23 = vector.broadcast %cst_27 : f32 to vector<1x4x256xf32>
    %24 = arith.mulf %23, %22 : vector<1x4x256xf32>
    %25 = vector.extract_strided_slice %21 {offsets = [1, 0, 0], sizes = [1, 4, 256], strides = [1, 1, 1]} : vector<4x4x256xf32> to vector<1x4x256xf32>
    %cst_28 = arith.constant 0.000000e+00 : f32
    %26 = vector.broadcast %cst_28 : f32 to vector<1x4x256xf32>
    %27 = arith.mulf %26, %25 : vector<1x4x256xf32>
    %28 = arith.addf %24, %27 : vector<1x4x256xf32>
    %29 = vector.extract_strided_slice %21 {offsets = [0, 0, 0], sizes = [1, 4, 256], strides = [1, 1, 1]} : vector<4x4x256xf32> to vector<1x4x256xf32>
    %cst_29 = arith.constant 0.571428597 : f32
    %30 = vector.broadcast %cst_29 : f32 to vector<1x4x256xf32>
    %31 = arith.mulf %30, %29 : vector<1x4x256xf32>
    %32 = vector.extract_strided_slice %21 {offsets = [1, 0, 0], sizes = [1, 4, 256], strides = [1, 1, 1]} : vector<4x4x256xf32> to vector<1x4x256xf32>
    %cst_30 = arith.constant 0.428571433 : f32
    %33 = vector.broadcast %cst_30 : f32 to vector<1x4x256xf32>
    %34 = arith.mulf %33, %32 : vector<1x4x256xf32>
    %35 = arith.addf %31, %34 : vector<1x4x256xf32>
    %36 = vector.extract_strided_slice %21 {offsets = [0, 0, 0], sizes = [1, 4, 256], strides = [1, 1, 1]} : vector<4x4x256xf32> to vector<1x4x256xf32>
    %cst_31 = arith.constant 0.142857149 : f32
    %37 = vector.broadcast %cst_31 : f32 to vector<1x4x256xf32>
    %38 = arith.mulf %37, %36 : vector<1x4x256xf32>
    %39 = vector.extract_strided_slice %21 {offsets = [1, 0, 0], sizes = [1, 4, 256], strides = [1, 1, 1]} : vector<4x4x256xf32> to vector<1x4x256xf32>
    %cst_32 = arith.constant 0.857142865 : f32
    %40 = vector.broadcast %cst_32 : f32 to vector<1x4x256xf32>
    %41 = arith.mulf %40, %39 : vector<1x4x256xf32>
    %42 = arith.addf %38, %41 : vector<1x4x256xf32>
    %43 = vector.extract_strided_slice %21 {offsets = [1, 0, 0], sizes = [1, 4, 256], strides = [1, 1, 1]} : vector<4x4x256xf32> to vector<1x4x256xf32>
    %cst_33 = arith.constant 0.714285731 : f32
    %44 = vector.broadcast %cst_33 : f32 to vector<1x4x256xf32>
    %45 = arith.mulf %44, %43 : vector<1x4x256xf32>
    %46 = vector.extract_strided_slice %21 {offsets = [2, 0, 0], sizes = [1, 4, 256], strides = [1, 1, 1]} : vector<4x4x256xf32> to vector<1x4x256xf32>
    %cst_34 = arith.constant 0.285714298 : f32
    %47 = vector.broadcast %cst_34 : f32 to vector<1x4x256xf32>
    %48 = arith.mulf %47, %46 : vector<1x4x256xf32>
    %49 = arith.addf %45, %48 : vector<1x4x256xf32>
    %50 = vector.extract_strided_slice %21 {offsets = [1, 0, 0], sizes = [1, 4, 256], strides = [1, 1, 1]} : vector<4x4x256xf32> to vector<1x4x256xf32>
    %cst_35 = arith.constant 0.285714298 : f32
    %51 = vector.broadcast %cst_35 : f32 to vector<1x4x256xf32>
    %52 = arith.mulf %51, %50 : vector<1x4x256xf32>
    %53 = vector.extract_strided_slice %21 {offsets = [2, 0, 0], sizes = [1, 4, 256], strides = [1, 1, 1]} : vector<4x4x256xf32> to vector<1x4x256xf32>
    %cst_36 = arith.constant 0.714285731 : f32
    %54 = vector.broadcast %cst_36 : f32 to vector<1x4x256xf32>
    %55 = arith.mulf %54, %53 : vector<1x4x256xf32>
    %56 = arith.addf %52, %55 : vector<1x4x256xf32>
    %57 = vector.extract_strided_slice %21 {offsets = [2, 0, 0], sizes = [1, 4, 256], strides = [1, 1, 1]} : vector<4x4x256xf32> to vector<1x4x256xf32>
    %cst_37 = arith.constant 0.857142865 : f32
    %58 = vector.broadcast %cst_37 : f32 to vector<1x4x256xf32>
    %59 = arith.mulf %58, %57 : vector<1x4x256xf32>
    %60 = vector.extract_strided_slice %21 {offsets = [3, 0, 0], sizes = [1, 4, 256], strides = [1, 1, 1]} : vector<4x4x256xf32> to vector<1x4x256xf32>
    %cst_38 = arith.constant 0.142857149 : f32
    %61 = vector.broadcast %cst_38 : f32 to vector<1x4x256xf32>
    %62 = arith.mulf %61, %60 : vector<1x4x256xf32>
    %63 = arith.addf %59, %62 : vector<1x4x256xf32>
    %64 = vector.extract_strided_slice %21 {offsets = [2, 0, 0], sizes = [1, 4, 256], strides = [1, 1, 1]} : vector<4x4x256xf32> to vector<1x4x256xf32>
    %cst_39 = arith.constant 0.428571433 : f32
    %65 = vector.broadcast %cst_39 : f32 to vector<1x4x256xf32>
    %66 = arith.mulf %65, %64 : vector<1x4x256xf32>
    %67 = vector.extract_strided_slice %21 {offsets = [3, 0, 0], sizes = [1, 4, 256], strides = [1, 1, 1]} : vector<4x4x256xf32> to vector<1x4x256xf32>
    %cst_40 = arith.constant 0.571428597 : f32
    %68 = vector.broadcast %cst_40 : f32 to vector<1x4x256xf32>
    %69 = arith.mulf %68, %67 : vector<1x4x256xf32>
    %70 = arith.addf %66, %69 : vector<1x4x256xf32>
    %71 = vector.extract_strided_slice %21 {offsets = [3, 0, 0], sizes = [1, 4, 256], strides = [1, 1, 1]} : vector<4x4x256xf32> to vector<1x4x256xf32>
    %cst_41 = arith.constant 1.000000e+00 : f32
    %72 = vector.broadcast %cst_41 : f32 to vector<1x4x256xf32>
    %73 = arith.mulf %72, %71 : vector<1x4x256xf32>
    %74 = vector.extract_strided_slice %21 {offsets = [3, 0, 0], sizes = [1, 4, 256], strides = [1, 1, 1]} : vector<4x4x256xf32> to vector<1x4x256xf32>
    %cst_42 = arith.constant 0.000000e+00 : f32
    %75 = vector.broadcast %cst_42 : f32 to vector<1x4x256xf32>
    %76 = arith.mulf %75, %74 : vector<1x4x256xf32>
    %77 = arith.addf %73, %76 : vector<1x4x256xf32>
    %78 = tpu.concatenate %28, %35, %42, %49, %56, %63, %70, %77 in 0 : vector<1x4x256xf32>, vector<1x4x256xf32>, vector<1x4x256xf32>, vector<1x4x256xf32>, vector<1x4x256xf32>, vector<1x4x256xf32>, vector<1x4x256xf32>, vector<1x4x256xf32> -> vector<8x4x256xf32>
    %79 = vector.extract_strided_slice %78 {offsets = [0, 0, 0], sizes = [8, 1, 256], strides = [1, 1, 1]} : vector<8x4x256xf32> to vector<8x1x256xf32>
    %cst_43 = arith.constant 1.000000e+00 : f32
    %80 = vector.broadcast %cst_43 : f32 to vector<8x1x256xf32>
    %81 = arith.mulf %80, %79 : vector<8x1x256xf32>
    %82 = vector.extract_strided_slice %78 {offsets = [0, 1, 0], sizes = [8, 1, 256], strides = [1, 1, 1]} : vector<8x4x256xf32> to vector<8x1x256xf32>
    %cst_44 = arith.constant 0.000000e+00 : f32
    %83 = vector.broadcast %cst_44 : f32 to vector<8x1x256xf32>
    %84 = arith.mulf %83, %82 : vector<8x1x256xf32>
    %85 = arith.addf %81, %84 : vector<8x1x256xf32>
    %c1_45 = arith.constant 1 : index
    %c1_46 = arith.constant 1 : index
    %c0_47 = arith.constant 0 : index
    %86 = vector.load %arg13[%c1_45, %c1_46, %c0_47] : memref<10x10x256xf32, #tpu.memory_space<vmem>>, vector<8x1x256xf32>
    tpu.vector_store %arg13[%c1_45, %c1_46, %c0_47], %85 {strides = array<i32>} : memref<10x10x256xf32, #tpu.memory_space<vmem>>, vector<8x1x256xf32>,
    %87 = vector.extract_strided_slice %78 {offsets = [0, 0, 0], sizes = [8, 1, 256], strides = [1, 1, 1]} : vector<8x4x256xf32> to vector<8x1x256xf32>
    %cst_48 = arith.constant 0.571428597 : f32
    %88 = vector.broadcast %cst_48 : f32 to vector<8x1x256xf32>
    %89 = arith.mulf %88, %87 : vector<8x1x256xf32>
    %90 = vector.extract_strided_slice %78 {offsets = [0, 1, 0], sizes = [8, 1, 256], strides = [1, 1, 1]} : vector<8x4x256xf32> to vector<8x1x256xf32>
    %cst_49 = arith.constant 0.428571433 : f32
    %91 = vector.broadcast %cst_49 : f32 to vector<8x1x256xf32>
    %92 = arith.mulf %91, %90 : vector<8x1x256xf32>
    %93 = arith.addf %89, %92 : vector<8x1x256xf32>
    %c1_50 = arith.constant 1 : index
    %c2 = arith.constant 2 : index
    %c0_51 = arith.constant 0 : index
    %94 = vector.load %arg13[%c1_50, %c2, %c0_51] : memref<10x10x256xf32, #tpu.memory_space<vmem>>, vector<8x1x256xf32>
    tpu.vector_store %arg13[%c1_50, %c2, %c0_51], %93 {strides = array<i32>} : memref<10x10x256xf32, #tpu.memory_space<vmem>>, vector<8x1x256xf32>,
    %95 = vector.extract_strided_slice %78 {offsets = [0, 0, 0], sizes = [8, 1, 256], strides = [1, 1, 1]} : vector<8x4x256xf32> to vector<8x1x256xf32>
    %cst_52 = arith.constant 0.142857149 : f32
    %96 = vector.broadcast %cst_52 : f32 to vector<8x1x256xf32>
    %97 = arith.mulf %96, %95 : vector<8x1x256xf32>
    %98 = vector.extract_strided_slice %78 {offsets = [0, 1, 0], sizes = [8, 1, 256], strides = [1, 1, 1]} : vector<8x4x256xf32> to vector<8x1x256xf32>
    %cst_53 = arith.constant 0.857142865 : f32
    %99 = vector.broadcast %cst_53 : f32 to vector<8x1x256xf32>
    %100 = arith.mulf %99, %98 : vector<8x1x256xf32>
    %101 = arith.addf %97, %100 : vector<8x1x256xf32>
    %c1_54 = arith.constant 1 : index
    %c3 = arith.constant 3 : index
    %c0_55 = arith.constant 0 : index
    %102 = vector.load %arg13[%c1_54, %c3, %c0_55] : memref<10x10x256xf32, #tpu.memory_space<vmem>>, vector<8x1x256xf32>
    tpu.vector_store %arg13[%c1_54, %c3, %c0_55], %101 {strides = array<i32>} : memref<10x10x256xf32, #tpu.memory_space<vmem>>, vector<8x1x256xf32>,
    %103 = vector.extract_strided_slice %78 {offsets = [0, 1, 0], sizes = [8, 1, 256], strides = [1, 1, 1]} : vector<8x4x256xf32> to vector<8x1x256xf32>
    %cst_56 = arith.constant 0.714285731 : f32
    %104 = vector.broadcast %cst_56 : f32 to vector<8x1x256xf32>
    %105 = arith.mulf %104, %103 : vector<8x1x256xf32>
    %106 = vector.extract_strided_slice %78 {offsets = [0, 2, 0], sizes = [8, 1, 256], strides = [1, 1, 1]} : vector<8x4x256xf32> to vector<8x1x256xf32>
    %cst_57 = arith.constant 0.285714298 : f32
    %107 = vector.broadcast %cst_57 : f32 to vector<8x1x256xf32>
    %108 = arith.mulf %107, %106 : vector<8x1x256xf32>
    %109 = arith.addf %105, %108 : vector<8x1x256xf32>
    %c1_58 = arith.constant 1 : index
    %c4 = arith.constant 4 : index
    %c0_59 = arith.constant 0 : index
    %110 = vector.load %arg13[%c1_58, %c4, %c0_59] : memref<10x10x256xf32, #tpu.memory_space<vmem>>, vector<8x1x256xf32>
    tpu.vector_store %arg13[%c1_58, %c4, %c0_59], %109 {strides = array<i32>} : memref<10x10x256xf32, #tpu.memory_space<vmem>>, vector<8x1x256xf32>,
    %111 = vector.extract_strided_slice %78 {offsets = [0, 1, 0], sizes = [8, 1, 256], strides = [1, 1, 1]} : vector<8x4x256xf32> to vector<8x1x256xf32>
    %cst_60 = arith.constant 0.285714298 : f32
    %112 = vector.broadcast %cst_60 : f32 to vector<8x1x256xf32>
    %113 = arith.mulf %112, %111 : vector<8x1x256xf32>
    %114 = vector.extract_strided_slice %78 {offsets = [0, 2, 0], sizes = [8, 1, 256], strides = [1, 1, 1]} : vector<8x4x256xf32> to vector<8x1x256xf32>
    %cst_61 = arith.constant 0.714285731 : f32
    %115 = vector.broadcast %cst_61 : f32 to vector<8x1x256xf32>
    %116 = arith.mulf %115, %114 : vector<8x1x256xf32>
    %117 = arith.addf %113, %116 : vector<8x1x256xf32>
    %c1_62 = arith.constant 1 : index
    %c5 = arith.constant 5 : index
    %c0_63 = arith.constant 0 : index
    %118 = vector.load %arg13[%c1_62, %c5, %c0_63] : memref<10x10x256xf32, #tpu.memory_space<vmem>>, vector<8x1x256xf32>
    tpu.vector_store %arg13[%c1_62, %c5, %c0_63], %117 {strides = array<i32>} : memref<10x10x256xf32, #tpu.memory_space<vmem>>, vector<8x1x256xf32>,
    %119 = vector.extract_strided_slice %78 {offsets = [0, 2, 0], sizes = [8, 1, 256], strides = [1, 1, 1]} : vector<8x4x256xf32> to vector<8x1x256xf32>
    %cst_64 = arith.constant 0.857142865 : f32
    %120 = vector.broadcast %cst_64 : f32 to vector<8x1x256xf32>
    %121 = arith.mulf %120, %119 : vector<8x1x256xf32>
    %122 = vector.extract_strided_slice %78 {offsets = [0, 3, 0], sizes = [8, 1, 256], strides = [1, 1, 1]} : vector<8x4x256xf32> to vector<8x1x256xf32>
    %cst_65 = arith.constant 0.142857149 : f32
    %123 = vector.broadcast %cst_65 : f32 to vector<8x1x256xf32>
    %124 = arith.mulf %123, %122 : vector<8x1x256xf32>
    %125 = arith.addf %121, %124 : vector<8x1x256xf32>
    %c1_66 = arith.constant 1 : index
    %c6 = arith.constant 6 : index
    %c0_67 = arith.constant 0 : index
    %126 = vector.load %arg13[%c1_66, %c6, %c0_67] : memref<10x10x256xf32, #tpu.memory_space<vmem>>, vector<8x1x256xf32>
    tpu.vector_store %arg13[%c1_66, %c6, %c0_67], %125 {strides = array<i32>} : memref<10x10x256xf32, #tpu.memory_space<vmem>>, vector<8x1x256xf32>,
    %127 = vector.extract_strided_slice %78 {offsets = [0, 2, 0], sizes = [8, 1, 256], strides = [1, 1, 1]} : vector<8x4x256xf32> to vector<8x1x256xf32>
    %cst_68 = arith.constant 0.428571433 : f32
    %128 = vector.broadcast %cst_68 : f32 to vector<8x1x256xf32>
    %129 = arith.mulf %128, %127 : vector<8x1x256xf32>
    %130 = vector.extract_strided_slice %78 {offsets = [0, 3, 0], sizes = [8, 1, 256], strides = [1, 1, 1]} : vector<8x4x256xf32> to vector<8x1x256xf32>
    %cst_69 = arith.constant 0.571428597 : f32
    %131 = vector.broadcast %cst_69 : f32 to vector<8x1x256xf32>
    %132 = arith.mulf %131, %130 : vector<8x1x256xf32>
    %133 = arith.addf %129, %132 : vector<8x1x256xf32>
    %c1_70 = arith.constant 1 : index
    %c7 = arith.constant 7 : index
    %c0_71 = arith.constant 0 : index
    %134 = vector.load %arg13[%c1_70, %c7, %c0_71] : memref<10x10x256xf32, #tpu.memory_space<vmem>>, vector<8x1x256xf32>
    tpu.vector_store %arg13[%c1_70, %c7, %c0_71], %133 {strides = array<i32>} : memref<10x10x256xf32, #tpu.memory_space<vmem>>, vector<8x1x256xf32>,
    %135 = vector.extract_strided_slice %78 {offsets = [0, 3, 0], sizes = [8, 1, 256], strides = [1, 1, 1]} : vector<8x4x256xf32> to vector<8x1x256xf32>
    %cst_72 = arith.constant 1.000000e+00 : f32
    %136 = vector.broadcast %cst_72 : f32 to vector<8x1x256xf32>
    %137 = arith.mulf %136, %135 : vector<8x1x256xf32>
    %138 = vector.extract_strided_slice %78 {offsets = [0, 3, 0], sizes = [8, 1, 256], strides = [1, 1, 1]} : vector<8x4x256xf32> to vector<8x1x256xf32>
    %cst_73 = arith.constant 0.000000e+00 : f32
    %139 = vector.broadcast %cst_73 : f32 to vector<8x1x256xf32>
    %140 = arith.mulf %139, %138 : vector<8x1x256xf32>
    %141 = arith.addf %137, %140 : vector<8x1x256xf32>
    %c1_74 = arith.constant 1 : index
    %c8 = arith.constant 8 : index
    %c0_75 = arith.constant 0 : index
    %142 = vector.load %arg13[%c1_74, %c8, %c0_75] : memref<10x10x256xf32, #tpu.memory_space<vmem>>, vector<8x1x256xf32>
    tpu.vector_store %arg13[%c1_74, %c8, %c0_75], %141 {strides = array<i32>} : memref<10x10x256xf32, #tpu.memory_space<vmem>>, vector<8x1x256xf32>,
    %cst_76 = arith.constant 0.000000e+00 : f32
    %143 = vector.broadcast %cst_76 : f32 to vector<64x256xf32>
    %c0_77 = arith.constant 0 : index
    %c0_78 = arith.constant 0 : index
    %c0_79 = arith.constant 0 : index
    %144 = vector.load %arg12[%c0_77, %c0_78, %c0_79] : memref<10x10x48xf32, #tpu.memory_space<vmem>>, vector<8x8x48xf32>
    %145 = vector.shape_cast %144 : vector<8x8x48xf32> to vector<64x48xf32>
    %146 = arith.truncf %145 : vector<64x48xf32> to vector<64x48xbf16>
    %c0_80 = arith.constant 0 : index
    %c0_81 = arith.constant 0 : index
    %c0_82 = arith.constant 0 : index
    %147 = vector.load %arg13[%c0_80, %c0_81, %c0_82] : memref<10x10x256xf32, #tpu.memory_space<vmem>>, vector<8x8x256xf32>
    %148 = vector.shape_cast %147 : vector<8x8x256xf32> to vector<64x256xf32>
    %149 = arith.truncf %148 : vector<64x256xf32> to vector<64x256xbf16>
    %c0_83 = arith.constant 0 : index
    %c0_84 = arith.constant 0 : index
    %c0_85 = arith.constant 0 : index
    %150 = vector.load %arg5[%c0_83, %c0_84, %c0_85] : memref<9x48x256xbf16, #tpu.memory_space<vmem>>, vector<1x48x256xbf16>
    %151 = vector.shape_cast %150 : vector<1x48x256xbf16> to vector<48x256xbf16>
    %cst_86 = arith.constant dense<0.000000e+00> : vector<64x256xf32>
    %152 = tpu.matmul %146, %151, %cst_86 {dimension_numbers = #tpu.dot_dimension_numbers<[1], [0], [0], [1], [0, 0, 1, 1], [], []>} : vector<64x48xbf16>, vector<48x256xbf16>, vector<64x256xf32> -> vector<64x256xf32>
    %153 = arith.addf %143, %152 : vector<64x256xf32>
    %c0_87 = arith.constant 0 : index
    %c0_88 = arith.constant 0 : index
    %c0_89 = arith.constant 0 : index
    %154 = vector.load %arg6[%c0_87, %c0_88, %c0_89] : memref<9x256x256xbf16, #tpu.memory_space<vmem>>, vector<1x256x256xbf16>
    %155 = vector.shape_cast %154 : vector<1x256x256xbf16> to vector<256x256xbf16>
    %cst_90 = arith.constant dense<0.000000e+00> : vector<64x256xf32>
    %156 = tpu.matmul %149, %155, %cst_90 {dimension_numbers = #tpu.dot_dimension_numbers<[1], [0], [0], [1], [0, 0, 1, 1], [], []>} : vector<64x256xbf16>, vector<256x256xbf16>, vector<64x256xf32> -> vector<64x256xf32>
    %157 = arith.addf %153, %156 : vector<64x256xf32>
    %c0_91 = arith.constant 0 : index
    %c1_92 = arith.constant 1 : index
    %c0_93 = arith.constant 0 : index
    %158 = vector.load %arg12[%c0_91, %c1_92, %c0_93] : memref<10x10x48xf32, #tpu.memory_space<vmem>>, vector<8x8x48xf32>
    %159 = vector.shape_cast %158 : vector<8x8x48xf32> to vector<64x48xf32>
    %160 = arith.truncf %159 : vector<64x48xf32> to vector<64x48xbf16>
    %c0_94 = arith.constant 0 : index
    %c1_95 = arith.constant 1 : index
    %c0_96 = arith.constant 0 : index
    %161 = vector.load %arg13[%c0_94, %c1_95, %c0_96] : memref<10x10x256xf32, #tpu.memory_space<vmem>>, vector<8x8x256xf32>
    %162 = vector.shape_cast %161 : vector<8x8x256xf32> to vector<64x256xf32>
    %163 = arith.truncf %162 : vector<64x256xf32> to vector<64x256xbf16>
    %c1_97 = arith.constant 1 : index
    %c0_98 = arith.constant 0 : index
    %c0_99 = arith.constant 0 : index
    %164 = vector.load %arg5[%c1_97, %c0_98, %c0_99] : memref<9x48x256xbf16, #tpu.memory_space<vmem>>, vector<1x48x256xbf16>
    %165 = vector.shape_cast %164 : vector<1x48x256xbf16> to vector<48x256xbf16>
    %cst_100 = arith.constant dense<0.000000e+00> : vector<64x256xf32>
    %166 = tpu.matmul %160, %165, %cst_100 {dimension_numbers = #tpu.dot_dimension_numbers<[1], [0], [0], [1], [0, 0, 1, 1], [], []>} : vector<64x48xbf16>, vector<48x256xbf16>, vector<64x256xf32> -> vector<64x256xf32>
    %167 = arith.addf %157, %166 : vector<64x256xf32>
    %c1_101 = arith.constant 1 : index
    %c0_102 = arith.constant 0 : index
    %c0_103 = arith.constant 0 : index
    %168 = vector.load %arg6[%c1_101, %c0_102, %c0_103] : memref<9x256x256xbf16, #tpu.memory_space<vmem>>, vector<1x256x256xbf16>
    %169 = vector.shape_cast %168 : vector<1x256x256xbf16> to vector<256x256xbf16>
    %cst_104 = arith.constant dense<0.000000e+00> : vector<64x256xf32>
    %170 = tpu.matmul %163, %169, %cst_104 {dimension_numbers = #tpu.dot_dimension_numbers<[1], [0], [0], [1], [0, 0, 1, 1], [], []>} : vector<64x256xbf16>, vector<256x256xbf16>, vector<64x256xf32> -> vector<64x256xf32>
    %171 = arith.addf %167, %170 : vector<64x256xf32>
    %c0_105 = arith.constant 0 : index
    %c2_106 = arith.constant 2 : index
    %c0_107 = arith.constant 0 : index
    %172 = vector.load %arg12[%c0_105, %c2_106, %c0_107] : memref<10x10x48xf32, #tpu.memory_space<vmem>>, vector<8x8x48xf32>
    %173 = vector.shape_cast %172 : vector<8x8x48xf32> to vector<64x48xf32>
    %174 = arith.truncf %173 : vector<64x48xf32> to vector<64x48xbf16>
    %c0_108 = arith.constant 0 : index
    %c2_109 = arith.constant 2 : index
    %c0_110 = arith.constant 0 : index
    %175 = vector.load %arg13[%c0_108, %c2_109, %c0_110] : memref<10x10x256xf32, #tpu.memory_space<vmem>>, vector<8x8x256xf32>
    %176 = vector.shape_cast %175 : vector<8x8x256xf32> to vector<64x256xf32>
    %177 = arith.truncf %176 : vector<64x256xf32> to vector<64x256xbf16>
    %c2_111 = arith.constant 2 : index
    %c0_112 = arith.constant 0 : index
    %c0_113 = arith.constant 0 : index
    %178 = vector.load %arg5[%c2_111, %c0_112, %c0_113] : memref<9x48x256xbf16, #tpu.memory_space<vmem>>, vector<1x48x256xbf16>
    %179 = vector.shape_cast %178 : vector<1x48x256xbf16> to vector<48x256xbf16>
    %cst_114 = arith.constant dense<0.000000e+00> : vector<64x256xf32>
    %180 = tpu.matmul %174, %179, %cst_114 {dimension_numbers = #tpu.dot_dimension_numbers<[1], [0], [0], [1], [0, 0, 1, 1], [], []>} : vector<64x48xbf16>, vector<48x256xbf16>, vector<64x256xf32> -> vector<64x256xf32>
    %181 = arith.addf %171, %180 : vector<64x256xf32>
    %c2_115 = arith.constant 2 : index
    %c0_116 = arith.constant 0 : index
    %c0_117 = arith.constant 0 : index
    %182 = vector.load %arg6[%c2_115, %c0_116, %c0_117] : memref<9x256x256xbf16, #tpu.memory_space<vmem>>, vector<1x256x256xbf16>
    %183 = vector.shape_cast %182 : vector<1x256x256xbf16> to vector<256x256xbf16>
    %cst_118 = arith.constant dense<0.000000e+00> : vector<64x256xf32>
    %184 = tpu.matmul %177, %183, %cst_118 {dimension_numbers = #tpu.dot_dimension_numbers<[1], [0], [0], [1], [0, 0, 1, 1], [], []>} : vector<64x256xbf16>, vector<256x256xbf16>, vector<64x256xf32> -> vector<64x256xf32>
    %185 = arith.addf %181, %184 : vector<64x256xf32>
    %c1_119 = arith.constant 1 : index
    %c0_120 = arith.constant 0 : index
    %c0_121 = arith.constant 0 : index
    %186 = vector.load %arg12[%c1_119, %c0_120, %c0_121] : memref<10x10x48xf32, #tpu.memory_space<vmem>>, vector<8x8x48xf32>
    %187 = vector.shape_cast %186 : vector<8x8x48xf32> to vector<64x48xf32>
    %188 = arith.truncf %187 : vector<64x48xf32> to vector<64x48xbf16>
    %c1_122 = arith.constant 1 : index
    %c0_123 = arith.constant 0 : index
    %c0_124 = arith.constant 0 : index
    %189 = vector.load %arg13[%c1_122, %c0_123, %c0_124] : memref<10x10x256xf32, #tpu.memory_space<vmem>>, vector<8x8x256xf32>
    %190 = vector.shape_cast %189 : vector<8x8x256xf32> to vector<64x256xf32>
    %191 = arith.truncf %190 : vector<64x256xf32> to vector<64x256xbf16>
    %c3_125 = arith.constant 3 : index
    %c0_126 = arith.constant 0 : index
    %c0_127 = arith.constant 0 : index
    %192 = vector.load %arg5[%c3_125, %c0_126, %c0_127] : memref<9x48x256xbf16, #tpu.memory_space<vmem>>, vector<1x48x256xbf16>
    %193 = vector.shape_cast %192 : vector<1x48x256xbf16> to vector<48x256xbf16>
    %cst_128 = arith.constant dense<0.000000e+00> : vector<64x256xf32>
    %194 = tpu.matmul %188, %193, %cst_128 {dimension_numbers = #tpu.dot_dimension_numbers<[1], [0], [0], [1], [0, 0, 1, 1], [], []>} : vector<64x48xbf16>, vector<48x256xbf16>, vector<64x256xf32> -> vector<64x256xf32>
    %195 = arith.addf %185, %194 : vector<64x256xf32>
    %c3_129 = arith.constant 3 : index
    %c0_130 = arith.constant 0 : index
    %c0_131 = arith.constant 0 : index
    %196 = vector.load %arg6[%c3_129, %c0_130, %c0_131] : memref<9x256x256xbf16, #tpu.memory_space<vmem>>, vector<1x256x256xbf16>
    %197 = vector.shape_cast %196 : vector<1x256x256xbf16> to vector<256x256xbf16>
    %cst_132 = arith.constant dense<0.000000e+00> : vector<64x256xf32>
    %198 = tpu.matmul %191, %197, %cst_132 {dimension_numbers = #tpu.dot_dimension_numbers<[1], [0], [0], [1], [0, 0, 1, 1], [], []>} : vector<64x256xbf16>, vector<256x256xbf16>, vector<64x256xf32> -> vector<64x256xf32>
    %199 = arith.addf %195, %198 : vector<64x256xf32>
    %c1_133 = arith.constant 1 : index
    %c1_134 = arith.constant 1 : index
    %c0_135 = arith.constant 0 : index
    %200 = vector.load %arg12[%c1_133, %c1_134, %c0_135] : memref<10x10x48xf32, #tpu.memory_space<vmem>>, vector<8x8x48xf32>
    %201 = vector.shape_cast %200 : vector<8x8x48xf32> to vector<64x48xf32>
    %202 = arith.truncf %201 : vector<64x48xf32> to vector<64x48xbf16>
    %c1_136 = arith.constant 1 : index
    %c1_137 = arith.constant 1 : index
    %c0_138 = arith.constant 0 : index
    %203 = vector.load %arg13[%c1_136, %c1_137, %c0_138] : memref<10x10x256xf32, #tpu.memory_space<vmem>>, vector<8x8x256xf32>
    %204 = vector.shape_cast %203 : vector<8x8x256xf32> to vector<64x256xf32>
    %205 = arith.truncf %204 : vector<64x256xf32> to vector<64x256xbf16>
    %c4_139 = arith.constant 4 : index
    %c0_140 = arith.constant 0 : index
    %c0_141 = arith.constant 0 : index
    %206 = vector.load %arg5[%c4_139, %c0_140, %c0_141] : memref<9x48x256xbf16, #tpu.memory_space<vmem>>, vector<1x48x256xbf16>
    %207 = vector.shape_cast %206 : vector<1x48x256xbf16> to vector<48x256xbf16>
    %cst_142 = arith.constant dense<0.000000e+00> : vector<64x256xf32>
    %208 = tpu.matmul %202, %207, %cst_142 {dimension_numbers = #tpu.dot_dimension_numbers<[1], [0], [0], [1], [0, 0, 1, 1], [], []>} : vector<64x48xbf16>, vector<48x256xbf16>, vector<64x256xf32> -> vector<64x256xf32>
    %209 = arith.addf %199, %208 : vector<64x256xf32>
    %c4_143 = arith.constant 4 : index
    %c0_144 = arith.constant 0 : index
    %c0_145 = arith.constant 0 : index
    %210 = vector.load %arg6[%c4_143, %c0_144, %c0_145] : memref<9x256x256xbf16, #tpu.memory_space<vmem>>, vector<1x256x256xbf16>
    %211 = vector.shape_cast %210 : vector<1x256x256xbf16> to vector<256x256xbf16>
    %cst_146 = arith.constant dense<0.000000e+00> : vector<64x256xf32>
    %212 = tpu.matmul %205, %211, %cst_146 {dimension_numbers = #tpu.dot_dimension_numbers<[1], [0], [0], [1], [0, 0, 1, 1], [], []>} : vector<64x256xbf16>, vector<256x256xbf16>, vector<64x256xf32> -> vector<64x256xf32>
    %213 = arith.addf %209, %212 : vector<64x256xf32>
    %c1_147 = arith.constant 1 : index
    %c2_148 = arith.constant 2 : index
    %c0_149 = arith.constant 0 : index
    %214 = vector.load %arg12[%c1_147, %c2_148, %c0_149] : memref<10x10x48xf32, #tpu.memory_space<vmem>>, vector<8x8x48xf32>
    %215 = vector.shape_cast %214 : vector<8x8x48xf32> to vector<64x48xf32>
    %216 = arith.truncf %215 : vector<64x48xf32> to vector<64x48xbf16>
    %c1_150 = arith.constant 1 : index
    %c2_151 = arith.constant 2 : index
    %c0_152 = arith.constant 0 : index
    %217 = vector.load %arg13[%c1_150, %c2_151, %c0_152] : memref<10x10x256xf32, #tpu.memory_space<vmem>>, vector<8x8x256xf32>
    %218 = vector.shape_cast %217 : vector<8x8x256xf32> to vector<64x256xf32>
    %219 = arith.truncf %218 : vector<64x256xf32> to vector<64x256xbf16>
    %c5_153 = arith.constant 5 : index
    %c0_154 = arith.constant 0 : index
    %c0_155 = arith.constant 0 : index
    %220 = vector.load %arg5[%c5_153, %c0_154, %c0_155] : memref<9x48x256xbf16, #tpu.memory_space<vmem>>, vector<1x48x256xbf16>
    %221 = vector.shape_cast %220 : vector<1x48x256xbf16> to vector<48x256xbf16>
    %cst_156 = arith.constant dense<0.000000e+00> : vector<64x256xf32>
    %222 = tpu.matmul %216, %221, %cst_156 {dimension_numbers = #tpu.dot_dimension_numbers<[1], [0], [0], [1], [0, 0, 1, 1], [], []>} : vector<64x48xbf16>, vector<48x256xbf16>, vector<64x256xf32> -> vector<64x256xf32>
    %223 = arith.addf %213, %222 : vector<64x256xf32>
    %c5_157 = arith.constant 5 : index
    %c0_158 = arith.constant 0 : index
    %c0_159 = arith.constant 0 : index
    %224 = vector.load %arg6[%c5_157, %c0_158, %c0_159] : memref<9x256x256xbf16, #tpu.memory_space<vmem>>, vector<1x256x256xbf16>
    %225 = vector.shape_cast %224 : vector<1x256x256xbf16> to vector<256x256xbf16>
    %cst_160 = arith.constant dense<0.000000e+00> : vector<64x256xf32>
    %226 = tpu.matmul %219, %225, %cst_160 {dimension_numbers = #tpu.dot_dimension_numbers<[1], [0], [0], [1], [0, 0, 1, 1], [], []>} : vector<64x256xbf16>, vector<256x256xbf16>, vector<64x256xf32> -> vector<64x256xf32>
    %227 = arith.addf %223, %226 : vector<64x256xf32>
    %c2_161 = arith.constant 2 : index
    %c0_162 = arith.constant 0 : index
    %c0_163 = arith.constant 0 : index
    %228 = vector.load %arg12[%c2_161, %c0_162, %c0_163] : memref<10x10x48xf32, #tpu.memory_space<vmem>>, vector<8x8x48xf32>
    %229 = vector.shape_cast %228 : vector<8x8x48xf32> to vector<64x48xf32>
    %230 = arith.truncf %229 : vector<64x48xf32> to vector<64x48xbf16>
    %c2_164 = arith.constant 2 : index
    %c0_165 = arith.constant 0 : index
    %c0_166 = arith.constant 0 : index
    %231 = vector.load %arg13[%c2_164, %c0_165, %c0_166] : memref<10x10x256xf32, #tpu.memory_space<vmem>>, vector<8x8x256xf32>
    %232 = vector.shape_cast %231 : vector<8x8x256xf32> to vector<64x256xf32>
    %233 = arith.truncf %232 : vector<64x256xf32> to vector<64x256xbf16>
    %c6_167 = arith.constant 6 : index
    %c0_168 = arith.constant 0 : index
    %c0_169 = arith.constant 0 : index
    %234 = vector.load %arg5[%c6_167, %c0_168, %c0_169] : memref<9x48x256xbf16, #tpu.memory_space<vmem>>, vector<1x48x256xbf16>
    %235 = vector.shape_cast %234 : vector<1x48x256xbf16> to vector<48x256xbf16>
    %cst_170 = arith.constant dense<0.000000e+00> : vector<64x256xf32>
    %236 = tpu.matmul %230, %235, %cst_170 {dimension_numbers = #tpu.dot_dimension_numbers<[1], [0], [0], [1], [0, 0, 1, 1], [], []>} : vector<64x48xbf16>, vector<48x256xbf16>, vector<64x256xf32> -> vector<64x256xf32>
    %237 = arith.addf %227, %236 : vector<64x256xf32>
    %c6_171 = arith.constant 6 : index
    %c0_172 = arith.constant 0 : index
    %c0_173 = arith.constant 0 : index
    %238 = vector.load %arg6[%c6_171, %c0_172, %c0_173] : memref<9x256x256xbf16, #tpu.memory_space<vmem>>, vector<1x256x256xbf16>
    %239 = vector.shape_cast %238 : vector<1x256x256xbf16> to vector<256x256xbf16>
    %cst_174 = arith.constant dense<0.000000e+00> : vector<64x256xf32>
    %240 = tpu.matmul %233, %239, %cst_174 {dimension_numbers = #tpu.dot_dimension_numbers<[1], [0], [0], [1], [0, 0, 1, 1], [], []>} : vector<64x256xbf16>, vector<256x256xbf16>, vector<64x256xf32> -> vector<64x256xf32>
    %241 = arith.addf %237, %240 : vector<64x256xf32>
    %c2_175 = arith.constant 2 : index
    %c1_176 = arith.constant 1 : index
    %c0_177 = arith.constant 0 : index
    %242 = vector.load %arg12[%c2_175, %c1_176, %c0_177] : memref<10x10x48xf32, #tpu.memory_space<vmem>>, vector<8x8x48xf32>
    %243 = vector.shape_cast %242 : vector<8x8x48xf32> to vector<64x48xf32>
    %244 = arith.truncf %243 : vector<64x48xf32> to vector<64x48xbf16>
    %c2_178 = arith.constant 2 : index
    %c1_179 = arith.constant 1 : index
    %c0_180 = arith.constant 0 : index
    %245 = vector.load %arg13[%c2_178, %c1_179, %c0_180] : memref<10x10x256xf32, #tpu.memory_space<vmem>>, vector<8x8x256xf32>
    %246 = vector.shape_cast %245 : vector<8x8x256xf32> to vector<64x256xf32>
    %247 = arith.truncf %246 : vector<64x256xf32> to vector<64x256xbf16>
    %c7_181 = arith.constant 7 : index
    %c0_182 = arith.constant 0 : index
    %c0_183 = arith.constant 0 : index
    %248 = vector.load %arg5[%c7_181, %c0_182, %c0_183] : memref<9x48x256xbf16, #tpu.memory_space<vmem>>, vector<1x48x256xbf16>
    %249 = vector.shape_cast %248 : vector<1x48x256xbf16> to vector<48x256xbf16>
    %cst_184 = arith.constant dense<0.000000e+00> : vector<64x256xf32>
    %250 = tpu.matmul %244, %249, %cst_184 {dimension_numbers = #tpu.dot_dimension_numbers<[1], [0], [0], [1], [0, 0, 1, 1], [], []>} : vector<64x48xbf16>, vector<48x256xbf16>, vector<64x256xf32> -> vector<64x256xf32>
    %251 = arith.addf %241, %250 : vector<64x256xf32>
    %c7_185 = arith.constant 7 : index
    %c0_186 = arith.constant 0 : index
    %c0_187 = arith.constant 0 : index
    %252 = vector.load %arg6[%c7_185, %c0_186, %c0_187] : memref<9x256x256xbf16, #tpu.memory_space<vmem>>, vector<1x256x256xbf16>
    %253 = vector.shape_cast %252 : vector<1x256x256xbf16> to vector<256x256xbf16>
    %cst_188 = arith.constant dense<0.000000e+00> : vector<64x256xf32>
    %254 = tpu.matmul %247, %253, %cst_188 {dimension_numbers = #tpu.dot_dimension_numbers<[1], [0], [0], [1], [0, 0, 1, 1], [], []>} : vector<64x256xbf16>, vector<256x256xbf16>, vector<64x256xf32> -> vector<64x256xf32>
    %255 = arith.addf %251, %254 : vector<64x256xf32>
    %c2_189 = arith.constant 2 : index
    %c2_190 = arith.constant 2 : index
    %c0_191 = arith.constant 0 : index
    %256 = vector.load %arg12[%c2_189, %c2_190, %c0_191] : memref<10x10x48xf32, #tpu.memory_space<vmem>>, vector<8x8x48xf32>
    %257 = vector.shape_cast %256 : vector<8x8x48xf32> to vector<64x48xf32>
    %258 = arith.truncf %257 : vector<64x48xf32> to vector<64x48xbf16>
    %c2_192 = arith.constant 2 : index
    %c2_193 = arith.constant 2 : index
    %c0_194 = arith.constant 0 : index
    %259 = vector.load %arg13[%c2_192, %c2_193, %c0_194] : memref<10x10x256xf32, #tpu.memory_space<vmem>>, vector<8x8x256xf32>
    %260 = vector.shape_cast %259 : vector<8x8x256xf32> to vector<64x256xf32>
    %261 = arith.truncf %260 : vector<64x256xf32> to vector<64x256xbf16>
    %c8_195 = arith.constant 8 : index
    %c0_196 = arith.constant 0 : index
    %c0_197 = arith.constant 0 : index
    %262 = vector.load %arg5[%c8_195, %c0_196, %c0_197] : memref<9x48x256xbf16, #tpu.memory_space<vmem>>, vector<1x48x256xbf16>
    %263 = vector.shape_cast %262 : vector<1x48x256xbf16> to vector<48x256xbf16>
    %cst_198 = arith.constant dense<0.000000e+00> : vector<64x256xf32>
    %264 = tpu.matmul %258, %263, %cst_198 {dimension_numbers = #tpu.dot_dimension_numbers<[1], [0], [0], [1], [0, 0, 1, 1], [], []>} : vector<64x48xbf16>, vector<48x256xbf16>, vector<64x256xf32> -> vector<64x256xf32>
    %265 = arith.addf %255, %264 : vector<64x256xf32>
    %c8_199 = arith.constant 8 : index
    %c0_200 = arith.constant 0 : index
    %c0_201 = arith.constant 0 : index
    %266 = vector.load %arg6[%c8_199, %c0_200, %c0_201] : memref<9x256x256xbf16, #tpu.memory_space<vmem>>, vector<1x256x256xbf16>
    %267 = vector.shape_cast %266 : vector<1x256x256xbf16> to vector<256x256xbf16>
    %cst_202 = arith.constant dense<0.000000e+00> : vector<64x256xf32>
    %268 = tpu.matmul %261, %267, %cst_202 {dimension_numbers = #tpu.dot_dimension_numbers<[1], [0], [0], [1], [0, 0, 1, 1], [], []>} : vector<64x256xbf16>, vector<256x256xbf16>, vector<64x256xf32> -> vector<64x256xf32>
    %269 = arith.addf %265, %268 : vector<64x256xf32>
    %c0_203 = arith.constant 0 : index
    %c0_204 = arith.constant 0 : index
    %270 = vector.load %arg7[%c0_203, %c0_204] : memref<2x256xf32, #tpu.memory_space<vmem>>, vector<1x256xf32>
    %271 = vector.broadcast %270 : vector<1x256xf32> to vector<64x256xf32>
    %272 = arith.mulf %269, %271 : vector<64x256xf32>
    %c1_205 = arith.constant 1 : index
    %c0_206 = arith.constant 0 : index
    %273 = vector.load %arg7[%c1_205, %c0_206] : memref<2x256xf32, #tpu.memory_space<vmem>>, vector<1x256xf32>
    %274 = vector.broadcast %273 : vector<1x256xf32> to vector<64x256xf32>
    %275 = arith.addf %272, %274 : vector<64x256xf32>
    %cst_207 = arith.constant 0.000000e+00 : f32
    %276 = vector.broadcast %cst_207 : f32 to vector<64x256xf32>
    %277 = arith.maximumf %275, %276 : vector<64x256xf32>
    %278 = vector.shape_cast %277 : vector<64x256xf32> to vector<8x8x256xf32>
    %c1_208 = arith.constant 1 : index
    %c1_209 = arith.constant 1 : index
    %c0_210 = arith.constant 0 : index
    %279 = vector.load %arg14[%c1_208, %c1_209, %c0_210] : memref<10x10x256xf32, #tpu.memory_space<vmem>>, vector<8x8x256xf32>
    tpu.vector_store %arg14[%c1_208, %c1_209, %c0_210], %278 {strides = array<i32>} : memref<10x10x256xf32, #tpu.memory_space<vmem>>, vector<8x8x256xf32>,
    %cst_211 = arith.constant 0.000000e+00 : f32
    %280 = vector.broadcast %cst_211 : f32 to vector<64x256xf32>
    %c0_212 = arith.constant 0 : index
    %c0_213 = arith.constant 0 : index
    %c0_214 = arith.constant 0 : index
    %281 = vector.load %arg14[%c0_212, %c0_213, %c0_214] : memref<10x10x256xf32, #tpu.memory_space<vmem>>, vector<8x8x256xf32>
    %282 = vector.shape_cast %281 : vector<8x8x256xf32> to vector<64x256xf32>
    %283 = arith.truncf %282 : vector<64x256xf32> to vector<64x256xbf16>
    %c0_215 = arith.constant 0 : index
    %c0_216 = arith.constant 0 : index
    %c0_217 = arith.constant 0 : index
    %284 = vector.load %arg8[%c0_215, %c0_216, %c0_217] : memref<9x256x256xbf16, #tpu.memory_space<vmem>>, vector<1x256x256xbf16>
    %285 = vector.shape_cast %284 : vector<1x256x256xbf16> to vector<256x256xbf16>
    %cst_218 = arith.constant dense<0.000000e+00> : vector<64x256xf32>
    %286 = tpu.matmul %283, %285, %cst_218 {dimension_numbers = #tpu.dot_dimension_numbers<[1], [0], [0], [1], [0, 0, 1, 1], [], []>} : vector<64x256xbf16>, vector<256x256xbf16>, vector<64x256xf32> -> vector<64x256xf32>
    %287 = arith.addf %280, %286 : vector<64x256xf32>
    %c0_219 = arith.constant 0 : index
    %c1_220 = arith.constant 1 : index
    %c0_221 = arith.constant 0 : index
    %288 = vector.load %arg14[%c0_219, %c1_220, %c0_221] : memref<10x10x256xf32, #tpu.memory_space<vmem>>, vector<8x8x256xf32>
    %289 = vector.shape_cast %288 : vector<8x8x256xf32> to vector<64x256xf32>
    %290 = arith.truncf %289 : vector<64x256xf32> to vector<64x256xbf16>
    %c1_222 = arith.constant 1 : index
    %c0_223 = arith.constant 0 : index
    %c0_224 = arith.constant 0 : index
    %291 = vector.load %arg8[%c1_222, %c0_223, %c0_224] : memref<9x256x256xbf16, #tpu.memory_space<vmem>>, vector<1x256x256xbf16>
    %292 = vector.shape_cast %291 : vector<1x256x256xbf16> to vector<256x256xbf16>
    %cst_225 = arith.constant dense<0.000000e+00> : vector<64x256xf32>
    %293 = tpu.matmul %290, %292, %cst_225 {dimension_numbers = #tpu.dot_dimension_numbers<[1], [0], [0], [1], [0, 0, 1, 1], [], []>} : vector<64x256xbf16>, vector<256x256xbf16>, vector<64x256xf32> -> vector<64x256xf32>
    %294 = arith.addf %287, %293 : vector<64x256xf32>
    %c0_226 = arith.constant 0 : index
    %c2_227 = arith.constant 2 : index
    %c0_228 = arith.constant 0 : index
    %295 = vector.load %arg14[%c0_226, %c2_227, %c0_228] : memref<10x10x256xf32, #tpu.memory_space<vmem>>, vector<8x8x256xf32>
    %296 = vector.shape_cast %295 : vector<8x8x256xf32> to vector<64x256xf32>
    %297 = arith.truncf %296 : vector<64x256xf32> to vector<64x256xbf16>
    %c2_229 = arith.constant 2 : index
    %c0_230 = arith.constant 0 : index
    %c0_231 = arith.constant 0 : index
    %298 = vector.load %arg8[%c2_229, %c0_230, %c0_231] : memref<9x256x256xbf16, #tpu.memory_space<vmem>>, vector<1x256x256xbf16>
    %299 = vector.shape_cast %298 : vector<1x256x256xbf16> to vector<256x256xbf16>
    %cst_232 = arith.constant dense<0.000000e+00> : vector<64x256xf32>
    %300 = tpu.matmul %297, %299, %cst_232 {dimension_numbers = #tpu.dot_dimension_numbers<[1], [0], [0], [1], [0, 0, 1, 1], [], []>} : vector<64x256xbf16>, vector<256x256xbf16>, vector<64x256xf32> -> vector<64x256xf32>
    %301 = arith.addf %294, %300 : vector<64x256xf32>
    %c1_233 = arith.constant 1 : index
    %c0_234 = arith.constant 0 : index
    %c0_235 = arith.constant 0 : index
    %302 = vector.load %arg14[%c1_233, %c0_234, %c0_235] : memref<10x10x256xf32, #tpu.memory_space<vmem>>, vector<8x8x256xf32>
    %303 = vector.shape_cast %302 : vector<8x8x256xf32> to vector<64x256xf32>
    %304 = arith.truncf %303 : vector<64x256xf32> to vector<64x256xbf16>
    %c3_236 = arith.constant 3 : index
    %c0_237 = arith.constant 0 : index
    %c0_238 = arith.constant 0 : index
    %305 = vector.load %arg8[%c3_236, %c0_237, %c0_238] : memref<9x256x256xbf16, #tpu.memory_space<vmem>>, vector<1x256x256xbf16>
    %306 = vector.shape_cast %305 : vector<1x256x256xbf16> to vector<256x256xbf16>
    %cst_239 = arith.constant dense<0.000000e+00> : vector<64x256xf32>
    %307 = tpu.matmul %304, %306, %cst_239 {dimension_numbers = #tpu.dot_dimension_numbers<[1], [0], [0], [1], [0, 0, 1, 1], [], []>} : vector<64x256xbf16>, vector<256x256xbf16>, vector<64x256xf32> -> vector<64x256xf32>
    %308 = arith.addf %301, %307 : vector<64x256xf32>
    %c1_240 = arith.constant 1 : index
    %c1_241 = arith.constant 1 : index
    %c0_242 = arith.constant 0 : index
    %309 = vector.load %arg14[%c1_240, %c1_241, %c0_242] : memref<10x10x256xf32, #tpu.memory_space<vmem>>, vector<8x8x256xf32>
    %310 = vector.shape_cast %309 : vector<8x8x256xf32> to vector<64x256xf32>
    %311 = arith.truncf %310 : vector<64x256xf32> to vector<64x256xbf16>
    %c4_243 = arith.constant 4 : index
    %c0_244 = arith.constant 0 : index
    %c0_245 = arith.constant 0 : index
    %312 = vector.load %arg8[%c4_243, %c0_244, %c0_245] : memref<9x256x256xbf16, #tpu.memory_space<vmem>>, vector<1x256x256xbf16>
    %313 = vector.shape_cast %312 : vector<1x256x256xbf16> to vector<256x256xbf16>
    %cst_246 = arith.constant dense<0.000000e+00> : vector<64x256xf32>
    %314 = tpu.matmul %311, %313, %cst_246 {dimension_numbers = #tpu.dot_dimension_numbers<[1], [0], [0], [1], [0, 0, 1, 1], [], []>} : vector<64x256xbf16>, vector<256x256xbf16>, vector<64x256xf32> -> vector<64x256xf32>
    %315 = arith.addf %308, %314 : vector<64x256xf32>
    %c1_247 = arith.constant 1 : index
    %c2_248 = arith.constant 2 : index
    %c0_249 = arith.constant 0 : index
    %316 = vector.load %arg14[%c1_247, %c2_248, %c0_249] : memref<10x10x256xf32, #tpu.memory_space<vmem>>, vector<8x8x256xf32>
    %317 = vector.shape_cast %316 : vector<8x8x256xf32> to vector<64x256xf32>
    %318 = arith.truncf %317 : vector<64x256xf32> to vector<64x256xbf16>
    %c5_250 = arith.constant 5 : index
    %c0_251 = arith.constant 0 : index
    %c0_252 = arith.constant 0 : index
    %319 = vector.load %arg8[%c5_250, %c0_251, %c0_252] : memref<9x256x256xbf16, #tpu.memory_space<vmem>>, vector<1x256x256xbf16>
    %320 = vector.shape_cast %319 : vector<1x256x256xbf16> to vector<256x256xbf16>
    %cst_253 = arith.constant dense<0.000000e+00> : vector<64x256xf32>
    %321 = tpu.matmul %318, %320, %cst_253 {dimension_numbers = #tpu.dot_dimension_numbers<[1], [0], [0], [1], [0, 0, 1, 1], [], []>} : vector<64x256xbf16>, vector<256x256xbf16>, vector<64x256xf32> -> vector<64x256xf32>
    %322 = arith.addf %315, %321 : vector<64x256xf32>
    %c2_254 = arith.constant 2 : index
    %c0_255 = arith.constant 0 : index
    %c0_256 = arith.constant 0 : index
    %323 = vector.load %arg14[%c2_254, %c0_255, %c0_256] : memref<10x10x256xf32, #tpu.memory_space<vmem>>, vector<8x8x256xf32>
    %324 = vector.shape_cast %323 : vector<8x8x256xf32> to vector<64x256xf32>
    %325 = arith.truncf %324 : vector<64x256xf32> to vector<64x256xbf16>
    %c6_257 = arith.constant 6 : index
    %c0_258 = arith.constant 0 : index
    %c0_259 = arith.constant 0 : index
    %326 = vector.load %arg8[%c6_257, %c0_258, %c0_259] : memref<9x256x256xbf16, #tpu.memory_space<vmem>>, vector<1x256x256xbf16>
    %327 = vector.shape_cast %326 : vector<1x256x256xbf16> to vector<256x256xbf16>
    %cst_260 = arith.constant dense<0.000000e+00> : vector<64x256xf32>
    %328 = tpu.matmul %325, %327, %cst_260 {dimension_numbers = #tpu.dot_dimension_numbers<[1], [0], [0], [1], [0, 0, 1, 1], [], []>} : vector<64x256xbf16>, vector<256x256xbf16>, vector<64x256xf32> -> vector<64x256xf32>
    %329 = arith.addf %322, %328 : vector<64x256xf32>
    %c2_261 = arith.constant 2 : index
    %c1_262 = arith.constant 1 : index
    %c0_263 = arith.constant 0 : index
    %330 = vector.load %arg14[%c2_261, %c1_262, %c0_263] : memref<10x10x256xf32, #tpu.memory_space<vmem>>, vector<8x8x256xf32>
    %331 = vector.shape_cast %330 : vector<8x8x256xf32> to vector<64x256xf32>
    %332 = arith.truncf %331 : vector<64x256xf32> to vector<64x256xbf16>
    %c7_264 = arith.constant 7 : index
    %c0_265 = arith.constant 0 : index
    %c0_266 = arith.constant 0 : index
    %333 = vector.load %arg8[%c7_264, %c0_265, %c0_266] : memref<9x256x256xbf16, #tpu.memory_space<vmem>>, vector<1x256x256xbf16>
    %334 = vector.shape_cast %333 : vector<1x256x256xbf16> to vector<256x256xbf16>
    %cst_267 = arith.constant dense<0.000000e+00> : vector<64x256xf32>
    %335 = tpu.matmul %332, %334, %cst_267 {dimension_numbers = #tpu.dot_dimension_numbers<[1], [0], [0], [1], [0, 0, 1, 1], [], []>} : vector<64x256xbf16>, vector<256x256xbf16>, vector<64x256xf32> -> vector<64x256xf32>
    %336 = arith.addf %329, %335 : vector<64x256xf32>
    %c2_268 = arith.constant 2 : index
    %c2_269 = arith.constant 2 : index
    %c0_270 = arith.constant 0 : index
    %337 = vector.load %arg14[%c2_268, %c2_269, %c0_270] : memref<10x10x256xf32, #tpu.memory_space<vmem>>, vector<8x8x256xf32>
    %338 = vector.shape_cast %337 : vector<8x8x256xf32> to vector<64x256xf32>
    %339 = arith.truncf %338 : vector<64x256xf32> to vector<64x256xbf16>
    %c8_271 = arith.constant 8 : index
    %c0_272 = arith.constant 0 : index
    %c0_273 = arith.constant 0 : index
    %340 = vector.load %arg8[%c8_271, %c0_272, %c0_273] : memref<9x256x256xbf16, #tpu.memory_space<vmem>>, vector<1x256x256xbf16>
    %341 = vector.shape_cast %340 : vector<1x256x256xbf16> to vector<256x256xbf16>
    %cst_274 = arith.constant dense<0.000000e+00> : vector<64x256xf32>
    %342 = tpu.matmul %339, %341, %cst_274 {dimension_numbers = #tpu.dot_dimension_numbers<[1], [0], [0], [1], [0, 0, 1, 1], [], []>} : vector<64x256xbf16>, vector<256x256xbf16>, vector<64x256xf32> -> vector<64x256xf32>
    %343 = arith.addf %336, %342 : vector<64x256xf32>
    %c0_275 = arith.constant 0 : index
    %c0_276 = arith.constant 0 : index
    %344 = vector.load %arg9[%c0_275, %c0_276] : memref<2x256xf32, #tpu.memory_space<vmem>>, vector<1x256xf32>
    %345 = vector.broadcast %344 : vector<1x256xf32> to vector<64x256xf32>
    %346 = arith.mulf %343, %345 : vector<64x256xf32>
    %c1_277 = arith.constant 1 : index
    %c0_278 = arith.constant 0 : index
    %347 = vector.load %arg9[%c1_277, %c0_278] : memref<2x256xf32, #tpu.memory_space<vmem>>, vector<1x256xf32>
    %348 = vector.broadcast %347 : vector<1x256xf32> to vector<64x256xf32>
    %349 = arith.addf %346, %348 : vector<64x256xf32>
    %cst_279 = arith.constant 0.000000e+00 : f32
    %350 = vector.broadcast %cst_279 : f32 to vector<64x256xf32>
    %351 = arith.maximumf %349, %350 : vector<64x256xf32>
    %352 = arith.truncf %351 : vector<64x256xf32> to vector<64x256xbf16>
    %c0_280 = arith.constant 0 : index
    %c0_281 = arith.constant 0 : index
    %353 = vector.load %arg10[%c0_280, %c0_281] : memref<256x128xbf16, #tpu.memory_space<vmem>>, vector<256x128xbf16>
    %cst_282 = arith.constant dense<0.000000e+00> : vector<64x128xf32>
    %354 = tpu.matmul %352, %353, %cst_282 {dimension_numbers = #tpu.dot_dimension_numbers<[1], [0], [0], [1], [0, 0, 1, 1], [], []>} : vector<64x256xbf16>, vector<256x128xbf16>, vector<64x128xf32> -> vector<64x128xf32>
    %355 = vector.shape_cast %354 : vector<64x128xf32> to vector<1x64x128xf32>
    %c0_283 = arith.constant 0 : index
    %c0_284 = arith.constant 0 : index
    %c0_285 = arith.constant 0 : index
    %356 = vector.load %arg11[%c0_283, %c0_284, %c0_285] : memref<1x64x128xf32, #tpu.memory_space<vmem>>, vector<1x64x128xf32>
    tpu.vector_store %arg11[%c0_283, %c0_284, %c0_285], %355 {strides = array<i32>} : memref<1x64x128xf32, #tpu.memory_space<vmem>>, vector<1x64x128xf32>,
    return
  }
  func.func @transform_0(%arg0: i32) -> (i32, i32, i32) {
    %c0_i32 = arith.constant 0 : i32
    %c0_i32_0 = arith.constant 0 : i32
    %c0_i32_1 = arith.constant 0 : i32
    return %arg0, %c0_i32, %c0_i32_0 : i32, i32, i32
  }
  func.func @transform_1(%arg0: i32) -> (i32, i32, i32, i32) {
    %c0_i32 = arith.constant 0 : i32
    %c0_i32_0 = arith.constant 0 : i32
    %c0_i32_1 = arith.constant 0 : i32
    %c0_i32_2 = arith.constant 0 : i32
    return %arg0, %c0_i32, %c0_i32_0, %c0_i32_1 : i32, i32, i32, i32
  }
  func.func @transform_2(%arg0: i32) -> (i32, i32) {
    %c0_i32 = arith.constant 0 : i32
    %c0_i32_0 = arith.constant 0 : i32
    %c0_i32_1 = arith.constant 0 : i32
    return %c0_i32, %c0_i32_0 : i32, i32
  }
  func.func @transform_3(%arg0: i32) -> (i32, i32) {
    %c0_i32 = arith.constant 0 : i32
    %c0_i32_0 = arith.constant 0 : i32
    %c0_i32_1 = arith.constant 0 : i32
    return %c0_i32, %c0_i32_0 : i32, i32
  }
  func.func @transform_4(%arg0: i32) -> (i32, i32, i32) {
    %c0_i32 = arith.constant 0 : i32
    %c0_i32_0 = arith.constant 0 : i32
    %c0_i32_1 = arith.constant 0 : i32
    %c0_i32_2 = arith.constant 0 : i32
    return %c0_i32, %c0_i32_0, %c0_i32_1 : i32, i32, i32
  }
  func.func @transform_5(%arg0: i32) -> (i32, i32, i32) {
    %c0_i32 = arith.constant 0 : i32
    %c0_i32_0 = arith.constant 0 : i32
    %c0_i32_1 = arith.constant 0 : i32
    %c0_i32_2 = arith.constant 0 : i32
    return %c0_i32, %c0_i32_0, %c0_i32_1 : i32, i32, i32
  }
  func.func @transform_6(%arg0: i32) -> (i32, i32) {
    %c0_i32 = arith.constant 0 : i32
    %c0_i32_0 = arith.constant 0 : i32
    %c0_i32_1 = arith.constant 0 : i32
    return %c0_i32, %c0_i32_0 : i32, i32
  }
  func.func @transform_7(%arg0: i32) -> (i32, i32, i32) {
    %c0_i32 = arith.constant 0 : i32
    %c0_i32_0 = arith.constant 0 : i32
    %c0_i32_1 = arith.constant 0 : i32
    %c0_i32_2 = arith.constant 0 : i32
    return %c0_i32, %c0_i32_0, %c0_i32_1 : i32, i32, i32
  }
  func.func @transform_8(%arg0: i32) -> (i32, i32) {
    %c0_i32 = arith.constant 0 : i32
    %c0_i32_0 = arith.constant 0 : i32
    %c0_i32_1 = arith.constant 0 : i32
    return %c0_i32, %c0_i32_0 : i32, i32
  }
  func.func @transform_9(%arg0: i32) -> (i32, i32) {
    %c0_i32 = arith.constant 0 : i32
    %c0_i32_0 = arith.constant 0 : i32
    %c0_i32_1 = arith.constant 0 : i32
    return %c0_i32, %c0_i32_0 : i32, i32
  }
  func.func @transform_10(%arg0: i32) -> (i32, i32, i32) {
    %c0_i32 = arith.constant 0 : i32
    %c0_i32_0 = arith.constant 0 : i32
    %c0_i32_1 = arith.constant 0 : i32
    return %arg0, %c0_i32, %c0_i32_0 : i32, i32, i32
  }
}

</mosaic_0001>

<bundles_post_ra>
// kernel: decoder_forward.1
= control target key start
LH: loop header
LB: loop body
LE: loop exit
PB: predicated region body
PF: predicated region fallthrough
CT: control target
= control target key end

     0   :  { %s14008_s13 = smov 0   ;;  %s17178_s0 = inlined_call_operand.vmem [shape: bf16[2,64,256], index: 0, kind: input, shape index: {}]   ;;  %s17179_s1 = inlined_call_operand.vmem [shape: f32[2,4,4,256], index: 1, kind: input, shape index: {}]   ;;  %s17180_s2 = inlined_call_operand.vmem [shape: bf16[256,48], index: 2, kind: input, shape index: {}]   ;;  %s17181_s3 = inlined_call_operand.vmem [shape: f32[2,48], index: 3, kind: input, shape index: {}]   ;;  %s17182_s4 = inlined_call_operand.vmem [shape: bf16[9,48,256], index: 4, kind: input, shape index: {}]   ;;  %s17183_s5 = inlined_call_operand.vmem [shape: bf16[9,256,256], index: 5, kind: input, shape index: {}]   ;;  %s17184_s6 = inlined_call_operand.vmem [shape: f32[2,256], index: 6, kind: input, shape index: {}]   ;;  %s17185_s7 = inlined_call_operand.vmem [shape: bf16[9,256,256], index: 7, kind: input, shape index: {}]   ;;  %s17186_s8 = inlined_call_operand.vmem [shape: f32[2,256], index: 8, kind: input, shape index: {}]   ;;  %s17187_s9 = inlined_call_operand.vmem [shape: bf16[256,128], index: 9, kind: input, shape index: {}]   ;;  %s17188_s10 = inlined_call_operand.vmem [shape: f32[2,64,128], index: 10, kind: output, shape index: {}]  }
   0x1 LB: > { %s11113_s14 = sadd.s32 4294967295, %s13948_s13   ;;  %p11117_p0 = scmp.ge.s32.totalorder %s13948_s13, 1  ;;  %s13948_s13 = sphi %s14008_s13, %s20_s13  }
   0x2   : > { %p322_p1 = scmp.lt.s32.totalorder %s13948_s13, 3 }
   0x4   : > { %p323_p2 = pnand %p11117_p0, %p322_p1 }
   0x5   : > { %v12946_v0 = vld [vmem:[%s17180_s2 + $0x40] sm:$0xff] (!%p323_p2)   ;;  %v14027_v2 = vld [vmem:[%s17180_s2 + $0x48] sm:$0xff] (!%p323_p2)   ;;  %p14031_p3 = scmp.lt.s32.totalorder (!%p323_p2), %s11113_s14, 1  ;;  %v13950_v3 = vmov (!%p323_p2), 0.0   ;;  %v12950_v5 = vld [vmem:[%s17180_s2 + $0x50] sm:$0xff] (!%p323_p2)   ;;  %v852_v21 = vlaneseq (!%p323_p2)  ;;  %vm381_vm1 = vcmask (!%p323_p2), 392192  }
   0x6   : > { %326 = sbr.rel (%p323_p2) target bundleno = 2226 (0x8b2), region = 60  ;;  %v14022_v1 = vld [vmem:[%s17180_s2] sm:$0xff] (!%p323_p2)   ;;  %12455 = vmatprep.subr.bf16.mxu0 (!%p323_p2), %v12946_v0  ;;  %404 = vst [vmem:[#allocation3 + $0x8] sm:$0xff] (!%p323_p2), %v13950_v3  ;;  %407 = vst [vmem:[#allocation3 + $0x20] sm:$0xff] (!%p323_p2), %v13950_v3  ;;  %v12949_v4 = vld [vmem:[%s17180_s2 + $0x8] sm:$0xff] (!%p323_p2)   ;;  %vm383_vm2 = vcmask (!%p323_p2), 386048  }
   0x7   : > { %408 = vst [vmem:[#allocation3 + $0x28] sm:$0xff] (!%p323_p2), %v13950_v3  ;;  %403 = vst [vmem:[#allocation3] sm:$0xff] (!%p323_p2), %v13950_v3  ;;  %12456 = vmatpush3.bf16.msra.mxu0 (!%p323_p2), %v14022_v1  ;;  %v12951_v6 = vld [vmem:[%s17180_s2 + $0x10] sm:$0xff] (!%p323_p2)   ;;  %v12952_v7 = vld [vmem:[%s17180_s2 + $0x58] sm:$0xff] (!%p323_p2)   ;;  %v13951_v25 = vmov (!%p323_p2), 1966171168  }
   0x8   : > { %405 = vst [vmem:[#allocation3 + $0x10] sm:$0x3] (!%p323_p2), %v13950_v3  ;;  %406 = vst [vmem:[#allocation3 + $0x18] sm:$0x3] (!%p323_p2), %v13950_v3  ;;  %12457 = vmatprep.subr.bf16.mxu0 (!%p323_p2), %v14027_v2  ;;  %v12953_v8 = vld [vmem:[%s17180_s2 + $0x18] sm:$0xff] (!%p323_p2)   ;;  %v12954_v9 = vld [vmem:[%s17180_s2 + $0x60] sm:$0xff] (!%p323_p2)   ;;  %v850_v26 = vunpack.c.l.s4 (!%p323_p2), %v13951_v25 }
   0x9   : > { %409 = vst [vmem:[#allocation3 + $0x30] sm:$0x3] (!%p323_p2), %v13950_v3  ;;  %410 = vst [vmem:[#allocation3 + $0x38] sm:$0x3] (!%p323_p2), %v13950_v3  ;;  %v12955_v10 = vld [vmem:[%s17180_s2 + $0x20] sm:$0xff] (!%p323_p2)   ;;  %v12956_v11 = vld [vmem:[%s17180_s2 + $0x68] sm:$0xff] (!%p323_p2)  }
   0xa   : > { %411 = vst [vmem:[#allocation3 + $0x40] sm:$0xff] (!%p323_p2), %v13950_v3  ;;  %412 = vst [vmem:[#allocation3 + $0x48] sm:$0xff] (!%p323_p2), %v13950_v3  ;;  %v12957_v17 = vld [vmem:[%s17180_s2 + $0x28] sm:$0xff] (!%p323_p2)   ;;  %v12958_v18 = vld [vmem:[%s17180_s2 + $0x70] sm:$0xff] (!%p323_p2)   ;;  %v851_v35 = vunpack.c.0.s8 (!%p323_p2), %v850_v26  ;;  %v14192_v36 = vshrl.u32 (!%p323_p2), %v852_v21, 7  ;;  %vm14211_vm0 = vcmp.lt.s32.totalorder (!%p323_p2), %v852_v21, 256 }
   0xb   : > { %413 = vst [vmem:[#allocation3 + $0x50] sm:$0x3] (!%p323_p2), %v13950_v3  ;;  %414 = vst [vmem:[#allocation3 + $0x58] sm:$0x3] (!%p323_p2), %v13950_v3  ;;  %12458 = vmatpush3.bf16.msra.mxu0 (!%p323_p2), %v12949_v4  ;;  %v12959_v30 = vld [vmem:[%s17180_s2 + $0x30] sm:$0xff] (!%p323_p2)   ;;  %v12960_v33 = vld [vmem:[%s17180_s2 + $0x78] sm:$0xff] (!%p323_p2)  }
   0xc   : > { %415 = vst [vmem:[#allocation3 + $0x60] sm:$0xff] (!%p323_p2), %v13950_v3  ;;  %416 = vst [vmem:[#allocation3 + $0x68] sm:$0xff] (!%p323_p2), %v13950_v3  ;;  %12459 = vmatprep.subr.bf16.mxu0 (!%p323_p2), %v12950_v5  ;;  %v12961_v38 = vld [vmem:[%s17180_s2 + $0x38] sm:$0xff] (!%p323_p2)   ;;  %v12976_v43 = vld [vmem:[%s17183_s5 + $0x4] ss:$8 sps:$4 sm:$0xff] (!%p323_p2)   ;;  %v14207_v45 = vsub.s32 (!%p323_p2), %v851_v35, %v14192_v36  ;;  %vm2904_vm3 = vcmask (!%p323_p2), 1046528  }
   0xd   : > { %417 = vst [vmem:[#allocation3 + $0x70] sm:$0x3] %v13950_v3  ;;  %418 = vst [vmem:[#allocation3 + $0x78] sm:$0x3] %v13950_v3  ;;  %s17193_s14 = smov (!%p14031_p3, %s11113_s14), 1  ;;  %vm3473_vm4 = vcmask 1045504  }
   0xe   : > { %419 = vst [vmem:[#allocation3 + $0x80] sm:$0xff] %v13950_v3  ;;  %420 = vst [vmem:[#allocation3 + $0x88] sm:$0xff] %v13950_v3  ;;  %s12452_s30 = sshll.u32 %s17193_s14, 6  ;;  %s12453_s15 = sshll.u32 %s17193_s14, 5  ;;  %v12974_v55 = vld [vmem:[%s17183_s5] ss:$8 sps:$4 sm:$0xff]  }
   0xf   : > { %421 = vst [vmem:[#allocation3 + $0x90] sm:$0x3] %v13950_v3  ;;  %422 = vst [vmem:[#allocation3 + $0x98] sm:$0x3] %v13950_v3  ;;  %12460 = vmatpush3.bf16.msra.mxu0 %v12951_v6  ;;  %s14148_s20 = scalar_lea.vmem %s17178_s0, %s12452_s30  ;;  %s14153_s23 = scalar_lea.vmem %s17179_s1, %s12453_s15  ;;  %v12979_v57 = vld [vmem:[%s17183_s5 + $0x14] ss:$8 sps:$4 sm:$0xff]  }
  0x10   : > { %423 = vst [vmem:[#allocation3 + $0xa0] sm:$0xff] %v13950_v3  ;;  %424 = vst [vmem:[#allocation3 + $0xa8] sm:$0xff] %v13950_v3  ;;  %12461 = vmatprep.subr.bf16.mxu0 %v12952_v7  ;;  %v12964_v12 = vld [vmem:[%s14148_s20 + $0x4] ss:$8 sps:$4 sm:$0xff]   ;;  %v14165_v15 = vld [vmem:[%s14153_s23 + $0x10] sm:$0xff]  ;;  %s17165_s16 = scalar_lea.vmem %s17188_s10, %s12452_s30 }
  0x11   : > { %425 = vst [vmem:[#allocation3 + $0xb0] sm:$0x3] %v13950_v3  ;;  %426 = vst [vmem:[#allocation3 + $0xb8] sm:$0x3] %v13950_v3  ;;  %v768_v13 = vld [vmem:[%s14153_s23 + $0x8] sm:$0xff]  ;;  %v767_v14 = vld [vmem:[%s14153_s23] sm:$0xff]  ;;  %691 = vmatprep.mubr.bf16.mxu0 %v12964_v12 }
  0x12   : > { %427 = vst [vmem:[#allocation3 + $0xc0] sm:$0xff] %v13950_v3  ;;  %428 = vst [vmem:[#allocation3 + $0xc8] sm:$0xff] %v13950_v3  ;;  %v771_v16 = vmul.f32 0.0, %v768_v13  ;;  %v773_v19 = vmul.f32 0.5714286, %v767_v14 }
  0x13   : > { %429 = vst [vmem:[#allocation3 + $0xd0] sm:$0x3] %v13950_v3  ;;  %430 = vst [vmem:[#allocation3 + $0xd8] sm:$0x3] %v13950_v3  ;;  %12462 = vmatpush3.bf16.msra.mxu0 %v12953_v8  ;;  %v774_v20 = vmul.f32 0.42857143, %v768_v13 }
  0x14   : > { %431 = vst [vmem:[#allocation3 + $0xe0] sm:$0xff] %v13950_v3  ;;  %432 = vst [vmem:[#allocation3 + $0xe8] sm:$0xff] %v13950_v3  ;;  %12463 = vmatprep.subr.bf16.mxu0 %v12954_v9  ;;  %v779_v22 = vmul.f32 0.71428573, %v768_v13  ;;  %v780_v23 = vmul.f32 0.2857143, %v14165_v15  ;;  %v14175_v28 = vadd.f32 %v771_v16, %v767_v14 }
  0x15   : > { %433 = vst [vmem:[#allocation3 + $0xf0] sm:$0x3] %v13950_v3  ;;  %434 = vst [vmem:[#allocation3 + $0xf8] sm:$0x3] %v13950_v3  ;;  %v782_v24 = vmul.f32 0.2857143, %v768_v13  ;;  %v14182_v31 = vadd.f32 %v774_v20, %v773_v19 }
  0x16   : > { %435 = vst [vmem:[#allocation3 + $0x100] sm:$0xff] %v13950_v3  ;;  %436 = vst [vmem:[#allocation3 + $0x108] sm:$0xff] %v13950_v3  ;;  %v783_v27 = vmul.f32 0.71428573, %v14165_v15  ;;  %v14177_v29 = vadd.f32 %v780_v23, %v779_v22  ;;  %v14190_v34 = vmul.f32 0.0, %v14175_v28 }
  0x17   : > { %437 = vst [vmem:[#allocation3 + $0x110] sm:$0x3] %v13950_v3  ;;  %438 = vst [vmem:[#allocation3 + $0x118] sm:$0x3] %v13950_v3  ;;  %12464 = vmatpush3.bf16.msra.mxu0 %v12955_v10  ;;  %v14195_v37 = vmul.f32 0.0, %v14182_v31 }
  0x18   : > { %439 = vst [vmem:[#allocation3 + $0x120] sm:$0xff] %v13950_v3  ;;  %440 = vst [vmem:[#allocation3 + $0x128] sm:$0xff] %v13950_v3  ;;  %12465 = vmatprep.subr.bf16.mxu0 %v12956_v11  ;;  %v14184_v32 = vadd.f32 %v783_v27, %v782_v24  ;;  %v776_v39 = vmul.f32 0.14285715, %v767_v14  ;;  %v11150_v40 = vrot.slane %v14190_v34, 9 }
  0x19   : > { %441 = vst [vmem:[#allocation3 + $0x130] sm:$0x3] %v13950_v3  ;;  %442 = vst [vmem:[#allocation3 + $0x138] sm:$0x3] %v13950_v3  ;;  %v777_v41 = vmul.f32 0.85714287, %v768_v13 }
  0x1a   : > { %443 = vst [vmem:[#allocation4] sm:$0xff] %v13950_v3  ;;  %444 = vst [vmem:[#allocation4 + $0x8] sm:$0xff] %v13950_v3  ;;  %v998_v42 = vmul.f32 0.5714286, %v14175_v28  ;;  %v833_v44 = vadd.f32 %v11150_v40, %v14175_v28  ;;  %v11151_v46 = vrot.slane %v14195_v37, 9 }
  0x1b   : > { %445 = vst [vmem:[#allocation4 + $0x10] sm:$0x3] %v13950_v3  ;;  %446 = vst [vmem:[#allocation4 + $0x18] sm:$0x3] %v13950_v3  ;;  %12466 = vmatpush3.bf16.msra.mxu0 %v12957_v17  ;;  %v12962_v47 = vld [vmem:[%s14148_s20] ss:$8 sps:$4 sm:$0xff]   ;;  %v14219_v54 = vadd.f32 %v777_v41, %v776_v39 }
  0x1c   : > { %447 = vst [vmem:[#allocation4 + $0x20] sm:$0xff] %v13950_v3  ;;  %448 = vst [vmem:[#allocation4 + $0x28] sm:$0xff] %v13950_v3  ;;  %12467 = vmatprep.subr.bf16.mxu0 %v12958_v18  ;;  %v11198_v49 = vrot.slane %v998_v42, 9  ;;  %v12965_v50 = vld [vmem:[%s14148_s20 + $0x14] ss:$8 sps:$4 sm:$0xff]   ;;  %v855_v51 = vrot.slane %v833_v44, %v14207_v45  ;;  %v834_v53 = vadd.f32 %v11151_v46, %v14182_v31 }
  0x1d   : > { %449 = vst [vmem:[#allocation4 + $0x30] sm:$0x3] %v13950_v3  ;;  %450 = vst [vmem:[#allocation4 + $0x38] sm:$0x3] %v13950_v3  ;;  %v1006_v52 = vmul.f32 0.42857143, %v14175_v28 }
  0x1e   : > { %451 = vst [vmem:[#allocation4 + $0x40] sm:$0xff] %v13950_v3  ;;  %452 = vst [vmem:[#allocation4 + $0x48] sm:$0xff] %v13950_v3  ;;  %v1206_v56 = vmul.f32 0.14285715, %v14175_v28  ;;  %v862_v58 = vrot.slane %v855_v51, %v14207_v45  ;;  %v869_v61 = vrot.slane %v834_v53, %v14207_v45  ;;  %v14231_v63 = vmul.f32 0.0, %v14219_v54 }
  0x1f   : > { %453 = vst [vmem:[#allocation4 + $0x50] sm:$0x3] %v13950_v3  ;;  %454 = vst [vmem:[#allocation4 + $0x58] sm:$0x3] %v13950_v3  ;;  %12468 = vmatpush3.bf16.msra.mxu0 %v12959_v30  ;;  %v11158_v59 = vrot.slane %v1006_v52, 9  ;;  %v2062_v60 = vadd.f32 %v11198_v49, %v1006_v52 }
  0x20   : > { %455 = vst [vmem:[#allocation4 + $0x60] sm:$0xff] %v13950_v3  ;;  %456 = vst [vmem:[#allocation4 + $0x68] sm:$0xff] %v13950_v3  ;;  %12469 = vmatprep.subr.bf16.mxu0 %v12960_v33  ;;  %v11190_v62 = vrot.slane %v1206_v56, 9  ;;  %v1214_v1 = vmul.f32 0.85714287, %v14175_v28  ;;  %v876_v4 = vrot.slane %v869_v61, %v14207_v45  ;;  %v11152_v22 = vrot.slane %v14231_v63, 9 }
  0x21   : > { %457 = vst [vmem:[#allocation4 + $0x70] sm:$0x3] %v13950_v3  ;;  %458 = vst [vmem:[#allocation4 + $0x78] sm:$0x3] %v13950_v3  ;;  %v1046_v0 = vadd.f32 %v11158_v59, %v998_v42  ;;  %v2084_v2 = vrot.slane %v2062_v60, %v14207_v45  ;;  %v12977_v5 = vld [vmem:[%s17183_s5 + $0x10] ss:$8 sps:$4 sm:$0xff]  }
  0x22   : > { %459 = vst [vmem:[#allocation4 + $0x80] sm:$0xff] %v13950_v3  ;;  %460 = vst [vmem:[#allocation4 + $0x88] sm:$0xff] %v13950_v3  ;;  %v1414_v6 = vmul.f32 0.71428573, %v14175_v28  ;;  %v12982_v7 = vld [vmem:[%s17183_s5 + $0x24] ss:$8 sps:$4 sm:$0xff]   ;;  %v1862_v10 = vadd.f32 %v11190_v62, %v1214_v1  ;;  %v835_v30 = vadd.f32 %v11152_v22, %v14219_v54 }
  0x23   : > { %461 = vst [vmem:[#allocation4 + $0x90] sm:$0x3] %v13950_v3  ;;  %462 = vst [vmem:[#allocation4 + $0x98] sm:$0x3] %v13950_v3  ;;  %12470 = vmatpush3.bf16.msra.mxu0 %v12961_v38  ;;  %v1068_v8 = vrot.slane %v1046_v0, %v14207_v45  ;;  %v11166_v9 = vrot.slane %v1214_v1, 9  ;;  %v2091_v11 = vrot.slane %v2084_v2, %v14207_v45 }
  0x24   : > { %463 = vst [vmem:[#allocation4 + $0xa0] sm:$0xff] %v13950_v3  ;;  %464 = vst [vmem:[#allocation4 + $0xa8] sm:$0xff] %v13950_v3  ;;  %2640 = vmatprep.subr.bf16.mxu0 %v12976_v43  ;;  %v12967_v12 = vld [vmem:[%s14148_s20 + $0x10] ss:$8 sps:$4 sm:$0xff]   ;;  %v11182_v13 = vrot.slane %v1414_v6, 9  ;;  %v1884_v19 = vrot.slane %v1862_v10, %v14207_v45  ;;  %v883_v41 = vrot.slane %v835_v30, %v14207_v45 }
  0x25   : > { %465 = vst [vmem:[#allocation4 + $0xb0] sm:$0x3] %v13950_v3  ;;  %466 = vst [vmem:[#allocation4 + $0xb8] sm:$0x3] %v13950_v3  ;;  %v12968_v14 = vld [vmem:[%s14148_s20 + $0x24] ss:$8 sps:$4 sm:$0xff]   ;;  %v1075_v16 = vrot.slane %v1068_v8, %v14207_v45  ;;  %v1254_v17 = vadd.f32 %v11166_v9, %v1206_v56  ;;  %v2092_v21 = vcombine.high %v2091_v11, %v2091_v11 }
  0x26   : > { %467 = vst [vmem:[#allocation4 + $0xc0] sm:$0xff] %v13950_v3  ;;  %468 = vst [vmem:[#allocation4 + $0xc8] sm:$0xff] %v13950_v3  ;;  %692 = vmatmul.mubr.bf16.vlgmr.msra.gmra.mrb[0].mxu0 %v12962_v47  ;;  %v1422_v18 = vmul.f32 0.2857143, %v14175_v28  ;;  %v12980_v20 = vld [vmem:[%s17183_s5 + $0x20] ss:$8 sps:$4 sm:$0xff]   ;;  %v1891_v27 = vrot.slane %v1884_v19, %v14207_v45  ;;  %v890_v51 = vrot.slane %v883_v41, %v14207_v45 }
  0x27   : > { %469 = vst [vmem:[#allocation4 + $0xd0] sm:$0x3] %v13950_v3  ;;  %470 = vst [vmem:[#allocation4 + $0xd8] sm:$0x3] %v13950_v3  ;;  %699 = vmatprep.mubr.bf16.mxu0 %v12965_v50  ;;  %2641 = vmatpush1.bf16.msra.mxu0 %v12974_v55  ;;  %v12985_v23 = vld [vmem:[%s17183_s5 + $0x34] ss:$8 sps:$4 sm:$0xff]   ;;  %v1276_v24 = vrot.slane %v1254_v17, %v14207_v45 }
  0x28   : > { %471 = vst [vmem:[#allocation4 + $0xe0] sm:$0xff] %v13950_v3  ;;  %472 = vst [vmem:[#allocation4 + $0xe8] sm:$0xff] %v13950_v3  ;;  %2642 = vmatprep.subr.bf16.mxu0 %v12979_v57  ;;  %v11174_v25 = vrot.slane %v1422_v18, 9  ;;  %v1662_v26 = vadd.f32 %v11182_v13, %v1422_v18  ;;  %v1892_v39 = vcombine.high %v1891_v27, %v1891_v27  ;;  %v12983_v40 = vld [vmem:[%s17183_s5 + $0x30] ss:$8 sps:$4 sm:$0xff]  }
  0x29   : > { %473 = vst [vmem:[#allocation4 + $0xf0] sm:$0x3] %v13950_v3  ;;  %474 = vst [vmem:[#allocation4 + $0xf8] sm:$0x3] %v13950_v3  ;;  %v1283_v33 = vrot.slane %v1276_v24, %v14207_v45  ;;  %v14275_v42 = vmul.f32 0.5714286, %v14182_v31 }
  0x2a   : > { %475 = vst [vmem:[#allocation4 + $0x100] sm:$0xff] %v13950_v3  ;;  %476 = vst [vmem:[#allocation4 + $0x108] sm:$0xff] %v13950_v3  ;;  %v1462_v35 = vadd.f32 %v11174_v25, %v1414_v6  ;;  %v1684_v38 = vrot.slane %v1662_v26, %v14207_v45  ;;  %v12970_v43 = vld [vmem:[%s14148_s20 + $0x20] ss:$8 sps:$4 sm:$0xff]   ;;  %v12988_v44 = vld [vmem:[%s17183_s5 + $0x44] ss:$8 sps:$4 sm:$0xff]  }
  0x2b   : > { %477 = vst [vmem:[#allocation4 + $0x110] sm:$0x3] %v13950_v3  ;;  %478 = vst [vmem:[#allocation4 + $0x118] sm:$0x3] %v13950_v3  ;;  %2643 = vmatpush1.bf16.msra.mxu0 %v12977_v5  ;;  %v12971_v49 = vld [vmem:[%s14148_s20 + $0x34] ss:$8 sps:$4 sm:$0xff]  }
  0x2c   : > { %479 = vst [vmem:[#allocation4 + $0x120] sm:$0xff] %v13950_v3  ;;  %480 = vst [vmem:[#allocation4 + $0x128] sm:$0xff] %v13950_v3  ;;  %2644 = vmatprep.subr.bf16.mxu0 %v12982_v7  ;;  %v1484_v46 = vrot.slane %v1462_v35, %v14207_v45  ;;  %v1685_v47 = vcombine.high %v1684_v38, %v1684_v38  ;;  %v12986_v50 = vld [vmem:[%s17183_s5 + $0x40] ss:$8 sps:$4 sm:$0xff]   ;;  %v12991_v52 = vld [vmem:[%s17183_s5 + $0x54] ss:$8 sps:$4 sm:$0xff]  }
  0x2d   : > { %481 = vst [vmem:[#allocation4 + $0x130] sm:$0x3] %v13950_v3  ;;  %482 = vst [vmem:[#allocation4 + $0x138] sm:$0x3] %v13950_v3  ;;  %v11199_v56 = vrot.slane %v14275_v42, 9 }
  0x2e   : > { %975 = vst.msk [vmem:[#allocation3 + $0x21] ss:$8 sm:$0x3] %vm14211_vm0, %v862_v58  ;;  %978 = vst.msk [vmem:[#allocation3 + $0x41] ss:$8 sm:$0x3] %vm14211_vm0, %v876_v4  ;;  %700 = vmatmul.mubr.bf16.gmra.mrb[4].mxu0 %v12967_v12  ;;  %v1485_v53 = vcombine.high %v1484_v46, %v1484_v46  ;;  %v1692_v55 = vrot.slane %v1685_v47, %v14207_v45 }
  0x2f   : > { %1183 = vst.msk [vmem:[#allocation3 + $0x22] ss:$8 sm:$0x3] %vm14211_vm0, %v1075_v16  ;;  %2207 = vst.msk [vmem:[#allocation3 + $0x27] ss:$8 sm:$0x3] %vm14211_vm0, %v2092_v21  ;;  %707 = vmatprep.mubr.bf16.mxu0 %v12968_v14  ;;  %2645 = vmatpush1.bf16.msra.mxu0 %v12980_v20 }
  0x30   : > { %2646 = vmatprep.subr.bf16.mxu0 %v12985_v23  ;;  %1391 = vst.msk [vmem:[#allocation3 + $0x23] ss:$8 sm:$0x3] %vm14211_vm0, %v1283_v33  ;;  %2007 = vst.msk [vmem:[#allocation3 + $0x26] ss:$8 sm:$0x3] %vm14211_vm0, %v1892_v39  ;;  %v1492_v60 = vrot.slane %v1485_v53, %v14207_v45 }
  0x31   : > { %981 = vst.msk [vmem:[#allocation3 + $0x61] ss:$8 sm:$0x3] %vm14211_vm0, %v890_v51  ;;  %v14299_v57 = vmul.f32 0.5714286, %v14219_v54 }
  0x32   : > { %v14302_v58 = vmul.f32 0.42857143, %v14182_v31  ;;  %v14305_v59 = vmul.f32 0.42857143, %v14219_v54  ;;  %v1207_v61 = vmul.f32 0.14285715, %v14182_v31 }
  0x33   : > { %2647 = vmatpush1.bf16.msra.mxu0 %v12983_v40  ;;  %1807 = vst.msk [vmem:[#allocation3 + $0x25] ss:$8 sm:$0x3] %vm14211_vm0, %v1692_v55  ;;  %v14312_v62 = vmul.f32 0.14285715, %v14219_v54 }
  0x34   : > { %2648 = vmatprep.subr.bf16.mxu0 %v12988_v44  ;;  %v1215_v0 = vmul.f32 0.85714287, %v14182_v31  ;;  %v12989_v1 = vld [vmem:[%s17183_s5 + $0x50] ss:$8 sps:$4 sm:$0xff]   ;;  %v11159_v2 = vrot.slane %v14302_v58, 9  ;;  %v11160_v4 = vrot.slane %v14305_v59, 9 }
  0x35   : > { %v1216_v5 = vmul.f32 0.85714287, %v14219_v54  ;;  %v1415_v6 = vmul.f32 0.71428573, %v14182_v31  ;;  %v12994_v7 = vld [vmem:[%s17183_s5 + $0x64] ss:$8 sps:$4 sm:$0xff]  }
  0x36   : > { %708 = vmatmul.mubr.bf16.gmra.mrb[8].mxu0 %v12970_v43  ;;  %1607 = vst.msk [vmem:[#allocation3 + $0x24] ss:$8 sm:$0x3] %vm14211_vm0, %v1492_v60  ;;  %v11167_v8 = vrot.slane %v1215_v0, 9  ;;  %v1416_v9 = vmul.f32 0.71428573, %v14219_v54  ;;  %v1047_v12 = vadd.f32 %v11159_v2, %v14275_v42  ;;  %v1048_v13 = vadd.f32 %v11160_v4, %v14299_v57 }
  0x37   : > { %v1423_v10 = vmul.f32 0.2857143, %v14182_v31  ;;  %v11191_v11 = vrot.slane %v1207_v61, 9  ;;  %715 = vmatprep.mubr.bf16.mxu0 %v12971_v49  ;;  %2649 = vmatpush1.bf16.msra.mxu0 %v12986_v50  ;;  %v11168_v14 = vrot.slane %v1216_v5, 9  ;;  %v1424_v16 = vmul.f32 0.2857143, %v14219_v54 }
  0x38   : > { %v12973_v17 = vld [vmem:[%s14148_s20 + $0x30] ss:$8 sps:$4 sm:$0xff]   ;;  %2650 = vmatprep.subr.bf16.mxu0 %v12991_v52  ;;  %v1255_v18 = vadd.f32 %v11167_v8, %v1207_v61  ;;  %v11183_v20 = vrot.slane %v1415_v6, 9  ;;  %v11184_v21 = vrot.slane %v1416_v9, 9  ;;  %v12992_v22 = vld [vmem:[%s17183_s5 + $0x60] ss:$8 sps:$4 sm:$0xff]   ;;  %v1082_v23 = vrot.slane %v1047_v12, %v14207_v45 }
  0x39   : > { %v11175_v19 = vrot.slane %v1423_v10, 9  ;;  %v1096_v24 = vrot.slane %v1048_v13, %v14207_v45  ;;  %v1256_v25 = vadd.f32 %v11168_v14, %v14312_v62  ;;  %v11176_v26 = vrot.slane %v1424_v16, 9  ;;  %v12997_v27 = vld [vmem:[%s17183_s5 + $0x74] ss:$8 sps:$4 sm:$0xff]   ;;  %v12995_v50 = vld [vmem:[%s17183_s5 + $0x70] ss:$8 sps:$4 sm:$0xff]  }
  0x3a   : > { %v1290_v30 = vrot.slane %v1255_v18, %v14207_v45  ;;  %v1663_v35 = vadd.f32 %v11183_v20, %v1423_v10  ;;  %v1664_v38 = vadd.f32 %v11184_v21, %v1424_v16  ;;  %v1089_v39 = vrot.slane %v1082_v23, %v14207_v45  ;;  %v13000_v61 = vld [vmem:[%s17183_s5 + $0x84] ss:$8 sps:$4 sm:$0xff]   ;;  %v13193_v48 = vld [vmem:[%s17183_s5 + $0x3d0] ss:$8 sps:$4 sm:$0xff]  }
  0x3b   : > { %v1463_v33 = vadd.f32 %v11175_v19, %v1415_v6  ;;  %2651 = vmatpush1.bf16.msra.mxu0 %v12989_v1  ;;  %v1103_v40 = vrot.slane %v1096_v24, %v14207_v45  ;;  %v1304_v41 = vrot.slane %v1256_v25, %v14207_v45  ;;  %v1464_v43 = vadd.f32 %v11176_v26, %v1416_v9  ;;  %v13006_v20 = vld [vmem:[%s17183_s5 + $0xa4] ss:$8 sps:$4 sm:$0xff]   ;;  %v13004_v24 = vld [vmem:[%s17183_s5 + $0xa0] ss:$8 sps:$4 sm:$0xff]   ;;  %v13009_v25 = vld [vmem:[%s17183_s5 + $0xb4] ss:$8 sps:$4 sm:$0xff]  }
  0x3c   : > { %2652 = vmatprep.subr.bf16.mxu0 %v12994_v7  ;;  %v1297_v44 = vrot.slane %v1290_v30, %v14207_v45  ;;  %v1699_v47 = vrot.slane %v1663_v35, %v14207_v45  ;;  %v1714_v49 = vrot.slane %v1664_v38, %v14207_v45  ;;  %1186 = vst.msk [vmem:[#allocation3 + $0x42] ss:$8 sm:$0x3] %vm14211_vm0, %v1089_v39  ;;  %v11192_v55 = vrot.slane %v14312_v62, 9  ;;  %v13007_v26 = vld [vmem:[%s17183_s5 + $0xb0] ss:$8 sps:$4 sm:$0xff]  }
  0x3d   : > { %v1499_v46 = vrot.slane %v1463_v33, %v14207_v45  ;;  %v2421_v51 = vld [vmem:[#allocation3 + $0x28] sm:$0xff]  ;;  %1189 = vst.msk [vmem:[#allocation3 + $0x62] ss:$8 sm:$0x3] %vm14211_vm0, %v1103_v40  ;;  %v1311_v52 = vrot.slane %v1304_v41, %v14207_v45  ;;  %v1514_v53 = vrot.slane %v1464_v43, %v14207_v45  ;;  %v1863_v60 = vadd.f32 %v11191_v11, %v1215_v0  ;;  %v13015_v33 = vld [vmem:[%s17183_s5 + $0xd4] ss:$8 sps:$4 sm:$0xff]  }
  0x3e   : > { %716 = vmatmul.mubr.bf16.gmra.mrb[12].mxu0 %v12973_v17  ;;  %v2435_v1 = vpack.c.bf16 %v2421_v51, %v13950_v3  ;;  %1394 = vst.msk [vmem:[#allocation3 + $0x43] ss:$8 sm:$0x3] %vm14211_vm0, %v1297_v44  ;;  %v1700_v4 = vcombine.high %v1699_v47, %v1699_v47  ;;  %v1715_v7 = vcombine.high %v1714_v49, %v1714_v49  ;;  %v11200_v9 = vrot.slane %v14299_v57, 9  ;;  %v12998_v11 = vld [vmem:[%s17183_s5 + $0x80] ss:$8 sps:$4 sm:$0xff]  }
  0x3f   : > { %v1500_v2 = vcombine.high %v1499_v46, %v1499_v46  ;;  %2653 = vmatpush1.bf16.msra.mxu0 %v12992_v22  ;;  %1397 = vst.msk [vmem:[#allocation3 + $0x63] ss:$8 sm:$0x3] %vm14211_vm0, %v1311_v52  ;;  %v1515_v6 = vcombine.high %v1514_v53, %v1514_v53  ;;  %v1864_v62 = vadd.f32 %v11192_v55, %v1216_v5  ;;  %v13003_v57 = vld [vmem:[%s17183_s5 + $0x94] ss:$8 sps:$4 sm:$0xff]   ;;  %v2420_v44 = vld [vmem:[#allocation3 + $0x20] sm:$0xff] }
  0x40   : > { %v1899_v0 = vrot.slane %v1863_v60, %v14207_v45  ;;  %2654 = vmatprep.subr.bf16.mxu0 %v12997_v27  ;;  %2672 = vmatprep.mubr.bf16.mxu0 %v2435_v1  ;;  %v1707_v3 = vrot.slane %v1700_v4, %v14207_v45  ;;  %v2063_v10 = vadd.f32 %v11199_v56, %v14302_v58  ;;  %v13012_v27 = vld [vmem:[%s17183_s5 + $0xc4] ss:$8 sps:$4 sm:$0xff]   ;;  %v13010_v30 = vld [vmem:[%s17183_s5 + $0xc0] ss:$8 sps:$4 sm:$0xff]   ;;  %v13013_v35 = vld [vmem:[%s17183_s5 + $0xd0] ss:$8 sps:$4 sm:$0xff]  }
  0x41   : > { %v1507_v8 = vrot.slane %v1500_v2, %v14207_v45  ;;  %v1522_v5 = vrot.slane %v1515_v6, %v14207_v45  ;;  %v1722_v12 = vrot.slane %v1715_v7, %v14207_v45  ;;  %v1914_v14 = vrot.slane %v1864_v62, %v14207_v45  ;;  %v13018_v38 = vld [vmem:[%s17183_s5 + $0xe4] ss:$8 sps:$4 sm:$0xff]   ;;  %v13016_v39 = vld [vmem:[%s17183_s5 + $0xe0] ss:$8 sps:$4 sm:$0xff]   ;;  %v13021_v40 = vld [vmem:[%s17183_s5 + $0xf4] ss:$8 sps:$4 sm:$0xff]  }
  0x42   : > { %v1906_v13 = vrot.slane %v1899_v0, %v14207_v45  ;;  %1810 = vst.msk [vmem:[#allocation3 + $0x45] ss:$8 sm:$0x3] %vm14211_vm0, %v1707_v3  ;;  %v2064_v42 = vadd.f32 %v11200_v9, %v14305_v59  ;;  %v2099_v56 = vrot.slane %v2063_v10, %v14207_v45  ;;  %v13001_v59 = vld [vmem:[%s17183_s5 + $0x90] ss:$8 sps:$4 sm:$0xff]   ;;  %v14449_v52 = vld [vmem:[#allocation3 + $0x8] sm:$0xff] }
  0x43   : > { %1610 = vst.msk [vmem:[#allocation3 + $0x44] ss:$8 sm:$0x3] %vm14211_vm0, %v1507_v8  ;;  %2655 = vmatpush1.bf16.msra.mxu0 %v12995_v50  ;;  %1613 = vst.msk [vmem:[#allocation3 + $0x64] ss:$8 sm:$0x3] %vm14211_vm0, %v1522_v5  ;;  %v1921_v16 = vrot.slane %v1914_v14, %v14207_v45  ;;  %v2434_v53 = vpack.c.bf16 %v2420_v44, %v14449_v52 }
  0x44   : > { %1813 = vst.msk [vmem:[#allocation3 + $0x65] ss:$8 sm:$0x3] %vm14211_vm0, %v1722_v12  ;;  %v1907_v58 = vcombine.high %v1906_v13, %v1906_v13  ;;  %2656 = vmatprep.subr.bf16.mxu0 %v13000_v61  ;;  %v2106_v17 = vrot.slane %v2099_v56, %v14207_v45  ;;  %v2114_v18 = vrot.slane %v2064_v42, %v14207_v45  ;;  %v770_v41 = vld [vmem:[%s14153_s23 + $0x18] sm:$0xff]  ;;  %v785_v49 = vmul.f32 0.85714287, %v14165_v15 }
  0x45   : > { %v1922_v19 = vcombine.high %v1921_v16, %v1921_v16  ;;  %v13019_v43 = vld [vmem:[%s17183_s5 + $0xf0] ss:$8 sps:$4 sm:$0xff]   ;;  %v786_v50 = vmul.f32 0.14285715, %v770_v41  ;;  %v788_v51 = vmul.f32 0.42857143, %v14165_v15 }
  0x46   : > { %2010 = vst.msk [vmem:[#allocation3 + $0x46] ss:$8 sm:$0x3] %vm14211_vm0, %v1907_v58  ;;  %v2107_v21 = vcombine.high %v2106_v17, %v2106_v17  ;;  %v2121_v22 = vrot.slane %v2114_v18, %v14207_v45  ;;  %v789_v55 = vmul.f32 0.5714286, %v770_v41  ;;  %v14469_v3 = vmul.f32 0.0, %v14177_v29 }
  0x47   : > { %2657 = vmatpush1.bf16.msra.mxu0 %v12998_v11  ;;  %2013 = vst.msk [vmem:[#allocation3 + $0x66] ss:$8 sm:$0x3] %vm14211_vm0, %v1922_v19  ;;  %v14452_v2 = vadd.f32 %v786_v50, %v785_v49  ;;  %v14455_v4 = vmul.f32 0.5714286, %v14177_v29  ;;  %v14472_v9 = vmul.f32 0.0, %v14184_v32 }
  0x48   : > { %2658 = vmatprep.subr.bf16.mxu0 %v13003_v57  ;;  %v2122_v23 = vcombine.high %v2121_v22, %v2121_v22  ;;  %2210 = vst.msk [vmem:[#allocation3 + $0x47] ss:$8 sm:$0x3] %vm14211_vm0, %v2107_v21  ;;  %v14458_v6 = vmul.f32 0.5714286, %v14184_v32  ;;  %v14463_v7 = vadd.f32 %v789_v55, %v788_v51  ;;  %v11153_v57 = vrot.slane %v14469_v3, 9 }
  0x49   : > { %v14461_v15 = vmul.f32 0.14285715, %v14177_v29  ;;  %v1210_v62 = vmul.f32 0.14285715, %v14184_v32  ;;  %v1417_v0 = vmul.f32 0.71428573, %v14177_v29 }
  0x4a   : > { %2213 = vst.msk [vmem:[#allocation3 + $0x67] ss:$8 sm:$0x3] %vm14211_vm0, %v2122_v23  ;;  %v1418_v8 = vmul.f32 0.71428573, %v14184_v32  ;;  %v11154_v42 = vrot.slane %v14472_v9, 9  ;;  %v836_v19 = vadd.f32 %v11153_v57, %v14177_v29 }
  0x4b   : > { %2659 = vmatpush1.bf16.msra.mxu0 %v13001_v59  ;;  %v1009_v10 = vmul.f32 0.42857143, %v14177_v29  ;;  %v1010_v11 = vmul.f32 0.42857143, %v14184_v32  ;;  %v1217_v12 = vmul.f32 0.85714287, %v14177_v29 }
  0x4c   : > { %2660 = vmatprep.subr.bf16.mxu0 %v13006_v20  ;;  %v1218_v13 = vmul.f32 0.85714287, %v14184_v32  ;;  %v1425_v14 = vmul.f32 0.2857143, %v14177_v29  ;;  %v1426_v18 = vmul.f32 0.2857143, %v14184_v32  ;;  %v837_v20 = vadd.f32 %v11154_v42, %v14184_v32 }
  0x4d   : > { %v11161_v56 = vrot.slane %v1009_v10, 9  ;;  %v11162_v58 = vrot.slane %v1010_v11, 9  ;;  %v11169_v16 = vrot.slane %v1217_v12, 9  ;;  %v11185_v55 = vrot.slane %v1417_v0, 9  ;;  %385 = vst.msk [vmem:[#allocation2 + $0x10] sm:$0xff] %vm381_vm1, %v14449_v52  ;;  %382 = vst.msk [vmem:[#allocation2] sm:$0xff] %vm381_vm1, %v14449_v52 }
  0x4e   : > { %v11170_v17 = vrot.slane %v1218_v13, 9  ;;  %v11177_v59 = vrot.slane %v1425_v14, 9  ;;  %v11201_v42 = vrot.slane %v14455_v4, 9  ;;  %386 = vst.msk [vmem:[#allocation2 + $0x18] sm:$0x3] %vm383_vm2, %v14449_v52 }
  0x4f   : > { %2661 = vmatpush1.bf16.msra.mxu0 %v13004_v24  ;;  %v2423_v46 = vld [vmem:[#allocation3 + $0x48] sm:$0xff]  ;;  %v2422_v61 = vld [vmem:[#allocation3 + $0x40] sm:$0xff]  ;;  %v1049_v21 = vadd.f32 %v11161_v56, %v14455_v4  ;;  %v1050_v22 = vadd.f32 %v11162_v58, %v14458_v6  ;;  %v1257_v23 = vadd.f32 %v11169_v16, %v14461_v15  ;;  %v11202_v56 = vrot.slane %v14458_v6, 9  ;;  %384 = vst.msk [vmem:[#allocation2 + $0x8] sm:$0x3] %vm383_vm2, %v14449_v52 }
  0x50   : > { %2662 = vmatprep.subr.bf16.mxu0 %v13009_v25  ;;  %v1258_v24 = vadd.f32 %v11170_v17, %v1210_v62  ;;  %v11178_v25 = vrot.slane %v1426_v18, 9  ;;  %v1665_v58 = vadd.f32 %v11185_v55, %v1425_v14  ;;  %387 = vst.msk [vmem:[#allocation2 + $0x20] sm:$0xff] %vm381_vm1, %v14449_v52  ;;  %389 = vst.msk [vmem:[#allocation2 + $0x30] sm:$0xff] %vm381_vm1, %v14449_v52  ;;  %v13026_v55 = vld [vmem:[%s17182_s4 + $0x4] ss:$8 sps:$4 sm:$0xff]  }
  0x51   : > { %v2425_v47 = vld [vmem:[#allocation3 + $0x68] sm:$0xff]  ;;  %v2424_v1 = vld [vmem:[#allocation3 + $0x60] sm:$0xff]  ;;  %v2066_v17 = vadd.f32 %v11202_v56, %v1010_v11  ;;  %388 = vst.msk [vmem:[#allocation2 + $0x28] sm:$0x3] %vm383_vm2, %v14449_v52  ;;  %390 = vst.msk [vmem:[#allocation2 + $0x38] sm:$0x3] %vm383_vm2, %v14449_v52 }
  0x52   : > { %v2437_v60 = vpack.c.bf16 %v2425_v47, %v2423_v46  ;;  %v2436_v5 = vpack.c.bf16 %v2424_v1, %v2422_v61  ;;  %v11193_v61 = vrot.slane %v14461_v15, 9  ;;  %v11194_v1 = vrot.slane %v1210_v62, 9  ;;  %391 = vst.msk [vmem:[#allocation2 + $0x40] sm:$0xff] %vm381_vm1, %v14449_v52  ;;  %393 = vst.msk [vmem:[#allocation2 + $0x50] sm:$0xff] %vm381_vm1, %v14449_v52 }
  0x53   : > { %2663 = vmatpush1.bf16.msra.mxu0 %v13007_v26  ;;  %v1465_v26 = vadd.f32 %v11177_v59, %v1417_v0  ;;  %v2065_v62 = vadd.f32 %v11201_v42, %v1009_v10  ;;  %v14521_v59 = vmul.f32 0.0, %v14452_v2  ;;  %v14532_v10 = vmul.f32 0.0, %v14463_v7  ;;  %392 = vst.msk [vmem:[#allocation2 + $0x48] sm:$0x3] %vm383_vm2, %v14449_v52  ;;  %394 = vst.msk [vmem:[#allocation2 + $0x58] sm:$0x3] %vm383_vm2, %v14449_v52 }
  0x54   : > { %2664 = vmatprep.subr.bf16.mxu0 %v13012_v27  ;;  %v897_v27 = vrot.slane %v836_v19, %v14207_v45  ;;  %v1865_v0 = vadd.f32 %v11193_v61, %v1217_v12  ;;  %v1729_v19 = vrot.slane %v1665_v58, %v14207_v45  ;;  %395 = vst.msk [vmem:[#allocation2 + $0x60] sm:$0xff] %vm381_vm1, %v14449_v52  ;;  %397 = vst.msk [vmem:[#allocation2 + $0x70] sm:$0xff] %vm381_vm1, %v14449_v52  ;;  %v13024_v42 = vld [vmem:[%s17182_s4] ss:$8 sps:$4 sm:$0xff]  }
  0x55   : > { %v1529_v41 = vrot.slane %v1465_v26, %v14207_v45  ;;  %v2129_v12 = vrot.slane %v2065_v62, %v14207_v45  ;;  %v11155_v11 = vrot.slane %v14521_v59, 9  ;;  %396 = vst.msk [vmem:[#allocation2 + $0x68] sm:$0x3] %vm383_vm2, %v14449_v52  ;;  %398 = vst.msk [vmem:[#allocation2 + $0x78] sm:$0x3] %vm383_vm2, %v14449_v52 }
  0x56   : > { %v1929_v6 = vrot.slane %v1865_v0, %v14207_v45  ;;  %399 = vst.msk [vmem:[#allocation2 + $0x80] sm:$0xff] %vm381_vm1, %v14449_v52  ;;  %401 = vst.msk [vmem:[#allocation2 + $0x90] sm:$0xff] %vm381_vm1, %v14449_v52  ;;  %v1219_v58 = vmul.f32 0.85714287, %v14452_v2  ;;  %v1419_v62 = vmul.f32 0.71428573, %v14452_v2 }
  0x57   : > { %2665 = vmatpush1.bf16.msra.mxu0 %v13010_v30  ;;  %v911_v30 = vrot.slane %v837_v20, %v14207_v45  ;;  %v1530_v51 = vcombine.high %v1529_v41, %v1529_v41  ;;  %400 = vst.msk [vmem:[#allocation2 + $0x88] sm:$0x3] %vm383_vm2, %v14449_v52  ;;  %402 = vst.msk [vmem:[#allocation2 + $0x98] sm:$0x3] %vm383_vm2, %v14449_v52  ;;  %v1003_v52 = vmul.f32 0.5714286, %v14452_v2 }
  0x58   : > { %2666 = vmatprep.subr.bf16.mxu0 %v13015_v33  ;;  %v1110_v33 = vrot.slane %v1049_v21, %v14207_v45  ;;  %v1936_v21 = vrot.slane %v1929_v6, %v14207_v45  ;;  %v1011_v41 = vmul.f32 0.42857143, %v14452_v2 }
  0x59   : > { %v918_v44 = vrot.slane %v911_v30, %v14207_v45 }
  0x5a   : > { %v1117_v46 = vrot.slane %v1110_v33, %v14207_v45 }
  0x5b   : > { %2667 = vmatpush1.bf16.msra.mxu0 %v13013_v35  ;;  %v1124_v35 = vrot.slane %v1050_v22, %v14207_v45  ;;  %987 = vst.msk [vmem:[#allocation3 + $0xa1] ss:$8 sm:$0x3] %vm14211_vm0, %v918_v44 }
  0x5c   : > { %2668 = vmatprep.subr.bf16.mxu0 %v13018_v38  ;;  %v1318_v38 = vrot.slane %v1257_v23, %v14207_v45  ;;  %1192 = vst.msk [vmem:[#allocation3 + $0x82] ss:$8 sm:$0x3] %vm14211_vm0, %v1117_v46  ;;  %v2136_v23 = vrot.slane %v2129_v12, %v14207_v45  ;;  %v14603_v46 = vmul.f32 0.42857143, %v14463_v7 }
  0x5d   : > { %v1131_v47 = vrot.slane %v1124_v35, %v14207_v45  ;;  %v13028_v12 = vld [vmem:[%s17182_s4 + $0x44] ss:$8 sps:$4 sm:$0xff]  }
  0x5e   : > { %v1325_v49 = vrot.slane %v1318_v38, %v14207_v45  ;;  %v2137_v33 = vcombine.high %v2136_v23, %v2136_v23  ;;  %v11156_v38 = vrot.slane %v14532_v10, 9 }
  0x5f   : > { %2669 = vmatpush1.bf16.msra.mxu0 %v13016_v39  ;;  %v1332_v39 = vrot.slane %v1258_v24, %v14207_v45  ;;  %1195 = vst.msk [vmem:[#allocation3 + $0xa2] ss:$8 sm:$0x3] %vm14211_vm0, %v1131_v47  ;;  %v14606_v47 = vmul.f32 0.14285715, %v14452_v2 }
  0x60   : > { %2670 = vmatprep.subr.bf16.mxu0 %v13021_v40  ;;  %v1466_v40 = vadd.f32 %v11178_v25, %v1418_v8  ;;  %1400 = vst.msk [vmem:[#allocation3 + $0x83] ss:$8 sm:$0x3] %vm14211_vm0, %v1325_v49  ;;  %2216 = vst.msk [vmem:[#allocation3 + $0x87] ss:$8 sm:$0x3] %vm14211_vm0, %v2137_v33 }
  0x61   : > { %v1339_v50 = vrot.slane %v1332_v39, %v14207_v45  ;;  %v838_v39 = vadd.f32 %v11155_v11, %v14452_v2  ;;  %v13022_v49 = vld [vmem:[%s17182_s4 + $0x34] ss:$8 sps:$4 sm:$0xff]   ;;  %v1428_v11 = vmul.f32 0.2857143, %v14463_v7 }
  0x62   : > { %3026 = vmatprep.subr.bf16.mxu1 %v13022_v49 }
  0x63   : > { %2671 = vmatpush1.bf16.msra.mxu0 %v13019_v43  ;;  %v904_v43 = vrot.slane %v897_v27, %v14207_v45  ;;  %1403 = vst.msk [vmem:[#allocation3 + $0xa3] ss:$8 sm:$0x3] %vm14211_vm0, %v1339_v50  ;;  %v1937_v27 = vcombine.high %v1936_v21, %v1936_v21  ;;  %v925_v44 = vrot.slane %v838_v39, %v14207_v45  ;;  %v11163_v50 = vrot.slane %v1011_v41, 9  ;;  %v13032_v21 = vld [vmem:[%s17182_s4 + $0x14] ss:$8 sps:$4 sm:$0xff]  }
  0x64   : > { %2755 = vmatprep.subr.bf16.mxu0 %v13026_v55  ;;  %v11180_v39 = vrot.slane %v1428_v11, 9 }
  0x65   : > { %984 = vst.msk [vmem:[#allocation3 + $0x81] ss:$8 sm:$0x3] %vm14211_vm0, %v904_v43  ;;  %2016 = vst.msk [vmem:[#allocation3 + $0x86] ss:$8 sm:$0x3] %vm14211_vm0, %v1937_v27  ;;  %v839_v43 = vadd.f32 %v11156_v38, %v14463_v7  ;;  %v932_v61 = vrot.slane %v925_v44, %v14207_v45  ;;  %v1051_v56 = vadd.f32 %v11163_v50, %v1003_v52 }
  0x66   : > { %2673 = vmatmul.mubr.bf16.vlgmr.msra.gmra.mrb[16].mxu0 %v2434_v53  ;;  %v1544_v53 = vrot.slane %v1466_v40, %v14207_v45  ;;  %v14593_v40 = vmul.f32 0.5714286, %v14463_v7 }
  0x67   : > { %2682 = vmatprep.mubr.bf16.mxu0 %v2437_v60  ;;  %v11186_v60 = vrot.slane %v1418_v8, 9  ;;  %v1866_v8 = vadd.f32 %v11194_v1, %v1218_v13  ;;  %v2144_v13 = vrot.slane %v2066_v17, %v14207_v45  ;;  %v939_v1 = vrot.slane %v839_v43, %v14207_v45  ;;  %990 = vst.msk [vmem:[#allocation3 + $0xc1] ss:$8 sm:$0x3] %vm14211_vm0, %v932_v61  ;;  %v13033_v43 = vld [vmem:[%s17182_s4 + $0x40] ss:$8 sps:$4 sm:$0xff]  }
  0x68   : > { %v1545_v57 = vcombine.high %v1544_v53, %v1544_v53  ;;  %v11203_v53 = vrot.slane %v1003_v52, 9  ;;  %v1420_v17 = vmul.f32 0.71428573, %v14463_v7  ;;  %2756 = vmatpush1.bf16.msra.mxu0 %v13024_v42  ;;  %v13039_v42 = vld [vmem:[%s17182_s4 + $0x50] ss:$8 sps:$4 sm:$0xff]  }
  0x69   : > { %v1666_v16 = vadd.f32 %v11186_v60, %v1426_v18  ;;  %v1944_v14 = vrot.slane %v1866_v8, %v14207_v45  ;;  %v1730_v18 = vcombine.high %v1729_v19, %v1729_v19  ;;  %v2151_v24 = vrot.slane %v2144_v13, %v14207_v45  ;;  %v13027_v60 = vld [vmem:[%s17182_s4 + $0x30] ss:$8 sps:$4 sm:$0xff]   ;;  %2757 = vmatprep.subr.bf16.mxu0 %v13032_v21 }
  0x6a   : > { %v1552_v15 = vrot.slane %v1545_v57, %v14207_v45  ;;  %v11195_v57 = vrot.slane %v14606_v47, 9  ;;  %v14629_v0 = vadd.f32 %v11203_v53, %v1011_v41  ;;  %3027 = vmatpush1.bf16.msra.mxu1 %v13027_v60  ;;  %v946_v8 = vrot.slane %v939_v1, %v14207_v45  ;;  %v13030_v41 = vld [vmem:[%s17182_s4 + $0x10] ss:$8 sps:$4 sm:$0xff]   ;;  %v13034_v53 = vld [vmem:[%s17182_s4 + $0x54] ss:$8 sps:$4 sm:$0xff]  }
  0x6b   : > { %v1744_v4 = vrot.slane %v1666_v16, %v14207_v45  ;;  %v1951_v22 = vrot.slane %v1944_v14, %v14207_v45  ;;  %v1737_v25 = vrot.slane %v1730_v18, %v14207_v45  ;;  %v2152_v35 = vcombine.high %v2151_v24, %v2151_v24  ;;  %3028 = vmatprep.subr.bf16.mxu1 %v13028_v12 }
  0x6c   : > { %1619 = vst.msk [vmem:[#allocation3 + $0xa4] ss:$8 sm:$0x3] %vm14211_vm0, %v1552_v15  ;;  %v1220_v16 = vmul.f32 0.85714287, %v14463_v7  ;;  %v1138_v19 = vrot.slane %v1051_v56, %v14207_v45  ;;  %v11187_v18 = vrot.slane %v1419_v62, 9  ;;  %v1468_v55 = vadd.f32 %v11180_v39, %v1420_v17  ;;  %2758 = vmatpush1.bf16.msra.mxu0 %v13030_v41 }
  0x6d   : > { %v1745_v20 = vcombine.high %v1744_v4, %v1744_v4  ;;  %v1952_v30 = vcombine.high %v1951_v22, %v1951_v22  ;;  %1816 = vst.msk [vmem:[#allocation3 + $0x85] ss:$8 sm:$0x3] %vm14211_vm0, %v1737_v25  ;;  %2219 = vst.msk [vmem:[#allocation3 + $0xa7] ss:$8 sm:$0x3] %vm14211_vm0, %v2152_v35  ;;  %v2159_v12 = vrot.slane %v14629_v0, %v14207_v45 }
  0x6e   : > { %2683 = vmatmul.mubr.bf16.gmra.mrb[20].mxu0 %v2436_v5  ;;  %v1537_v5 = vrot.slane %v1530_v51, %v14207_v45  ;;  %v14612_v51 = vmul.f32 0.14285715, %v14463_v7  ;;  %v11171_v4 = vrot.slane %v1219_v58, 9  ;;  %v11172_v6 = vrot.slane %v1220_v16, 9  ;;  %3029 = vmatpush1.bf16.msra.mxu1 %v13033_v43 }
  0x6f   : > { %v1752_v26 = vrot.slane %v1745_v20, %v14207_v45  ;;  %2019 = vst.msk [vmem:[#allocation3 + $0xa6] ss:$8 sm:$0x3] %vm14211_vm0, %v1952_v30  ;;  %v1427_v14 = vmul.f32 0.2857143, %v14452_v2  ;;  %v11188_v20 = vrot.slane %v1420_v17, 9  ;;  %v1145_v25 = vrot.slane %v1138_v19, %v14207_v45  ;;  %3030 = vmatprep.subr.bf16.mxu1 %v13034_v53 }
  0x70   : > { %1616 = vst.msk [vmem:[#allocation3 + $0x84] ss:$8 sm:$0x3] %vm14211_vm0, %v1537_v5  ;;  %v11164_v5 = vrot.slane %v14603_v46, 9  ;;  %v1260_v27 = vadd.f32 %v11172_v6, %v14612_v51  ;;  %v11196_v1 = vrot.slane %v14612_v51, 9  ;;  %v1574_v17 = vrot.slane %v1468_v55, %v14207_v45 }
  0x71   : > { %1819 = vst.msk [vmem:[#allocation3 + $0xa5] ss:$8 sm:$0x3] %vm14211_vm0, %v1752_v26  ;;  %993 = vst.msk [vmem:[#allocation3 + $0xe1] ss:$8 sm:$0x3] %vm14211_vm0, %v946_v8  ;;  %v1259_v26 = vadd.f32 %v11171_v4, %v14606_v47  ;;  %v1667_v52 = vadd.f32 %v11187_v18, %v1427_v14  ;;  %v1668_v60 = vadd.f32 %v11188_v20, %v1428_v11 }
  0x72   : > { %v1052_v15 = vadd.f32 %v11164_v5, %v14593_v40  ;;  %v11179_v30 = vrot.slane %v1427_v14, 9  ;;  %1198 = vst.msk [vmem:[#allocation3 + $0xc2] ss:$8 sm:$0x3] %vm14211_vm0, %v1145_v25  ;;  %v1360_v49 = vrot.slane %v1260_v27, %v14207_v45  ;;  %v13038_v5 = vld [vmem:[%s17182_s4 + $0x24] ss:$8 sps:$4 sm:$0xff]   ;;  %v1868_v6 = vadd.f32 %v11196_v1, %v1220_v16  ;;  %3031 = vmatpush1.bf16.msra.mxu1 %v13039_v42 }
  0x73   : > { %v1346_v47 = vrot.slane %v1259_v26, %v14207_v45  ;;  %v1759_v61 = vrot.slane %v1667_v52, %v14207_v45  ;;  %v13036_v51 = vld [vmem:[%s17182_s4 + $0x20] ss:$8 sps:$4 sm:$0xff]   ;;  %v1774_v4 = vrot.slane %v1668_v60, %v14207_v45  ;;  %2759 = vmatprep.subr.bf16.mxu0 %v13038_v5  ;;  %v13042_v16 = vld [vmem:[%s17183_s5 + $0x104] ss:$8 sps:$4 sm:$0xff]   ;;  %v2166_v0 = vrot.slane %v2159_v12, %v14207_v45 }
  0x74   : > { %v1152_v13 = vrot.slane %v1052_v15, %v14207_v45  ;;  %v1467_v50 = vadd.f32 %v11179_v30, %v1419_v62  ;;  %v1367_v8 = vrot.slane %v1360_v49, %v14207_v45  ;;  %v1867_v62 = vadd.f32 %v11195_v57, %v1219_v58  ;;  %3308 = vmatprep.subr.bf16.mxu1 %v13042_v16 }
  0x75   : > { %v1353_v56 = vrot.slane %v1346_v47, %v14207_v45  ;;  %v1760_v19 = vcombine.high %v1759_v61, %v1759_v61  ;;  %v11204_v58 = vrot.slane %v14593_v40, 9  ;;  %v1775_v18 = vcombine.high %v1774_v4, %v1774_v4  ;;  %2760 = vmatpush1.bf16.msra.mxu0 %v13036_v51 }
  0x76   : > { %v1159_v38 = vrot.slane %v1152_v13, %v14207_v45  ;;  %v1559_v15 = vrot.slane %v1467_v50, %v14207_v45  ;;  %1409 = vst.msk [vmem:[#allocation3 + $0xe3] ss:$8 sm:$0x3] %vm14211_vm0, %v1367_v8  ;;  %v1959_v57 = vrot.slane %v1867_v62, %v14207_v45  ;;  %v1575_v13 = vcombine.high %v1574_v17, %v1574_v17 }
  0x77   : > { %v2427_v22 = vld [vmem:[#allocation3 + $0x88] sm:$0xff]  ;;  %v2426_v24 = vld [vmem:[#allocation3 + $0x80] sm:$0xff]  ;;  %1406 = vst.msk [vmem:[#allocation3 + $0xc3] ss:$8 sm:$0x3] %vm14211_vm0, %v1353_v56  ;;  %v1767_v11 = vrot.slane %v1760_v19, %v14207_v45  ;;  %v1974_v20 = vrot.slane %v1868_v6, %v14207_v45  ;;  %v2167_v27 = vcombine.high %v2166_v0, %v2166_v0  ;;  %v13952_v30 = vmov 0  }
  0x78   : > { %v2429_v23 = vld [vmem:[#allocation3 + $0xa8] sm:$0xff]  ;;  %v2428_v35 = vld [vmem:[#allocation3 + $0xa0] sm:$0xff]  ;;  %1201 = vst.msk [vmem:[#allocation3 + $0xe2] ss:$8 sm:$0x3] %vm14211_vm0, %v1159_v38  ;;  %v1560_v14 = vcombine.high %v1559_v15, %v1559_v15  ;;  %v1966_v40 = vrot.slane %v1959_v57, %v14207_v45  ;;  %3058 = vmatprep.mubr.bf16.mxu1 %v13952_v30  ;;  %v2230_v49 = vadd.f32 %v14190_v34, %v14175_v28 }
  0x79   : > { %v2439_v33 = vpack.c.bf16 %v2429_v23, %v2427_v22  ;;  %v2438_v44 = vpack.c.bf16 %v2428_v35, %v2426_v24  ;;  %v2068_v22 = vadd.f32 %v11204_v58, %v14603_v46  ;;  %v1582_v23 = vrot.slane %v1575_v13, %v14207_v45  ;;  %1822 = vst.msk [vmem:[#allocation3 + $0xc5] ss:$8 sm:$0x3] %vm14211_vm0, %v1767_v11  ;;  %v14769_v13 = vld [vmem:[%s17181_s3] ss:$0 sm:$0xff] }
  0x7a   : > { %v1567_v21 = vrot.slane %v1560_v14, %v14207_v45  ;;  %v1782_v24 = vrot.slane %v1775_v18, %v14207_v45  ;;  %v1981_v25 = vrot.slane %v1974_v20, %v14207_v45  ;;  %v1967_v26 = vcombine.high %v1966_v40, %v1966_v40  ;;  %2222 = vst.msk [vmem:[#allocation3 + $0xc7] ss:$8 sm:$0x3] %vm14211_vm0, %v2167_v27  ;;  %v14774_v11 = vld [vmem:[%s17181_s3 + $0x1] ss:$0 sm:$0xff] }
  0x7b   : > { %2692 = vmatprep.mubr.bf16.mxu0 %v2439_v33  ;;  %v2174_v46 = vrot.slane %v2068_v22, %v14207_v45  ;;  %1625 = vst.msk [vmem:[#allocation3 + $0xe4] ss:$8 sm:$0x3] %vm14211_vm0, %v1582_v23  ;;  %v2252_v50 = vrot.slane %v2230_v49, %v14207_v45  ;;  %v2231_v61 = vadd.f32 %v14195_v37, %v14182_v31 }
  0x7c   : > { %2693 = vmatmul.mubr.bf16.gmra.mrb[24].mxu0 %v2438_v44  ;;  %1622 = vst.msk [vmem:[#allocation3 + $0xc4] ss:$8 sm:$0x3] %vm14211_vm0, %v1567_v21  ;;  %1825 = vst.msk [vmem:[#allocation3 + $0xe5] ss:$8 sm:$0x3] %vm14211_vm0, %v1782_v24  ;;  %v1982_v33 = vcombine.high %v1981_v25, %v1981_v25  ;;  %v2232_v1 = vadd.f32 %v14231_v63, %v14219_v54  ;;  %v2233_v31 = vadd.f32 %v14469_v3, %v14177_v29 }
  0x7d   : > { %2022 = vst.msk [vmem:[#allocation3 + $0xc6] ss:$8 sm:$0x3] %vm14211_vm0, %v1967_v26  ;;  %v2181_v35 = vrot.slane %v2174_v46, %v14207_v45  ;;  %v2253_v53 = vcombine.high %v2252_v50, %v2252_v50  ;;  %v2268_v5 = vrot.slane %v2231_v61, %v14207_v45  ;;  %v2234_v37 = vadd.f32 %v14472_v9, %v14184_v32 }
  0x7e   : > { %2025 = vst.msk [vmem:[#allocation3 + $0xe6] ss:$8 sm:$0x3] %vm14211_vm0, %v1982_v33  ;;  %v2284_v42 = vrot.slane %v2232_v1, %v14207_v45  ;;  %v2300_v54 = vrot.slane %v2233_v31, %v14207_v45  ;;  %v2235_v32 = vadd.f32 %v14521_v59, %v14452_v2  ;;  %v2236_v9 = vadd.f32 %v14532_v10, %v14463_v7 }
  0x7f   : > { %v2182_v38 = vcombine.high %v2181_v35, %v2181_v35  ;;  %v2260_v55 = vrot.slane %v2253_v53, %v14207_v45  ;;  %v2269_v28 = vcombine.high %v2268_v5, %v2268_v5  ;;  %v2316_v63 = vrot.slane %v2234_v37, %v14207_v45  ;;  %v13043_v37 = vld [vmem:[%s17183_s5 + $0x110] ss:$8 sps:$4 sm:$0xff]  }
  0x80   : > { %v2285_v34 = vcombine.high %v2284_v42, %v2284_v42  ;;  %v2301_v51 = vcombine.high %v2300_v54, %v2300_v54  ;;  %v2332_v6 = vrot.slane %v2235_v32, %v14207_v45  ;;  %v2348_v14 = vrot.slane %v2236_v9, %v14207_v45  ;;  %v13048_v54 = vld [vmem:[%s17183_s5 + $0x124] ss:$8 sps:$4 sm:$0xff]  }
  0x81   : > { %2225 = vst.msk [vmem:[#allocation3 + $0xe7] ss:$8 sm:$0x3] %vm14211_vm0, %v2182_v38  ;;  %v2261_v60 = vcombine.high %v2260_v55, %v2260_v55  ;;  %v2276_v56 = vrot.slane %v2269_v28, %v14207_v45  ;;  %v2317_v17 = vcombine.high %v2316_v63, %v2316_v63  ;;  %v13040_v55 = vld [vmem:[%s17183_s5 + $0x100] ss:$8 sps:$4 sm:$0xff]  }
  0x82   : > { %v2292_v8 = vrot.slane %v2285_v34, %v14207_v45  ;;  %v2308_v19 = vrot.slane %v2301_v51, %v14207_v45  ;;  %v2333_v57 = vcombine.high %v2332_v6, %v2332_v6  ;;  %v2349_v58 = vcombine.high %v2348_v14, %v2348_v14  ;;  %v13045_v28 = vld [vmem:[%s17183_s5 + $0x114] ss:$8 sps:$4 sm:$0xff]  }
  0x83   : > { %2383 = vst.msk [vmem:[#allocation3 + $0x30] ss:$8 sm:$0x3] %vm14211_vm0, %v2261_v60  ;;  %v2277_v15 = vcombine.high %v2276_v56, %v2276_v56  ;;  %v2324_v4 = vrot.slane %v2317_v17, %v14207_v45  ;;  %v13046_v17 = vld [vmem:[%s17183_s5 + $0x120] ss:$8 sps:$4 sm:$0xff]  }
  0x84   : > { %v2431_v39 = vld [vmem:[#allocation3 + $0xc8] sm:$0xff]  ;;  %v2430_v52 = vld [vmem:[#allocation3 + $0xc0] sm:$0xff]  ;;  %v2293_v62 = vcombine.high %v2292_v8, %v2292_v8  ;;  %v2309_v29 = vcombine.high %v2308_v19, %v2308_v19  ;;  %v2340_v12 = vrot.slane %v2333_v57, %v14207_v45  ;;  %v2356_v16 = vrot.slane %v2349_v58, %v14207_v45 }
  0x85   : > { %2386 = vst.msk [vmem:[#allocation3 + $0x50] ss:$8 sm:$0x3] %vm14211_vm0, %v2277_v15  ;;  %v2325_v3 = vcombine.high %v2324_v4, %v2324_v4 }
  0x86   : > { %2389 = vst.msk [vmem:[#allocation3 + $0x70] ss:$8 sm:$0x3] %vm14211_vm0, %v2293_v62  ;;  %2392 = vst.msk [vmem:[#allocation3 + $0x90] ss:$8 sm:$0x3] %vm14211_vm0, %v2309_v29  ;;  %v2341_v2 = vcombine.high %v2340_v12, %v2340_v12  ;;  %v2357_v59 = vcombine.high %v2356_v16, %v2356_v16 }
  0x87   : > { %2395 = vst.msk [vmem:[#allocation3 + $0xb0] ss:$8 sm:$0x3] %vm14211_vm0, %v2325_v3  ;;  %v13051_v12 = vld [vmem:[%s17183_s5 + $0x134] ss:$8 sps:$4 sm:$0xff]  }
  0x88   : > { %v2433_v41 = vld [vmem:[#allocation3 + $0xe8] sm:$0xff]  ;;  %v2432_v43 = vld [vmem:[#allocation3 + $0xe0] sm:$0xff]  ;;  %2398 = vst.msk [vmem:[#allocation3 + $0xd0] ss:$8 sm:$0x3] %vm14211_vm0, %v2341_v2 }
  0x89   : > { %v2441_v44 = vpack.c.bf16 %v2433_v41, %v2431_v39  ;;  %v2440_v47 = vpack.c.bf16 %v2432_v43, %v2430_v52  ;;  %2401 = vst.msk [vmem:[#allocation3 + $0xf0] ss:$8 sm:$0x3] %vm14211_vm0, %v2357_v59  ;;  %v2406_v41 = vld [vmem:[#allocation2] sm:$0xff] }
  0x8a   : > { %v2828_v43 = vld [vmem:[#allocation2 + $0x1] sm:$0xff] }
  0x8b   : > { %2702 = vmatprep.mubr.bf16.mxu0 %v2441_v44 }
  0x8c   : > { %2703 = vmatmul.mubr.bf16.gmra.mrb[28].mxu0 %v2440_v47 }
  0x8d   : > { %2787 = vmatprep.mubr.bf16.mxu0 %v13952_v30 }
  0xf9   : > { %v12471_v7 = vpop.f32.mrb[0].mxu0 }
  0xfa   : > { %v12472_v10 = vpop.f32.mrb[1].mxu0 }
  0xfb   : > { %v12473_v18 = vadd.f32 %v12472_v10, %v12471_v7  ;;  %v12474_v20 = vpop.f32.mrb[2].mxu0 }
  0xfc   : > { %v12475_v21 = vpop.f32.mrb[3].mxu0 }
  0xfd   : > { %v729_v40 = vmul.f32 %v12473_v18, %v14769_v13  ;;  %v12476_v22 = vadd.f32 %v12475_v21, %v12474_v20  ;;  %v13049_v20 = vld [vmem:[%s17183_s5 + $0x130] ss:$8 sps:$4 sm:$0xff]   ;;  %v13054_v21 = vld [vmem:[%s17183_s5 + $0x144] ss:$8 sps:$4 sm:$0xff]  }
  0xff   : > { %v742_v0 = vadd.f32 %v14774_v11, %v729_v40  ;;  %v730_v23 = vmul.f32 %v12476_v22, %v14769_v13 }
 0x101   : > { %v750_v24 = vmax.f32 %v742_v0, 0.0  ;;  %v743_v25 = vadd.f32 %v14774_v11, %v730_v23  ;;  %v12477_v26 = vpop.f32.mrb[4].mxu0  ;;  %v2841_v0 = vld [vmem:[#allocation3 + $0x8] sm:$0xfe]  ;;  %v2843_v23 = vld [vmem:[#allocation3 + $0x18] sm:$0x1] }
 0x102   : > { %v12478_v27 = vpop.f32.mrb[5].mxu0 }
 0x103   : > { %759 = vst.msk [vmem:[#allocation2 + $0x11] sm:$0xff] %vm381_vm1, %v750_v24  ;;  %v751_v46 = vmax.f32 %v743_v25, 0.0  ;;  %v12479_v33 = vadd.f32 %v12478_v27, %v12477_v26  ;;  %v12480_v35 = vpop.f32.mrb[6].mxu0  ;;  %v2845_v24 = vld [vmem:[#allocation3 + $0x28] sm:$0xfe] }
 0x104   : > { %v12481_v38 = vpop.f32.mrb[7].mxu0  ;;  %v2847_v27 = vld [vmem:[#allocation3 + $0x38] sm:$0x1] }
 0x105   : > { %760 = vst.msk [vmem:[#allocation2 + $0x21] sm:$0xff] %vm381_vm1, %v751_v46  ;;  %v731_v39 = vmul.f32 %v12479_v33, %v14769_v13  ;;  %v12482_v52 = vadd.f32 %v12481_v38, %v12480_v35  ;;  %v13052_v46 = vld [vmem:[%s17183_s5 + $0x140] ss:$8 sps:$4 sm:$0xff]  }
 0x107   : > { %v744_v44 = vadd.f32 %v14774_v11, %v731_v39  ;;  %v732_v47 = vmul.f32 %v12482_v52, %v14769_v13  ;;  %v2909_v52 = vrot.slane %v2843_v23, 1 }
 0x109   : > { %v752_v49 = vmax.f32 %v744_v44, 0.0  ;;  %v745_v50 = vadd.f32 %v14774_v11, %v732_v47  ;;  %v12483_v53 = vpop.f32.mrb[8].mxu0 }
 0x10a   : > { %v2407_v60 = vld [vmem:[#allocation2 + $0x10] sm:$0xff]  ;;  %v12484_v1 = vpop.f32.mrb[9].mxu0 }
 0x10b   : > { %v2829_v61 = vld [vmem:[#allocation2 + $0x11] sm:$0xff]  ;;  %761 = vst.msk [vmem:[#allocation2 + $0x31] sm:$0xff] %vm381_vm1, %v752_v49  ;;  %v2414_v5 = vpack.c.bf16 %v2407_v60, %v2406_v41  ;;  %v753_v34 = vmax.f32 %v745_v50, 0.0  ;;  %v12485_v56 = vadd.f32 %v12484_v1, %v12483_v53  ;;  %v12486_v8 = vpop.f32.mrb[10].mxu0  ;;  %v2914_v41 = vrot.slane %v2845_v24, 1 }
 0x10c   : > { %v2836_v42 = vpack.c.bf16 %v2829_v61, %v2828_v43  ;;  %v12487_v15 = vpop.f32.mrb[11].mxu0  ;;  %v2408_v19 = vld [vmem:[#allocation2 + $0x20] sm:$0xff]  ;;  %v13057_v43 = vld [vmem:[%s17183_s5 + $0x154] ss:$8 sps:$4 sm:$0xff]   ;;  %v2915_v50 = vrot.slane %v2847_v27, 1 }
 0x10d   : > { %11244 = vmatmul.mubr.msk.bf16.vlgmr.msra.gmra.mrb[16].mxu0 %vm381_vm1, %v2414_v5  ;;  %762 = vst.msk [vmem:[#allocation2 + $0x41] sm:$0xff] %vm381_vm1, %v753_v34  ;;  %v733_v62 = vmul.f32 %v12485_v56, %v14769_v13  ;;  %v12488_v31 = vadd.f32 %v12487_v15, %v12486_v8  ;;  %v2830_v9 = vld [vmem:[#allocation2 + $0x21] sm:$0xff]  ;;  %v13063_v8 = vld [vmem:[%s17183_s5 + $0x174] ss:$8 sps:$4 sm:$0xff]   ;;  %v13085_v27 = vld [vmem:[%s17183_s5 + $0x1f0] ss:$8 sps:$4 sm:$0xff]  }
 0x10e   : > { %11260 = vmatmul.mubr.msk.bf16.vlgmr.msra.gmra.mrb[0].mxu1 %vm381_vm1, %v2836_v42  ;;  %2797 = vmatprep.mubr.bf16.mxu0 %v13952_v30  ;;  %v13060_v60 = vld [vmem:[%s17183_s5 + $0x164] ss:$8 sps:$4 sm:$0xff]   ;;  %v2916_v1 = vsel %vm2904_vm3, %v2914_v41, %v2915_v50  ;;  %v13058_v42 = vld [vmem:[%s17183_s5 + $0x160] ss:$8 sps:$4 sm:$0xff]  }
 0x10f   : > { %3309 = vmatpush1.bf16.msra.mxu1 %v13040_v55  ;;  %3068 = vmatprep.mubr.bf16.mxu1 %v13952_v30  ;;  %v746_v63 = vadd.f32 %v14774_v11, %v733_v62  ;;  %v734_v51 = vmul.f32 %v12488_v31, %v14769_v13  ;;  %v13055_v55 = vld [vmem:[%s17183_s5 + $0x150] ss:$8 sps:$4 sm:$0xff]  }
 0x110   : > { %3310 = vmatprep.subr.bf16.mxu1 %v13045_v28  ;;  %v13061_v31 = vld [vmem:[%s17183_s5 + $0x170] ss:$8 sps:$4 sm:$0xff]  }
 0x111   : > { %v754_v4 = vmax.f32 %v746_v63, 0.0  ;;  %v747_v29 = vadd.f32 %v14774_v11, %v734_v51  ;;  %v12489_v3 = vpop.f32.mrb[12].mxu0  ;;  %v13069_v63 = vld [vmem:[%s17183_s5 + $0x194] ss:$8 sps:$4 sm:$0xff]   ;;  %v13067_v51 = vld [vmem:[%s17183_s5 + $0x190] ss:$8 sps:$4 sm:$0xff]  }
 0x112   : > { %v2409_v32 = vld [vmem:[#allocation2 + $0x30] sm:$0xff]  ;;  %v12490_v14 = vpop.f32.mrb[13].mxu0 }
 0x113   : > { %3311 = vmatpush1.bf16.msra.mxu1 %v13043_v37  ;;  %v2831_v6 = vld [vmem:[#allocation2 + $0x31] sm:$0xff]  ;;  %v2415_v57 = vpack.c.bf16 %v2409_v32, %v2408_v19  ;;  %763 = vst.msk [vmem:[#allocation2 + $0x51] sm:$0xff] %vm381_vm1, %v754_v4  ;;  %v755_v16 = vmax.f32 %v747_v29, 0.0  ;;  %v12491_v2 = vadd.f32 %v12490_v14, %v12489_v3  ;;  %v12492_v59 = vpop.f32.mrb[14].mxu0  ;;  %v13066_v37 = vld [vmem:[%s17183_s5 + $0x184] ss:$8 sps:$4 sm:$0xff]  }
 0x114   : > { %3312 = vmatprep.subr.bf16.mxu1 %v13048_v54  ;;  %v2837_v58 = vpack.c.bf16 %v2831_v6, %v2830_v9  ;;  %v12493_v7 = vpop.f32.mrb[15].mxu0  ;;  %v2410_v25 = vld [vmem:[#allocation2 + $0x40] sm:$0xff]  ;;  %v13075_v4 = vld [vmem:[%s17183_s5 + $0x1b4] ss:$8 sps:$4 sm:$0xff]   ;;  %v13073_v29 = vld [vmem:[%s17183_s5 + $0x1b0] ss:$8 sps:$4 sm:$0xff]  }
 0x115   : > { %11245 = vmatmul.mubr.msk.bf16.gmra.mrb[20].mxu0 %vm381_vm1, %v2415_v57  ;;  %764 = vst.msk [vmem:[#allocation2 + $0x61] sm:$0xff] %vm381_vm1, %v755_v16  ;;  %v735_v10 = vmul.f32 %v12491_v2, %v14769_v13  ;;  %v12494_v18 = vadd.f32 %v12493_v7, %v12492_v59  ;;  %v2832_v26 = vld [vmem:[#allocation2 + $0x41] sm:$0xff]  ;;  %v13081_v9 = vld [vmem:[%s17183_s5 + $0x1d4] ss:$8 sps:$4 sm:$0xff]   ;;  %v13079_v6 = vld [vmem:[%s17183_s5 + $0x1d0] ss:$8 sps:$4 sm:$0xff]  }
 0x116   : > { %11261 = vmatmul.mubr.msk.bf16.gmra.mrb[4].mxu1 %vm381_vm1, %v2837_v58  ;;  %2807 = vmatprep.mubr.bf16.mxu0 %v13952_v30  ;;  %v13064_v54 = vld [vmem:[%s17183_s5 + $0x180] ss:$8 sps:$4 sm:$0xff]   ;;  %v13078_v3 = vld [vmem:[%s17183_s5 + $0x1c4] ss:$8 sps:$4 sm:$0xff]   ;;  %v2842_v58 = vld [vmem:[#allocation3 + $0x10] sm:$0x1] }
 0x117   : > { %3313 = vmatpush1.bf16.msra.mxu1 %v13046_v17  ;;  %v748_v40 = vadd.f32 %v14774_v11, %v735_v10  ;;  %v736_v22 = vmul.f32 %v12494_v18, %v14769_v13  ;;  %3078 = vmatprep.mubr.bf16.mxu1 %v13952_v30  ;;  %v2908_v13 = vrot.slane %v2841_v0, 1  ;;  %v13072_v17 = vld [vmem:[%s17183_s5 + $0x1a4] ss:$8 sps:$4 sm:$0xff]   ;;  %v13070_v19 = vld [vmem:[%s17183_s5 + $0x1a0] ss:$8 sps:$4 sm:$0xff]  }
 0x118   : > { %3314 = vmatprep.subr.bf16.mxu1 %v13051_v12  ;;  %v13076_v32 = vld [vmem:[%s17183_s5 + $0x1c0] ss:$8 sps:$4 sm:$0xff]   ;;  %v13084_v14 = vld [vmem:[%s17183_s5 + $0x1e4] ss:$8 sps:$4 sm:$0xff]   ;;  %v2846_v16 = vld [vmem:[#allocation3 + $0x30] sm:$0x1] }
 0x119   : > { %v756_v33 = vmax.f32 %v748_v40, 0.0  ;;  %v749_v35 = vadd.f32 %v14774_v11, %v736_v22  ;;  %v2910_v61 = vsel %vm2904_vm3, %v2908_v13, %v2909_v52  ;;  %v2840_v57 = vld [vmem:[#allocation3] sm:$0xfe]  ;;  %v2849_v2 = vld [vmem:[#allocation3 + $0x48] sm:$0xfe]  ;;  %v2906_v40 = vrot.slane %v2842_v58, 1 }
 0x11a   : > { %v14833_v38 = vld [vmem:[#allocation2 + $0x50] sm:$0xff]  ;;  %v2970_v56 = vpack.c.bf16 %v2916_v1, %v2910_v61  ;;  %v2844_v12 = vld [vmem:[#allocation3 + $0x20] sm:$0xfe]  ;;  %v2851_v7 = vld [vmem:[#allocation3 + $0x58] sm:$0x1]  ;;  %v2912_v0 = vrot.slane %v2846_v16, 1 }
 0x11b   : > { %3315 = vmatpush1.bf16.msra.mxu1 %v13049_v20  ;;  %v2833_v39 = vld [vmem:[#allocation2 + $0x51] sm:$0xff]  ;;  %765 = vst.msk [vmem:[#allocation2 + $0x71] sm:$0xff] %vm381_vm1, %v756_v33  ;;  %v757_v44 = vmax.f32 %v749_v35, 0.0  ;;  %v2416_v47 = vpack.c.bf16 %v14833_v38, %v2410_v25  ;;  %v13082_v59 = vld [vmem:[%s17183_s5 + $0x1e0] ss:$8 sps:$4 sm:$0xff]   ;;  %v2911_v22 = vrot.slane %v2844_v12, 1 }
 0x11c   : > { %3316 = vmatprep.subr.bf16.mxu1 %v13054_v21  ;;  %v2838_v49 = vpack.c.bf16 %v2833_v39, %v2832_v26  ;;  %v14840_v11 = vld [vmem:[#allocation2 + $0x60] sm:$0xff]  ;;  %v2853_v10 = vld [vmem:[#allocation3 + $0x68] sm:$0xfe]  ;;  %v2855_v18 = vld [vmem:[#allocation3 + $0x78] sm:$0x1]  ;;  %v2905_v21 = vrot.slane %v2840_v57, 1 }
 0x11d   : > { %766 = vst.msk [vmem:[#allocation2 + $0x81] sm:$0xff] %vm381_vm1, %v757_v44  ;;  %11246 = vmatmul.mubr.msk.bf16.gmra.mrb[24].mxu0 %vm381_vm1, %v2416_v47  ;;  %v3976_v53 = vpack.c.bf16 %v14840_v11, %v14833_v38  ;;  %v2834_v5 = vld [vmem:[#allocation2 + $0x61] sm:$0xff]  ;;  %v13087_v20 = vld [vmem:[%s17183_s5 + $0x1f4] ss:$8 sps:$4 sm:$0xff]   ;;  %v2920_v23 = vrot.slane %v2849_v2, 1  ;;  %v2921_v24 = vrot.slane %v2851_v7, 1 }
 0x11e   : > { %11262 = vmatmul.mubr.msk.bf16.gmra.mrb[8].mxu1 %vm381_vm1, %v2838_v49  ;;  %2817 = vmatprep.mubr.bf16.mxu0 %v13952_v30  ;;  %v2926_v25 = vrot.slane %v2853_v10, 1  ;;  %v2927_v26 = vrot.slane %v2855_v18, 1  ;;  %v2850_v33 = vld [vmem:[#allocation3 + $0x50] sm:$0x1]  ;;  %v13090_v35 = vld [vmem:[%s17182_s4 + $0x64] ss:$8 sps:$4 sm:$0xff]   ;;  %v2907_v41 = vsel %vm2904_vm3, %v2905_v21, %v2906_v40 }
 0x11f   : > { %3317 = vmatpush1.bf16.msra.mxu1 %v13052_v46  ;;  %3088 = vmatprep.mubr.bf16.mxu1 %v13952_v30  ;;  %v2848_v46 = vld [vmem:[#allocation3 + $0x40] sm:$0xfe]  ;;  %v2854_v13 = vld [vmem:[#allocation3 + $0x70] sm:$0x1]  ;;  %v2857_v52 = vld [vmem:[#allocation3 + $0x88] sm:$0xfe]  ;;  %v2922_v50 = vsel %vm2904_vm3, %v2920_v23, %v2921_v24 }
 0x120   : > { %3318 = vmatprep.subr.bf16.mxu1 %v13057_v43  ;;  %v2852_v39 = vld [vmem:[#allocation3 + $0x60] sm:$0xfe]  ;;  %v2913_v43 = vsel %vm2904_vm3, %v2911_v22, %v2912_v0  ;;  %v2859_v44 = vld [vmem:[#allocation3 + $0x98] sm:$0x1]  ;;  %v2861_v47 = vld [vmem:[#allocation3 + $0xa8] sm:$0xfe] }
 0x121   : > { %v2863_v49 = vld [vmem:[#allocation3 + $0xb8] sm:$0x1]  ;;  %v2969_v61 = vpack.c.bf16 %v2913_v43, %v2907_v41  ;;  %v2917_v1 = vrot.slane %v2848_v46, 1  ;;  %v13094_v10 = vld [vmem:[%s17182_s4 + $0x80] ss:$8 sps:$4 sm:$0xff]  }
 0x122   : > { %v2413_v28 = vld [vmem:[#allocation2 + $0x70] sm:$0xff]  ;;  %v2864_v0 = vld [vmem:[#allocation3 + $0xc0] sm:$0xfe] }
 0x123   : > { %3319 = vmatpush1.bf16.msra.mxu1 %v13055_v55  ;;  %v2835_v34 = vld [vmem:[#allocation2 + $0x71] sm:$0xff]  ;;  %v2417_v15 = vpack.c.bf16 %v2413_v28, %v14840_v11  ;;  %v2928_v55 = vsel %vm2904_vm3, %v2926_v25, %v2927_v26  ;;  %v2866_v23 = vld [vmem:[#allocation3 + $0xd0] sm:$0x1]  ;;  %v2868_v26 = vld [vmem:[#allocation3 + $0xe0] sm:$0xfe] }
 0x124   : > { %3320 = vmatprep.subr.bf16.mxu1 %v13060_v60  ;;  %v2839_v62 = vpack.c.bf16 %v2835_v34, %v2834_v5  ;;  %v13088_v60 = vld [vmem:[%s17182_s4 + $0x60] ss:$8 sps:$4 sm:$0xff]   ;;  %v2918_v5 = vrot.slane %v2850_v33, 1  ;;  %v2972_v28 = vpack.c.bf16 %v2928_v55, %v2922_v50  ;;  %v2923_v34 = vrot.slane %v2852_v39, 1  ;;  %v3398_v55 = vld [vmem:[#allocation2 + $0x12] sm:$0xff] }
 0x125   : > { %11247 = vmatmul.mubr.msk.bf16.gmra.mrb[28].mxu0 %vm381_vm1, %v2417_v15  ;;  %v2933_v15 = vrot.slane %v2859_v44, 1  ;;  %v2941_v39 = vrot.slane %v2864_v0, 1  ;;  %v2947_v41 = vrot.slane %v2868_v26, 1  ;;  %v3397_v50 = vld [vmem:[#allocation2 + $0x2] sm:$0xff]  ;;  %v13124_v26 = vld [vmem:[%s17183_s5 + $0x290] ss:$8 sps:$4 sm:$0xff]  }
 0x126   : > { %11263 = vmatmul.mubr.msk.bf16.gmra.mrb[12].mxu1 %vm381_vm1, %v2839_v62  ;;  %v2938_v62 = vrot.slane %v2861_v47, 1  ;;  %v13123_v0 = vld [vmem:[%s17183_s5 + $0x284] ss:$8 sps:$4 sm:$0xff]  }
 0x127   : > { %3321 = vmatpush1.bf16.msra.mxu1 %v13058_v42  ;;  %3340 = vmatprep.mubr.bf16.mxu1 %v2970_v56  ;;  %v13093_v42 = vld [vmem:[%s17182_s4 + $0x74] ss:$8 sps:$4 sm:$0xff]   ;;  %v2924_v56 = vrot.slane %v2854_v13, 1 }
 0x128   : > { %3322 = vmatprep.subr.bf16.mxu1 %v13063_v8  ;;  %v2932_v8 = vrot.slane %v2857_v52, 1  ;;  %v2942_v52 = vrot.slane %v2866_v23, 1 }
 0x12a   : > { %v2943_v44 = vsel %vm2904_vm3, %v2941_v39, %v2942_v52 }
 0x12b   : > { %3323 = vmatpush1.bf16.msra.mxu1 %v13061_v31  ;;  %v2939_v31 = vrot.slane %v2863_v49, 1 }
 0x12c   : > { %3324 = vmatprep.subr.bf16.mxu1 %v13066_v37  ;;  %v2856_v37 = vld [vmem:[#allocation3 + $0x80] sm:$0xfe] }
 0x12d   : > { %v2940_v57 = vsel %vm2904_vm3, %v2938_v62, %v2939_v31  ;;  %v2929_v58 = vrot.slane %v2856_v37, 1  ;;  %v13106_v62 = vld [vmem:[%s17183_s5 + $0x230] ss:$8 sps:$4 sm:$0xff]   ;;  %v13111_v31 = vld [vmem:[%s17183_s5 + $0x244] ss:$8 sps:$4 sm:$0xff]  }
 0x12e   : > { %v3401_v37 = vld [vmem:[#allocation2 + $0x42] sm:$0xff] }
 0x12f   : > { %3325 = vmatpush1.bf16.msra.mxu1 %v13064_v54  ;;  %v13091_v54 = vld [vmem:[%s17182_s4 + $0x70] ss:$8 sps:$4 sm:$0xff]  }
 0x130   : > { %3326 = vmatprep.subr.bf16.mxu1 %v13069_v63  ;;  %v2858_v63 = vld [vmem:[#allocation3 + $0x90] sm:$0x1] }
 0x131   : > { %v2930_v16 = vrot.slane %v2858_v63, 1  ;;  %v3410_v63 = vld [vmem:[#allocation3 + $0x8] sm:$0xfc] }
 0x133   : > { %3327 = vmatpush1.bf16.msra.mxu1 %v13067_v51  ;;  %v2860_v51 = vld [vmem:[#allocation3 + $0xa0] sm:$0xfe]  ;;  %v2931_v24 = vsel %vm2904_vm3, %v2929_v58, %v2930_v16 }
 0x134   : > { %3328 = vmatprep.subr.bf16.mxu1 %v13072_v17  ;;  %v2862_v17 = vld [vmem:[#allocation3 + $0xb0] sm:$0x1]  ;;  %v2935_v2 = vrot.slane %v2860_v51, 1  ;;  %v3412_v51 = vld [vmem:[#allocation3 + $0x18] sm:$0x3] }
 0x135   : > { %v13117_v58 = vld [vmem:[%s17183_s5 + $0x264] ss:$8 sps:$4 sm:$0xff]  }
 0x137   : > { %3329 = vmatpush1.bf16.msra.mxu1 %v13070_v19  ;;  %v13096_v19 = vld [vmem:[%s17182_s4 + $0x84] ss:$8 sps:$4 sm:$0xff]  }
 0x138   : > { %3330 = vmatprep.subr.bf16.mxu1 %v13075_v4  ;;  %v2865_v4 = vld [vmem:[#allocation3 + $0xc8] sm:$0xfe] }
 0x139   : > { %v2944_v18 = vrot.slane %v2865_v4, 1  ;;  %v13109_v4 = vld [vmem:[%s17183_s5 + $0x240] ss:$8 sps:$4 sm:$0xff]  }
 0x13b   : > { %3331 = vmatpush1.bf16.msra.mxu1 %v13073_v29  ;;  %v2919_v29 = vsel %vm2904_vm3, %v2917_v1, %v2918_v5  ;;  %v3405_v1 = vpack.c.bf16 %v3398_v55, %v3397_v50  ;;  %v13100_v5 = vld [vmem:[%s17183_s5 + $0x210] ss:$8 sps:$4 sm:$0xff]  }
 0x13c   : > { %3332 = vmatprep.subr.bf16.mxu1 %v13078_v3  ;;  %v2925_v3 = vsel %vm2904_vm3, %v2923_v34, %v2924_v56  ;;  %v13103_v34 = vld [vmem:[%s17183_s5 + $0x220] ss:$8 sps:$4 sm:$0xff]  }
 0x13d   : > { %v2971_v12 = vpack.c.bf16 %v2925_v3, %v2919_v29  ;;  %v3399_v56 = vld [vmem:[#allocation2 + $0x22] sm:$0xff]  ;;  %v13114_v3 = vld [vmem:[%s17183_s5 + $0x254] ss:$8 sps:$4 sm:$0xff]  }
 0x13f   : > { %3333 = vmatpush1.bf16.msra.mxu1 %v13076_v32  ;;  %v2867_v32 = vld [vmem:[#allocation3 + $0xd8] sm:$0x1] }
 0x140   : > { %3334 = vmatprep.subr.bf16.mxu1 %v13081_v9  ;;  %v2869_v9 = vld [vmem:[#allocation3 + $0xe8] sm:$0xfe]  ;;  %v2945_v21 = vrot.slane %v2867_v32, 1  ;;  %v3477_v32 = vrot.slane %v3410_v63, 2 }
 0x141   : > { %v2950_v40 = vrot.slane %v2869_v9, 1  ;;  %v3478_v9 = vrot.slane %v3412_v51, 2 }
 0x142   : > { %v2946_v46 = vsel %vm2904_vm3, %v2944_v18, %v2945_v21  ;;  %v13936_v21 = vld [vmem:[%s14153_s23 + $0x18] sm:$0xff] }
 0x143   : > { %3335 = vmatpush1.bf16.msra.mxu1 %v13079_v6  ;;  %v2871_v6 = vld [vmem:[#allocation3 + $0xf8] sm:$0x1] }
 0x144   : > { %3336 = vmatprep.subr.bf16.mxu1 %v13084_v14  ;;  %v2934_v14 = vsel %vm2904_vm3, %v2932_v8, %v2933_v15  ;;  %v2951_v22 = vrot.slane %v2871_v6, 1  ;;  %v13108_v15 = vld [vmem:[%s17183_s5 + $0x234] ss:$8 sps:$4 sm:$0xff]  }
 0x145   : > { %v2974_v7 = vpack.c.bf16 %v2940_v57, %v2934_v14  ;;  %v13112_v57 = vld [vmem:[%s17183_s5 + $0x250] ss:$8 sps:$4 sm:$0xff]  }
 0x146   : > { %v2952_v33 = vsel %vm2904_vm3, %v2950_v40, %v2951_v22  ;;  %v791_v40 = vmul.f32 0.0, %v13936_v21  ;;  %v13118_v22 = vld [vmem:[%s17183_s5 + $0x270] ss:$8 sps:$4 sm:$0xff]  }
 0x147   : > { %3337 = vmatpush1.bf16.msra.mxu1 %v13082_v59  ;;  %v2936_v59 = vrot.slane %v2862_v17, 1  ;;  %v2976_v13 = vpack.c.bf16 %v2952_v33, %v2946_v46  ;;  %v3414_v17 = vld [vmem:[#allocation3 + $0x28] sm:$0xfc] }
 0x148   : > { %3338 = vmatprep.subr.bf16.mxu1 %v13087_v20  ;;  %v13099_v20 = vld [vmem:[%s17183_s5 + $0x204] ss:$8 sps:$4 sm:$0xff]   ;;  %v3483_v6 = vrot.slane %v3414_v17, 2  ;;  %v15011_v23 = vadd.f32 %v13936_v21, %v791_v40  ;;  %v3411_v21 = vld [vmem:[#allocation3 + $0x10] sm:$0x3] }
 0x149   : > { %v2937_v25 = vsel %vm2904_vm3, %v2935_v2, %v2936_v59  ;;  %v3403_v2 = vld [vmem:[#allocation2 + $0x62] sm:$0xff]  ;;  %v3404_v59 = vld [vmem:[#allocation2 + $0x72] sm:$0xff] }
 0x14a   : > { %v3408_v18 = vpack.c.bf16 %v3404_v59, %v3403_v2  ;;  %v13129_v46 = vld [vmem:[%s17183_s5 + $0x2a4] ss:$8 sps:$4 sm:$0xff]   ;;  %v1213_v33 = vmul.f32 0.14285715, %v15011_v23  ;;  %v15029_v39 = vmul.f32 0.0, %v15011_v23 }
 0x14b   : > { %3339 = vmatpush1.bf16.msra.mxu1 %v13085_v27  ;;  %v2870_v27 = vld [vmem:[#allocation3 + $0xf0] sm:$0x1]  ;;  %v1221_v52 = vmul.f32 0.85714287, %v15011_v23  ;;  %v13138_v2 = vld [vmem:[%s17183_s5 + $0x2d4] ss:$8 sps:$4 sm:$0xff]  }
 0x14c   : > { %3595 = vmatprep.subr.bf16.mxu1 %v13090_v35  ;;  %v2973_v35 = vpack.c.bf16 %v2937_v25, %v2931_v24  ;;  %v2948_v43 = vrot.slane %v2870_v27, 1  ;;  %v13121_v24 = vld [vmem:[%s17183_s5 + $0x280] ss:$8 sps:$4 sm:$0xff]   ;;  %v13126_v25 = vld [vmem:[%s17183_s5 + $0x294] ss:$8 sps:$4 sm:$0xff]   ;;  %v11157_v50 = vrot.slane %v15029_v39, 9 }
 0x14d   : > { %v1005_v27 = vmul.f32 0.5714286, %v15011_v23  ;;  %v3413_v40 = vld [vmem:[#allocation3 + $0x20] sm:$0xfc] }
 0x14e   : > { %3341 = vmatmul.mubr.bf16.vlgmr.msra.gmra.mrb[0].mxu1 %v2969_v61  ;;  %v2949_v47 = vsel %vm2904_vm3, %v2947_v41, %v2948_v43  ;;  %v13102_v61 = vld [vmem:[%s17183_s5 + $0x214] ss:$8 sps:$4 sm:$0xff]   ;;  %v1429_v41 = vmul.f32 0.2857143, %v15011_v23 }
 0x14f   : > { %3596 = vmatpush1.bf16.msra.mxu1 %v13088_v60  ;;  %3350 = vmatprep.mubr.bf16.mxu1 %v2972_v28  ;;  %v2975_v49 = vpack.c.bf16 %v2949_v47, %v2943_v44  ;;  %v13097_v60 = vld [vmem:[%s17183_s5 + $0x200] ss:$8 sps:$4 sm:$0xff]   ;;  %v3400_v28 = vld [vmem:[#allocation2 + $0x32] sm:$0xff]  ;;  %v11197_v44 = vrot.slane %v1213_v33, 9  ;;  %v11205_v47 = vrot.slane %v1005_v27, 9 }
 0x150   : > { %3597 = vmatprep.subr.bf16.mxu1 %v13093_v42  ;;  %v13105_v42 = vld [vmem:[%s17183_s5 + $0x224] ss:$8 sps:$4 sm:$0xff]   ;;  %v3406_v8 = vpack.c.bf16 %v3400_v28, %v3399_v56 }
 0x153   : > { %3598 = vmatpush1.bf16.msra.mxu1 %v13091_v54  ;;  %v3402_v54 = vld [vmem:[#allocation2 + $0x52] sm:$0xff] }
 0x154   : > { %3599 = vmatprep.subr.bf16.mxu1 %v13096_v19  ;;  %v3416_v19 = vld [vmem:[#allocation3 + $0x38] sm:$0x3]  ;;  %v3407_v29 = vpack.c.bf16 %v3402_v54, %v3401_v37 }
 0x155   : > { %v3484_v14 = vrot.slane %v3416_v19, 2  ;;  %v13130_v54 = vld [vmem:[%s17183_s5 + $0x2b0] ss:$8 sps:$4 sm:$0xff]   ;;  %v13135_v19 = vld [vmem:[%s17183_s5 + $0x2c4] ss:$8 sps:$4 sm:$0xff]  }
 0x156   : > { %3351 = vmatmul.mubr.bf16.gmra.mrb[4].mxu1 %v2971_v12  ;;  %v3479_v12 = vsel %vm3473_vm4, %v3477_v32, %v3478_v9 }
 0x157   : > { %3360 = vmatprep.mubr.bf16.mxu1 %v2974_v7  ;;  %3600 = vmatpush1.bf16.msra.mxu1 %v13094_v10  ;;  %v3485_v16 = vsel %vm3473_vm4, %v3483_v6, %v3484_v14  ;;  %v13115_v7 = vld [vmem:[%s17183_s5 + $0x260] ss:$8 sps:$4 sm:$0xff]  }
 0x158   : > { %3877 = vmatprep.subr.bf16.mxu1 %v13099_v20  ;;  %v3539_v10 = vpack.c.bf16 %v3485_v16, %v3479_v12  ;;  %v13120_v20 = vld [vmem:[%s17183_s5 + $0x274] ss:$8 sps:$4 sm:$0xff]   ;;  %v13133_v12 = vld [vmem:[%s17183_s5 + $0x2c0] ss:$8 sps:$4 sm:$0xff]  }
 0x15e   : > { %3361 = vmatmul.mubr.bf16.gmra.mrb[8].mxu1 %v2973_v35  ;;  %v1421_v35 = vmul.f32 0.71428573, %v15011_v23 }
 0x15f   : > { %3370 = vmatprep.mubr.bf16.mxu1 %v2976_v13  ;;  %v1013_v13 = vmul.f32 0.42857143, %v15011_v23 }
 0x160   : > { %v11189_v43 = vrot.slane %v1421_v35, 9 }
 0x161   : > { %v11165_v55 = vrot.slane %v1013_v13, 9  ;;  %v2069_v28 = vadd.f32 %v11205_v47, %v1013_v13 }
 0x163   : > { %v1053_v56 = vadd.f32 %v11165_v55, %v1005_v27  ;;  %v2189_v37 = vrot.slane %v2069_v28, %v14207_v45  ;;  %v13139_v27 = vld [vmem:[%s17183_s5 + $0x2e0] ss:$8 sps:$4 sm:$0xff]  }
 0x164   : > { %v3421_v28 = vld [vmem:[#allocation3 + $0x60] sm:$0xfc] }
 0x165   : > { %v1166_v51 = vrot.slane %v1053_v56, %v14207_v45  ;;  %v3426_v56 = vld [vmem:[#allocation3 + $0x88] sm:$0xfc] }
 0x166   : > { %3371 = vmatmul.mubr.bf16.gmra.mrb[12].mxu1 %v2975_v49  ;;  %v13127_v49 = vld [vmem:[%s17183_s5 + $0x2a0] ss:$8 sps:$4 sm:$0xff]  }
 0x167   : > { %3627 = vmatprep.mubr.bf16.mxu1 %v13952_v30  ;;  %v1173_v32 = vrot.slane %v1166_v51, %v14207_v45 }
 0x169   : > { %1204 = vst.msk [vmem:[#allocation3 + $0x102] ss:$8 sm:$0x3] %vm14211_vm0, %v1173_v32 }
 0x16e   : > { %11340 = vmatmul.mubr.msk.bf16.vlgmr.msra.gmra.mrb[0].mxu1 %vm381_vm1, %v3405_v1  ;;  %v11181_v1 = vrot.slane %v1429_v41, 9 }
 0x16f   : > { %3878 = vmatpush1.bf16.msra.mxu1 %v13097_v60  ;;  %3637 = vmatprep.mubr.bf16.mxu1 %v13952_v30  ;;  %v11173_v60 = vrot.slane %v1221_v52, 9 }
 0x170   : > { %3879 = vmatprep.subr.bf16.mxu1 %v13102_v61  ;;  %v13132_v61 = vld [vmem:[%s17183_s5 + $0x2b4] ss:$8 sps:$4 sm:$0xff]  }
 0x173   : > { %3880 = vmatpush1.bf16.msra.mxu1 %v13100_v5  ;;  %v1669_v5 = vadd.f32 %v11189_v43, %v1429_v41 }
 0x174   : > { %3881 = vmatprep.subr.bf16.mxu1 %v13105_v42  ;;  %v1869_v42 = vadd.f32 %v11197_v44, %v1221_v52  ;;  %v13144_v52 = vld [vmem:[%s17183_s5 + $0x2f4] ss:$8 sps:$4 sm:$0xff]  }
 0x176   : > { %11341 = vmatmul.mubr.msk.bf16.gmra.mrb[4].mxu1 %vm381_vm1, %v3406_v8  ;;  %v1261_v8 = vadd.f32 %v11173_v60, %v1213_v33  ;;  %v3475_v33 = vrot.slane %v3411_v21, 2  ;;  %v13147_v60 = vld [vmem:[%s17182_s4 + $0x94] ss:$8 sps:$4 sm:$0xff]   ;;  %v3438_v21 = vld [vmem:[#allocation3 + $0xe8] sm:$0xfc] }
 0x177   : > { %3882 = vmatpush1.bf16.msra.mxu1 %v13103_v34  ;;  %3647 = vmatprep.mubr.bf16.mxu1 %v13952_v30  ;;  %v840_v34 = vadd.f32 %v11157_v50, %v15011_v23 }
 0x178   : > { %3883 = vmatprep.subr.bf16.mxu1 %v13108_v15  ;;  %v1469_v15 = vadd.f32 %v11181_v1, %v1421_v35  ;;  %v1374_v17 = vrot.slane %v1261_v8, %v14207_v45  ;;  %v3480_v35 = vrot.slane %v3413_v40, 2  ;;  %v3419_v1 = vld [vmem:[#allocation3 + $0x50] sm:$0x3]  ;;  %v3428_v8 = vld [vmem:[#allocation3 + $0x98] sm:$0x3] }
 0x179   : > { %v953_v63 = vrot.slane %v840_v34, %v14207_v45  ;;  %v3423_v34 = vld [vmem:[#allocation3 + $0x70] sm:$0x3]  ;;  %v3487_v51 = vrot.slane %v3419_v1, 2  ;;  %v3440_v40 = vld [vmem:[#allocation3 + $0xf8] sm:$0x3] }
 0x17a   : > { %v1381_v9 = vrot.slane %v1374_v17, %v14207_v45  ;;  %v3492_v17 = vrot.slane %v3421_v28, 2 }
 0x17b   : > { %3884 = vmatpush1.bf16.msra.mxu1 %v13106_v62  ;;  %v1789_v62 = vrot.slane %v1669_v5, %v14207_v45 }
 0x17c   : > { %3885 = vmatprep.subr.bf16.mxu1 %v13111_v31  ;;  %v1989_v31 = vrot.slane %v1869_v42, %v14207_v45  ;;  %1412 = vst.msk [vmem:[#allocation3 + $0x103] ss:$8 sm:$0x3] %vm14211_vm0, %v1381_v9 }
 0x17e   : > { %11342 = vmatmul.mubr.msk.bf16.gmra.mrb[8].mxu1 %vm381_vm1, %v3407_v29  ;;  %v1790_v29 = vcombine.high %v1789_v62, %v1789_v62  ;;  %v1996_v6 = vrot.slane %v1989_v31, %v14207_v45  ;;  %v3432_v62 = vld [vmem:[#allocation3 + $0xb8] sm:$0x3] }
 0x17f   : > { %3886 = vmatpush1.bf16.msra.mxu1 %v13109_v4  ;;  %3657 = vmatprep.mubr.bf16.mxu1 %v13952_v30  ;;  %v1589_v4 = vrot.slane %v1469_v15, %v14207_v45  ;;  %v3430_v15 = vld [vmem:[#allocation3 + $0xa8] sm:$0xfc]  ;;  %v3508_v9 = vrot.slane %v3432_v62, 2 }
 0x180   : > { %3887 = vmatprep.subr.bf16.mxu1 %v13114_v3  ;;  %v960_v3 = vrot.slane %v953_v63, %v14207_v45  ;;  %v1997_v16 = vcombine.high %v1996_v6, %v1996_v6  ;;  %v3507_v32 = vrot.slane %v3430_v15, 2  ;;  %v13148_v6 = vld [vmem:[%s17182_s4 + $0xa0] ss:$8 sps:$4 sm:$0xff]  }
 0x181   : > { %v1590_v14 = vcombine.high %v1589_v4, %v1589_v4  ;;  %v13150_v4 = vld [vmem:[%s17182_s4 + $0xa4] ss:$8 sps:$4 sm:$0xff]  }
 0x182   : > { %996 = vst.msk [vmem:[#allocation3 + $0x101] ss:$8 sm:$0x3] %vm14211_vm0, %v960_v3  ;;  %2028 = vst.msk [vmem:[#allocation3 + $0x106] ss:$8 sm:$0x3] %vm14211_vm0, %v1997_v16 }
 0x183   : > { %3888 = vmatpush1.bf16.msra.mxu1 %v13112_v57  ;;  %v1797_v57 = vrot.slane %v1790_v29, %v14207_v45  ;;  %v1597_v59 = vrot.slane %v1590_v14, %v14207_v45  ;;  %v3501_v29 = vrot.slane %v3426_v56, 2  ;;  %v3502_v3 = vrot.slane %v3428_v8, 2  ;;  %v3429_v16 = vld [vmem:[#allocation3 + $0xa0] sm:$0xfc] }
 0x184   : > { %3889 = vmatprep.subr.bf16.mxu1 %v13117_v58  ;;  %v2196_v58 = vrot.slane %v2189_v37, %v14207_v45 }
 0x185   : > { %1828 = vst.msk [vmem:[#allocation3 + $0x105] ss:$8 sm:$0x3] %vm14211_vm0, %v1797_v57  ;;  %1628 = vst.msk [vmem:[#allocation3 + $0x104] ss:$8 sm:$0x3] %vm14211_vm0, %v1597_v59  ;;  %v3509_v59 = vsel %vm3473_vm4, %v3507_v32, %v3508_v9 }
 0x186   : > { %11343 = vmatmul.mubr.msk.bf16.gmra.mrb[12].mxu1 %vm381_vm1, %v3408_v18  ;;  %v13141_v18 = vld [vmem:[%s17183_s5 + $0x2e4] ss:$8 sps:$4 sm:$0xff]   ;;  %v13165_v9 = vld [vmem:[%s17183_s5 + $0x334] ss:$8 sps:$4 sm:$0xff]  }
 0x187   : > { %3890 = vmatpush1.bf16.msra.mxu1 %v13115_v7  ;;  %3909 = vmatprep.mubr.bf16.mxu1 %v3539_v10  ;;  %v2197_v7 = vcombine.high %v2196_v58, %v2196_v58  ;;  %v13136_v10 = vld [vmem:[%s17183_s5 + $0x2d0] ss:$8 sps:$4 sm:$0xff]   ;;  %v3425_v58 = vld [vmem:[#allocation3 + $0x80] sm:$0xfc] }
 0x188   : > { %3891 = vmatprep.subr.bf16.mxu1 %v13120_v20  ;;  %v3409_v20 = vld [vmem:[#allocation3] sm:$0xfc] }
 0x189   : > { %2228 = vst.msk [vmem:[#allocation3 + $0x107] ss:$8 sm:$0x3] %vm14211_vm0, %v2197_v7  ;;  %v3431_v7 = vld [vmem:[#allocation3 + $0xb0] sm:$0x3] }
 0x18b   : > { %3892 = vmatpush1.bf16.msra.mxu1 %v13118_v22  ;;  %v3415_v22 = vld [vmem:[#allocation3 + $0x30] sm:$0x3] }
 0x18c   : > { %3893 = vmatprep.subr.bf16.mxu1 %v13123_v0  ;;  %v3418_v0 = vld [vmem:[#allocation3 + $0x48] sm:$0xfc]  ;;  %v3481_v13 = vrot.slane %v3415_v22, 2 }
 0x18d   : > { %v3489_v41 = vrot.slane %v3418_v0, 2  ;;  %v3498_v0 = vrot.slane %v3425_v58, 2  ;;  %v13171_v58 = vld [vmem:[%s17183_s5 + $0x354] ss:$8 sps:$4 sm:$0xff]  }
 0x18e   : > { %v3482_v55 = vsel %vm3473_vm4, %v3480_v35, %v3481_v13  ;;  %v3519_v13 = vrot.slane %v3438_v21, 2  ;;  %v13938_v21 = vld [vmem:[#allocation2 + $0x70] sm:$0xff] }
 0x18f   : > { %3894 = vmatpush1.bf16.msra.mxu1 %v13121_v24  ;;  %v3420_v24 = vld [vmem:[#allocation3 + $0x58] sm:$0x3] }
 0x190   : > { %3895 = vmatprep.subr.bf16.mxu1 %v13126_v25  ;;  %v3422_v25 = vld [vmem:[#allocation3 + $0x68] sm:$0xfc]  ;;  %v3490_v43 = vrot.slane %v3420_v24, 2 }
 0x191   : > { %v3495_v44 = vrot.slane %v3422_v25, 2 }
 0x192   : > { %v3491_v5 = vsel %vm3473_vm4, %v3489_v41, %v3490_v43  ;;  %v13156_v41 = vld [vmem:[%s17183_s5 + $0x304] ss:$8 sps:$4 sm:$0xff]  }
 0x193   : > { %3896 = vmatpush1.bf16.msra.mxu1 %v13124_v26  ;;  %v3424_v26 = vld [vmem:[#allocation3 + $0x78] sm:$0x3] }
 0x194   : > { %3897 = vmatprep.subr.bf16.mxu1 %v13129_v46  ;;  %v3474_v46 = vrot.slane %v3409_v20, 2  ;;  %v3496_v47 = vrot.slane %v3424_v26, 2  ;;  %v3436_v20 = vld [vmem:[#allocation3 + $0xd8] sm:$0x3]  ;;  %v3504_v26 = vrot.slane %v3429_v16, 2 }
 0x195   : > { %v3514_v35 = vrot.slane %v3436_v20, 2  ;;  %v13174_v16 = vld [vmem:[%s17183_s5 + $0x364] ss:$8 sps:$4 sm:$0xff]  }
 0x196   : > { %v3476_v50 = vsel %vm3473_vm4, %v3474_v46, %v3475_v33  ;;  %v3497_v42 = vsel %vm3473_vm4, %v3495_v44, %v3496_v47  ;;  %v13151_v46 = vld [vmem:[%s17182_s4 + $0xb0] ss:$8 sps:$4 sm:$0xff]   ;;  %v3433_v47 = vld [vmem:[#allocation3 + $0xc0] sm:$0xfc] }
 0x197   : > { %3898 = vmatpush1.bf16.msra.mxu1 %v13127_v49  ;;  %v13142_v49 = vld [vmem:[%s17183_s5 + $0x2f0] ss:$8 sps:$4 sm:$0xff]   ;;  %v3538_v31 = vpack.c.bf16 %v3482_v55, %v3476_v50  ;;  %v3541_v63 = vpack.c.bf16 %v3497_v42, %v3491_v5  ;;  %v3510_v5 = vrot.slane %v3433_v47, 2 }
 0x198   : > { %3899 = vmatprep.subr.bf16.mxu1 %v13132_v61  ;;  %v3417_v61 = vld [vmem:[#allocation3 + $0x40] sm:$0xfc]  ;;  %v3435_v55 = vld [vmem:[#allocation3 + $0xd0] sm:$0x3] }
 0x199   : > { %v3486_v37 = vrot.slane %v3417_v61, 2  ;;  %v3439_v61 = vld [vmem:[#allocation3 + $0xf0] sm:$0x3]  ;;  %v3511_v28 = vrot.slane %v3435_v55, 2 }
 0x19a   : > { %v3517_v56 = vrot.slane %v3439_v61, 2 }
 0x19b   : > { %3900 = vmatpush1.bf16.msra.mxu1 %v13130_v54  ;;  %v13145_v54 = vld [vmem:[%s17182_s4 + $0x90] ss:$8 sps:$4 sm:$0xff]   ;;  %v3488_v14 = vsel %vm3473_vm4, %v3486_v37, %v3487_v51  ;;  %v3512_v8 = vsel %vm3473_vm4, %v3510_v5, %v3511_v28  ;;  %v13154_v37 = vld [vmem:[%s17183_s5 + $0x300] ss:$8 sps:$4 sm:$0xff]   ;;  %v13159_v51 = vld [vmem:[%s17183_s5 + $0x314] ss:$8 sps:$4 sm:$0xff]  }
 0x19c   : > { %3901 = vmatprep.subr.bf16.mxu1 %v13135_v19  ;;  %v3493_v19 = vrot.slane %v3423_v34, 2  ;;  %v13192_v5 = vld [vmem:[%s17183_s5 + $0x3c4] ss:$8 sps:$4 sm:$0xff]  }
 0x19e   : > { %v3494_v57 = vsel %vm3473_vm4, %v3492_v17, %v3493_v19  ;;  %v13157_v17 = vld [vmem:[%s17183_s5 + $0x310] ss:$8 sps:$4 sm:$0xff]   ;;  %v13162_v19 = vld [vmem:[%s17183_s5 + $0x324] ss:$8 sps:$4 sm:$0xff]  }
 0x19f   : > { %3902 = vmatpush1.bf16.msra.mxu1 %v13133_v12  ;;  %v3427_v12 = vld [vmem:[#allocation3 + $0x90] sm:$0x3]  ;;  %v3540_v22 = vpack.c.bf16 %v3494_v57, %v3488_v14  ;;  %v13168_v14 = vld [vmem:[%s17183_s5 + $0x344] ss:$8 sps:$4 sm:$0xff]   ;;  %v13166_v57 = vld [vmem:[%s17183_s5 + $0x340] ss:$8 sps:$4 sm:$0xff]  }
 0x1a0   : > { %3903 = vmatprep.subr.bf16.mxu1 %v13138_v2  ;;  %v3503_v2 = vsel %vm3473_vm4, %v3501_v29, %v3502_v3  ;;  %v3499_v25 = vrot.slane %v3427_v12, 2  ;;  %v13160_v29 = vld [vmem:[%s17183_s5 + $0x320] ss:$8 sps:$4 sm:$0xff]   ;;  %v13169_v12 = vld [vmem:[%s17183_s5 + $0x350] ss:$8 sps:$4 sm:$0xff]  }
 0x1a1   : > { %v3543_v24 = vpack.c.bf16 %v3509_v59, %v3503_v2  ;;  %v13937_v3 = vld [vmem:[#allocation2 + $0x40] sm:$0xff]  ;;  %v3979_v2 = vld [vmem:[#allocation3 + $0x28] sm:$0xff] }
 0x1a2   : > { %v3500_v43 = vsel %vm3473_vm4, %v3498_v0, %v3499_v25  ;;  %v3981_v59 = vld [vmem:[#allocation3 + $0x48] sm:$0xff]  ;;  %v13175_v0 = vld [vmem:[%s17183_s5 + $0x370] ss:$8 sps:$4 sm:$0xff]  }
 0x1a3   : > { %3904 = vmatpush1.bf16.msra.mxu1 %v13136_v10  ;;  %v13153_v10 = vld [vmem:[%s17182_s4 + $0xb4] ss:$8 sps:$4 sm:$0xff]  }
 0x1a4   : > { %3905 = vmatprep.subr.bf16.mxu1 %v13141_v18  ;;  %v3434_v18 = vld [vmem:[#allocation3 + $0xc8] sm:$0xfc] }
 0x1a5   : > { %v3513_v33 = vrot.slane %v3434_v18, 2  ;;  %v3995_v18 = vpack.c.bf16 %v3981_v59, %v3979_v2  ;;  %v13208_v59 = vld [vmem:[%s17182_s4 + $0xe0] ss:$8 sps:$4 sm:$0xff]  }
 0x1a7   : > { %3906 = vmatpush1.bf16.msra.mxu1 %v13139_v27  ;;  %v3505_v27 = vrot.slane %v3431_v7, 2 }
 0x1a8   : > { %3907 = vmatprep.subr.bf16.mxu1 %v13144_v52  ;;  %v3520_v52 = vrot.slane %v3440_v40, 2 }
 0x1a9   : > { %v3506_v44 = vsel %vm3473_vm4, %v3504_v26, %v3505_v27 }
 0x1aa   : > { %v3521_v50 = vsel %vm3473_vm4, %v3519_v13, %v3520_v52  ;;  %v3542_v1 = vpack.c.bf16 %v3506_v44, %v3500_v43  ;;  %v2237_v13 = vadd.f32 %v15029_v39, %v15011_v23  ;;  %v13181_v52 = vld [vmem:[%s17183_s5 + $0x390] ss:$8 sps:$4 sm:$0xff]   ;;  %v13184_v23 = vld [vmem:[%s17183_s5 + $0x3a0] ss:$8 sps:$4 sm:$0xff]  }
 0x1ab   : > { %3908 = vmatpush1.bf16.msra.mxu1 %v13142_v49  ;;  %v3515_v49 = vsel %vm3473_vm4, %v3513_v33, %v3514_v35  ;;  %v13183_v35 = vld [vmem:[%s17183_s5 + $0x394] ss:$8 sps:$4 sm:$0xff]  }
 0x1ac   : > { %4051 = vmatprep.subr.bf16.mxu1 %v13147_v60  ;;  %v3437_v60 = vld [vmem:[#allocation3 + $0xe0] sm:$0xfc]  ;;  %v3545_v42 = vpack.c.bf16 %v3521_v50, %v3515_v49  ;;  %v2364_v43 = vrot.slane %v2237_v13, %v14207_v45  ;;  %v13189_v50 = vld [vmem:[%s17183_s5 + $0x3b4] ss:$8 sps:$4 sm:$0xff]  }
 0x1ad   : > { %v3516_v34 = vrot.slane %v3437_v60, 2  ;;  %v4423_v13 = vld [vmem:[#allocation2 + $0x21] sm:$0xff] }
 0x1ae   : > { %3910 = vmatmul.mubr.bf16.vlgmr.msra.gmra.mrb[0].mxu1 %v3538_v31  ;;  %v3967_v31 = vld [vmem:[#allocation2 + $0x20] sm:$0xff]  ;;  %v2365_v49 = vcombine.high %v2364_v43, %v2364_v43 }
 0x1af   : > { %4052 = vmatpush1.bf16.msra.mxu1 %v13145_v54  ;;  %3919 = vmatprep.mubr.bf16.mxu1 %v3541_v63  ;;  %v3518_v15 = vsel %vm3473_vm4, %v3516_v34, %v3517_v56  ;;  %v3966_v54 = vld [vmem:[#allocation2 + $0x10] sm:$0xff] }
 0x1b0   : > { %4053 = vmatprep.subr.bf16.mxu1 %v13150_v4  ;;  %v3544_v62 = vpack.c.bf16 %v3518_v15, %v3512_v8  ;;  %v3974_v63 = vpack.c.bf16 %v3967_v31, %v3966_v54  ;;  %v3968_v4 = vld [vmem:[#allocation2 + $0x30] sm:$0xff]  ;;  %v2372_v60 = vrot.slane %v2365_v49, %v14207_v45  ;;  %v13190_v45 = vld [vmem:[%s17183_s5 + $0x3c0] ss:$8 sps:$4 sm:$0xff]   ;;  %v13198_v15 = vld [vmem:[%s17183_s5 + $0x3e4] ss:$8 sps:$4 sm:$0xff]  }
 0x1b1   : > { %v3975_v32 = vpack.c.bf16 %v13937_v3, %v3968_v4  ;;  %v13195_v56 = vld [vmem:[%s17183_s5 + $0x3d4] ss:$8 sps:$4 sm:$0xff]   ;;  %v3978_v54 = vld [vmem:[#allocation3 + $0x20] sm:$0xff] }
 0x1b2   : > { %v2373_v61 = vcombine.high %v2372_v60, %v2372_v60  ;;  %v13201_v31 = vld [vmem:[%s17183_s5 + $0x3f4] ss:$8 sps:$4 sm:$0xff]  }
 0x1b3   : > { %4054 = vmatpush1.bf16.msra.mxu1 %v13148_v6  ;;  %v13163_v6 = vld [vmem:[%s17183_s5 + $0x330] ss:$8 sps:$4 sm:$0xff]   ;;  %v13216_v49 = vld [vmem:[%s17183_s5 + $0x414] ss:$8 sps:$4 sm:$0xff]  }
 0x1b4   : > { %4055 = vmatprep.subr.bf16.mxu1 %v13153_v10  ;;  %v3973_v10 = vld [vmem:[#allocation2 + $0x80] sm:$0xff]  ;;  %2404 = vst.msk [vmem:[#allocation3 + $0x110] ss:$8 sm:$0x3] %vm14211_vm0, %v2373_v61  ;;  %v4424_v60 = vld [vmem:[#allocation2 + $0x31] sm:$0xff] }
 0x1b5   : > { %v3977_v40 = vpack.c.bf16 %v3973_v10, %v13938_v21  ;;  %v13213_v10 = vld [vmem:[%s17183_s5 + $0x404] ss:$8 sps:$4 sm:$0xff]  }
 0x1b6   : > { %3920 = vmatmul.mubr.bf16.gmra.mrb[4].mxu1 %v3540_v22  ;;  %v13177_v22 = vld [vmem:[%s17183_s5 + $0x374] ss:$8 sps:$4 sm:$0xff]   ;;  %v3991_v21 = vld [vmem:[#allocation3 + $0xe8] sm:$0xff] }
 0x1b7   : > { %3929 = vmatprep.mubr.bf16.mxu1 %v3543_v24  ;;  %4056 = vmatpush1.bf16.msra.mxu1 %v13151_v46  ;;  %v13180_v24 = vld [vmem:[%s17183_s5 + $0x384] ss:$8 sps:$4 sm:$0xff]   ;;  %v13178_v46 = vld [vmem:[%s17183_s5 + $0x380] ss:$8 sps:$4 sm:$0xff]  }
 0x1b8   : > { %4333 = vmatprep.subr.bf16.mxu1 %v13156_v41  ;;  %v13186_v41 = vld [vmem:[%s17183_s5 + $0x3a4] ss:$8 sps:$4 sm:$0xff]  }
 0x1b9   : > { %v4425_v61 = vld [vmem:[#allocation2 + $0x41] sm:$0xff] }
 0x1be   : > { %3930 = vmatmul.mubr.bf16.gmra.mrb[8].mxu1 %v3542_v1  ;;  %v13187_v1 = vld [vmem:[%s17183_s5 + $0x3b0] ss:$8 sps:$4 sm:$0xff]  }
 0x1bf   : > { %3939 = vmatprep.mubr.bf16.mxu1 %v3545_v42 }
 0x1c6   : > { %3940 = vmatmul.mubr.bf16.gmra.mrb[12].mxu1 %v3544_v62  ;;  %v13196_v62 = vld [vmem:[%s17183_s5 + $0x3e0] ss:$8 sps:$4 sm:$0xff]  }
 0x1c7   : > { %4083 = vmatprep.mubr.bf16.mxu1 %v13952_v30 }
 0x1ce   : > { %11420 = vmatmul.mubr.msk.bf16.vlgmr.msra.gmra.mrb[0].mxu1 %vm381_vm1, %v3974_v63  ;;  %v3980_v63 = vld [vmem:[#allocation3 + $0x40] sm:$0xff] }
 0x1cf   : > { %4334 = vmatpush1.bf16.msra.mxu1 %v13154_v37  ;;  %4093 = vmatprep.mubr.bf16.mxu1 %v13952_v30  ;;  %v13199_v37 = vld [vmem:[%s17183_s5 + $0x3f0] ss:$8 sps:$4 sm:$0xff]   ;;  %v3994_v4 = vpack.c.bf16 %v3980_v63, %v3978_v54  ;;  %v4439_v54 = vld [vmem:[#allocation3 + $0x48] sm:$0xfe] }
 0x1d0   : > { %4335 = vmatprep.subr.bf16.mxu1 %v13159_v51  ;;  %v13204_v51 = vld [vmem:[%s17182_s4 + $0xc4] ss:$8 sps:$4 sm:$0xff]   ;;  %v4441_v63 = vld [vmem:[#allocation3 + $0x58] sm:$0x1] }
 0x1d3   : > { %4336 = vmatpush1.bf16.msra.mxu1 %v13157_v17  ;;  %v3983_v17 = vld [vmem:[#allocation3 + $0x68] sm:$0xff] }
 0x1d4   : > { %4337 = vmatprep.subr.bf16.mxu1 %v13162_v19  ;;  %v3985_v19 = vld [vmem:[#allocation3 + $0x88] sm:$0xff] }
 0x1d5   : > { %v3997_v3 = vpack.c.bf16 %v3985_v19, %v3983_v17  ;;  %v13228_v19 = vld [vmem:[%s17183_s5 + $0x454] ss:$8 sps:$4 sm:$0xff]  }
 0x1d6   : > { %11421 = vmatmul.mubr.msk.bf16.gmra.mrb[4].mxu1 %vm381_vm1, %v3975_v32  ;;  %v13207_v32 = vld [vmem:[%s17182_s4 + $0xd4] ss:$8 sps:$4 sm:$0xff]  }
 0x1d7   : > { %4338 = vmatpush1.bf16.msra.mxu1 %v13160_v29  ;;  %4103 = vmatprep.mubr.bf16.mxu1 %v13952_v30  ;;  %v13202_v29 = vld [vmem:[%s17182_s4 + $0xc0] ss:$8 sps:$4 sm:$0xff]  }
 0x1d8   : > { %4339 = vmatprep.subr.bf16.mxu1 %v13165_v9  ;;  %v3982_v9 = vld [vmem:[#allocation3 + $0x60] sm:$0xff] }
 0x1db   : > { %4340 = vmatpush1.bf16.msra.mxu1 %v13163_v6  ;;  %v3984_v6 = vld [vmem:[#allocation3 + $0x80] sm:$0xff] }
 0x1dc   : > { %4341 = vmatprep.subr.bf16.mxu1 %v13168_v14  ;;  %v13205_v14 = vld [vmem:[%s17182_s4 + $0xd0] ss:$8 sps:$4 sm:$0xff]  }
 0x1de   : > { %11422 = vmatmul.mubr.msk.bf16.gmra.mrb[8].mxu1 %vm381_vm1, %v3976_v53  ;;  %v13172_v53 = vld [vmem:[%s17183_s5 + $0x360] ss:$8 sps:$4 sm:$0xff]  }
 0x1df   : > { %4342 = vmatpush1.bf16.msra.mxu1 %v13166_v57  ;;  %4113 = vmatprep.mubr.bf16.mxu1 %v13952_v30  ;;  %v3987_v57 = vld [vmem:[#allocation3 + $0xa8] sm:$0xff] }
 0x1e0   : > { %4343 = vmatprep.subr.bf16.mxu1 %v13171_v58  ;;  %v15178_v7 = vpop.f32.mrb[16].mxu0  ;;  %v3989_v58 = vld [vmem:[#allocation3 + $0xc8] sm:$0xff] }
 0x1e1   : > { %v15180_v38 = vpop.f32.mrb[17].mxu0  ;;  %v3999_v2 = vpack.c.bf16 %v3989_v58, %v3987_v57  ;;  %v4428_v58 = vld [vmem:[#allocation2 + $0x71] sm:$0xff] }
 0x1e2   : > { %v15182_v11 = vpop.f32.mrb[18].mxu0 }
 0x1e3   : > { %4344 = vmatpush1.bf16.msra.mxu1 %v13169_v12  ;;  %v15187_v20 = vpop.f32.mrb[19].mxu0  ;;  %v13210_v12 = vld [vmem:[%s17182_s4 + $0xe4] ss:$8 sps:$4 sm:$0xff]  }
 0x1e4   : > { %4345 = vmatprep.subr.bf16.mxu1 %v13174_v16  ;;  %v3996_v16 = vpack.c.bf16 %v3984_v6, %v3982_v9  ;;  %v13226_v9 = vld [vmem:[%s17183_s5 + $0x450] ss:$8 sps:$4 sm:$0xff]   ;;  %v13231_v6 = vld [vmem:[%s17183_s5 + $0x464] ss:$8 sps:$4 sm:$0xff]  }
 0x1e6   : > { %11423 = vmatmul.mubr.msk.bf16.gmra.mrb[12].mxu1 %vm381_vm1, %v3977_v40  ;;  %v3993_v40 = vld [vmem:[#allocation3 + $0x108] sm:$0xff] }
 0x1e7   : > { %4346 = vmatpush1.bf16.msra.mxu1 %v13172_v53  ;;  %4365 = vmatprep.mubr.bf16.mxu1 %v3995_v18  ;;  %v3986_v53 = vld [vmem:[#allocation3 + $0xa0] sm:$0xff] }
 0x1e8   : > { %4347 = vmatprep.subr.bf16.mxu1 %v13177_v22  ;;  %v15199_v25 = vpop.f32.mrb[20].mxu0  ;;  %v3988_v18 = vld [vmem:[#allocation3 + $0xc0] sm:$0xff] }
 0x1e9   : > { %v15201_v26 = vpop.f32.mrb[21].mxu0  ;;  %v3998_v22 = vpack.c.bf16 %v3988_v18, %v3986_v53  ;;  %v13232_v53 = vld [vmem:[%s17183_s5 + $0x470] ss:$8 sps:$4 sm:$0xff]   ;;  %v13237_v18 = vld [vmem:[%s17183_s5 + $0x484] ss:$8 sps:$4 sm:$0xff]  }
 0x1ea   : > { %v15203_v27 = vpop.f32.mrb[22].mxu0 }
 0x1eb   : > { %4348 = vmatpush1.bf16.msra.mxu1 %v13175_v0  ;;  %v15208_v33 = vpop.f32.mrb[23].mxu0  ;;  %v4001_v0 = vpack.c.bf16 %v3993_v40, %v3991_v21  ;;  %v13235_v21 = vld [vmem:[%s17183_s5 + $0x480] ss:$8 sps:$4 sm:$0xff]   ;;  %v13240_v40 = vld [vmem:[%s17183_s5 + $0x494] ss:$8 sps:$4 sm:$0xff]  }
 0x1ec   : > { %4349 = vmatprep.subr.bf16.mxu1 %v13180_v24  ;;  %v3990_v24 = vld [vmem:[#allocation3 + $0xe0] sm:$0xff] }
 0x1ef   : > { %4350 = vmatpush1.bf16.msra.mxu1 %v13178_v46  ;;  %v3992_v46 = vld [vmem:[#allocation3 + $0x100] sm:$0xff] }
 0x1f0   : > { %4351 = vmatprep.subr.bf16.mxu1 %v13183_v35  ;;  %v15222_v44 = vpop.f32.mrb[24].mxu0  ;;  %v4000_v35 = vpack.c.bf16 %v3992_v46, %v3990_v24  ;;  %v13241_v24 = vld [vmem:[%s17183_s5 + $0x4a0] ss:$8 sps:$4 sm:$0xff]   ;;  %v13246_v46 = vld [vmem:[%s17183_s5 + $0x4b4] ss:$8 sps:$4 sm:$0xff]  }
 0x1f1   : > { %v15224_v47 = vpop.f32.mrb[25].mxu0 }
 0x1f2   : > { %v15229_v39 = vpop.f32.mrb[26].mxu0 }
 0x1f3   : > { %4352 = vmatpush1.bf16.msra.mxu1 %v13181_v52  ;;  %v15234_v55 = vpop.f32.mrb[27].mxu0  ;;  %v13211_v52 = vld [vmem:[%s17183_s5 + $0x400] ss:$8 sps:$4 sm:$0xff]  }
 0x1f4   : > { %4353 = vmatprep.subr.bf16.mxu1 %v13186_v41  ;;  %v4422_v41 = vld [vmem:[#allocation2 + $0x11] sm:$0xff] }
 0x1f5   : > { %v4430_v43 = vpack.c.bf16 %v4423_v13, %v4422_v41  ;;  %v13249_v13 = vld [vmem:[%s17183_s5 + $0x4c4] ss:$8 sps:$4 sm:$0xff]   ;;  %v13252_v41 = vld [vmem:[%s17183_s5 + $0x4d4] ss:$8 sps:$4 sm:$0xff]  }
 0x1f7   : > { %4354 = vmatpush1.bf16.msra.mxu1 %v13184_v23  ;;  %v13214_v23 = vld [vmem:[%s17183_s5 + $0x410] ss:$8 sps:$4 sm:$0xff]  }
 0x1f8   : > { %4355 = vmatprep.subr.bf16.mxu1 %v13189_v50  ;;  %v15245_v42 = vpop.f32.mrb[28].mxu0  ;;  %v13219_v50 = vld [vmem:[%s17183_s5 + $0x424] ss:$8 sps:$4 sm:$0xff]  }
 0x1f9   : > { %v15247_v28 = vpop.f32.mrb[29].mxu0 }
 0x1fa   : > { %v15252_v34 = vpop.f32.mrb[30].mxu0 }
 0x1fb   : > { %4356 = vmatpush1.bf16.msra.mxu1 %v13187_v1  ;;  %v15257_v8 = vpop.f32.mrb[31].mxu0  ;;  %v13217_v1 = vld [vmem:[%s17183_s5 + $0x420] ss:$8 sps:$4 sm:$0xff]  }
 0x1fc   : > { %4357 = vmatprep.subr.bf16.mxu1 %v13192_v5  ;;  %v4431_v5 = vpack.c.bf16 %v4425_v61, %v4424_v60  ;;  %v4438_v60 = vld [vmem:[#allocation3 + $0x40] sm:$0xfe]  ;;  %v4440_v61 = vld [vmem:[#allocation3 + $0x50] sm:$0x1] }
 0x1ff   : > { %4358 = vmatpush1.bf16.msra.mxu1 %v13190_v45  ;;  %v13222_v45 = vld [vmem:[%s17183_s5 + $0x434] ss:$8 sps:$4 sm:$0xff]  }
 0x200   : > { %4359 = vmatprep.subr.bf16.mxu1 %v13195_v56  ;;  %v13220_v56 = vld [vmem:[%s17183_s5 + $0x430] ss:$8 sps:$4 sm:$0xff]  }
 0x203   : > { %4360 = vmatpush1.bf16.msra.mxu1 %v13193_v48  ;;  %v4426_v48 = vld [vmem:[#allocation2 + $0x51] sm:$0xff] }
 0x204   : > { %4361 = vmatprep.subr.bf16.mxu1 %v13198_v15  ;;  %v13225_v15 = vld [vmem:[%s17183_s5 + $0x444] ss:$8 sps:$4 sm:$0xff]  }
 0x207   : > { %4362 = vmatpush1.bf16.msra.mxu1 %v13196_v62  ;;  %v4427_v62 = vld [vmem:[#allocation2 + $0x61] sm:$0xff] }
 0x208   : > { %4363 = vmatprep.subr.bf16.mxu1 %v13201_v31  ;;  %v4435_v31 = vld [vmem:[#allocation3 + $0x28] sm:$0xfe]  ;;  %v4432_v17 = vpack.c.bf16 %v4427_v62, %v4426_v48 }
 0x209   : > { %v13253_v48 = vld [vmem:[%s17183_s5 + $0x4e0] ss:$8 sps:$4 sm:$0xff]  }
 0x20b   : > { %4364 = vmatpush1.bf16.msra.mxu1 %v13199_v37  ;;  %v4437_v37 = vld [vmem:[#allocation3 + $0x38] sm:$0x1] }
 0x20c   : > { %4619 = vmatprep.subr.bf16.mxu1 %v13204_v51  ;;  %v13223_v51 = vld [vmem:[%s17183_s5 + $0x440] ss:$8 sps:$4 sm:$0xff]  }
 0x20e   : > { %4366 = vmatmul.mubr.bf16.vlgmr.msra.gmra.mrb[0].mxu1 %v3994_v4  ;;  %v4501_v4 = vrot.slane %v4435_v31, 1  ;;  %v4504_v31 = vrot.slane %v4438_v60, 1  ;;  %v4452_v60 = vld [vmem:[#allocation3 + $0xb0] sm:$0x1] }
 0x20f   : > { %4620 = vmatpush1.bf16.msra.mxu1 %v13202_v29  ;;  %4375 = vmatprep.mubr.bf16.mxu1 %v3997_v3  ;;  %v4502_v29 = vrot.slane %v4437_v37, 1  ;;  %v4507_v3 = vrot.slane %v4439_v54, 1  ;;  %v4505_v37 = vrot.slane %v4440_v61, 1  ;;  %v13258_v54 = vld [vmem:[%s17183_s5 + $0x4f4] ss:$8 sps:$4 sm:$0xff]  }
 0x210   : > { %4621 = vmatprep.subr.bf16.mxu1 %v13207_v32  ;;  %v4508_v32 = vrot.slane %v4441_v63, 1  ;;  %v4454_v61 = vld [vmem:[#allocation3 + $0xc0] sm:$0xfe] }
 0x212   : > { %v4509_v57 = vsel %vm2904_vm3, %v4507_v3, %v4508_v32  ;;  %v4506_v3 = vsel %vm2904_vm3, %v4504_v31, %v4505_v37  ;;  %v13261_v32 = vld [vmem:[%s17182_s4 + $0xf4] ss:$8 sps:$4 sm:$0xff]   ;;  %v4465_v31 = vld [vmem:[#allocation3 + $0x118] sm:$0x1] }
 0x213   : > { %4622 = vmatpush1.bf16.msra.mxu1 %v13205_v14  ;;  %v4503_v14 = vsel %vm2904_vm3, %v4501_v4, %v4502_v29  ;;  %v13256_v4 = vld [vmem:[%s17183_s5 + $0x4f0] ss:$8 sps:$4 sm:$0xff]  }
 0x214   : > { %4623 = vmatprep.subr.bf16.mxu1 %v13210_v12  ;;  %v4429_v12 = vld [vmem:[#allocation2 + $0x81] sm:$0xff] }
 0x216   : > { %4376 = vmatmul.mubr.bf16.gmra.mrb[4].mxu1 %v3996_v16  ;;  %v13229_v16 = vld [vmem:[%s17183_s5 + $0x460] ss:$8 sps:$4 sm:$0xff]  }
 0x217   : > { %4385 = vmatprep.mubr.bf16.mxu1 %v3999_v2  ;;  %4624 = vmatpush1.bf16.msra.mxu1 %v13208_v59  ;;  %v4563_v2 = vpack.c.bf16 %v4509_v57, %v4503_v14  ;;  %v4433_v59 = vpack.c.bf16 %v4429_v12, %v4428_v58  ;;  %v4446_v58 = vld [vmem:[#allocation3 + $0x80] sm:$0xfe]  ;;  %v4448_v12 = vld [vmem:[#allocation3 + $0x90] sm:$0x1] }
 0x218   : > { %4901 = vmatprep.subr.bf16.mxu1 %v13213_v10  ;;  %v13234_v10 = vld [vmem:[%s17183_s5 + $0x474] ss:$8 sps:$4 sm:$0xff]  }
 0x21e   : > { %4386 = vmatmul.mubr.bf16.gmra.mrb[8].mxu1 %v3998_v22  ;;  %v13238_v22 = vld [vmem:[%s17183_s5 + $0x490] ss:$8 sps:$4 sm:$0xff]  }
 0x21f   : > { %4395 = vmatprep.mubr.bf16.mxu1 %v4001_v0  ;;  %v13243_v0 = vld [vmem:[%s17183_s5 + $0x4a4] ss:$8 sps:$4 sm:$0xff]  }
 0x226   : > { %4396 = vmatmul.mubr.bf16.gmra.mrb[12].mxu1 %v4000_v35  ;;  %v13244_v35 = vld [vmem:[%s17183_s5 + $0x4b0] ss:$8 sps:$4 sm:$0xff]  }
 0x227   : > { %4651 = vmatprep.mubr.bf16.mxu1 %v13952_v30 }
 0x22e   : > { %11500 = vmatmul.mubr.msk.bf16.vlgmr.msra.gmra.mrb[0].mxu1 %vm381_vm1, %v4430_v43  ;;  %v13250_v43 = vld [vmem:[%s17183_s5 + $0x4d0] ss:$8 sps:$4 sm:$0xff]  }
 0x22f   : > { %4902 = vmatpush1.bf16.msra.mxu1 %v13211_v52  ;;  %4661 = vmatprep.mubr.bf16.mxu1 %v13952_v30  ;;  %v13247_v52 = vld [vmem:[%s17183_s5 + $0x4c0] ss:$8 sps:$4 sm:$0xff]  }
 0x230   : > { %4903 = vmatprep.subr.bf16.mxu1 %v13216_v49  ;;  %v13255_v49 = vld [vmem:[%s17183_s5 + $0x4e4] ss:$8 sps:$4 sm:$0xff]  }
 0x233   : > { %4904 = vmatpush1.bf16.msra.mxu1 %v13214_v23  ;;  %v4434_v23 = vld [vmem:[#allocation3 + $0x20] sm:$0xfe] }
 0x234   : > { %4905 = vmatprep.subr.bf16.mxu1 %v13219_v50  ;;  %v4436_v50 = vld [vmem:[#allocation3 + $0x30] sm:$0x1] }
 0x235   : > { %v4499_v62 = vrot.slane %v4436_v50, 1  ;;  %v4450_v50 = vld [vmem:[#allocation3 + $0xa0] sm:$0xfe] }
 0x236   : > { %11501 = vmatmul.mubr.msk.bf16.gmra.mrb[4].mxu1 %vm381_vm1, %v4431_v5  ;;  %v4445_v5 = vld [vmem:[#allocation3 + $0x78] sm:$0x1] }
 0x237   : > { %4906 = vmatpush1.bf16.msra.mxu1 %v13217_v1  ;;  %4671 = vmatprep.mubr.bf16.mxu1 %v13952_v30  ;;  %v4443_v1 = vld [vmem:[#allocation3 + $0x68] sm:$0xfe] }
 0x238   : > { %4907 = vmatprep.subr.bf16.mxu1 %v13222_v45  ;;  %v4447_v45 = vld [vmem:[#allocation3 + $0x88] sm:$0xfe]  ;;  %v4513_v63 = vrot.slane %v4443_v1, 1 }
 0x23b   : > { %4908 = vmatpush1.bf16.msra.mxu1 %v13220_v56  ;;  %v4449_v56 = vld [vmem:[#allocation3 + $0x98] sm:$0x1] }
 0x23c   : > { %4909 = vmatprep.subr.bf16.mxu1 %v13225_v15  ;;  %v4498_v15 = vrot.slane %v4434_v23, 1 }
 0x23e   : > { %11502 = vmatmul.mubr.msk.bf16.gmra.mrb[8].mxu1 %vm381_vm1, %v4432_v17  ;;  %v4519_v17 = vrot.slane %v4447_v45, 1  ;;  %v4500_v29 = vsel %vm2904_vm3, %v4498_v15, %v4499_v62  ;;  %v4456_v45 = vld [vmem:[#allocation3 + $0xd0] sm:$0x1]  ;;  %v4461_v15 = vld [vmem:[#allocation3 + $0xf8] sm:$0x1] }
 0x23f   : > { %4910 = vmatpush1.bf16.msra.mxu1 %v13223_v51  ;;  %4681 = vmatprep.mubr.bf16.mxu1 %v13952_v30  ;;  %v4514_v51 = vrot.slane %v4445_v5, 1  ;;  %v4463_v62 = vld [vmem:[#allocation3 + $0x108] sm:$0xfe] }
 0x240   : > { %4911 = vmatprep.subr.bf16.mxu1 %v13228_v19  ;;  %v4520_v19 = vrot.slane %v4449_v56, 1  ;;  %v13267_v56 = vld [vmem:[%s17182_s4 + $0x114] ss:$8 sps:$4 sm:$0xff]  }
 0x241   : > { %v4515_v14 = vsel %vm2904_vm3, %v4513_v63, %v4514_v51  ;;  %v4523_v51 = vrot.slane %v4452_v60, 1  ;;  %v4992_v60 = vld [vmem:[#allocation2 + $0x32] sm:$0xff] }
 0x242   : > { %v4521_v57 = vsel %vm2904_vm3, %v4519_v17, %v4520_v19  ;;  %v4528_v17 = vrot.slane %v4454_v61, 1  ;;  %v4529_v19 = vrot.slane %v4456_v45, 1  ;;  %v4993_v61 = vld [vmem:[#allocation2 + $0x42] sm:$0xff]  ;;  %v13279_v45 = vld [vmem:[%s17183_s5 + $0x534] ss:$8 sps:$4 sm:$0xff]  }
 0x243   : > { %4912 = vmatpush1.bf16.msra.mxu1 %v13226_v9  ;;  %v4442_v9 = vld [vmem:[#allocation3 + $0x60] sm:$0xfe] }
 0x244   : > { %4913 = vmatprep.subr.bf16.mxu1 %v13231_v6  ;;  %v4444_v6 = vld [vmem:[#allocation3 + $0x70] sm:$0x1] }
 0x246   : > { %11503 = vmatmul.mubr.msk.bf16.gmra.mrb[12].mxu1 %vm381_vm1, %v4433_v59  ;;  %v4455_v59 = vld [vmem:[#allocation3 + $0xc8] sm:$0xfe] }
 0x247   : > { %4914 = vmatpush1.bf16.msra.mxu1 %v13229_v16  ;;  %4933 = vmatprep.mubr.bf16.mxu1 %v4563_v2  ;;  %v4451_v16 = vld [vmem:[#allocation3 + $0xa8] sm:$0xfe]  ;;  %v4453_v2 = vld [vmem:[#allocation3 + $0xb8] sm:$0x1] }
 0x248   : > { %4915 = vmatprep.subr.bf16.mxu1 %v13234_v10  ;;  %v4457_v10 = vld [vmem:[#allocation3 + $0xd8] sm:$0x1] }
 0x24b   : > { %4916 = vmatpush1.bf16.msra.mxu1 %v13232_v53  ;;  %v4562_v53 = vpack.c.bf16 %v4506_v3, %v4500_v29  ;;  %v4538_v3 = vrot.slane %v4461_v15, 1  ;;  %v13282_v15 = vld [vmem:[%s17183_s5 + $0x544] ss:$8 sps:$4 sm:$0xff]  }
 0x24c   : > { %4917 = vmatprep.subr.bf16.mxu1 %v13237_v18  ;;  %v4510_v18 = vrot.slane %v4442_v9, 1  ;;  %v4544_v9 = vrot.slane %v4465_v31, 1  ;;  %v5003_v31 = vld [vmem:[#allocation3 + $0x28] sm:$0xfc] }
 0x24f   : > { %4918 = vmatpush1.bf16.msra.mxu1 %v13235_v21  ;;  %v13259_v21 = vld [vmem:[%s17182_s4 + $0xf0] ss:$8 sps:$4 sm:$0xff]  }
 0x250   : > { %4919 = vmatprep.subr.bf16.mxu1 %v13240_v40  ;;  %v4565_v40 = vpack.c.bf16 %v4521_v57, %v4515_v14  ;;  %v4530_v57 = vsel %vm2904_vm3, %v4528_v17, %v4529_v19  ;;  %v13285_v19 = vld [vmem:[%s17183_s5 + $0x554] ss:$8 sps:$4 sm:$0xff]  }
 0x253   : > { %4920 = vmatpush1.bf16.msra.mxu1 %v13238_v22  ;;  %v4511_v22 = vrot.slane %v4444_v6, 1  ;;  %v13270_v6 = vld [vmem:[%s17183_s5 + $0x504] ss:$8 sps:$4 sm:$0xff]  }
 0x254   : > { %4921 = vmatprep.subr.bf16.mxu1 %v13243_v0  ;;  %v4516_v0 = vrot.slane %v4446_v58, 1  ;;  %v4458_v58 = vld [vmem:[#allocation3 + $0xe0] sm:$0xfe] }
 0x257   : > { %4922 = vmatpush1.bf16.msra.mxu1 %v13241_v24  ;;  %v4517_v24 = vrot.slane %v4448_v12, 1 }
 0x258   : > { %4923 = vmatprep.subr.bf16.mxu1 %v13246_v46  ;;  %v13264_v46 = vld [vmem:[%s17182_s4 + $0x104] ss:$8 sps:$4 sm:$0xff]  }
 0x259   : > { %v4518_v23 = vsel %vm2904_vm3, %v4516_v0, %v4517_v24 }
 0x25b   : > { %4924 = vmatpush1.bf16.msra.mxu1 %v13244_v35  ;;  %v4525_v35 = vrot.slane %v4451_v16, 1 }
 0x25c   : > { %4925 = vmatprep.subr.bf16.mxu1 %v13249_v13  ;;  %v4526_v13 = vrot.slane %v4453_v2, 1  ;;  %v4460_v2 = vld [vmem:[#allocation3 + $0xf0] sm:$0x1] }
 0x25e   : > { %v4527_v1 = vsel %vm2904_vm3, %v4525_v35, %v4526_v13  ;;  %v4991_v13 = vld [vmem:[#allocation2 + $0x22] sm:$0xff] }
 0x25f   : > { %4926 = vmatpush1.bf16.msra.mxu1 %v13247_v52  ;;  %v4531_v52 = vrot.slane %v4455_v59, 1  ;;  %v4462_v59 = vld [vmem:[#allocation3 + $0x100] sm:$0xfe] }
 0x260   : > { %4927 = vmatprep.subr.bf16.mxu1 %v13252_v41  ;;  %v4532_v41 = vrot.slane %v4457_v10, 1  ;;  %v4464_v10 = vld [vmem:[#allocation3 + $0x110] sm:$0x1] }
 0x261   : > { %v4541_v0 = vrot.slane %v4464_v10, 1  ;;  %v13291_v10 = vld [vmem:[%s17183_s5 + $0x574] ss:$8 sps:$4 sm:$0xff]  }
 0x262   : > { %v4533_v5 = vsel %vm2904_vm3, %v4531_v52, %v4532_v41  ;;  %v13268_v52 = vld [vmem:[%s17183_s5 + $0x500] ss:$8 sps:$4 sm:$0xff]   ;;  %v4990_v41 = vld [vmem:[#allocation2 + $0x12] sm:$0xff] }
 0x263   : > { %4928 = vmatpush1.bf16.msra.mxu1 %v13250_v43  ;;  %v13262_v43 = vld [vmem:[%s17182_s4 + $0x100] ss:$8 sps:$4 sm:$0xff]   ;;  %v4567_v63 = vpack.c.bf16 %v4533_v5, %v4527_v1  ;;  %v4999_v5 = vpack.c.bf16 %v4993_v61, %v4992_v60  ;;  %v5008_v61 = vld [vmem:[#allocation3 + $0x50] sm:$0x3] }
 0x264   : > { %4929 = vmatprep.subr.bf16.mxu1 %v13255_v49  ;;  %v4512_v49 = vsel %vm2904_vm3, %v4510_v18, %v4511_v22  ;;  %v4534_v18 = vrot.slane %v4458_v58, 1  ;;  %v4540_v22 = vrot.slane %v4462_v59, 1  ;;  %v13274_v1 = vld [vmem:[%s17183_s5 + $0x520] ss:$8 sps:$4 sm:$0xff]   ;;  %v4996_v58 = vld [vmem:[#allocation2 + $0x72] sm:$0xff] }
 0x265   : > { %v4564_v37 = vpack.c.bf16 %v4518_v23, %v4512_v49  ;;  %v13273_v49 = vld [vmem:[%s17183_s5 + $0x514] ss:$8 sps:$4 sm:$0xff]   ;;  %v13271_v23 = vld [vmem:[%s17183_s5 + $0x510] ss:$8 sps:$4 sm:$0xff]   ;;  %v5006_v60 = vld [vmem:[#allocation3 + $0x40] sm:$0xfc] }
 0x267   : > { %4930 = vmatpush1.bf16.msra.mxu1 %v13253_v48  ;;  %v4459_v48 = vld [vmem:[#allocation3 + $0xe8] sm:$0xfe] }
 0x268   : > { %4931 = vmatprep.subr.bf16.mxu1 %v13258_v54  ;;  %v4522_v54 = vrot.slane %v4450_v50, 1  ;;  %v4537_v29 = vrot.slane %v4459_v48, 1  ;;  %v13276_v50 = vld [vmem:[%s17183_s5 + $0x524] ss:$8 sps:$4 sm:$0xff]   ;;  %v4994_v48 = vld [vmem:[#allocation2 + $0x52] sm:$0xff] }
 0x26a   : > { %v4524_v14 = vsel %vm2904_vm3, %v4522_v54, %v4523_v51  ;;  %v4539_v12 = vsel %vm2904_vm3, %v4537_v29, %v4538_v3  ;;  %v5007_v54 = vld [vmem:[#allocation3 + $0x48] sm:$0xfc] }
 0x26b   : > { %4932 = vmatpush1.bf16.msra.mxu1 %v13256_v4  ;;  %v13265_v4 = vld [vmem:[%s17182_s4 + $0x110] ss:$8 sps:$4 sm:$0xff]   ;;  %v13280_v51 = vld [vmem:[%s17183_s5 + $0x540] ss:$8 sps:$4 sm:$0xff]   ;;  %v5075_v3 = vrot.slane %v5007_v54, 2 }
 0x26c   : > { %5187 = vmatprep.subr.bf16.mxu1 %v13261_v32  ;;  %v4543_v32 = vrot.slane %v4463_v62, 1  ;;  %v4995_v62 = vld [vmem:[#allocation2 + $0x62] sm:$0xff]  ;;  %v13315_v54 = vld [vmem:[%s17183_s5 + $0x5f4] ss:$8 sps:$4 sm:$0xff]  }
 0x26d   : > { %v5000_v17 = vpack.c.bf16 %v4995_v62, %v4994_v48  ;;  %v13310_v48 = vld [vmem:[%s17183_s5 + $0x5e0] ss:$8 sps:$4 sm:$0xff]  }
 0x26e   : > { %4934 = vmatmul.mubr.bf16.vlgmr.msra.gmra.mrb[0].mxu1 %v4562_v53  ;;  %v4545_v16 = vsel %vm2904_vm3, %v4543_v32, %v4544_v9  ;;  %v4566_v53 = vpack.c.bf16 %v4530_v57, %v4524_v14  ;;  %v13283_v9 = vld [vmem:[%s17183_s5 + $0x550] ss:$8 sps:$4 sm:$0xff]  }
 0x26f   : > { %5188 = vmatpush1.bf16.msra.mxu1 %v13259_v21  ;;  %4943 = vmatprep.mubr.bf16.mxu1 %v4565_v40  ;;  %v4569_v21 = vpack.c.bf16 %v4545_v16, %v4539_v12  ;;  %v4535_v40 = vrot.slane %v4460_v2, 1  ;;  %v4997_v12 = vld [vmem:[#allocation2 + $0x82] sm:$0xff] }
 0x270   : > { %5189 = vmatprep.subr.bf16.mxu1 %v13264_v46  ;;  %v4542_v46 = vsel %vm2904_vm3, %v4540_v22, %v4541_v0  ;;  %v13286_v16 = vld [vmem:[%s17183_s5 + $0x560] ss:$8 sps:$4 sm:$0xff]   ;;  %v5001_v59 = vpack.c.bf16 %v4997_v12, %v4996_v58  ;;  %v13295_v22 = vld [vmem:[%s17183_s5 + $0x590] ss:$8 sps:$4 sm:$0xff]   ;;  %v13300_v0 = vld [vmem:[%s17183_s5 + $0x5a4] ss:$8 sps:$4 sm:$0xff]  }
 0x271   : > { %v4536_v24 = vsel %vm2904_vm3, %v4534_v18, %v4535_v40  ;;  %v13294_v18 = vld [vmem:[%s17183_s5 + $0x584] ss:$8 sps:$4 sm:$0xff]   ;;  %v13297_v40 = vld [vmem:[%s17183_s5 + $0x594] ss:$8 sps:$4 sm:$0xff]   ;;  %v5016_v12 = vld [vmem:[#allocation3 + $0x90] sm:$0x3] }
 0x272   : > { %v4568_v35 = vpack.c.bf16 %v4542_v46, %v4536_v24  ;;  %v13298_v24 = vld [vmem:[%s17183_s5 + $0x5a0] ss:$8 sps:$4 sm:$0xff]   ;;  %v13303_v46 = vld [vmem:[%s17183_s5 + $0x5b4] ss:$8 sps:$4 sm:$0xff]  }
 0x273   : > { %5190 = vmatpush1.bf16.msra.mxu1 %v13262_v43  ;;  %v4998_v43 = vpack.c.bf16 %v4991_v13, %v4990_v41  ;;  %v13306_v13 = vld [vmem:[%s17183_s5 + $0x5c4] ss:$8 sps:$4 sm:$0xff]   ;;  %v13309_v41 = vld [vmem:[%s17183_s5 + $0x5d4] ss:$8 sps:$4 sm:$0xff]  }
 0x274   : > { %5191 = vmatprep.subr.bf16.mxu1 %v13267_v56  ;;  %v13277_v56 = vld [vmem:[%s17183_s5 + $0x530] ss:$8 sps:$4 sm:$0xff]   ;;  %v5014_v58 = vld [vmem:[#allocation3 + $0x80] sm:$0xfc] }
 0x276   : > { %4944 = vmatmul.mubr.bf16.gmra.mrb[4].mxu1 %v4564_v37  ;;  %v5005_v37 = vld [vmem:[#allocation3 + $0x38] sm:$0x3] }
 0x277   : > { %4953 = vmatprep.mubr.bf16.mxu1 %v4567_v63  ;;  %5192 = vmatpush1.bf16.msra.mxu1 %v13265_v4  ;;  %v5009_v63 = vld [vmem:[#allocation3 + $0x58] sm:$0x3]  ;;  %v5069_v4 = vrot.slane %v5003_v31, 2  ;;  %v5070_v29 = vrot.slane %v5005_v37, 2  ;;  %v5072_v31 = vrot.slane %v5006_v60, 2  ;;  %v5073_v37 = vrot.slane %v5008_v61, 2 }
 0x278   : > { %5469 = vmatprep.subr.bf16.mxu1 %v13270_v6  ;;  %v5076_v32 = vrot.slane %v5009_v63, 2  ;;  %v13288_v6 = vld [vmem:[%s17183_s5 + $0x564] ss:$8 sps:$4 sm:$0xff]   ;;  %v5020_v60 = vld [vmem:[#allocation3 + $0xb0] sm:$0x3] }
 0x279   : > { %v5071_v14 = vsel %vm3473_vm4, %v5069_v4, %v5070_v29  ;;  %v13313_v4 = vld [vmem:[%s17183_s5 + $0x5f0] ss:$8 sps:$4 sm:$0xff]   ;;  %v5022_v61 = vld [vmem:[#allocation3 + $0xc0] sm:$0xfc] }
 0x27a   : > { %v5077_v57 = vsel %vm3473_vm4, %v5075_v3, %v5076_v32  ;;  %v5074_v3 = vsel %vm3473_vm4, %v5072_v31, %v5073_v37  ;;  %v13318_v32 = vld [vmem:[%s17182_s4 + $0x124] ss:$8 sps:$4 sm:$0xff]   ;;  %v5033_v31 = vld [vmem:[#allocation3 + $0x118] sm:$0x3] }
 0x27b   : > { %v5131_v2 = vpack.c.bf16 %v5077_v57, %v5071_v14 }
 0x27e   : > { %4954 = vmatmul.mubr.bf16.gmra.mrb[8].mxu1 %v4566_v53  ;;  %v13289_v53 = vld [vmem:[%s17183_s5 + $0x570] ss:$8 sps:$4 sm:$0xff]  }
 0x27f   : > { %4963 = vmatprep.mubr.bf16.mxu1 %v4569_v21  ;;  %v13292_v21 = vld [vmem:[%s17183_s5 + $0x580] ss:$8 sps:$4 sm:$0xff]  }
 0x286   : > { %4964 = vmatmul.mubr.bf16.gmra.mrb[12].mxu1 %v4568_v35  ;;  %v13301_v35 = vld [vmem:[%s17183_s5 + $0x5b0] ss:$8 sps:$4 sm:$0xff]  }
 0x287   : > { %5219 = vmatprep.mubr.bf16.mxu1 %v13952_v30 }
 0x28e   : > { %11580 = vmatmul.mubr.msk.bf16.vlgmr.msra.gmra.mrb[0].mxu1 %vm381_vm1, %v4998_v43  ;;  %v13307_v43 = vld [vmem:[%s17183_s5 + $0x5d0] ss:$8 sps:$4 sm:$0xff]  }
 0x28f   : > { %5470 = vmatpush1.bf16.msra.mxu1 %v13268_v52  ;;  %5229 = vmatprep.mubr.bf16.mxu1 %v13952_v30  ;;  %v13304_v52 = vld [vmem:[%s17183_s5 + $0x5c0] ss:$8 sps:$4 sm:$0xff]  }
 0x290   : > { %5471 = vmatprep.subr.bf16.mxu1 %v13273_v49  ;;  %v13312_v49 = vld [vmem:[%s17183_s5 + $0x5e4] ss:$8 sps:$4 sm:$0xff]  }
 0x293   : > { %5472 = vmatpush1.bf16.msra.mxu1 %v13271_v23  ;;  %v5002_v23 = vld [vmem:[#allocation3 + $0x20] sm:$0xfc] }
 0x294   : > { %5473 = vmatprep.subr.bf16.mxu1 %v13276_v50  ;;  %v5004_v50 = vld [vmem:[#allocation3 + $0x30] sm:$0x3] }
 0x295   : > { %v5067_v62 = vrot.slane %v5004_v50, 2  ;;  %v5018_v50 = vld [vmem:[#allocation3 + $0xa0] sm:$0xfc] }
 0x296   : > { %11581 = vmatmul.mubr.msk.bf16.gmra.mrb[4].mxu1 %vm381_vm1, %v4999_v5  ;;  %v5013_v5 = vld [vmem:[#allocation3 + $0x78] sm:$0x3] }
 0x297   : > { %5474 = vmatpush1.bf16.msra.mxu1 %v13274_v1  ;;  %5239 = vmatprep.mubr.bf16.mxu1 %v13952_v30  ;;  %v5011_v1 = vld [vmem:[#allocation3 + $0x68] sm:$0xfc] }
 0x298   : > { %5475 = vmatprep.subr.bf16.mxu1 %v13279_v45  ;;  %v5015_v45 = vld [vmem:[#allocation3 + $0x88] sm:$0xfc]  ;;  %v5081_v63 = vrot.slane %v5011_v1, 2 }
 0x29b   : > { %5476 = vmatpush1.bf16.msra.mxu1 %v13277_v56  ;;  %v5017_v56 = vld [vmem:[#allocation3 + $0x98] sm:$0x3] }
 0x29c   : > { %5477 = vmatprep.subr.bf16.mxu1 %v13282_v15  ;;  %v5066_v15 = vrot.slane %v5002_v23, 2 }
 0x29e   : > { %11582 = vmatmul.mubr.msk.bf16.gmra.mrb[8].mxu1 %vm381_vm1, %v5000_v17  ;;  %v5087_v17 = vrot.slane %v5015_v45, 2  ;;  %v5068_v29 = vsel %vm3473_vm4, %v5066_v15, %v5067_v62  ;;  %v5024_v45 = vld [vmem:[#allocation3 + $0xd0] sm:$0x3]  ;;  %v5029_v15 = vld [vmem:[#allocation3 + $0xf8] sm:$0x3] }
 0x29f   : > { %5478 = vmatpush1.bf16.msra.mxu1 %v13280_v51  ;;  %5249 = vmatprep.mubr.bf16.mxu1 %v13952_v30  ;;  %v5082_v51 = vrot.slane %v5013_v5, 2  ;;  %v5031_v62 = vld [vmem:[#allocation3 + $0x108] sm:$0xfc] }
 0x2a0   : > { %5479 = vmatprep.subr.bf16.mxu1 %v13285_v19  ;;  %v5088_v19 = vrot.slane %v5017_v56, 2  ;;  %v13324_v56 = vld [vmem:[%s17182_s4 + $0x144] ss:$8 sps:$4 sm:$0xff]  }
 0x2a1   : > { %v5083_v14 = vsel %vm3473_vm4, %v5081_v63, %v5082_v51  ;;  %v5091_v51 = vrot.slane %v5020_v60, 2  ;;  %v5561_v60 = vld [vmem:[#allocation2 + $0x40] sm:$0xff] }
 0x2a2   : > { %v5089_v57 = vsel %vm3473_vm4, %v5087_v17, %v5088_v19  ;;  %v5096_v17 = vrot.slane %v5022_v61, 2  ;;  %v5097_v19 = vrot.slane %v5024_v45, 2  ;;  %v5562_v61 = vld [vmem:[#allocation2 + $0x50] sm:$0xff] }
 0x2a3   : > { %5480 = vmatpush1.bf16.msra.mxu1 %v13283_v9  ;;  %v5010_v9 = vld [vmem:[#allocation3 + $0x60] sm:$0xfc]  ;;  %v13336_v45 = vld [vmem:[%s17183_s5 + $0x634] ss:$8 sps:$4 sm:$0xff]  }
 0x2a4   : > { %5481 = vmatprep.subr.bf16.mxu1 %v13288_v6  ;;  %v5012_v6 = vld [vmem:[#allocation3 + $0x70] sm:$0x3] }
 0x2a6   : > { %11583 = vmatmul.mubr.msk.bf16.gmra.mrb[12].mxu1 %vm381_vm1, %v5001_v59  ;;  %v5023_v59 = vld [vmem:[#allocation3 + $0xc8] sm:$0xfc] }
 0x2a7   : > { %5482 = vmatpush1.bf16.msra.mxu1 %v13286_v16  ;;  %5501 = vmatprep.mubr.bf16.mxu1 %v5131_v2  ;;  %v5019_v16 = vld [vmem:[#allocation3 + $0xa8] sm:$0xfc]  ;;  %v5021_v2 = vld [vmem:[#allocation3 + $0xb8] sm:$0x3] }
 0x2a8   : > { %5483 = vmatprep.subr.bf16.mxu1 %v13291_v10  ;;  %v5025_v10 = vld [vmem:[#allocation3 + $0xd8] sm:$0x3] }
 0x2ab   : > { %5484 = vmatpush1.bf16.msra.mxu1 %v13289_v53  ;;  %v5130_v53 = vpack.c.bf16 %v5074_v3, %v5068_v29  ;;  %v5106_v3 = vrot.slane %v5029_v15, 2  ;;  %v5563_v15 = vld [vmem:[#allocation2 + $0x60] sm:$0xff] }
 0x2ac   : > { %5485 = vmatprep.subr.bf16.mxu1 %v13294_v18  ;;  %v5078_v18 = vrot.slane %v5010_v9, 2  ;;  %v5112_v9 = vrot.slane %v5033_v31, 2  ;;  %v13337_v31 = vld [vmem:[%s17183_s5 + $0x640] ss:$8 sps:$4 sm:$0xff]  }
 0x2af   : > { %5486 = vmatpush1.bf16.msra.mxu1 %v13292_v21  ;;  %v13316_v21 = vld [vmem:[%s17182_s4 + $0x120] ss:$8 sps:$4 sm:$0xff]  }
 0x2b0   : > { %5487 = vmatprep.subr.bf16.mxu1 %v13297_v40  ;;  %v5133_v40 = vpack.c.bf16 %v5089_v57, %v5083_v14  ;;  %v5098_v57 = vsel %vm3473_vm4, %v5096_v17, %v5097_v19  ;;  %v5573_v17 = vld [vmem:[#allocation3 + $0x48] sm:$0xff] }
 0x2b1   : > { %v5575_v19 = vld [vmem:[#allocation3 + $0x68] sm:$0xff] }
 0x2b3   : > { %5488 = vmatpush1.bf16.msra.mxu1 %v13295_v22  ;;  %v5079_v22 = vrot.slane %v5012_v6, 2  ;;  %v13327_v6 = vld [vmem:[%s17183_s5 + $0x604] ss:$8 sps:$4 sm:$0xff]  }
 0x2b4   : > { %5489 = vmatprep.subr.bf16.mxu1 %v13300_v0  ;;  %v5084_v0 = vrot.slane %v5014_v58, 2  ;;  %v5026_v58 = vld [vmem:[#allocation3 + $0xe0] sm:$0xfc] }
 0x2b7   : > { %5490 = vmatpush1.bf16.msra.mxu1 %v13298_v24  ;;  %v5085_v24 = vrot.slane %v5016_v12, 2 }
 0x2b8   : > { %5491 = vmatprep.subr.bf16.mxu1 %v13303_v46  ;;  %v13321_v46 = vld [vmem:[%s17182_s4 + $0x134] ss:$8 sps:$4 sm:$0xff]  }
 0x2b9   : > { %v5086_v23 = vsel %vm3473_vm4, %v5084_v0, %v5085_v24 }
 0x2bb   : > { %5492 = vmatpush1.bf16.msra.mxu1 %v13301_v35  ;;  %v5093_v35 = vrot.slane %v5019_v16, 2 }
 0x2bc   : > { %5493 = vmatprep.subr.bf16.mxu1 %v13306_v13  ;;  %v5094_v13 = vrot.slane %v5021_v2, 2  ;;  %v5028_v2 = vld [vmem:[#allocation3 + $0xf0] sm:$0x3] }
 0x2be   : > { %v5095_v1 = vsel %vm3473_vm4, %v5093_v35, %v5094_v13  ;;  %v5560_v13 = vld [vmem:[#allocation2 + $0x30] sm:$0xff] }
 0x2bf   : > { %5494 = vmatpush1.bf16.msra.mxu1 %v13304_v52  ;;  %v5099_v52 = vrot.slane %v5023_v59, 2  ;;  %v5030_v59 = vld [vmem:[#allocation3 + $0x100] sm:$0xfc] }
 0x2c0   : > { %5495 = vmatprep.subr.bf16.mxu1 %v13309_v41  ;;  %v5100_v41 = vrot.slane %v5025_v10, 2  ;;  %v5032_v10 = vld [vmem:[#allocation3 + $0x110] sm:$0x3] }
 0x2c1   : > { %v5109_v0 = vrot.slane %v5032_v10, 2  ;;  %v13360_v10 = vld [vmem:[%s17183_s5 + $0x6b4] ss:$8 sps:$4 sm:$0xff]  }
 0x2c2   : > { %v5101_v5 = vsel %vm3473_vm4, %v5099_v52, %v5100_v41  ;;  %v13325_v52 = vld [vmem:[%s17183_s5 + $0x600] ss:$8 sps:$4 sm:$0xff]  }
 0x2c3   : > { %5496 = vmatpush1.bf16.msra.mxu1 %v13307_v43  ;;  %v13319_v43 = vld [vmem:[%s17182_s4 + $0x130] ss:$8 sps:$4 sm:$0xff]   ;;  %v5135_v63 = vpack.c.bf16 %v5101_v5, %v5095_v1  ;;  %v5559_v41 = vld [vmem:[#allocation2 + $0x20] sm:$0xff]  ;;  %v5568_v5 = vpack.c.bf16 %v5562_v61, %v5561_v60 }
 0x2c4   : > { %5497 = vmatprep.subr.bf16.mxu1 %v13312_v49  ;;  %v5080_v49 = vsel %vm3473_vm4, %v5078_v18, %v5079_v22  ;;  %v5102_v18 = vrot.slane %v5026_v58, 2  ;;  %v5108_v22 = vrot.slane %v5030_v59, 2  ;;  %v13331_v1 = vld [vmem:[%s17183_s5 + $0x620] ss:$8 sps:$4 sm:$0xff]   ;;  %v13378_v61 = vld [vmem:[%s17182_s4 + $0x164] ss:$8 sps:$4 sm:$0xff]  }
 0x2c5   : > { %v5132_v37 = vpack.c.bf16 %v5086_v23, %v5080_v49  ;;  %v13330_v49 = vld [vmem:[%s17183_s5 + $0x614] ss:$8 sps:$4 sm:$0xff]   ;;  %v13328_v23 = vld [vmem:[%s17183_s5 + $0x610] ss:$8 sps:$4 sm:$0xff]   ;;  %v13349_v58 = vld [vmem:[%s17183_s5 + $0x680] ss:$8 sps:$4 sm:$0xff]  }
 0x2c6   : > { %v13355_v59 = vld [vmem:[%s17183_s5 + $0x6a0] ss:$8 sps:$4 sm:$0xff]  }
 0x2c7   : > { %5498 = vmatpush1.bf16.msra.mxu1 %v13310_v48  ;;  %v5027_v48 = vld [vmem:[#allocation3 + $0xe8] sm:$0xfc] }
 0x2c8   : > { %5499 = vmatprep.subr.bf16.mxu1 %v13315_v54  ;;  %v5090_v54 = vrot.slane %v5018_v50, 2  ;;  %v5105_v29 = vrot.slane %v5027_v48, 2  ;;  %v13333_v50 = vld [vmem:[%s17183_s5 + $0x624] ss:$8 sps:$4 sm:$0xff]  }
 0x2c9   : > { %v13339_v48 = vld [vmem:[%s17183_s5 + $0x644] ss:$8 sps:$4 sm:$0xff]  }
 0x2ca   : > { %v5092_v14 = vsel %vm3473_vm4, %v5090_v54, %v5091_v51  ;;  %v5107_v12 = vsel %vm3473_vm4, %v5105_v29, %v5106_v3  ;;  %v13342_v54 = vld [vmem:[%s17183_s5 + $0x654] ss:$8 sps:$4 sm:$0xff]   ;;  %v13345_v51 = vld [vmem:[%s17183_s5 + $0x664] ss:$8 sps:$4 sm:$0xff]   ;;  %v13343_v3 = vld [vmem:[%s17183_s5 + $0x660] ss:$8 sps:$4 sm:$0xff]  }
 0x2cb   : > { %5500 = vmatpush1.bf16.msra.mxu1 %v13313_v4  ;;  %v13322_v4 = vld [vmem:[%s17182_s4 + $0x140] ss:$8 sps:$4 sm:$0xff]   ;;  %v5566_v29 = vld [vmem:[#allocation2 + $0x90] sm:$0xff] }
 0x2cc   : > { %5645 = vmatprep.subr.bf16.mxu1 %v13318_v32  ;;  %v5111_v32 = vrot.slane %v5031_v62, 2  ;;  %v5564_v62 = vld [vmem:[#allocation2 + $0x70] sm:$0xff] }
 0x2ce   : > { %5502 = vmatmul.mubr.bf16.vlgmr.msra.gmra.mrb[0].mxu1 %v5130_v53  ;;  %v5113_v16 = vsel %vm3473_vm4, %v5111_v32, %v5112_v9  ;;  %v5134_v53 = vpack.c.bf16 %v5098_v57, %v5092_v14  ;;  %v5589_v32 = vpack.c.bf16 %v5575_v19, %v5573_v17  ;;  %v13346_v14 = vld [vmem:[%s17183_s5 + $0x670] ss:$8 sps:$4 sm:$0xff]   ;;  %v13351_v57 = vld [vmem:[%s17183_s5 + $0x684] ss:$8 sps:$4 sm:$0xff]  }
 0x2cf   : > { %5646 = vmatpush1.bf16.msra.mxu1 %v13316_v21  ;;  %5511 = vmatprep.mubr.bf16.mxu1 %v5133_v40  ;;  %v5137_v21 = vpack.c.bf16 %v5113_v16, %v5107_v12  ;;  %v5103_v40 = vrot.slane %v5028_v2, 2  ;;  %v13354_v12 = vld [vmem:[%s17183_s5 + $0x694] ss:$8 sps:$4 sm:$0xff]   ;;  %v13352_v16 = vld [vmem:[%s17183_s5 + $0x690] ss:$8 sps:$4 sm:$0xff]   ;;  %v5585_v17 = vld [vmem:[#allocation3 + $0x108] sm:$0xff] }
 0x2d0   : > { %5647 = vmatprep.subr.bf16.mxu1 %v13321_v46  ;;  %v5110_v46 = vsel %vm3473_vm4, %v5108_v22, %v5109_v0  ;;  %v13357_v2 = vld [vmem:[%s17183_s5 + $0x6a4] ss:$8 sps:$4 sm:$0xff]   ;;  %v13364_v22 = vld [vmem:[%s17183_s5 + $0x6d0] ss:$8 sps:$4 sm:$0xff]  }
 0x2d1   : > { %v5104_v24 = vsel %vm3473_vm4, %v5102_v18, %v5103_v40  ;;  %v13363_v18 = vld [vmem:[%s17183_s5 + $0x6c4] ss:$8 sps:$4 sm:$0xff]   ;;  %v13366_v40 = vld [vmem:[%s17183_s5 + $0x6d4] ss:$8 sps:$4 sm:$0xff]  }
 0x2d2   : > { %v5136_v35 = vpack.c.bf16 %v5110_v46, %v5104_v24  ;;  %v13369_v0 = vld [vmem:[%s17183_s5 + $0x6e4] ss:$8 sps:$4 sm:$0xff]   ;;  %v13367_v24 = vld [vmem:[%s17183_s5 + $0x6e0] ss:$8 sps:$4 sm:$0xff]   ;;  %v13372_v46 = vld [vmem:[%s17183_s5 + $0x6f4] ss:$8 sps:$4 sm:$0xff]  }
 0x2d3   : > { %5648 = vmatpush1.bf16.msra.mxu1 %v13319_v43  ;;  %v5567_v43 = vpack.c.bf16 %v5560_v13, %v5559_v41  ;;  %v5572_v13 = vld [vmem:[#allocation3 + $0x40] sm:$0xff]  ;;  %v13375_v41 = vld [vmem:[%s17182_s4 + $0x154] ss:$8 sps:$4 sm:$0xff]  }
 0x2d4   : > { %5649 = vmatprep.subr.bf16.mxu1 %v13324_v56  ;;  %v13334_v56 = vld [vmem:[%s17183_s5 + $0x630] ss:$8 sps:$4 sm:$0xff]  }
 0x2d6   : > { %5512 = vmatmul.mubr.bf16.gmra.mrb[4].mxu1 %v5132_v37  ;;  %v5569_v37 = vpack.c.bf16 %v5564_v62, %v5563_v15  ;;  %v13381_v15 = vld [vmem:[%s17182_s4 + $0x174] ss:$8 sps:$4 sm:$0xff]  }
 0x2d7   : > { %5521 = vmatprep.mubr.bf16.mxu1 %v5135_v63  ;;  %5650 = vmatpush1.bf16.msra.mxu1 %v13322_v4  ;;  %v13340_v63 = vld [vmem:[%s17183_s5 + $0x650] ss:$8 sps:$4 sm:$0xff]   ;;  %v5565_v4 = vld [vmem:[#allocation2 + $0x80] sm:$0xff] }
 0x2d8   : > { %5927 = vmatprep.subr.bf16.mxu1 %v13327_v6  ;;  %v5570_v9 = vpack.c.bf16 %v5566_v29, %v5565_v4  ;;  %v13348_v6 = vld [vmem:[%s17183_s5 + $0x674] ss:$8 sps:$4 sm:$0xff]   ;;  %v13939_v4 = vld [vmem:[#allocation3 + $0x8] sm:$0xff] }
 0x2d9   : > { %v5595_v29 = vpack.c.bf16 %v13939_v4, %v5585_v17  ;;  %v13411_v17 = vld [vmem:[%s17183_s5 + $0x794] ss:$8 sps:$4 sm:$0xff]  }
 0x2de   : > { %5522 = vmatmul.mubr.bf16.gmra.mrb[8].mxu1 %v5134_v53  ;;  %v13358_v53 = vld [vmem:[%s17183_s5 + $0x6b0] ss:$8 sps:$4 sm:$0xff]  }
 0x2df   : > { %5531 = vmatprep.mubr.bf16.mxu1 %v5137_v21  ;;  %v13361_v21 = vld [vmem:[%s17183_s5 + $0x6c0] ss:$8 sps:$4 sm:$0xff]  }
 0x2e6   : > { %5532 = vmatmul.mubr.bf16.gmra.mrb[12].mxu1 %v5136_v35  ;;  %v13370_v35 = vld [vmem:[%s17183_s5 + $0x6f0] ss:$8 sps:$4 sm:$0xff]  }
 0x2e7   : > { %5677 = vmatprep.mubr.bf16.mxu1 %v13952_v30 }
 0x2ee   : > { %11660 = vmatmul.mubr.msk.bf16.vlgmr.msra.gmra.mrb[0].mxu1 %vm381_vm1, %v5567_v43  ;;  %v5577_v43 = vld [vmem:[#allocation3 + $0x88] sm:$0xff] }
 0x2ef   : > { %5928 = vmatpush1.bf16.msra.mxu1 %v13325_v52  ;;  %5687 = vmatprep.mubr.bf16.mxu1 %v13952_v30  ;;  %v5574_v52 = vld [vmem:[#allocation3 + $0x60] sm:$0xff] }
 0x2f0   : > { %5929 = vmatprep.subr.bf16.mxu1 %v13330_v49  ;;  %v5579_v49 = vld [vmem:[#allocation3 + $0xa8] sm:$0xff] }
 0x2f1   : > { %v5591_v60 = vpack.c.bf16 %v5579_v49, %v5577_v43  ;;  %v13399_v43 = vld [vmem:[%s17183_s5 + $0x754] ss:$8 sps:$4 sm:$0xff]  }
 0x2f3   : > { %5930 = vmatpush1.bf16.msra.mxu1 %v13328_v23  ;;  %v5588_v23 = vpack.c.bf16 %v5574_v52, %v5572_v13  ;;  %v6035_v13 = vld [vmem:[#allocation3 + $0x78] sm:$0x1]  ;;  %v13394_v52 = vld [vmem:[%s17183_s5 + $0x740] ss:$8 sps:$4 sm:$0xff]  }
 0x2f4   : > { %5931 = vmatprep.subr.bf16.mxu1 %v13333_v50  ;;  %v13373_v50 = vld [vmem:[%s17182_s4 + $0x150] ss:$8 sps:$4 sm:$0xff]  }
 0x2f6   : > { %11661 = vmatmul.mubr.msk.bf16.gmra.mrb[4].mxu1 %vm381_vm1, %v5568_v5  ;;  %v5578_v5 = vld [vmem:[#allocation3 + $0xa0] sm:$0xff] }
 0x2f7   : > { %5932 = vmatpush1.bf16.msra.mxu1 %v13331_v1  ;;  %5697 = vmatprep.mubr.bf16.mxu1 %v13952_v30  ;;  %v5576_v1 = vld [vmem:[#allocation3 + $0x80] sm:$0xff] }
 0x2f8   : > { %5933 = vmatprep.subr.bf16.mxu1 %v13336_v45  ;;  %v13376_v45 = vld [vmem:[%s17182_s4 + $0x160] ss:$8 sps:$4 sm:$0xff]   ;;  %v5590_v62 = vpack.c.bf16 %v5578_v5, %v5576_v1  ;;  %v13402_v1 = vld [vmem:[%s17183_s5 + $0x764] ss:$8 sps:$4 sm:$0xff]  }
 0x2fb   : > { %5934 = vmatpush1.bf16.msra.mxu1 %v13334_v56  ;;  %v5581_v56 = vld [vmem:[#allocation3 + $0xc8] sm:$0xff] }
 0x2fc   : > { %5935 = vmatprep.subr.bf16.mxu1 %v13339_v48  ;;  %v5583_v48 = vld [vmem:[#allocation3 + $0xe8] sm:$0xff] }
 0x2fe   : > { %11662 = vmatmul.mubr.msk.bf16.gmra.mrb[8].mxu1 %vm381_vm1, %v5569_v37  ;;  %v13379_v37 = vld [vmem:[%s17182_s4 + $0x170] ss:$8 sps:$4 sm:$0xff]  }
 0x2ff   : > { %5936 = vmatpush1.bf16.msra.mxu1 %v13337_v31  ;;  %5707 = vmatprep.mubr.bf16.mxu1 %v13952_v30  ;;  %v5593_v31 = vpack.c.bf16 %v5583_v48, %v5581_v56  ;;  %v6022_v56 = vld [vmem:[#allocation2 + $0x81] sm:$0xff]  ;;  %v6023_v48 = vld [vmem:[#allocation2 + $0x91] sm:$0xff] }
 0x300   : > { %5937 = vmatprep.subr.bf16.mxu1 %v13342_v54  ;;  %v13384_v54 = vld [vmem:[%s17183_s5 + $0x704] ss:$8 sps:$4 sm:$0xff]  }
 0x303   : > { %5938 = vmatpush1.bf16.msra.mxu1 %v13340_v63  ;;  %v5580_v63 = vld [vmem:[#allocation3 + $0xc0] sm:$0xff] }
 0x304   : > { %5939 = vmatprep.subr.bf16.mxu1 %v13345_v51  ;;  %v5582_v51 = vld [vmem:[#allocation3 + $0xe0] sm:$0xff] }
 0x305   : > { %v5592_v19 = vpack.c.bf16 %v5582_v51, %v5580_v63  ;;  %v13408_v63 = vld [vmem:[%s17183_s5 + $0x784] ss:$8 sps:$4 sm:$0xff]   ;;  %v13406_v51 = vld [vmem:[%s17183_s5 + $0x780] ss:$8 sps:$4 sm:$0xff]  }
 0x306   : > { %11663 = vmatmul.mubr.msk.bf16.gmra.mrb[12].mxu1 %vm381_vm1, %v5570_v9  ;;  %v6017_v9 = vld [vmem:[#allocation2 + $0x31] sm:$0xff] }
 0x307   : > { %5940 = vmatpush1.bf16.msra.mxu1 %v13343_v3  ;;  %5959 = vmatprep.mubr.bf16.mxu1 %v5589_v32  ;;  %v5584_v3 = vld [vmem:[#allocation3 + $0x100] sm:$0xff] }
 0x308   : > { %5941 = vmatprep.subr.bf16.mxu1 %v13348_v6  ;;  %v5594_v32 = vpack.c.bf16 %v13939_v4, %v5584_v3  ;;  %v13382_v6 = vld [vmem:[%s17183_s5 + $0x700] ss:$8 sps:$4 sm:$0xff]   ;;  %v13414_v4 = vld [vmem:[%s17183_s5 + $0x7a4] ss:$8 sps:$4 sm:$0xff]   ;;  %v13417_v3 = vld [vmem:[%s17183_s5 + $0x7b4] ss:$8 sps:$4 sm:$0xff]  }
 0x30b   : > { %5942 = vmatpush1.bf16.msra.mxu1 %v13346_v14  ;;  %v6016_v14 = vld [vmem:[#allocation2 + $0x21] sm:$0xff] }
 0x30c   : > { %5943 = vmatprep.subr.bf16.mxu1 %v13351_v57  ;;  %v6024_v57 = vpack.c.bf16 %v6017_v9, %v6016_v14  ;;  %v13420_v9 = vld [vmem:[%s17183_s5 + $0x7c4] ss:$8 sps:$4 sm:$0xff]   ;;  %v13423_v14 = vld [vmem:[%s17183_s5 + $0x7d4] ss:$8 sps:$4 sm:$0xff]  }
 0x30f   : > { %5944 = vmatpush1.bf16.msra.mxu1 %v13349_v58  ;;  %v13387_v58 = vld [vmem:[%s17183_s5 + $0x714] ss:$8 sps:$4 sm:$0xff]  }
 0x310   : > { %5945 = vmatprep.subr.bf16.mxu1 %v13354_v12  ;;  %v13385_v12 = vld [vmem:[%s17183_s5 + $0x710] ss:$8 sps:$4 sm:$0xff]  }
 0x313   : > { %5946 = vmatpush1.bf16.msra.mxu1 %v13352_v16  ;;  %v13390_v16 = vld [vmem:[%s17183_s5 + $0x724] ss:$8 sps:$4 sm:$0xff]  }
 0x314   : > { %5947 = vmatprep.subr.bf16.mxu1 %v13357_v2  ;;  %v6018_v2 = vld [vmem:[#allocation2 + $0x41] sm:$0xff] }
 0x317   : > { %5948 = vmatpush1.bf16.msra.mxu1 %v13355_v59  ;;  %v6019_v59 = vld [vmem:[#allocation2 + $0x51] sm:$0xff] }
 0x318   : > { %5949 = vmatprep.subr.bf16.mxu1 %v13360_v10  ;;  %v13388_v10 = vld [vmem:[%s17183_s5 + $0x720] ss:$8 sps:$4 sm:$0xff]  }
 0x31b   : > { %5950 = vmatpush1.bf16.msra.mxu1 %v13358_v53  ;;  %v6025_v53 = vpack.c.bf16 %v6019_v59, %v6018_v2  ;;  %v6032_v2 = vld [vmem:[#allocation3 + $0x60] sm:$0xfe]  ;;  %v6034_v59 = vld [vmem:[#allocation3 + $0x70] sm:$0x1] }
 0x31c   : > { %5951 = vmatprep.subr.bf16.mxu1 %v13363_v18  ;;  %v13393_v18 = vld [vmem:[%s17183_s5 + $0x734] ss:$8 sps:$4 sm:$0xff]  }
 0x31f   : > { %5952 = vmatpush1.bf16.msra.mxu1 %v13361_v21  ;;  %v13391_v21 = vld [vmem:[%s17183_s5 + $0x730] ss:$8 sps:$4 sm:$0xff]  }
 0x320   : > { %5953 = vmatprep.subr.bf16.mxu1 %v13366_v40  ;;  %v6020_v40 = vld [vmem:[#allocation2 + $0x61] sm:$0xff] }
 0x323   : > { %5954 = vmatpush1.bf16.msra.mxu1 %v13364_v22  ;;  %v13396_v22 = vld [vmem:[%s17183_s5 + $0x744] ss:$8 sps:$4 sm:$0xff]  }
 0x324   : > { %5955 = vmatprep.subr.bf16.mxu1 %v13369_v0  ;;  %v6021_v0 = vld [vmem:[#allocation2 + $0x71] sm:$0xff] }
 0x327   : > { %5956 = vmatpush1.bf16.msra.mxu1 %v13367_v24  ;;  %v6029_v24 = vld [vmem:[#allocation3 + $0x48] sm:$0xfe] }
 0x328   : > { %5957 = vmatprep.subr.bf16.mxu1 %v13372_v46  ;;  %v6031_v46 = vld [vmem:[#allocation3 + $0x58] sm:$0x1]  ;;  %v6095_v49 = vrot.slane %v6029_v24, 1  ;;  %v6098_v24 = vrot.slane %v6032_v2, 1 }
 0x32b   : > { %5958 = vmatpush1.bf16.msra.mxu1 %v13370_v35  ;;  %v6033_v35 = vld [vmem:[#allocation3 + $0x68] sm:$0xfe] }
 0x32c   : > { %6213 = vmatprep.subr.bf16.mxu1 %v13375_v41  ;;  %v6026_v41 = vpack.c.bf16 %v6021_v0, %v6020_v40  ;;  %v13424_v40 = vld [vmem:[%s17183_s5 + $0x7e0] ss:$8 sps:$4 sm:$0xff]  }
 0x32e   : > { %5960 = vmatmul.mubr.bf16.vlgmr.msra.gmra.mrb[0].mxu1 %v5588_v23  ;;  %v6096_v23 = vrot.slane %v6031_v46, 1  ;;  %v6099_v46 = vrot.slane %v6034_v59, 1  ;;  %v13493_v59 = vld [vmem:[%s17185_s7 + $0x120] ss:$8 sps:$4 sm:$0xff]  }
 0x32f   : > { %6214 = vmatpush1.bf16.msra.mxu1 %v13373_v50  ;;  %5969 = vmatprep.mubr.bf16.mxu1 %v5591_v60  ;;  %v6101_v50 = vrot.slane %v6033_v35, 1  ;;  %v6102_v60 = vrot.slane %v6035_v13, 1  ;;  %v13429_v35 = vld [vmem:[%s17183_s5 + $0x7f4] ss:$8 sps:$4 sm:$0xff]  }
 0x330   : > { %6215 = vmatprep.subr.bf16.mxu1 %v13378_v61  ;;  %v13397_v61 = vld [vmem:[%s17183_s5 + $0x750] ss:$8 sps:$4 sm:$0xff]   ;;  %v6097_v5 = vsel %vm2904_vm3, %v6095_v49, %v6096_v23  ;;  %v13432_v23 = vld [vmem:[%s17182_s4 + $0x184] ss:$8 sps:$4 sm:$0xff]  }
 0x331   : > { %v13427_v49 = vld [vmem:[%s17183_s5 + $0x7f0] ss:$8 sps:$4 sm:$0xff]  }
 0x333   : > { %6216 = vmatpush1.bf16.msra.mxu1 %v13376_v45  ;;  %v6103_v45 = vsel %vm2904_vm3, %v6101_v50, %v6102_v60  ;;  %v6036_v50 = vld [vmem:[#allocation3 + $0x80] sm:$0xfe] }
 0x334   : > { %6217 = vmatprep.subr.bf16.mxu1 %v13381_v15  ;;  %v13400_v15 = vld [vmem:[%s17183_s5 + $0x760] ss:$8 sps:$4 sm:$0xff]  }
 0x335   : > { %v13487_v60 = vld [vmem:[%s17185_s7 + $0x100] ss:$8 sps:$4 sm:$0xff]  }
 0x336   : > { %5970 = vmatmul.mubr.bf16.gmra.mrb[4].mxu1 %v5590_v62  ;;  %v6157_v62 = vpack.c.bf16 %v6103_v45, %v6097_v5  ;;  %v6100_v5 = vsel %vm2904_vm3, %v6098_v24, %v6099_v46  ;;  %v6038_v45 = vld [vmem:[#allocation3 + $0x90] sm:$0x1] }
 0x337   : > { %5979 = vmatprep.mubr.bf16.mxu1 %v5593_v31  ;;  %6218 = vmatpush1.bf16.msra.mxu1 %v13379_v37  ;;  %v6027_v31 = vpack.c.bf16 %v6023_v48, %v6022_v56  ;;  %v13405_v37 = vld [vmem:[%s17183_s5 + $0x774] ss:$8 sps:$4 sm:$0xff]   ;;  %v6040_v56 = vld [vmem:[#allocation3 + $0xa0] sm:$0xfe]  ;;  %v6050_v24 = vld [vmem:[#allocation3 + $0xf0] sm:$0x1] }
 0x338   : > { %6495 = vmatprep.subr.bf16.mxu1 %v13384_v54  ;;  %v13403_v54 = vld [vmem:[%s17183_s5 + $0x770] ss:$8 sps:$4 sm:$0xff]   ;;  %v13492_v48 = vld [vmem:[%s17185_s7 + $0x114] ss:$8 sps:$4 sm:$0xff]  }
 0x33e   : > { %5980 = vmatmul.mubr.bf16.gmra.mrb[8].mxu1 %v5592_v19  ;;  %v13409_v19 = vld [vmem:[%s17183_s5 + $0x790] ss:$8 sps:$4 sm:$0xff]  }
 0x33f   : > { %5989 = vmatprep.mubr.bf16.mxu1 %v5595_v29  ;;  %v13412_v29 = vld [vmem:[%s17183_s5 + $0x7a0] ss:$8 sps:$4 sm:$0xff]  }
 0x346   : > { %5990 = vmatmul.mubr.bf16.gmra.mrb[12].mxu1 %v5594_v32  ;;  %v13415_v32 = vld [vmem:[%s17183_s5 + $0x7b0] ss:$8 sps:$4 sm:$0xff]  }
 0x347   : > { %6245 = vmatprep.mubr.bf16.mxu1 %v13952_v30 }
 0x34e   : > { %11740 = vmatmul.mubr.msk.bf16.vlgmr.msra.gmra.mrb[0].mxu1 %vm381_vm1, %v6024_v57  ;;  %v13421_v57 = vld [vmem:[%s17183_s5 + $0x7d0] ss:$8 sps:$4 sm:$0xff]  }
 0x34f   : > { %6496 = vmatpush1.bf16.msra.mxu1 %v13382_v6  ;;  %6255 = vmatprep.mubr.bf16.mxu1 %v13952_v30  ;;  %v13418_v6 = vld [vmem:[%s17183_s5 + $0x7c0] ss:$8 sps:$4 sm:$0xff]  }
 0x350   : > { %6497 = vmatprep.subr.bf16.mxu1 %v13387_v58  ;;  %v13426_v58 = vld [vmem:[%s17183_s5 + $0x7e4] ss:$8 sps:$4 sm:$0xff]  }
 0x353   : > { %6498 = vmatpush1.bf16.msra.mxu1 %v13385_v12  ;;  %v6028_v12 = vld [vmem:[#allocation3 + $0x40] sm:$0xfe] }
 0x354   : > { %6499 = vmatprep.subr.bf16.mxu1 %v13390_v16  ;;  %v6030_v16 = vld [vmem:[#allocation3 + $0x50] sm:$0x1] }
 0x355   : > { %v6093_v0 = vrot.slane %v6030_v16, 1 }
 0x356   : > { %11741 = vmatmul.mubr.msk.bf16.gmra.mrb[4].mxu1 %vm381_vm1, %v6025_v53  ;;  %v6039_v53 = vld [vmem:[#allocation3 + $0x98] sm:$0x1] }
 0x357   : > { %6500 = vmatpush1.bf16.msra.mxu1 %v13388_v10  ;;  %6265 = vmatprep.mubr.bf16.mxu1 %v13952_v30  ;;  %v6037_v10 = vld [vmem:[#allocation3 + $0x88] sm:$0xfe] }
 0x358   : > { %6501 = vmatprep.subr.bf16.mxu1 %v13393_v18  ;;  %v6041_v18 = vld [vmem:[#allocation3 + $0xa8] sm:$0xfe]  ;;  %v6107_v13 = vrot.slane %v6037_v10, 1  ;;  %v13433_v10 = vld [vmem:[%s17182_s4 + $0x190] ss:$8 sps:$4 sm:$0xff]  }
 0x35b   : > { %6502 = vmatpush1.bf16.msra.mxu1 %v13391_v21  ;;  %v6043_v21 = vld [vmem:[#allocation3 + $0xb8] sm:$0x1] }
 0x35c   : > { %6503 = vmatprep.subr.bf16.mxu1 %v13396_v22  ;;  %v6092_v22 = vrot.slane %v6028_v12, 1 }
 0x35e   : > { %11742 = vmatmul.mubr.msk.bf16.gmra.mrb[8].mxu1 %vm381_vm1, %v6026_v41  ;;  %v6113_v41 = vrot.slane %v6041_v18, 1  ;;  %v13498_v18 = vld [vmem:[%s17185_s7 + $0x134] ss:$8 sps:$4 sm:$0xff]  }
 0x35f   : > { %6504 = vmatpush1.bf16.msra.mxu1 %v13394_v52  ;;  %6275 = vmatprep.mubr.bf16.mxu1 %v13952_v30  ;;  %v6108_v52 = vrot.slane %v6039_v53, 1  ;;  %v6044_v53 = vld [vmem:[#allocation3 + $0xc0] sm:$0xfe] }
 0x360   : > { %6505 = vmatprep.subr.bf16.mxu1 %v13399_v43  ;;  %v6114_v43 = vrot.slane %v6043_v21, 1 }
 0x363   : > { %6506 = vmatpush1.bf16.msra.mxu1 %v13397_v61  ;;  %v13489_v61 = vld [vmem:[%s17185_s7 + $0x104] ss:$8 sps:$4 sm:$0xff]  }
 0x364   : > { %6507 = vmatprep.subr.bf16.mxu1 %v13402_v1  ;;  %v6094_v1 = vsel %vm2904_vm3, %v6092_v22, %v6093_v0  ;;  %7691 = vmatprep.subr.bf16.mxu0 %v13489_v61  ;;  %v6046_v22 = vld [vmem:[#allocation3 + $0xd0] sm:$0x1]  ;;  %v6048_v0 = vld [vmem:[#allocation3 + $0xe0] sm:$0xfe] }
 0x365   : > { %7692 = vmatpush1.bf16.msra.mxu0 %v13487_v60  ;;  %v6116_v60 = vrot.slane %v6044_v53, 1  ;;  %v13501_v61 = vld [vmem:[%s17185_s7 + $0x144] ss:$8 sps:$4 sm:$0xff]   ;;  %v13505_v53 = vld [vmem:[%s17185_s7 + $0x160] ss:$8 sps:$4 sm:$0xff]  }
 0x366   : > { %11743 = vmatmul.mubr.msk.bf16.gmra.mrb[12].mxu1 %vm381_vm1, %v6027_v31  ;;  %v6042_v31 = vld [vmem:[#allocation3 + $0xb0] sm:$0x1]  ;;  %7693 = vmatprep.subr.bf16.mxu0 %v13492_v48  ;;  %v13436_v48 = vld [vmem:[%s17182_s4 + $0x1a0] ss:$8 sps:$4 sm:$0xff]  }
 0x367   : > { %6508 = vmatpush1.bf16.msra.mxu1 %v13400_v15  ;;  %6527 = vmatprep.mubr.bf16.mxu1 %v6157_v62  ;;  %v6109_v15 = vsel %vm2904_vm3, %v6107_v13, %v6108_v52  ;;  %v6115_v62 = vsel %vm2904_vm3, %v6113_v41, %v6114_v43  ;;  %v13438_v13 = vld [vmem:[%s17182_s4 + $0x1a4] ss:$8 sps:$4 sm:$0xff]   ;;  %v6055_v41 = vld [vmem:[#allocation3 + $0x118] sm:$0x1] }
 0x368   : > { %6509 = vmatprep.subr.bf16.mxu1 %v13405_v37  ;;  %v6045_v37 = vld [vmem:[#allocation3 + $0xc8] sm:$0xfe] }
 0x369   : > { %v6053_v52 = vld [vmem:[#allocation3 + $0x108] sm:$0xfe] }
 0x36a   : > { %v6057_v43 = vld [vmem:[#allocation3 + $0x128] sm:$0xfe] }
 0x36b   : > { %6510 = vmatpush1.bf16.msra.mxu1 %v13403_v54  ;;  %v6047_v54 = vld [vmem:[#allocation3 + $0xd8] sm:$0x1] }
 0x36c   : > { %6511 = vmatprep.subr.bf16.mxu1 %v13408_v63  ;;  %v6049_v63 = vld [vmem:[#allocation3 + $0xe8] sm:$0xfe]  ;;  %v6120_v12 = vrot.slane %v6047_v54, 1 }
 0x36d   : > { %v6125_v16 = vrot.slane %v6049_v63, 1  ;;  %v13441_v54 = vld [vmem:[%s17183_s5 + $0x804] ss:$8 sps:$4 sm:$0xff]   ;;  %v13499_v63 = vld [vmem:[%s17185_s7 + $0x140] ss:$8 sps:$4 sm:$0xff]  }
 0x36f   : > { %6512 = vmatpush1.bf16.msra.mxu1 %v13406_v51  ;;  %v6051_v51 = vld [vmem:[#allocation3 + $0xf8] sm:$0x1] }
 0x370   : > { %6513 = vmatprep.subr.bf16.mxu1 %v13411_v17  ;;  %v13490_v17 = vld [vmem:[%s17185_s7 + $0x110] ss:$8 sps:$4 sm:$0xff]   ;;  %v6126_v2 = vrot.slane %v6051_v51, 1  ;;  %v13504_v51 = vld [vmem:[%s17185_s7 + $0x154] ss:$8 sps:$4 sm:$0xff]  }
 0x371   : > { %7694 = vmatpush1.bf16.msra.mxu0 %v13490_v17 }
 0x373   : > { %6514 = vmatpush1.bf16.msra.mxu1 %v13409_v19  ;;  %v6156_v19 = vpack.c.bf16 %v6100_v5, %v6094_v1  ;;  %v6117_v5 = vrot.slane %v6046_v22, 1  ;;  %v13508_v22 = vld [vmem:[%s17185_s7 + $0x170] ss:$8 sps:$4 sm:$0xff]  }
 0x374   : > { %6515 = vmatprep.subr.bf16.mxu1 %v13414_v4  ;;  %v6104_v4 = vrot.slane %v6036_v50, 1 }
 0x375   : > { %v6118_v17 = vsel %vm2904_vm3, %v6116_v60, %v6117_v5  ;;  %v13447_v60 = vld [vmem:[%s17183_s5 + $0x824] ss:$8 sps:$4 sm:$0xff]   ;;  %v13445_v5 = vld [vmem:[%s17183_s5 + $0x820] ss:$8 sps:$4 sm:$0xff]  }
 0x377   : > { %6516 = vmatpush1.bf16.msra.mxu1 %v13412_v29  ;;  %v13495_v29 = vld [vmem:[%s17185_s7 + $0x124] ss:$8 sps:$4 sm:$0xff]  }
 0x378   : > { %6517 = vmatprep.subr.bf16.mxu1 %v13417_v3  ;;  %v13430_v3 = vld [vmem:[%s17182_s4 + $0x180] ss:$8 sps:$4 sm:$0xff]   ;;  %7695 = vmatprep.subr.bf16.mxu0 %v13495_v29 }
 0x379   : > { %7696 = vmatpush1.bf16.msra.mxu0 %v13493_v59 }
 0x37a   : > { %7697 = vmatprep.subr.bf16.mxu0 %v13498_v18  ;;  %v13510_v18 = vld [vmem:[%s17185_s7 + $0x174] ss:$8 sps:$4 sm:$0xff]  }
 0x37b   : > { %6518 = vmatpush1.bf16.msra.mxu1 %v13415_v32  ;;  %v6159_v32 = vpack.c.bf16 %v6115_v62, %v6109_v15  ;;  %v6131_v15 = vrot.slane %v6053_v52, 1  ;;  %v6132_v62 = vrot.slane %v6055_v41, 1  ;;  %v13514_v52 = vld [vmem:[%s17185_s7 + $0x190] ss:$8 sps:$4 sm:$0xff]   ;;  %v13439_v41 = vld [vmem:[%s17183_s5 + $0x800] ss:$8 sps:$4 sm:$0xff]  }
 0x37c   : > { %6519 = vmatprep.subr.bf16.mxu1 %v13420_v9  ;;  %v6105_v9 = vrot.slane %v6038_v45, 1  ;;  %v6122_v45 = vrot.slane %v6048_v0, 1 }
 0x37d   : > { %v6133_v29 = vsel %vm2904_vm3, %v6131_v15, %v6132_v62  ;;  %v6588_v15 = vld [vmem:[#allocation2 + $0x62] sm:$0xff] }
 0x37e   : > { %v6106_v21 = vsel %vm2904_vm3, %v6104_v4, %v6105_v9  ;;  %v6052_v4 = vld [vmem:[#allocation3 + $0x100] sm:$0xfe] }
 0x37f   : > { %6520 = vmatpush1.bf16.msra.mxu1 %v13418_v6  ;;  %v6110_v6 = vrot.slane %v6040_v56, 1  ;;  %v6123_v56 = vrot.slane %v6050_v24, 1  ;;  %v6056_v9 = vld [vmem:[#allocation3 + $0x120] sm:$0xfe] }
 0x380   : > { %6521 = vmatprep.subr.bf16.mxu1 %v13423_v14  ;;  %v6111_v14 = vrot.slane %v6042_v31, 1  ;;  %v6137_v31 = vrot.slane %v6057_v43, 1  ;;  %v6134_v59 = vrot.slane %v6056_v9, 1  ;;  %v13513_v24 = vld [vmem:[%s17185_s7 + $0x184] ss:$8 sps:$4 sm:$0xff]  }
 0x381   : > { %v6584_v43 = vld [vmem:[#allocation2 + $0x22] sm:$0xff] }
 0x382   : > { %v13453_v62 = vld [vmem:[%s17183_s5 + $0x844] ss:$8 sps:$4 sm:$0xff]  }
 0x383   : > { %6522 = vmatpush1.bf16.msra.mxu1 %v13421_v57  ;;  %v13435_v57 = vld [vmem:[%s17182_s4 + $0x194] ss:$8 sps:$4 sm:$0xff]  }
 0x384   : > { %6523 = vmatprep.subr.bf16.mxu1 %v13426_v58  ;;  %v6119_v58 = vrot.slane %v6045_v37, 1 }
 0x386   : > { %v6121_v46 = vsel %vm2904_vm3, %v6119_v58, %v6120_v12  ;;  %v6128_v58 = vrot.slane %v6052_v4, 1  ;;  %v13507_v12 = vld [vmem:[%s17185_s7 + $0x164] ss:$8 sps:$4 sm:$0xff]   ;;  %v13456_v4 = vld [vmem:[%s17183_s5 + $0x854] ss:$8 sps:$4 sm:$0xff]  }
 0x387   : > { %6524 = vmatpush1.bf16.msra.mxu1 %v13424_v40  ;;  %v6112_v40 = vsel %vm2904_vm3, %v6110_v6, %v6111_v14  ;;  %v6058_v6 = vld [vmem:[#allocation3 + $0x130] sm:$0x1] }
 0x388   : > { %6525 = vmatprep.subr.bf16.mxu1 %v13429_v35  ;;  %v6127_v35 = vsel %vm2904_vm3, %v6125_v16, %v6126_v2  ;;  %v6158_v50 = vpack.c.bf16 %v6112_v40, %v6106_v21  ;;  %v13502_v14 = vld [vmem:[%s17185_s7 + $0x150] ss:$8 sps:$4 sm:$0xff]  }
 0x389   : > { %v6161_v1 = vpack.c.bf16 %v6127_v35, %v6121_v46  ;;  %v13511_v46 = vld [vmem:[%s17185_s7 + $0x180] ss:$8 sps:$4 sm:$0xff]   ;;  %v13516_v35 = vld [vmem:[%s17185_s7 + $0x194] ss:$8 sps:$4 sm:$0xff]  }
 0x38b   : > { %6526 = vmatpush1.bf16.msra.mxu1 %v13427_v49  ;;  %v6059_v49 = vld [vmem:[#allocation3 + $0x138] sm:$0x1] }
 0x38c   : > { %6781 = vmatprep.subr.bf16.mxu1 %v13432_v23  ;;  %v13496_v23 = vld [vmem:[%s17185_s7 + $0x130] ss:$8 sps:$4 sm:$0xff]   ;;  %v6138_v37 = vrot.slane %v6059_v49, 1 }
 0x38d   : > { %7698 = vmatpush1.bf16.msra.mxu0 %v13496_v23  ;;  %v13444_v23 = vld [vmem:[%s17183_s5 + $0x814] ss:$8 sps:$4 sm:$0xff]  }
 0x38e   : > { %6528 = vmatmul.mubr.bf16.vlgmr.msra.gmra.mrb[0].mxu1 %v6156_v19  ;;  %7699 = vmatprep.subr.bf16.mxu0 %v13501_v61  ;;  %v6124_v19 = vsel %vm2904_vm3, %v6122_v45, %v6123_v56  ;;  %v6586_v61 = vld [vmem:[#allocation2 + $0x42] sm:$0xff]  ;;  %v13450_v56 = vld [vmem:[%s17183_s5 + $0x834] ss:$8 sps:$4 sm:$0xff]  }
 0x38f   : > { %6782 = vmatpush1.bf16.msra.mxu1 %v13430_v3  ;;  %6537 = vmatprep.mubr.bf16.mxu1 %v6159_v32  ;;  %v6139_v3 = vsel %vm2904_vm3, %v6137_v31, %v6138_v37  ;;  %v6054_v32 = vld [vmem:[#allocation3 + $0x110] sm:$0x1]  ;;  %v6589_v31 = vld [vmem:[#allocation2 + $0x72] sm:$0xff]  ;;  %v6597_v37 = vld [vmem:[#allocation3 + $0x48] sm:$0xfc] }
 0x390   : > { %6783 = vmatprep.subr.bf16.mxu1 %v13435_v57  ;;  %v6160_v57 = vpack.c.bf16 %v6124_v19, %v6118_v17  ;;  %v6163_v16 = vpack.c.bf16 %v6139_v3, %v6133_v29  ;;  %v6129_v2 = vrot.slane %v6054_v32, 1  ;;  %v13451_v17 = vld [vmem:[%s17183_s5 + $0x840] ss:$8 sps:$4 sm:$0xff]   ;;  %v6594_v19 = vpack.c.bf16 %v6589_v31, %v6588_v15 }
 0x391   : > { %7700 = vmatpush1.bf16.msra.mxu0 %v13499_v63  ;;  %v6601_v63 = vld [vmem:[#allocation3 + $0x68] sm:$0xfc]  ;;  %v6663_v29 = vrot.slane %v6597_v37, 2 }
 0x392   : > { %7701 = vmatprep.subr.bf16.mxu0 %v13504_v51  ;;  %v6130_v21 = vsel %vm2904_vm3, %v6128_v58, %v6129_v2  ;;  %v6603_v51 = vld [vmem:[#allocation3 + $0x78] sm:$0x3]  ;;  %v6669_v32 = vrot.slane %v6601_v63, 2  ;;  %v13457_v2 = vld [vmem:[%s17183_s5 + $0x860] ss:$8 sps:$4 sm:$0xff]  }
 0x393   : > { %6784 = vmatpush1.bf16.msra.mxu1 %v13433_v10  ;;  %v6135_v10 = vrot.slane %v6058_v6, 1  ;;  %v6670_v9 = vrot.slane %v6603_v51, 2  ;;  %v13454_v6 = vld [vmem:[%s17183_s5 + $0x850] ss:$8 sps:$4 sm:$0xff]  }
 0x394   : > { %6785 = vmatprep.subr.bf16.mxu1 %v13438_v13  ;;  %v6585_v13 = vld [vmem:[#allocation2 + $0x32] sm:$0xff] }
 0x395   : > { %7702 = vmatpush1.bf16.msra.mxu0 %v13502_v14  ;;  %v6136_v40 = vsel %vm2904_vm3, %v6134_v59, %v6135_v10  ;;  %v6592_v49 = vpack.c.bf16 %v6585_v13, %v6584_v43  ;;  %v13459_v14 = vld [vmem:[%s17183_s5 + $0x864] ss:$8 sps:$4 sm:$0xff]   ;;  %v6671_v58 = vsel %vm3473_vm4, %v6669_v32, %v6670_v9  ;;  %v13478_v43 = vld [vmem:[%s17183_s5 + $0x8d0] ss:$8 sps:$4 sm:$0xff]  }
 0x396   : > { %6538 = vmatmul.mubr.bf16.gmra.mrb[4].mxu1 %v6158_v50  ;;  %7703 = vmatprep.subr.bf16.mxu0 %v13507_v12  ;;  %v6162_v0 = vpack.c.bf16 %v6136_v40, %v6130_v21  ;;  %v13442_v50 = vld [vmem:[%s17183_s5 + $0x810] ss:$8 sps:$4 sm:$0xff]   ;;  %v6590_v12 = vld [vmem:[#allocation2 + $0x82] sm:$0xff]  ;;  %v13468_v40 = vld [vmem:[%s17183_s5 + $0x894] ss:$8 sps:$4 sm:$0xff]  }
 0x397   : > { %6547 = vmatprep.mubr.bf16.mxu1 %v6161_v1  ;;  %6786 = vmatpush1.bf16.msra.mxu1 %v13436_v48  ;;  %v6587_v1 = vld [vmem:[#allocation2 + $0x52] sm:$0xff]  ;;  %v13463_v21 = vld [vmem:[%s17183_s5 + $0x880] ss:$8 sps:$4 sm:$0xff]   ;;  %v13477_v13 = vld [vmem:[%s17183_s5 + $0x8c4] ss:$8 sps:$4 sm:$0xff]  }
 0x398   : > { %7063 = vmatprep.subr.bf16.mxu1 %v13441_v54  ;;  %v6593_v45 = vpack.c.bf16 %v6587_v1, %v6586_v61  ;;  %v13448_v48 = vld [vmem:[%s17183_s5 + $0x830] ss:$8 sps:$4 sm:$0xff]   ;;  %v6605_v1 = vld [vmem:[#allocation3 + $0x88] sm:$0xfc]  ;;  %v6604_v32 = vld [vmem:[#allocation3 + $0x80] sm:$0xfc] }
 0x399   : > { %7704 = vmatpush1.bf16.msra.mxu0 %v13505_v53  ;;  %v6599_v54 = vld [vmem:[#allocation3 + $0x58] sm:$0x3]  ;;  %v6602_v61 = vld [vmem:[#allocation3 + $0x70] sm:$0x3]  ;;  %v6675_v63 = vrot.slane %v6605_v1, 2 }
 0x39a   : > { %7705 = vmatprep.subr.bf16.mxu0 %v13510_v18  ;;  %v6664_v3 = vrot.slane %v6599_v54, 2  ;;  %v13460_v53 = vld [vmem:[%s17183_s5 + $0x870] ss:$8 sps:$4 sm:$0xff]   ;;  %v13465_v18 = vld [vmem:[%s17183_s5 + $0x884] ss:$8 sps:$4 sm:$0xff]   ;;  %v6667_v37 = vrot.slane %v6602_v61, 2 }
 0x39b   : > { %v13486_v54 = vld [vmem:[%s17183_s5 + $0x8f4] ss:$8 sps:$4 sm:$0xff]   ;;  %v6606_v9 = vld [vmem:[#allocation3 + $0x90] sm:$0x3]  ;;  %v6623_v61 = vld [vmem:[#allocation3 + $0x118] sm:$0x3] }
 0x39c   : > { %v6625_v1 = vld [vmem:[#allocation3 + $0x128] sm:$0xfc] }
 0x39d   : > { %7706 = vmatpush1.bf16.msra.mxu0 %v13508_v22  ;;  %v13466_v22 = vld [vmem:[%s17183_s5 + $0x890] ss:$8 sps:$4 sm:$0xff]  }
 0x39e   : > { %6548 = vmatmul.mubr.bf16.gmra.mrb[8].mxu1 %v6160_v57  ;;  %7707 = vmatprep.subr.bf16.mxu0 %v13513_v24  ;;  %v6665_v57 = vsel %vm3473_vm4, %v6663_v29, %v6664_v3  ;;  %v13469_v24 = vld [vmem:[%s17183_s5 + $0x8a0] ss:$8 sps:$4 sm:$0xff]  }
 0x39f   : > { %6557 = vmatprep.mubr.bf16.mxu1 %v6163_v16  ;;  %v6591_v16 = vld [vmem:[#allocation2 + $0x92] sm:$0xff]  ;;  %v6725_v59 = vpack.c.bf16 %v6671_v58, %v6665_v57  ;;  %v6608_v57 = vld [vmem:[#allocation3 + $0xa0] sm:$0xfc]  ;;  %v6610_v58 = vld [vmem:[#allocation3 + $0xb0] sm:$0x3] }
 0x3a0   : > { %v6595_v10 = vpack.c.bf16 %v6591_v16, %v6590_v12  ;;  %v6613_v12 = vld [vmem:[#allocation3 + $0xc8] sm:$0xfc]  ;;  %v6615_v16 = vld [vmem:[#allocation3 + $0xd8] sm:$0x3] }
 0x3a1   : > { %7708 = vmatpush1.bf16.msra.mxu0 %v13511_v46  ;;  %v13474_v46 = vld [vmem:[%s17183_s5 + $0x8b4] ss:$8 sps:$4 sm:$0xff]  }
 0x3a2   : > { %7709 = vmatprep.subr.bf16.mxu0 %v13516_v35  ;;  %v13472_v35 = vld [vmem:[%s17183_s5 + $0x8b0] ss:$8 sps:$4 sm:$0xff]  }
 0x3a5   : > { %7710 = vmatpush1.bf16.msra.mxu0 %v13514_v52  ;;  %v13475_v52 = vld [vmem:[%s17183_s5 + $0x8c0] ss:$8 sps:$4 sm:$0xff]  }
 0x3a6   : > { %6558 = vmatmul.mubr.bf16.gmra.mrb[12].mxu1 %v6162_v0  ;;  %v13471_v0 = vld [vmem:[%s17183_s5 + $0x8a4] ss:$8 sps:$4 sm:$0xff]  }
 0x3a7   : > { %6813 = vmatprep.mubr.bf16.mxu1 %v13952_v30 }
 0x3ae   : > { %11820 = vmatmul.mubr.msk.bf16.vlgmr.msra.gmra.mrb[0].mxu1 %vm381_vm1, %v6592_v49  ;;  %v13483_v49 = vld [vmem:[%s17183_s5 + $0x8e4] ss:$8 sps:$4 sm:$0xff]  }
 0x3af   : > { %7064 = vmatpush1.bf16.msra.mxu1 %v13439_v41  ;;  %6823 = vmatprep.mubr.bf16.mxu1 %v13952_v30  ;;  %v13480_v41 = vld [vmem:[%s17183_s5 + $0x8d4] ss:$8 sps:$4 sm:$0xff]  }
 0x3b0   : > { %7065 = vmatprep.subr.bf16.mxu1 %v13444_v23  ;;  %v6596_v23 = vld [vmem:[#allocation3 + $0x40] sm:$0xfc] }
 0x3b1   : > { %v6660_v15 = vrot.slane %v6596_v23, 2  ;;  %v6616_v23 = vld [vmem:[#allocation3 + $0xe0] sm:$0xfc] }
 0x3b3   : > { %7066 = vmatpush1.bf16.msra.mxu1 %v13442_v50  ;;  %v6598_v50 = vld [vmem:[#allocation3 + $0x50] sm:$0x3] }
 0x3b4   : > { %7067 = vmatprep.subr.bf16.mxu1 %v13447_v60  ;;  %v6600_v60 = vld [vmem:[#allocation3 + $0x60] sm:$0xfc] }
 0x3b5   : > { %v6666_v31 = vrot.slane %v6600_v60, 2  ;;  %v6621_v60 = vld [vmem:[#allocation3 + $0x108] sm:$0xfc] }
 0x3b6   : > { %11821 = vmatmul.mubr.msk.bf16.gmra.mrb[4].mxu1 %vm381_vm1, %v6593_v45  ;;  %v6609_v45 = vld [vmem:[#allocation3 + $0xa8] sm:$0xfc] }
 0x3b7   : > { %7068 = vmatpush1.bf16.msra.mxu1 %v13445_v5  ;;  %6833 = vmatprep.mubr.bf16.mxu1 %v13952_v30  ;;  %v6607_v5 = vld [vmem:[#allocation3 + $0x98] sm:$0x3]  ;;  %v6668_v3 = vsel %vm3473_vm4, %v6666_v31, %v6667_v37  ;;  %v6699_v37 = vrot.slane %v6621_v60, 2  ;;  %v11888_v60 = vld [vmem:[%s17184_s6 + $0x1] ss:$2 sm:$0x3] }
 0x3b8   : > { %7069 = vmatprep.subr.bf16.mxu1 %v13450_v56  ;;  %v6611_v56 = vld [vmem:[#allocation3 + $0xb8] sm:$0x3]  ;;  %v6676_v51 = vrot.slane %v6607_v5, 2 }
 0x3b9   : > { %v6627_v5 = vld [vmem:[#allocation3 + $0x138] sm:$0x3] }
 0x3bb   : > { %7070 = vmatpush1.bf16.msra.mxu1 %v13448_v48  ;;  %v13481_v48 = vld [vmem:[%s17183_s5 + $0x8e0] ss:$8 sps:$4 sm:$0xff]  }
 0x3bc   : > { %7071 = vmatprep.subr.bf16.mxu1 %v13453_v62  ;;  %v6661_v62 = vrot.slane %v6598_v50, 2  ;;  %v6618_v50 = vld [vmem:[#allocation3 + $0xf0] sm:$0x3] }
 0x3bd   : > { %v6691_v31 = vrot.slane %v6618_v50, 2  ;;  %v16054_v50 = vsub.s32 1, %v14192_v36 }
 0x3be   : > { %11822 = vmatmul.mubr.msk.bf16.gmra.mrb[8].mxu1 %vm381_vm1, %v6594_v19  ;;  %v6682_v19 = vrot.slane %v6611_v56, 2  ;;  %v6662_v29 = vsel %vm3473_vm4, %v6660_v15, %v6661_v62  ;;  %v6690_v62 = vrot.slane %v6616_v23, 2  ;;  %v7152_v23 = vld [vmem:[%s17184_s6] ss:$2 sm:$0x3] }
 0x3bf   : > { %7072 = vmatpush1.bf16.msra.mxu1 %v13451_v17  ;;  %6843 = vmatprep.mubr.bf16.mxu1 %v13952_v30  ;;  %v13462_v30 = vld [vmem:[%s17183_s5 + $0x874] ss:$8 sps:$4 sm:$0xff]   ;;  %v6681_v17 = vrot.slane %v6609_v45, 2 }
 0x3c0   : > { %7073 = vmatprep.subr.bf16.mxu1 %v13456_v4  ;;  %v13484_v4 = vld [vmem:[%s17183_s5 + $0x8f0] ss:$8 sps:$4 sm:$0xff]  }
 0x3c3   : > { %7074 = vmatpush1.bf16.msra.mxu1 %v13454_v6  ;;  %v6677_v6 = vsel %vm3473_vm4, %v6675_v63, %v6676_v51  ;;  %v6705_v63 = vrot.slane %v6625_v1, 2  ;;  %v6706_v51 = vrot.slane %v6627_v5, 2  ;;  %v16063_v5 = vrot.slane %v7152_v23, %v16054_v50 }
 0x3c4   : > { %7075 = vmatprep.subr.bf16.mxu1 %v13459_v14  ;;  %v6683_v14 = vsel %vm3473_vm4, %v6681_v17, %v6682_v19  ;;  %v6692_v19 = vsel %vm3473_vm4, %v6690_v62, %v6691_v31 }
 0x3c6   : > { %11823 = vmatmul.mubr.msk.bf16.gmra.mrb[12].mxu1 %vm381_vm1, %v6595_v10  ;;  %v6724_v10 = vpack.c.bf16 %v6668_v3, %v6662_v29  ;;  %v6707_v3 = vsel %vm3473_vm4, %v6705_v63, %v6706_v51 }
 0x3c7   : > { %7076 = vmatpush1.bf16.msra.mxu1 %v13457_v2  ;;  %7095 = vmatprep.mubr.bf16.mxu1 %v6725_v59  ;;  %v6617_v2 = vld [vmem:[#allocation3 + $0xe8] sm:$0xfc]  ;;  %v6619_v59 = vld [vmem:[#allocation3 + $0xf8] sm:$0x3] }
 0x3c8   : > { %7077 = vmatprep.subr.bf16.mxu1 %v13462_v30  ;;  %v6672_v30 = vrot.slane %v6604_v32, 2  ;;  %v6622_v32 = vld [vmem:[#allocation3 + $0x110] sm:$0x3] }
 0x3cb   : > { %7078 = vmatpush1.bf16.msra.mxu1 %v13460_v53  ;;  %v6727_v53 = vpack.c.bf16 %v6683_v14, %v6677_v6  ;;  %v6626_v6 = vld [vmem:[#allocation3 + $0x130] sm:$0x3] }
 0x3cc   : > { %7079 = vmatprep.subr.bf16.mxu1 %v13465_v18  ;;  %v6673_v18 = vrot.slane %v6606_v9, 2  ;;  %v6624_v9 = vld [vmem:[#allocation3 + $0x120] sm:$0xfc] }
 0x3cf   : > { %7080 = vmatpush1.bf16.msra.mxu1 %v13463_v21  ;;  %v6678_v21 = vrot.slane %v6608_v57, 2 }
 0x3d0   : > { %7081 = vmatprep.subr.bf16.mxu1 %v13468_v40  ;;  %v6679_v40 = vrot.slane %v6610_v58, 2 }
 0x3d3   : > { %7082 = vmatpush1.bf16.msra.mxu1 %v13466_v22  ;;  %v6687_v22 = vrot.slane %v6613_v12, 2  ;;  %v6697_v12 = vrot.slane %v6622_v32, 2 }
 0x3d4   : > { %7083 = vmatprep.subr.bf16.mxu1 %v13471_v0  ;;  %v6688_v0 = vrot.slane %v6615_v16, 2  ;;  %v6702_v16 = vrot.slane %v6624_v9, 2 }
 0x3d7   : > { %7084 = vmatpush1.bf16.msra.mxu1 %v13469_v24  ;;  %v6693_v24 = vrot.slane %v6617_v2, 2  ;;  %v6703_v2 = vrot.slane %v6626_v6, 2 }
 0x3d8   : > { %7085 = vmatprep.subr.bf16.mxu1 %v13474_v46  ;;  %v6694_v46 = vrot.slane %v6619_v59, 2 }
 0x3db   : > { %7086 = vmatpush1.bf16.msra.mxu1 %v13472_v35  ;;  %v6674_v35 = vsel %vm3473_vm4, %v6672_v30, %v6673_v18  ;;  %v13517_v18 = vld [vmem:[%s17185_s7 + $0x1a0] ss:$8 sps:$4 sm:$0xff]  }
 0x3dc   : > { %7087 = vmatprep.subr.bf16.mxu1 %v13477_v13  ;;  %v6680_v13 = vsel %vm3473_vm4, %v6678_v21, %v6679_v40  ;;  %v13522_v21 = vld [vmem:[%s17185_s7 + $0x1b4] ss:$8 sps:$4 sm:$0xff]   ;;  %v13520_v40 = vld [vmem:[%s17185_s7 + $0x1b0] ss:$8 sps:$4 sm:$0xff]  }
 0x3dd   : > { %v6726_v45 = vpack.c.bf16 %v6680_v13, %v6674_v35  ;;  %v13531_v35 = vld [vmem:[%s17185_s7 + $0x1e4] ss:$8 sps:$4 sm:$0xff]   ;;  %v13529_v13 = vld [vmem:[%s17185_s7 + $0x1e0] ss:$8 sps:$4 sm:$0xff]  }
 0x3df   : > { %7088 = vmatpush1.bf16.msra.mxu1 %v13475_v52  ;;  %v6612_v52 = vld [vmem:[#allocation3 + $0xc0] sm:$0xfc] }
 0x3e0   : > { %7089 = vmatprep.subr.bf16.mxu1 %v13480_v41  ;;  %v6614_v41 = vld [vmem:[#allocation3 + $0xd0] sm:$0x3]  ;;  %v6684_v56 = vrot.slane %v6612_v52, 2  ;;  %v13534_v52 = vld [vmem:[%s17185_s7 + $0x1f4] ss:$8 sps:$4 sm:$0xff]  }
 0x3e1   : > { %v6685_v15 = vrot.slane %v6614_v41, 2  ;;  %v13532_v41 = vld [vmem:[%s17185_s7 + $0x1f0] ss:$8 sps:$4 sm:$0xff]  }
 0x3e3   : > { %7090 = vmatpush1.bf16.msra.mxu1 %v13478_v43  ;;  %v6689_v43 = vsel %vm3473_vm4, %v6687_v22, %v6688_v0  ;;  %v6686_v17 = vsel %vm3473_vm4, %v6684_v56, %v6685_v15  ;;  %v13525_v22 = vld [vmem:[%s17185_s7 + $0x1c4] ss:$8 sps:$4 sm:$0xff]   ;;  %v13523_v0 = vld [vmem:[%s17185_s7 + $0x1c0] ss:$8 sps:$4 sm:$0xff]   ;;  %v16071_v15 = vrot.slane %v11888_v60, %v16054_v50 }
 0x3e4   : > { %7091 = vmatprep.subr.bf16.mxu1 %v13483_v49  ;;  %v6695_v49 = vsel %vm3473_vm4, %v6693_v24, %v6694_v46  ;;  %v6728_v14 = vpack.c.bf16 %v6692_v19, %v6686_v17  ;;  %v13528_v24 = vld [vmem:[%s17185_s7 + $0x1d4] ss:$8 sps:$4 sm:$0xff]   ;;  %v13526_v46 = vld [vmem:[%s17185_s7 + $0x1d0] ss:$8 sps:$4 sm:$0xff]  }
 0x3e7   : > { %7092 = vmatpush1.bf16.msra.mxu1 %v13481_v48  ;;  %v6729_v48 = vpack.c.bf16 %v6695_v49, %v6689_v43  ;;  %v13537_v43 = vld [vmem:[%s17185_s7 + $0x4] ss:$8 sps:$4 sm:$0xff]   ;;  %v16048_v49 = vsub.s32 0, %v14192_v36 }
 0x3e8   : > { %7093 = vmatprep.subr.bf16.mxu1 %v13486_v54  ;;  %v6700_v54 = vrot.slane %v6623_v61, 2 }
 0x3e9   : > { %v16060_v61 = vrot.slane %v7152_v23, %v16048_v49  ;;  %v16067_v56 = vrot.slane %v11888_v60, %v16048_v49 }
 0x3ea   : > { %v6701_v29 = vsel %vm3473_vm4, %v6699_v37, %v6700_v54 }
 0x3eb   : > { %7094 = vmatpush1.bf16.msra.mxu1 %v13484_v4  ;;  %v6620_v4 = vld [vmem:[#allocation3 + $0x100] sm:$0xfc]  ;;  %v6731_v58 = vpack.c.bf16 %v6707_v3, %v6701_v29 }
 0x3ec   : > { %v6696_v57 = vrot.slane %v6620_v4, 2 }
 0x3ee   : > { %7096 = vmatmul.mubr.bf16.vlgmr.msra.gmra.mrb[0].mxu1 %v6724_v10  ;;  %v6698_v59 = vsel %vm3473_vm4, %v6696_v57, %v6697_v12  ;;  %v6704_v10 = vsel %vm3473_vm4, %v6702_v16, %v6703_v2 }
 0x3ef   : > { %7105 = vmatprep.mubr.bf16.mxu1 %v6727_v53  ;;  %v6730_v30 = vpack.c.bf16 %v6704_v10, %v6698_v59  ;;  %v13519_v53 = vld [vmem:[%s17185_s7 + $0x1a4] ss:$8 sps:$4 sm:$0xff]  }
 0x3f0   : > { %7711 = vmatprep.subr.bf16.mxu0 %v13519_v53  ;;  %v7363_v53 = vld [vmem:[#allocation4 + $0x8] sm:$0xfe] }
 0x3f1   : > { %7712 = vmatpush1.bf16.msra.mxu0 %v13517_v18  ;;  %v7365_v18 = vld [vmem:[#allocation4 + $0x18] sm:$0x1] }
 0x3f2   : > { %7713 = vmatprep.subr.bf16.mxu0 %v13522_v21 }
 0x3f5   : > { %7714 = vmatpush1.bf16.msra.mxu0 %v13520_v40 }
 0x3f6   : > { %7106 = vmatmul.mubr.bf16.gmra.mrb[4].mxu1 %v6726_v45  ;;  %7715 = vmatprep.subr.bf16.mxu0 %v13525_v22  ;;  %v7362_v22 = vld [vmem:[#allocation4] sm:$0xfe] }
 0x3f7   : > { %7115 = vmatprep.mubr.bf16.mxu1 %v6729_v48 }
 0x3f9   : > { %7716 = vmatpush1.bf16.msra.mxu0 %v13523_v0 }
 0x3fa   : > { %7717 = vmatprep.subr.bf16.mxu0 %v13528_v24 }
 0x3fd   : > { %7718 = vmatpush1.bf16.msra.mxu0 %v13526_v46 }
 0x3fe   : > { %7116 = vmatmul.mubr.bf16.gmra.mrb[8].mxu1 %v6728_v14  ;;  %7719 = vmatprep.subr.bf16.mxu0 %v13531_v35  ;;  %v7429_v35 = vrot.slane %v7363_v53, 1 }
 0x3ff   : > { %7125 = vmatprep.mubr.bf16.mxu1 %v6731_v58 }
 0x401   : > { %7720 = vmatpush1.bf16.msra.mxu0 %v13529_v13  ;;  %v7430_v13 = vrot.slane %v7365_v18, 1  ;;  %v13535_v18 = vld [vmem:[%s17185_s7] ss:$8 sps:$4 sm:$0xff]  }
 0x402   : > { %7721 = vmatprep.subr.bf16.mxu0 %v13534_v52 }
 0x405   : > { %7722 = vmatpush1.bf16.msra.mxu0 %v13532_v41 }
 0x406   : > { %7126 = vmatmul.mubr.bf16.gmra.mrb[12].mxu1 %v6730_v30  ;;  %7924 = vmatprep.subr.bf16.mxu0 %v13537_v43 }
 0x4c1   : > { %v7097_v1 = vpop.f32.mrb[0].mxu1 }
 0x4c2   : > { %v12535_v45 = vadd.f32 %v7097_v1, %v15178_v7  ;;  %v7099_v48 = vpop.f32.mrb[1].mxu1 }
 0x4c3   : > { %v12536_v36 = vadd.f32 %v7099_v48, %v15180_v38  ;;  %v7101_v62 = vpop.f32.mrb[2].mxu1 }
 0x4c4   : > { %v7164_v31 = vmul.f32 %v12535_v45, %v16060_v61  ;;  %v12537_v37 = vadd.f32 %v7101_v62, %v15182_v11  ;;  %v7103_v54 = vpop.f32.mrb[3].mxu1 }
 0x4c5   : > { %v7165_v63 = vmul.f32 %v12536_v36, %v16063_v5  ;;  %v12538_v51 = vadd.f32 %v7103_v54, %v15187_v20 }
 0x4c6   : > { %v7193_v7 = vadd.f32 %v16067_v56, %v7164_v31  ;;  %v7166_v17 = vmul.f32 %v12537_v37, %v16060_v61 }
 0x4c7   : > { %v7194_v19 = vadd.f32 %v16071_v15, %v7165_v63  ;;  %v7167_v38 = vmul.f32 %v12538_v51, %v16063_v5  ;;  %v7431_v51 = vsel %vm2904_vm3, %v7429_v35, %v7430_v13 }
 0x4c8   : > { %v7209_v4 = vmax.f32 %v7193_v7, 0.0  ;;  %v7195_v29 = vadd.f32 %v16067_v56, %v7166_v17 }
 0x4c9   : > { %v7210_v3 = vmax.f32 %v7194_v19, 0.0  ;;  %v7196_v32 = vadd.f32 %v16071_v15, %v7167_v38  ;;  %v7107_v11 = vpop.f32.mrb[4].mxu1 }
 0x4ca   : > { %v7241_v9 = vrot.slane %v7209_v4, 7  ;;  %v7211_v6 = vmax.f32 %v7195_v29, 0.0  ;;  %v12539_v14 = vadd.f32 %v7107_v11, %v15199_v25  ;;  %v7109_v20 = vpop.f32.mrb[5].mxu1 }
 0x4cb   : > { %v7242_v57 = vrot.slane %v7210_v3, 7  ;;  %v7212_v58 = vmax.f32 %v7196_v32, 0.0  ;;  %v12540_v12 = vadd.f32 %v7109_v20, %v15201_v26  ;;  %v7111_v16 = vpop.f32.mrb[6].mxu1  ;;  %v7364_v26 = vld [vmem:[#allocation4 + $0x10] sm:$0x1] }
 0x4cc   : > { %7274 = vst [vmem:[#allocation4 + $0x20] sm:$0xfe] %v7241_v9  ;;  %7276 = vst [vmem:[#allocation4 + $0x30] sm:$0x1] %v7241_v9  ;;  %v7243_v2 = vrot.slane %v7211_v6, 7  ;;  %v7168_v59 = vmul.f32 %v12539_v14, %v16060_v61  ;;  %v12541_v10 = vadd.f32 %v7111_v16, %v15203_v27  ;;  %v7113_v30 = vpop.f32.mrb[7].mxu1 }
 0x4cd   : > { %7275 = vst [vmem:[#allocation4 + $0x28] sm:$0xfe] %v7242_v57  ;;  %7277 = vst [vmem:[#allocation4 + $0x38] sm:$0x1] %v7242_v57  ;;  %v7244_v21 = vrot.slane %v7212_v58, 7  ;;  %v7169_v25 = vmul.f32 %v12540_v12, %v16063_v5  ;;  %v12542_v40 = vadd.f32 %v7113_v30, %v15208_v33  ;;  %v7426_v33 = vrot.slane %v7362_v22, 1 }
 0x4ce   : > { %7278 = vst [vmem:[#allocation4 + $0x40] sm:$0xfe] %v7243_v2  ;;  %7280 = vst [vmem:[#allocation4 + $0x50] sm:$0x1] %v7243_v2  ;;  %v7197_v0 = vadd.f32 %v16067_v56, %v7168_v59  ;;  %v7170_v24 = vmul.f32 %v12541_v10, %v16060_v61  ;;  %v7427_v43 = vrot.slane %v7364_v26, 1 }
 0x4cf   : > { %7279 = vst [vmem:[#allocation4 + $0x48] sm:$0xfe] %v7244_v21  ;;  %7281 = vst [vmem:[#allocation4 + $0x58] sm:$0x1] %v7244_v21  ;;  %v7198_v27 = vadd.f32 %v16071_v15, %v7169_v25  ;;  %v7171_v46 = vmul.f32 %v12542_v40, %v16063_v5 }
 0x4d0   : > { %v7213_v52 = vmax.f32 %v7197_v0, 0.0  ;;  %v7199_v41 = vadd.f32 %v16067_v56, %v7170_v24  ;;  %v13540_v24 = vld [vmem:[%s17185_s7 + $0x14] ss:$8 sps:$4 sm:$0xff]  }
 0x4d1   : > { %v7214_v23 = vmax.f32 %v7198_v27, 0.0  ;;  %v7200_v60 = vadd.f32 %v16071_v15, %v7171_v46  ;;  %v7117_v1 = vpop.f32.mrb[8].mxu1 }
 0x4d2   : > { %v7245_v45 = vrot.slane %v7213_v52, 7  ;;  %v7215_v48 = vmax.f32 %v7199_v41, 0.0  ;;  %v12543_v36 = vadd.f32 %v7117_v1, %v15222_v44  ;;  %v7119_v62 = vpop.f32.mrb[9].mxu1  ;;  %v7428_v44 = vsel %vm2904_vm3, %v7426_v33, %v7427_v43 }
 0x4d3   : > { %v7246_v31 = vrot.slane %v7214_v23, 7  ;;  %v7216_v37 = vmax.f32 %v7200_v60, 0.0  ;;  %v12544_v54 = vadd.f32 %v7119_v62, %v15224_v47  ;;  %v7121_v63 = vpop.f32.mrb[10].mxu1  ;;  %v7366_v7 = vld [vmem:[#allocation4 + $0x20] sm:$0xfe] }
 0x4d4   : > { %7282 = vst [vmem:[#allocation4 + $0x60] sm:$0xfe] %v7245_v45  ;;  %7284 = vst [vmem:[#allocation4 + $0x70] sm:$0x1] %v7245_v45  ;;  %v7247_v17 = vrot.slane %v7215_v48, 7  ;;  %v7172_v19 = vmul.f32 %v12543_v36, %v16060_v61  ;;  %v12545_v38 = vadd.f32 %v7121_v63, %v15229_v39  ;;  %v7123_v4 = vpop.f32.mrb[11].mxu1 }
 0x4d5   : > { %v7367_v29 = vld [vmem:[#allocation4 + $0x28] sm:$0xfe]  ;;  %v7369_v3 = vld [vmem:[#allocation4 + $0x38] sm:$0x1]  ;;  %7283 = vst [vmem:[#allocation4 + $0x68] sm:$0xfe] %v7246_v31  ;;  %v7173_v47 = vmul.f32 %v12544_v54, %v16063_v5  ;;  %v12546_v11 = vadd.f32 %v7123_v4, %v15234_v55 }
 0x4d6   : > { %7285 = vst [vmem:[#allocation4 + $0x78] sm:$0x1] %v7246_v31  ;;  %v7248_v32 = vrot.slane %v7216_v37, 7  ;;  %v7435_v9 = vrot.slane %v7367_v29, 1  ;;  %v7368_v6 = vld [vmem:[#allocation4 + $0x30] sm:$0x1]  ;;  %v7201_v14 = vadd.f32 %v16067_v56, %v7172_v19  ;;  %v7174_v39 = vmul.f32 %v12545_v38, %v16060_v61 }
 0x4d7   : > { %7286 = vst [vmem:[#allocation4 + $0x80] sm:$0xfe] %v7247_v17  ;;  %7288 = vst [vmem:[#allocation4 + $0x90] sm:$0x1] %v7247_v17  ;;  %v7436_v20 = vrot.slane %v7369_v3, 1  ;;  %v7432_v57 = vrot.slane %v7366_v7, 1  ;;  %v7202_v16 = vadd.f32 %v16071_v15, %v7173_v47  ;;  %v7175_v2 = vmul.f32 %v12546_v11, %v16063_v5 }
 0x4d8   : > { %v7371_v58 = vld [vmem:[#allocation4 + $0x48] sm:$0xfe]  ;;  %v7373_v12 = vld [vmem:[#allocation4 + $0x58] sm:$0x1]  ;;  %7287 = vst [vmem:[#allocation4 + $0x88] sm:$0xfe] %v7248_v32  ;;  %v7203_v30 = vadd.f32 %v16067_v56, %v7174_v39 }
 0x4d9   : > { %7289 = vst [vmem:[#allocation4 + $0x98] sm:$0x1] %v7248_v32  ;;  %v7433_v59 = vrot.slane %v7368_v6, 1  ;;  %v7441_v55 = vrot.slane %v7371_v58, 1  ;;  %v7217_v10 = vmax.f32 %v7201_v14, 0.0  ;;  %v7437_v53 = vsel %vm2904_vm3, %v7435_v9, %v7436_v20  ;;  %v7127_v22 = vpop.f32.mrb[12].mxu1 }
 0x4da   : > { %v7442_v21 = vrot.slane %v7373_v12, 1  ;;  %v7218_v25 = vmax.f32 %v7202_v16, 0.0  ;;  %v7204_v40 = vadd.f32 %v16071_v15, %v7175_v2  ;;  %v7491_v26 = vpack.c.bf16 %v7437_v53, %v7431_v51  ;;  %v7370_v27 = vld [vmem:[#allocation4 + $0x40] sm:$0xfe]  ;;  %v7129_v52 = vpop.f32.mrb[13].mxu1 }
 0x4db   : > { %v7434_v0 = vsel %vm2904_vm3, %v7432_v57, %v7433_v59  ;;  %v7249_v46 = vrot.slane %v7217_v10, 7  ;;  %v7219_v35 = vmax.f32 %v7203_v30, 0.0  ;;  %v12547_v13 = vadd.f32 %v7127_v22, %v15245_v42  ;;  %v7372_v33 = vld [vmem:[#allocation4 + $0x50] sm:$0x1]  ;;  %v7131_v1 = vpop.f32.mrb[14].mxu1 }
 0x4dc   : > { %v7490_v41 = vpack.c.bf16 %v7434_v0, %v7428_v44  ;;  %v7250_v43 = vrot.slane %v7218_v25, 7  ;;  %v7220_v23 = vmax.f32 %v7204_v40, 0.0  ;;  %v12548_v60 = vadd.f32 %v7129_v52, %v15247_v28  ;;  %7723 = vmatprep.mubr.bf16.mxu0 %v7491_v26  ;;  %v7374_v45 = vld [vmem:[#allocation4 + $0x60] sm:$0xfe]  ;;  %v7133_v31 = vpop.f32.mrb[15].mxu1 }
 0x4dd   : > { %7290 = vst [vmem:[#allocation4 + $0xa0] sm:$0xfe] %v7249_v46  ;;  %7292 = vst [vmem:[#allocation4 + $0xb0] sm:$0x1] %v7249_v46  ;;  %v7251_v48 = vrot.slane %v7219_v35, 7  ;;  %v7176_v36 = vmul.f32 %v12547_v13, %v16060_v61  ;;  %v12549_v62 = vadd.f32 %v7131_v1, %v15252_v34  ;;  %v7443_v54 = vsel %vm2904_vm3, %v7441_v55, %v7442_v21 }
 0x4de   : > { %7724 = vmatmul.mubr.bf16.vlgmr.msra.gmra.mrb[32].mxu0 %v7490_v41  ;;  %v7375_v42 = vld [vmem:[#allocation4 + $0x68] sm:$0xfe]  ;;  %v7377_v37 = vld [vmem:[#allocation4 + $0x78] sm:$0x1]  ;;  %7291 = vst [vmem:[#allocation4 + $0xa8] sm:$0xfe] %v7250_v43  ;;  %v7177_v28 = vmul.f32 %v12548_v60, %v16063_v5  ;;  %v12550_v51 = vadd.f32 %v7133_v31, %v15257_v8 }
 0x4df   : > { %7293 = vst [vmem:[#allocation4 + $0xb8] sm:$0x1] %v7250_v43  ;;  %v7252_v63 = vrot.slane %v7220_v23, 7  ;;  %7925 = vmatpush1.bf16.msra.mxu0 %v13535_v18  ;;  %v13538_v7 = vld [vmem:[%s17185_s7 + $0x10] ss:$8 sps:$4 sm:$0xff]   ;;  %v7447_v17 = vrot.slane %v7375_v42, 1  ;;  %v7205_v19 = vadd.f32 %v16067_v56, %v7176_v36  ;;  %v7178_v38 = vmul.f32 %v12549_v62, %v16060_v61 }
 0x4e0   : > { %v7376_v34 = vld [vmem:[#allocation4 + $0x70] sm:$0x1]  ;;  %7294 = vst [vmem:[#allocation4 + $0xc0] sm:$0xfe] %v7251_v48  ;;  %7296 = vst [vmem:[#allocation4 + $0xd0] sm:$0x1] %v7251_v48  ;;  %7926 = vmatprep.subr.bf16.mxu0 %v13540_v24  ;;  %v7206_v8 = vadd.f32 %v16071_v15, %v7177_v28  ;;  %v7179_v44 = vmul.f32 %v12550_v51, %v16063_v5 }
 0x4e1   : > { %v7448_v4 = vrot.slane %v7377_v37, 1  ;;  %v13543_v29 = vld [vmem:[%s17185_s7 + $0x24] ss:$8 sps:$4 sm:$0xff]   ;;  %v7438_v3 = vrot.slane %v7370_v27, 1  ;;  %7295 = vst [vmem:[#allocation4 + $0xc8] sm:$0xfe] %v7252_v63  ;;  %v7207_v6 = vadd.f32 %v16067_v56, %v7178_v38 }
 0x4e2   : > { %7297 = vst [vmem:[#allocation4 + $0xd8] sm:$0x1] %v7252_v63  ;;  %v7439_v32 = vrot.slane %v7372_v33, 1  ;;  %v7444_v47 = vrot.slane %v7374_v45, 1  ;;  %v7379_v11 = vld [vmem:[#allocation4 + $0x88] sm:$0xfe]  ;;  %v7208_v58 = vadd.f32 %v16071_v15, %v7179_v44 }
 0x4e3   : > { %v7221_v9 = vmax.f32 %v7205_v19, 0.0  ;;  %v7449_v61 = vsel %vm2904_vm3, %v7447_v17, %v7448_v4  ;;  %v13541_v14 = vld [vmem:[%s17185_s7 + $0x20] ss:$8 sps:$4 sm:$0xff]   ;;  %v7445_v39 = vrot.slane %v7376_v34, 1  ;;  %v7381_v20 = vld [vmem:[#allocation4 + $0x98] sm:$0x1]  ;;  %7927 = vmatpush1.bf16.msra.mxu0 %v13538_v7 }
 0x4e4   : > { %v7222_v57 = vmax.f32 %v7206_v8, 0.0  ;;  %v7493_v12 = vpack.c.bf16 %v7449_v61, %v7443_v54  ;;  %v7440_v5 = vsel %vm2904_vm3, %v7438_v3, %v7439_v32  ;;  %v13546_v16 = vld [vmem:[%s17185_s7 + $0x34] ss:$8 sps:$4 sm:$0xff]   ;;  %v7378_v56 = vld [vmem:[#allocation4 + $0x80] sm:$0xfe]  ;;  %v7223_v59 = vmax.f32 %v7207_v6, 0.0  ;;  %7928 = vmatprep.subr.bf16.mxu0 %v13543_v29 }
 0x4e5   : > { %v7253_v2 = vrot.slane %v7221_v9, 7  ;;  %v7446_v55 = vsel %vm2904_vm3, %v7444_v47, %v7445_v39  ;;  %v7453_v10 = vrot.slane %v7379_v11, 1  ;;  %v7380_v30 = vld [vmem:[#allocation4 + $0x90] sm:$0x1]  ;;  %v7224_v18 = vmax.f32 %v7208_v58, 0.0  ;;  %v16148_v24 = vld [vmem:[#allocation4 + $0x48] sm:$0xff] }
 0x4e6   : > { %v7254_v53 = vrot.slane %v7222_v57, 7  ;;  %7733 = vmatprep.mubr.bf16.mxu0 %v7493_v12  ;;  %v7492_v15 = vpack.c.bf16 %v7446_v55, %v7440_v5  ;;  %v7454_v21 = vrot.slane %v7381_v20, 1  ;;  %v7382_v25 = vld [vmem:[#allocation4 + $0xa0] sm:$0xfe]  ;;  %v7255_v40 = vrot.slane %v7223_v59, 7  ;;  %v16150_v23 = vld [vmem:[#allocation4 + $0x28] sm:$0xff] }
 0x4e7   : > { %7298 = vst [vmem:[#allocation4 + $0xe0] sm:$0xfe] %v7253_v2  ;;  %7300 = vst [vmem:[#allocation4 + $0xf0] sm:$0x1] %v7253_v2  ;;  %v13544_v22 = vld [vmem:[%s17185_s7 + $0x30] ss:$8 sps:$4 sm:$0xff]   ;;  %7929 = vmatpush1.bf16.msra.mxu0 %v13541_v14  ;;  %v8432_v62 = vpack.c.bf16 %v16148_v24, %v16150_v23 }
 0x4e8   : > { %v7383_v26 = vld [vmem:[#allocation4 + $0xa8] sm:$0xfe]  ;;  %v7385_v0 = vld [vmem:[#allocation4 + $0xb8] sm:$0x1]  ;;  %7299 = vst [vmem:[#allocation4 + $0xe8] sm:$0xfe] %v7254_v53  ;;  %7734 = vmatmul.mubr.bf16.gmra.mrb[36].mxu0 %v7492_v15  ;;  %7930 = vmatprep.subr.bf16.mxu0 %v13546_v16  ;;  %v7455_v60 = vsel %vm2904_vm3, %v7453_v10, %v7454_v21 }
 0x4e9   : > { %7301 = vst [vmem:[#allocation4 + $0xf8] sm:$0x1] %v7254_v53  ;;  %v7256_v27 = vrot.slane %v7224_v18, 7  ;;  %v7459_v46 = vrot.slane %v7383_v26, 1  ;;  %v7460_v35 = vrot.slane %v7385_v0, 1  ;;  %v7450_v52 = vrot.slane %v7378_v56, 1 }
 0x4ea   : > { %v7384_v13 = vld [vmem:[#allocation4 + $0xb0] sm:$0x1]  ;;  %7302 = vst [vmem:[#allocation4 + $0x100] sm:$0xfe] %v7255_v40  ;;  %7304 = vst [vmem:[#allocation4 + $0x110] sm:$0x1] %v7255_v40 }
 0x4eb   : > { %v7451_v41 = vrot.slane %v7380_v30, 1  ;;  %v7456_v33 = vrot.slane %v7382_v25, 1  ;;  %v7457_v43 = vrot.slane %v7384_v13, 1  ;;  %7303 = vst [vmem:[#allocation4 + $0x108] sm:$0xfe] %v7256_v27  ;;  %v7461_v1 = vsel %vm2904_vm3, %v7459_v46, %v7460_v35  ;;  %v16160_v37 = vld [vmem:[#allocation4 + $0x40] sm:$0xff]  ;;  %7931 = vmatpush1.bf16.msra.mxu0 %v13544_v22 }
 0x4ec   : > { %7305 = vst [vmem:[#allocation4 + $0x118] sm:$0x1] %v7256_v27  ;;  %v13549_v45 = vld [vmem:[%s17185_s7 + $0x44] ss:$8 sps:$4 sm:$0xff]   ;;  %v7389_v36 = vld [vmem:[#allocation4 + $0xd8] sm:$0x1]  ;;  %v7495_v31 = vpack.c.bf16 %v7461_v1, %v7455_v60 }
 0x4ed   : > { %v7387_v48 = vld [vmem:[#allocation4 + $0xc8] sm:$0xfe]  ;;  %v7458_v42 = vsel %vm2904_vm3, %v7456_v33, %v7457_v43  ;;  %v13552_v28 = vld [vmem:[%s17185_s7 + $0x54] ss:$8 sps:$4 sm:$0xff]   ;;  %v7452_v51 = vsel %vm2904_vm3, %v7450_v52, %v7451_v41  ;;  %v7466_v17 = vrot.slane %v7389_v36, 1  ;;  %v16171_v19 = vld [vmem:[#allocation4 + $0x20] sm:$0xff]  ;;  %7932 = vmatprep.subr.bf16.mxu0 %v13549_v45 }
 0x4ee   : > { %v16162_v54 = vld [vmem:[#allocation4 + $0x88] sm:$0xff]  ;;  %7743 = vmatprep.mubr.bf16.mxu0 %v7495_v31  ;;  %v7465_v7 = vrot.slane %v7387_v48, 1  ;;  %v7386_v34 = vld [vmem:[#allocation4 + $0xc0] sm:$0xfe]  ;;  %v7494_v4 = vpack.c.bf16 %v7458_v42, %v7452_v51  ;;  %v7388_v29 = vld [vmem:[#allocation4 + $0xd0] sm:$0x1]  ;;  %v8431_v44 = vpack.c.bf16 %v16160_v37, %v16171_v19 }
 0x4ef   : > { %v13547_v63 = vld [vmem:[%s17185_s7 + $0x40] ss:$8 sps:$4 sm:$0xff]   ;;  %v7392_v8 = vld [vmem:[#allocation4 + $0xf0] sm:$0x1]  ;;  %v13555_v58 = vld [vmem:[%s17185_s7 + $0x64] ss:$8 sps:$4 sm:$0xff]  }
 0x4f0   : > { %v16173_v38 = vld [vmem:[#allocation4 + $0x68] sm:$0xff]  ;;  %v7390_v3 = vld [vmem:[#allocation4 + $0xe0] sm:$0xfe]  ;;  %v7393_v11 = vld [vmem:[#allocation4 + $0xf8] sm:$0x1]  ;;  %v7469_v6 = vrot.slane %v7392_v8, 1  ;;  %7744 = vmatmul.mubr.bf16.gmra.mrb[40].mxu0 %v7494_v4  ;;  %v7467_v16 = vsel %vm2904_vm3, %v7465_v7, %v7466_v17 }
 0x4f1   : > { %v8434_v32 = vpack.c.bf16 %v16162_v54, %v16173_v38  ;;  %v7391_v47 = vld [vmem:[#allocation4 + $0xe8] sm:$0xfe]  ;;  %v7468_v9 = vrot.slane %v7390_v3, 1  ;;  %v7472_v14 = vrot.slane %v7393_v11, 1  ;;  %v16179_v39 = vld [vmem:[#allocation4 + $0x80] sm:$0xff]  ;;  %7933 = vmatpush1.bf16.msra.mxu0 %v13547_v63  ;;  %v7462_v12 = vrot.slane %v7386_v34, 1 }
 0x4f2   : > { %v7471_v61 = vrot.slane %v7391_v47, 1  ;;  %v16181_v20 = vld [vmem:[#allocation4 + $0xc8] sm:$0xff]  ;;  %v13550_v57 = vld [vmem:[%s17185_s7 + $0x50] ss:$8 sps:$4 sm:$0xff]   ;;  %v7463_v5 = vrot.slane %v7388_v29, 1  ;;  %7934 = vmatprep.subr.bf16.mxu0 %v13552_v28  ;;  %v16191_v2 = vld [vmem:[#allocation4 + $0x60] sm:$0xff]  ;;  %v7325_v29 = vpack.c.bf16 %v16173_v38, %v16148_v24 }
 0x4f3   : > { %v16193_v59 = vld [vmem:[#allocation4 + $0xa8] sm:$0xff]  ;;  %v16195_v55 = vld [vmem:[#allocation4 + $0xc0] sm:$0xff]  ;;  %v7470_v30 = vsel %vm2904_vm3, %v7468_v9, %v7469_v6  ;;  %v8433_v53 = vpack.c.bf16 %v16179_v39, %v16191_v2  ;;  %v13558_v26 = vld [vmem:[%s17185_s7 + $0x74] ss:$8 sps:$4 sm:$0xff]   ;;  %v7324_v11 = vpack.c.bf16 %v16191_v2, %v16160_v37 }
 0x4f4   : > { %v7473_v56 = vsel %vm2904_vm3, %v7471_v61, %v7472_v14  ;;  %v8436_v18 = vpack.c.bf16 %v16181_v20, %v16193_v59  ;;  %v16202_v15 = vld [vmem:[#allocation4 + $0xa0] sm:$0xff]  ;;  %v7464_v25 = vsel %vm2904_vm3, %v7462_v12, %v7463_v5  ;;  %v13940_v0 = vld [vmem:[#allocation3 + $0x8] sm:$0xff]  ;;  %v13556_v46 = vld [vmem:[%s17185_s7 + $0x70] ss:$8 sps:$4 sm:$0xff]   ;;  %v7327_v6 = vpack.c.bf16 %v16193_v59, %v16162_v54 }
 0x4f5   : > { %v7497_v10 = vpack.c.bf16 %v7473_v56, %v7467_v16  ;;  %7935 = vmatpush1.bf16.msra.mxu0 %v13550_v57  ;;  %v13553_v21 = vld [vmem:[%s17185_s7 + $0x60] ss:$8 sps:$4 sm:$0xff]   ;;  %v8435_v40 = vpack.c.bf16 %v16195_v55, %v16202_v15  ;;  %v7496_v22 = vpack.c.bf16 %v7470_v30, %v7464_v25  ;;  %v7323_v27 = vpack.c.bf16 %v16150_v23, %v13940_v0  ;;  %v13561_v35 = vld [vmem:[%s17185_s7 + $0x84] ss:$8 sps:$4 sm:$0xff]   ;;  %v13564_v52 = vld [vmem:[%s17185_s7 + $0x94] ss:$8 sps:$4 sm:$0xff]  }
 0x4f6   : > { %7936 = vmatprep.subr.bf16.mxu0 %v13555_v58  ;;  %v13559_v13 = vld [vmem:[%s17185_s7 + $0x80] ss:$8 sps:$4 sm:$0xff]   ;;  %v13562_v41 = vld [vmem:[%s17185_s7 + $0x90] ss:$8 sps:$4 sm:$0xff]   ;;  %v13567_v33 = vld [vmem:[%s17185_s7 + $0xa4] ss:$8 sps:$4 sm:$0xff]   ;;  %v7322_v34 = vpack.c.bf16 %v16171_v19, %v13940_v0 }
 0x4f7   : > { %7753 = vmatprep.mubr.bf16.mxu0 %v7497_v10  ;;  %v13565_v43 = vld [vmem:[%s17185_s7 + $0xa0] ss:$8 sps:$4 sm:$0xff]   ;;  %v13570_v60 = vld [vmem:[%s17185_s7 + $0xb4] ss:$8 sps:$4 sm:$0xff]   ;;  %v13568_v1 = vld [vmem:[%s17185_s7 + $0xb0] ss:$8 sps:$4 sm:$0xff]   ;;  %v7326_v10 = vpack.c.bf16 %v16202_v15, %v16179_v39 }
 0x4f8   : > { %7754 = vmatmul.mubr.bf16.gmra.mrb[44].mxu0 %v7496_v22  ;;  %v13573_v45 = vld [vmem:[%s17185_s7 + $0xc4] ss:$8 sps:$4 sm:$0xff]   ;;  %v13571_v48 = vld [vmem:[%s17185_s7 + $0xc0] ss:$8 sps:$4 sm:$0xff]   ;;  %v13576_v36 = vld [vmem:[%s17185_s7 + $0xd4] ss:$8 sps:$4 sm:$0xff]  }
 0x4f9   : > { %7937 = vmatpush1.bf16.msra.mxu0 %v13553_v21  ;;  %7956 = vmatprep.mubr.bf16.mxu0 %v7323_v27  ;;  %v13574_v31 = vld [vmem:[%s17185_s7 + $0xd0] ss:$8 sps:$4 sm:$0xff]   ;;  %v13579_v42 = vld [vmem:[%s17185_s7 + $0xe4] ss:$8 sps:$4 sm:$0xff]   ;;  %v13577_v63 = vld [vmem:[%s17185_s7 + $0xe0] ss:$8 sps:$4 sm:$0xff]  }
 0x4fa   : > { %7938 = vmatprep.subr.bf16.mxu0 %v13558_v26  ;;  %v13582_v28 = vld [vmem:[%s17185_s7 + $0xf4] ss:$8 sps:$4 sm:$0xff]   ;;  %v13580_v51 = vld [vmem:[%s17185_s7 + $0xf0] ss:$8 sps:$4 sm:$0xff]   ;;  %v13585_v7 = vld [vmem:[%s17185_s7 + $0x204] ss:$8 sps:$4 sm:$0xff]  }
 0x4fb   : > { %v13583_v17 = vld [vmem:[%s17185_s7 + $0x200] ss:$8 sps:$4 sm:$0xff]   ;;  %v13588_v4 = vld [vmem:[%s17185_s7 + $0x214] ss:$8 sps:$4 sm:$0xff]   ;;  %v13586_v3 = vld [vmem:[%s17185_s7 + $0x210] ss:$8 sps:$4 sm:$0xff]  }
 0x4fc   : > { %v13591_v8 = vld [vmem:[%s17185_s7 + $0x224] ss:$8 sps:$4 sm:$0xff]   ;;  %v13589_v47 = vld [vmem:[%s17185_s7 + $0x220] ss:$8 sps:$4 sm:$0xff]   ;;  %v13594_v9 = vld [vmem:[%s17185_s7 + $0x234] ss:$8 sps:$4 sm:$0xff]  }
 0x4fd   : > { %7939 = vmatpush1.bf16.msra.mxu0 %v13556_v46  ;;  %v13592_v61 = vld [vmem:[%s17185_s7 + $0x230] ss:$8 sps:$4 sm:$0xff]   ;;  %v13597_v14 = vld [vmem:[%s17185_s7 + $0x244] ss:$8 sps:$4 sm:$0xff]   ;;  %v13595_v5 = vld [vmem:[%s17185_s7 + $0x240] ss:$8 sps:$4 sm:$0xff]  }
 0x4fe   : > { %7940 = vmatprep.subr.bf16.mxu0 %v13561_v35  ;;  %v16299_v57 = vld [vmem:[#allocation4 + $0xe8] sm:$0xff]  ;;  %v8000_v12 = vld [vmem:[#allocation4 + $0x18] sm:$0x3]  ;;  %v13600_v30 = vld [vmem:[%s17185_s7 + $0x254] ss:$8 sps:$4 sm:$0xff]  }
 0x4ff   : > { %v7998_v58 = vld [vmem:[#allocation4 + $0x8] sm:$0xfc]  ;;  %v8004_v56 = vld [vmem:[#allocation4 + $0x38] sm:$0x3]  ;;  %v7329_v21 = vpack.c.bf16 %v16299_v57, %v16181_v20  ;;  %v8065_v22 = vrot.slane %v8000_v12, 2  ;;  %v16317_v35 = vld [vmem:[#allocation4 + $0xe0] sm:$0xff] }
 0x500   : > { %v8002_v16 = vld [vmem:[#allocation4 + $0x28] sm:$0xfc]  ;;  %v8064_v25 = vrot.slane %v7998_v58, 2  ;;  %v8071_v0 = vrot.slane %v8004_v56, 2  ;;  %v13598_v27 = vld [vmem:[%s17185_s7 + $0x250] ss:$8 sps:$4 sm:$0xff]  }
 0x501   : > { %7941 = vmatpush1.bf16.msra.mxu0 %v13559_v13  ;;  %v8070_v26 = vrot.slane %v8002_v16, 2  ;;  %v13603_v46 = vld [vmem:[%s17185_s7 + $0x264] ss:$8 sps:$4 sm:$0xff]   ;;  %v13660_v24 = vld [vmem:[%s17185_s7 + $0x394] ss:$8 sps:$4 sm:$0xff]  }
 0x502   : > { %7942 = vmatprep.subr.bf16.mxu0 %v13564_v52  ;;  %v8066_v13 = vsel %vm3473_vm4, %v8064_v25, %v8065_v22  ;;  %v8006_v56 = vld [vmem:[#allocation4 + $0x48] sm:$0xfc]  ;;  %v13628_v25 = vld [vmem:[%s17185_s7 + $0x2f0] ss:$8 sps:$4 sm:$0xff]   ;;  %v13690_v54 = vld [vmem:[%s17185_s7 + $0x434] ss:$8 sps:$4 sm:$0xff]  }
 0x503   : > { %v8072_v52 = vsel %vm3473_vm4, %v8070_v26, %v8071_v0  ;;  %v13633_v22 = vld [vmem:[%s17185_s7 + $0x304] ss:$8 sps:$4 sm:$0xff]   ;;  %v8076_v26 = vrot.slane %v8006_v56, 2  ;;  %v13658_v23 = vld [vmem:[%s17185_s7 + $0x390] ss:$8 sps:$4 sm:$0xff]  }
 0x504   : > { %v13685_v37 = vld [vmem:[%s17185_s7 + $0x420] ss:$8 sps:$4 sm:$0xff]   ;;  %v13688_v19 = vld [vmem:[%s17185_s7 + $0x430] ss:$8 sps:$4 sm:$0xff]   ;;  %v13693_v38 = vld [vmem:[%s17185_s7 + $0x444] ss:$8 sps:$4 sm:$0xff]  }
 0x505   : > { %7943 = vmatpush1.bf16.msra.mxu0 %v13562_v41  ;;  %v13601_v41 = vld [vmem:[%s17185_s7 + $0x260] ss:$8 sps:$4 sm:$0xff]   ;;  %v8728_v20 = vld [vmem:[#allocation4 + $0x58] sm:$0x1]  ;;  %v13696_v2 = vld [vmem:[%s17185_s7 + $0x454] ss:$8 sps:$4 sm:$0xff]  }
 0x506   : > { %7944 = vmatprep.subr.bf16.mxu0 %v13567_v33  ;;  %v7328_v33 = vpack.c.bf16 %v16317_v35, %v16195_v55  ;;  %v8726_v39 = vld [vmem:[#allocation4 + $0x48] sm:$0xfe] }
 0x507   : > { %v13697_v15 = vld [vmem:[%s17185_s7 + $0x460] ss:$8 sps:$4 sm:$0xff]  }
 0x509   : > { %7945 = vmatpush1.bf16.msra.mxu0 %v13565_v43  ;;  %v13606_v43 = vld [vmem:[%s17185_s7 + $0x274] ss:$8 sps:$4 sm:$0xff]  }
 0x50a   : > { %7946 = vmatprep.subr.bf16.mxu0 %v13570_v60  ;;  %v8126_v60 = vpack.c.bf16 %v8072_v52, %v8066_v13  ;;  %v8009_v52 = vld [vmem:[#allocation4 + $0x60] sm:$0xfc] }
 0x50d   : > { %7947 = vmatpush1.bf16.msra.mxu0 %v13568_v1  ;;  %v13604_v1 = vld [vmem:[%s17185_s7 + $0x270] ss:$8 sps:$4 sm:$0xff]  }
 0x50e   : > { %7948 = vmatprep.subr.bf16.mxu0 %v13573_v45  ;;  %v13609_v45 = vld [vmem:[%s17185_s7 + $0x284] ss:$8 sps:$4 sm:$0xff]  }
 0x511   : > { %7949 = vmatpush1.bf16.msra.mxu0 %v13571_v48  ;;  %v13607_v48 = vld [vmem:[%s17185_s7 + $0x280] ss:$8 sps:$4 sm:$0xff]  }
 0x512   : > { %7950 = vmatprep.subr.bf16.mxu0 %v13576_v36  ;;  %v13612_v36 = vld [vmem:[%s17185_s7 + $0x294] ss:$8 sps:$4 sm:$0xff]  }
 0x515   : > { %7951 = vmatpush1.bf16.msra.mxu0 %v13574_v31  ;;  %v13610_v31 = vld [vmem:[%s17185_s7 + $0x290] ss:$8 sps:$4 sm:$0xff]  }
 0x516   : > { %7952 = vmatprep.subr.bf16.mxu0 %v13579_v42  ;;  %v13615_v42 = vld [vmem:[%s17185_s7 + $0x2a4] ss:$8 sps:$4 sm:$0xff]  }
 0x519   : > { %7953 = vmatpush1.bf16.msra.mxu0 %v13577_v63  ;;  %v13613_v63 = vld [vmem:[%s17185_s7 + $0x2a0] ss:$8 sps:$4 sm:$0xff]  }
 0x51a   : > { %7954 = vmatprep.subr.bf16.mxu0 %v13582_v28  ;;  %v13618_v28 = vld [vmem:[%s17185_s7 + $0x2b4] ss:$8 sps:$4 sm:$0xff]  }
 0x51d   : > { %7955 = vmatpush1.bf16.msra.mxu0 %v13580_v51  ;;  %v13616_v51 = vld [vmem:[%s17185_s7 + $0x2b0] ss:$8 sps:$4 sm:$0xff]  }
 0x51e   : > { %8326 = vmatprep.subr.bf16.mxu0 %v13585_v7  ;;  %v13621_v7 = vld [vmem:[%s17185_s7 + $0x2c4] ss:$8 sps:$4 sm:$0xff]  }
 0x520   : > { %7957 = vmatmul.mubr.bf16.vlgmr.msra.gmra.mrb[32].mxu0 %v7322_v34  ;;  %v13624_v34 = vld [vmem:[%s17185_s7 + $0x2d4] ss:$8 sps:$4 sm:$0xff]  }
 0x521   : > { %7966 = vmatprep.mubr.bf16.mxu0 %v7325_v29  ;;  %8327 = vmatpush1.bf16.msra.mxu0 %v13583_v17  ;;  %v13619_v17 = vld [vmem:[%s17185_s7 + $0x2c0] ss:$8 sps:$4 sm:$0xff]   ;;  %v13627_v29 = vld [vmem:[%s17185_s7 + $0x2e4] ss:$8 sps:$4 sm:$0xff]  }
 0x522   : > { %8328 = vmatprep.subr.bf16.mxu0 %v13588_v4  ;;  %v13622_v4 = vld [vmem:[%s17185_s7 + $0x2d0] ss:$8 sps:$4 sm:$0xff]  }
 0x525   : > { %8329 = vmatpush1.bf16.msra.mxu0 %v13586_v3  ;;  %v7997_v3 = vld [vmem:[#allocation4] sm:$0xfc] }
 0x526   : > { %8330 = vmatprep.subr.bf16.mxu0 %v13591_v8  ;;  %v7999_v8 = vld [vmem:[#allocation4 + $0x10] sm:$0x3]  ;;  %v8061_v58 = vrot.slane %v7997_v3, 2 }
 0x527   : > { %v8062_v12 = vrot.slane %v7999_v8, 2  ;;  %v13639_v8 = vld [vmem:[%s17185_s7 + $0x324] ss:$8 sps:$4 sm:$0xff]  }
 0x528   : > { %7967 = vmatmul.mubr.bf16.gmra.mrb[36].mxu0 %v7324_v11  ;;  %v8003_v11 = vld [vmem:[#allocation4 + $0x30] sm:$0x3] }
 0x529   : > { %7976 = vmatprep.mubr.bf16.mxu0 %v7327_v6  ;;  %8331 = vmatpush1.bf16.msra.mxu0 %v13589_v47  ;;  %v8001_v47 = vld [vmem:[#allocation4 + $0x20] sm:$0xfc]  ;;  %v8010_v6 = vld [vmem:[#allocation4 + $0x68] sm:$0xfc]  ;;  %v8068_v16 = vrot.slane %v8003_v11, 2 }
 0x52a   : > { %8332 = vmatprep.subr.bf16.mxu0 %v13594_v9  ;;  %v13625_v9 = vld [vmem:[%s17185_s7 + $0x2e0] ss:$8 sps:$4 sm:$0xff]  }
 0x52d   : > { %8333 = vmatpush1.bf16.msra.mxu0 %v13592_v61  ;;  %v8012_v61 = vld [vmem:[#allocation4 + $0x78] sm:$0x3] }
 0x52e   : > { %8334 = vmatprep.subr.bf16.mxu0 %v13597_v14  ;;  %v13630_v14 = vld [vmem:[%s17185_s7 + $0x2f4] ss:$8 sps:$4 sm:$0xff]  }
 0x530   : > { %7977 = vmatmul.mubr.bf16.gmra.mrb[40].mxu0 %v7326_v10  ;;  %v8008_v10 = vld [vmem:[#allocation4 + $0x58] sm:$0x3] }
 0x531   : > { %7986 = vmatprep.mubr.bf16.mxu0 %v7329_v21  ;;  %8335 = vmatpush1.bf16.msra.mxu0 %v13595_v5  ;;  %v8067_v5 = vrot.slane %v8001_v47, 2  ;;  %v8083_v21 = vrot.slane %v8012_v61, 2  ;;  %v8077_v0 = vrot.slane %v8008_v10, 2  ;;  %v8017_v61 = vld [vmem:[#allocation4 + $0xa0] sm:$0xfc] }
 0x532   : > { %8336 = vmatprep.subr.bf16.mxu0 %v13600_v30  ;;  %v8082_v30 = vrot.slane %v8010_v6, 2 }
 0x534   : > { %v8084_v13 = vsel %vm3473_vm4, %v8082_v30, %v8083_v21  ;;  %v13642_v30 = vld [vmem:[%s17185_s7 + $0x334] ss:$8 sps:$4 sm:$0xff]   ;;  %v8013_v21 = vld [vmem:[#allocation4 + $0x80] sm:$0xfc] }
 0x535   : > { %8337 = vmatpush1.bf16.msra.mxu0 %v13598_v27  ;;  %v8063_v27 = vsel %vm3473_vm4, %v8061_v58, %v8062_v12  ;;  %v13637_v12 = vld [vmem:[%s17185_s7 + $0x320] ss:$8 sps:$4 sm:$0xff]  }
 0x536   : > { %8338 = vmatprep.subr.bf16.mxu0 %v13603_v46  ;;  %v8069_v46 = vsel %vm3473_vm4, %v8067_v5, %v8068_v16  ;;  %v8026_v5 = vld [vmem:[#allocation4 + $0xe8] sm:$0xfc]  ;;  %v8028_v16 = vld [vmem:[#allocation4 + $0xf8] sm:$0x3] }
 0x538   : > { %7987 = vmatmul.mubr.bf16.gmra.mrb[44].mxu0 %v7328_v33  ;;  %v13631_v33 = vld [vmem:[%s17185_s7 + $0x300] ss:$8 sps:$4 sm:$0xff]  }
 0x539   : > { %8339 = vmatpush1.bf16.msra.mxu0 %v13601_v41  ;;  %8358 = vmatprep.mubr.bf16.mxu0 %v8126_v60  ;;  %v8011_v41 = vld [vmem:[#allocation4 + $0x70] sm:$0x3]  ;;  %v8020_v60 = vld [vmem:[#allocation4 + $0xb8] sm:$0x3] }
 0x53a   : > { %8340 = vmatprep.subr.bf16.mxu0 %v13606_v43  ;;  %v8018_v43 = vld [vmem:[#allocation4 + $0xa8] sm:$0xfc] }
 0x53d   : > { %8341 = vmatpush1.bf16.msra.mxu0 %v13604_v1  ;;  %v8125_v1 = vpack.c.bf16 %v8069_v46, %v8063_v27  ;;  %v8022_v27 = vld [vmem:[#allocation4 + $0xc8] sm:$0xfc]  ;;  %v8024_v46 = vld [vmem:[#allocation4 + $0xd8] sm:$0x3] }
 0x53e   : > { %8342 = vmatprep.subr.bf16.mxu0 %v13609_v45  ;;  %v8078_v45 = vsel %vm3473_vm4, %v8076_v26, %v8077_v0  ;;  %v8091_v26 = vrot.slane %v8017_v61, 2 }
 0x541   : > { %8343 = vmatpush1.bf16.msra.mxu0 %v13607_v48  ;;  %v13636_v48 = vld [vmem:[%s17185_s7 + $0x314] ss:$8 sps:$4 sm:$0xff]  }
 0x542   : > { %8344 = vmatprep.subr.bf16.mxu0 %v13612_v36  ;;  %v8005_v36 = vld [vmem:[#allocation4 + $0x40] sm:$0xfc] }
 0x545   : > { %8345 = vmatpush1.bf16.msra.mxu0 %v13610_v31  ;;  %v8007_v31 = vld [vmem:[#allocation4 + $0x50] sm:$0x3] }
 0x546   : > { %8346 = vmatprep.subr.bf16.mxu0 %v13615_v42  ;;  %v8128_v42 = vpack.c.bf16 %v8084_v13, %v8078_v45  ;;  %v8074_v3 = vrot.slane %v8007_v31, 2  ;;  %v8106_v13 = vrot.slane %v8026_v5, 2  ;;  %v8101_v45 = vrot.slane %v8024_v46, 2  ;;  %v8025_v31 = vld [vmem:[#allocation4 + $0xe0] sm:$0xfc] }
 0x547   : > { %v13654_v5 = vld [vmem:[%s17185_s7 + $0x374] ss:$8 sps:$4 sm:$0xff]   ;;  %v13675_v46 = vld [vmem:[%s17185_s7 + $0x3e4] ss:$8 sps:$4 sm:$0xff]  }
 0x549   : > { %8347 = vmatpush1.bf16.msra.mxu0 %v13613_v63  ;;  %v8079_v63 = vrot.slane %v8009_v52, 2  ;;  %v8107_v52 = vrot.slane %v8028_v16, 2  ;;  %v13652_v16 = vld [vmem:[%s17185_s7 + $0x370] ss:$8 sps:$4 sm:$0xff]  }
 0x54a   : > { %8348 = vmatprep.subr.bf16.mxu0 %v13618_v28  ;;  %v8080_v28 = vrot.slane %v8011_v41, 2  ;;  %v13640_v41 = vld [vmem:[%s17185_s7 + $0x330] ss:$8 sps:$4 sm:$0xff]  }
 0x54d   : > { %8349 = vmatpush1.bf16.msra.mxu0 %v13616_v51  ;;  %v8014_v51 = vld [vmem:[#allocation4 + $0x88] sm:$0xfc] }
 0x54e   : > { %8350 = vmatprep.subr.bf16.mxu0 %v13621_v7  ;;  %v8016_v7 = vld [vmem:[#allocation4 + $0x98] sm:$0x3]  ;;  %v8088_v47 = vrot.slane %v8014_v51, 2 }
 0x54f   : > { %v8089_v11 = vrot.slane %v8016_v7, 2 }
 0x551   : > { %8351 = vmatpush1.bf16.msra.mxu0 %v13619_v17  ;;  %v8094_v17 = vrot.slane %v8018_v43, 2  ;;  %v8090_v10 = vsel %vm3473_vm4, %v8088_v47, %v8089_v11  ;;  %v13646_v47 = vld [vmem:[%s17185_s7 + $0x350] ss:$8 sps:$4 sm:$0xff]  }
 0x552   : > { %8352 = vmatprep.subr.bf16.mxu0 %v13624_v34  ;;  %v8095_v34 = vrot.slane %v8020_v60, 2  ;;  %v13645_v60 = vld [vmem:[%s17185_s7 + $0x344] ss:$8 sps:$4 sm:$0xff]  }
 0x554   : > { %v8096_v6 = vsel %vm3473_vm4, %v8094_v17, %v8095_v34  ;;  %v13648_v17 = vld [vmem:[%s17185_s7 + $0x354] ss:$8 sps:$4 sm:$0xff]   ;;  %v8021_v34 = vld [vmem:[#allocation4 + $0xc0] sm:$0xfc] }
 0x555   : > { %8353 = vmatpush1.bf16.msra.mxu0 %v13622_v4  ;;  %v13634_v4 = vld [vmem:[%s17185_s7 + $0x310] ss:$8 sps:$4 sm:$0xff]   ;;  %v8097_v11 = vrot.slane %v8021_v34, 2 }
 0x556   : > { %8354 = vmatprep.subr.bf16.mxu0 %v13627_v29  ;;  %v8073_v29 = vrot.slane %v8005_v36, 2  ;;  %v8108_v36 = vsel %vm3473_vm4, %v8106_v13, %v8107_v52  ;;  %v13673_v13 = vld [vmem:[%s17185_s7 + $0x3e0] ss:$8 sps:$4 sm:$0xff]   ;;  %v13678_v52 = vld [vmem:[%s17185_s7 + $0x3f4] ss:$8 sps:$4 sm:$0xff]  }
 0x557   : > { %v13700_v34 = vld [vmem:[%s17185_s7 + $0x470] ss:$8 sps:$4 sm:$0xff]  }
 0x558   : > { %v8075_v58 = vsel %vm3473_vm4, %v8073_v29, %v8074_v3  ;;  %v8103_v3 = vrot.slane %v8025_v31, 2  ;;  %v13694_v31 = vld [vmem:[%s17185_s7 + $0x450] ss:$8 sps:$4 sm:$0xff]  }
 0x559   : > { %8355 = vmatpush1.bf16.msra.mxu0 %v13625_v9  ;;  %v8081_v9 = vsel %vm3473_vm4, %v8079_v63, %v8080_v28  ;;  %v13643_v28 = vld [vmem:[%s17185_s7 + $0x340] ss:$8 sps:$4 sm:$0xff]  }
 0x55a   : > { %8356 = vmatprep.subr.bf16.mxu0 %v13630_v14  ;;  %v8019_v14 = vld [vmem:[#allocation4 + $0xb0] sm:$0x3]  ;;  %v8127_v56 = vpack.c.bf16 %v8081_v9, %v8075_v58  ;;  %v13649_v58 = vld [vmem:[%s17185_s7 + $0x360] ss:$8 sps:$4 sm:$0xff]  }
 0x55b   : > { %v8092_v0 = vrot.slane %v8019_v14, 2 }
 0x55d   : > { %8357 = vmatpush1.bf16.msra.mxu0 %v13628_v25  ;;  %v8015_v25 = vld [vmem:[#allocation4 + $0x90] sm:$0x3] }
 0x55e   : > { %8632 = vmatprep.subr.bf16.mxu0 %v13633_v22  ;;  %v8130_v22 = vpack.c.bf16 %v8096_v6, %v8090_v10  ;;  %v8086_v43 = vrot.slane %v8015_v25, 2  ;;  %v13651_v6 = vld [vmem:[%s17185_s7 + $0x364] ss:$8 sps:$4 sm:$0xff]   ;;  %v13655_v10 = vld [vmem:[%s17185_s7 + $0x380] ss:$8 sps:$4 sm:$0xff]  }
 0x55f   : > { %v13664_v25 = vld [vmem:[%s17185_s7 + $0x3b0] ss:$8 sps:$4 sm:$0xff]  }
 0x560   : > { %8359 = vmatmul.mubr.bf16.vlgmr.msra.gmra.mrb[32].mxu0 %v8125_v1  ;;  %v8100_v1 = vrot.slane %v8022_v27, 2  ;;  %v13670_v27 = vld [vmem:[%s17185_s7 + $0x3d0] ss:$8 sps:$4 sm:$0xff]  }
 0x561   : > { %8368 = vmatprep.mubr.bf16.mxu0 %v8128_v42  ;;  %8633 = vmatpush1.bf16.msra.mxu0 %v13631_v33  ;;  %v8085_v33 = vrot.slane %v8013_v21, 2  ;;  %v8027_v42 = vld [vmem:[#allocation4 + $0xf0] sm:$0x3]  ;;  %v13666_v21 = vld [vmem:[%s17185_s7 + $0x3b4] ss:$8 sps:$4 sm:$0xff]  }
 0x562   : > { %8634 = vmatprep.subr.bf16.mxu0 %v13636_v48  ;;  %v8093_v48 = vsel %vm3473_vm4, %v8091_v26, %v8092_v0  ;;  %v8102_v7 = vsel %vm3473_vm4, %v8100_v1, %v8101_v45  ;;  %v13667_v26 = vld [vmem:[%s17185_s7 + $0x3c0] ss:$8 sps:$4 sm:$0xff]   ;;  %v13672_v0 = vld [vmem:[%s17185_s7 + $0x3d4] ss:$8 sps:$4 sm:$0xff]   ;;  %v13682_v1 = vld [vmem:[%s17185_s7 + $0x410] ss:$8 sps:$4 sm:$0xff]  }
 0x563   : > { %v8087_v63 = vsel %vm3473_vm4, %v8085_v33, %v8086_v43  ;;  %v8132_v29 = vpack.c.bf16 %v8108_v36, %v8102_v7  ;;  %v13681_v33 = vld [vmem:[%s17185_s7 + $0x404] ss:$8 sps:$4 sm:$0xff]   ;;  %v13679_v43 = vld [vmem:[%s17185_s7 + $0x400] ss:$8 sps:$4 sm:$0xff]   ;;  %v8795_v36 = vrot.slane %v8728_v20, 1 }
 0x564   : > { %v8129_v51 = vpack.c.bf16 %v8093_v48, %v8087_v63  ;;  %v13687_v45 = vld [vmem:[%s17185_s7 + $0x424] ss:$8 sps:$4 sm:$0xff]   ;;  %v8794_v48 = vrot.slane %v8726_v39, 1  ;;  %v13702_v7 = vld [vmem:[%s17185_s7 + $0x474] ss:$8 sps:$4 sm:$0xff]  }
 0x565   : > { %8635 = vmatpush1.bf16.msra.mxu0 %v13634_v4  ;;  %v8023_v4 = vld [vmem:[#allocation4 + $0xd0] sm:$0x3] }
 0x566   : > { %8636 = vmatprep.subr.bf16.mxu0 %v13639_v8  ;;  %v8104_v8 = vrot.slane %v8027_v42, 2  ;;  %v8098_v9 = vrot.slane %v8023_v4, 2  ;;  %v13699_v42 = vld [vmem:[%s17185_s7 + $0x464] ss:$8 sps:$4 sm:$0xff]   ;;  %v8796_v55 = vsel %vm2904_vm3, %v8794_v48, %v8795_v36  ;;  %v13703_v4 = vld [vmem:[%s17185_s7 + $0x480] ss:$8 sps:$4 sm:$0xff]  }
 0x568   : > { %8369 = vmatmul.mubr.bf16.gmra.mrb[36].mxu0 %v8127_v56  ;;  %v8105_v61 = vsel %vm3473_vm4, %v8103_v3, %v8104_v8  ;;  %v8099_v14 = vsel %vm3473_vm4, %v8097_v11, %v8098_v9  ;;  %v13657_v56 = vld [vmem:[%s17185_s7 + $0x384] ss:$8 sps:$4 sm:$0xff]   ;;  %v13706_v3 = vld [vmem:[%s17185_s7 + $0x490] ss:$8 sps:$4 sm:$0xff]   ;;  %v13714_v11 = vld [vmem:[%s17185_s7 + $0x4b4] ss:$8 sps:$4 sm:$0xff]  }
 0x569   : > { %8378 = vmatprep.mubr.bf16.mxu0 %v8130_v22  ;;  %8637 = vmatpush1.bf16.msra.mxu0 %v13637_v12  ;;  %v8131_v12 = vpack.c.bf16 %v8105_v61, %v8099_v14  ;;  %v13669_v22 = vld [vmem:[%s17185_s7 + $0x3c4] ss:$8 sps:$4 sm:$0xff]   ;;  %v13712_v9 = vld [vmem:[%s17185_s7 + $0x4b0] ss:$8 sps:$4 sm:$0xff]   ;;  %v13715_v61 = vld [vmem:[%s17185_s7 + $0x4c0] ss:$8 sps:$4 sm:$0xff]  }
 0x56a   : > { %8638 = vmatprep.subr.bf16.mxu0 %v13642_v30  ;;  %v13661_v30 = vld [vmem:[%s17185_s7 + $0x3a0] ss:$8 sps:$4 sm:$0xff]   ;;  %v13711_v8 = vld [vmem:[%s17185_s7 + $0x4a4] ss:$8 sps:$4 sm:$0xff]   ;;  %v13720_v14 = vld [vmem:[%s17185_s7 + $0x4d4] ss:$8 sps:$4 sm:$0xff]  }
 0x56d   : > { %8639 = vmatpush1.bf16.msra.mxu0 %v13640_v41  ;;  %v13676_v41 = vld [vmem:[%s17185_s7 + $0x3f0] ss:$8 sps:$4 sm:$0xff]  }
 0x56e   : > { %8640 = vmatprep.subr.bf16.mxu0 %v13645_v60  ;;  %v13684_v60 = vld [vmem:[%s17185_s7 + $0x414] ss:$8 sps:$4 sm:$0xff]  }
 0x570   : > { %8379 = vmatmul.mubr.bf16.gmra.mrb[40].mxu0 %v8129_v51 }
 0x571   : > { %8388 = vmatprep.mubr.bf16.mxu0 %v8132_v29  ;;  %8641 = vmatpush1.bf16.msra.mxu0 %v13643_v28  ;;  %v16551_v28 = vld [vmem:[#allocation4 + $0x100] sm:$0xff]  ;;  %v13708_v29 = vld [vmem:[%s17185_s7 + $0x494] ss:$8 sps:$4 sm:$0xff]  }
 0x572   : > { %8642 = vmatprep.subr.bf16.mxu0 %v13648_v17 }
 0x575   : > { %8643 = vmatpush1.bf16.msra.mxu0 %v13646_v47  ;;  %v13709_v47 = vld [vmem:[%s17185_s7 + $0x4a0] ss:$8 sps:$4 sm:$0xff]  }
 0x576   : > { %8644 = vmatprep.subr.bf16.mxu0 %v13651_v6  ;;  %v13717_v6 = vld [vmem:[%s17185_s7 + $0x4c4] ss:$8 sps:$4 sm:$0xff]  }
 0x578   : > { %8389 = vmatmul.mubr.bf16.gmra.mrb[44].mxu0 %v8131_v12  ;;  %v13723_v12 = vld [vmem:[%s17185_s7 + $0x4e4] ss:$8 sps:$4 sm:$0xff]  }
 0x579   : > { %8645 = vmatpush1.bf16.msra.mxu0 %v13649_v58  ;;  %8664 = vmatprep.mubr.bf16.mxu0 %v8432_v62  ;;  %v13663_v62 = vld [vmem:[%s17185_s7 + $0x3a4] ss:$8 sps:$4 sm:$0xff]   ;;  %v13718_v58 = vld [vmem:[%s17185_s7 + $0x4d0] ss:$8 sps:$4 sm:$0xff]  }
 0x57a   : > { %8646 = vmatprep.subr.bf16.mxu0 %v13654_v5  ;;  %v8725_v5 = vld [vmem:[#allocation4 + $0x40] sm:$0xfe] }
 0x57d   : > { %8647 = vmatpush1.bf16.msra.mxu0 %v13652_v16  ;;  %v8727_v16 = vld [vmem:[#allocation4 + $0x50] sm:$0x1] }
 0x57e   : > { %8648 = vmatprep.subr.bf16.mxu0 %v13657_v56  ;;  %v13721_v56 = vld [vmem:[%s17185_s7 + $0x4e0] ss:$8 sps:$4 sm:$0xff]  }
 0x581   : > { %8649 = vmatpush1.bf16.msra.mxu0 %v13655_v10  ;;  %v8734_v10 = vld [vmem:[#allocation4 + $0x88] sm:$0xfe] }
 0x582   : > { %8650 = vmatprep.subr.bf16.mxu0 %v13660_v24  ;;  %v8736_v24 = vld [vmem:[#allocation4 + $0x98] sm:$0x1] }
 0x585   : > { %8651 = vmatpush1.bf16.msra.mxu0 %v13658_v23  ;;  %v13726_v23 = vld [vmem:[%s17185_s7 + $0x4f4] ss:$8 sps:$4 sm:$0xff]  }
 0x586   : > { %8652 = vmatprep.subr.bf16.mxu0 %v13663_v62  ;;  %v8721_v62 = vld [vmem:[#allocation4 + $0x20] sm:$0xfe] }
 0x589   : > { %8653 = vmatpush1.bf16.msra.mxu0 %v13661_v30  ;;  %v8723_v30 = vld [vmem:[#allocation4 + $0x30] sm:$0x1] }
 0x58a   : > { %8654 = vmatprep.subr.bf16.mxu0 %v13666_v21  ;;  %v8791_v21 = vrot.slane %v8725_v5, 1 }
 0x58d   : > { %8655 = vmatpush1.bf16.msra.mxu0 %v13664_v25  ;;  %v8792_v25 = vrot.slane %v8727_v16, 1 }
 0x58e   : > { %8656 = vmatprep.subr.bf16.mxu0 %v13669_v22  ;;  %v8730_v22 = vld [vmem:[#allocation4 + $0x68] sm:$0xfe] }
 0x591   : > { %8657 = vmatpush1.bf16.msra.mxu0 %v13667_v26  ;;  %v8732_v26 = vld [vmem:[#allocation4 + $0x78] sm:$0x1] }
 0x592   : > { %8658 = vmatprep.subr.bf16.mxu0 %v13672_v0  ;;  %v8806_v0 = vrot.slane %v8734_v10, 1  ;;  %v8748_v10 = vld [vmem:[#allocation4 + $0xf8] sm:$0x1] }
 0x595   : > { %8659 = vmatpush1.bf16.msra.mxu0 %v13670_v27  ;;  %v8807_v27 = vrot.slane %v8736_v24, 1 }
 0x596   : > { %8660 = vmatprep.subr.bf16.mxu0 %v13675_v46  ;;  %v13724_v46 = vld [vmem:[%s17185_s7 + $0x4f0] ss:$8 sps:$4 sm:$0xff]  }
 0x599   : > { %8661 = vmatpush1.bf16.msra.mxu0 %v13673_v13  ;;  %v8785_v13 = vrot.slane %v8721_v62, 1  ;;  %v13736_v62 = vld [vmem:[%s17185_s7 + $0x530] ss:$8 sps:$4 sm:$0xff]  }
 0x59a   : > { %8662 = vmatprep.subr.bf16.mxu0 %v13678_v52  ;;  %v8786_v52 = vrot.slane %v8723_v30, 1 }
 0x59d   : > { %8663 = vmatpush1.bf16.msra.mxu0 %v13676_v41  ;;  %v13729_v41 = vld [vmem:[%s17185_s7 + $0x504] ss:$8 sps:$4 sm:$0xff]  }
 0x59e   : > { %9050 = vmatprep.subr.bf16.mxu0 %v13681_v33  ;;  %v8800_v33 = vrot.slane %v8730_v22, 1 }
 0x5a0   : > { %8665 = vmatmul.mubr.bf16.vlgmr.msra.gmra.mrb[32].mxu0 %v8431_v44  ;;  %v16532_v44 = vld [vmem:[#allocation4 + $0x108] sm:$0xff] }
 0x5a1   : > { %8674 = vmatprep.mubr.bf16.mxu0 %v8434_v32  ;;  %9051 = vmatpush1.bf16.msra.mxu0 %v13679_v43  ;;  %v13691_v32 = vld [vmem:[%s17185_s7 + $0x440] ss:$8 sps:$4 sm:$0xff]   ;;  %v8438_v59 = vpack.c.bf16 %v16532_v44, %v16299_v57  ;;  %v8801_v43 = vrot.slane %v8732_v26, 1  ;;  %v8825_v26 = vrot.slane %v8748_v10, 1 }
 0x5a2   : > { %9052 = vmatprep.subr.bf16.mxu0 %v13684_v60  ;;  %v8793_v60 = vsel %vm2904_vm3, %v8791_v21, %v8792_v25  ;;  %v13741_v25 = vld [vmem:[%s17185_s7 + $0x544] ss:$8 sps:$4 sm:$0xff]  }
 0x5a3   : > { %v8802_v20 = vsel %vm2904_vm3, %v8800_v33, %v8801_v43  ;;  %v9144_v33 = vld [vmem:[#allocation4 + $0x48] sm:$0xfc]  ;;  %v9146_v43 = vld [vmem:[#allocation4 + $0x58] sm:$0x3] }
 0x5a4   : > { %v9152_v10 = vld [vmem:[#allocation4 + $0x88] sm:$0xfc] }
 0x5a5   : > { %9053 = vmatpush1.bf16.msra.mxu0 %v13682_v1  ;;  %v8808_v1 = vsel %vm2904_vm3, %v8806_v0, %v8807_v27 }
 0x5a6   : > { %9054 = vmatprep.subr.bf16.mxu0 %v13687_v45  ;;  %v8733_v45 = vld [vmem:[#allocation4 + $0x80] sm:$0xfe] }
 0x5a7   : > { %v8803_v48 = vrot.slane %v8733_v45, 1  ;;  %v13744_v45 = vld [vmem:[%s17185_s7 + $0x554] ss:$8 sps:$4 sm:$0xff]  }
 0x5a8   : > { %8675 = vmatmul.mubr.bf16.gmra.mrb[36].mxu0 %v8433_v53  ;;  %v8722_v53 = vld [vmem:[#allocation4 + $0x28] sm:$0xfe] }
 0x5a9   : > { %8684 = vmatprep.mubr.bf16.mxu0 %v8436_v18  ;;  %9055 = vmatpush1.bf16.msra.mxu0 %v13685_v37  ;;  %v8724_v18 = vld [vmem:[#allocation4 + $0x38] sm:$0x1]  ;;  %v8788_v57 = vrot.slane %v8722_v53, 1  ;;  %v8735_v37 = vld [vmem:[#allocation4 + $0x90] sm:$0x1] }
 0x5aa   : > { %9056 = vmatprep.subr.bf16.mxu0 %v13690_v54  ;;  %v8789_v63 = vrot.slane %v8724_v18, 1  ;;  %v8787_v54 = vsel %vm2904_vm3, %v8785_v13, %v8786_v52  ;;  %v8731_v53 = vld [vmem:[#allocation4 + $0x70] sm:$0x1]  ;;  %v8852_v18 = vpack.c.bf16 %v8808_v1, %v8802_v20  ;;  %v8804_v36 = vrot.slane %v8735_v37, 1  ;;  %v8745_v37 = vld [vmem:[#allocation4 + $0xe0] sm:$0xfe] }
 0x5ab   : > { %v8849_v39 = vpack.c.bf16 %v8793_v60, %v8787_v54  ;;  %v8751_v13 = vld [vmem:[#allocation4 + $0x110] sm:$0x1]  ;;  %v9142_v20 = vld [vmem:[#allocation4 + $0x38] sm:$0x3] }
 0x5ac   : > { %v8790_v51 = vsel %vm2904_vm3, %v8788_v57, %v8789_v63  ;;  %v8747_v54 = vld [vmem:[#allocation4 + $0xf0] sm:$0x1] }
 0x5ad   : > { %9057 = vmatpush1.bf16.msra.mxu0 %v13688_v19  ;;  %v8850_v17 = vpack.c.bf16 %v8796_v55, %v8790_v51  ;;  %v13727_v19 = vld [vmem:[%s17185_s7 + $0x500] ss:$8 sps:$4 sm:$0xff]   ;;  %v13730_v55 = vld [vmem:[%s17185_s7 + $0x510] ss:$8 sps:$4 sm:$0xff]   ;;  %v13735_v51 = vld [vmem:[%s17185_s7 + $0x524] ss:$8 sps:$4 sm:$0xff]  }
 0x5ae   : > { %9058 = vmatprep.subr.bf16.mxu0 %v13693_v38  ;;  %v8742_v38 = vld [vmem:[#allocation4 + $0xc8] sm:$0xfe] }
 0x5af   : > { %v8818_v57 = vrot.slane %v8742_v38, 1 }
 0x5b0   : > { %8685 = vmatmul.mubr.bf16.gmra.mrb[40].mxu0 %v8435_v40  ;;  %v8437_v40 = vpack.c.bf16 %v16551_v28, %v16317_v35  ;;  %v13705_v35 = vld [vmem:[%s17185_s7 + $0x484] ss:$8 sps:$4 sm:$0xff]  }
 0x5b1   : > { %8694 = vmatprep.mubr.bf16.mxu0 %v8438_v59  ;;  %9059 = vmatpush1.bf16.msra.mxu0 %v13691_v32  ;;  %v8744_v32 = vld [vmem:[#allocation4 + $0xd8] sm:$0x1]  ;;  %v8729_v59 = vld [vmem:[#allocation4 + $0x60] sm:$0xfe] }
 0x5b2   : > { %9060 = vmatprep.subr.bf16.mxu0 %v13696_v2  ;;  %v13732_v2 = vld [vmem:[%s17185_s7 + $0x514] ss:$8 sps:$4 sm:$0xff]   ;;  %v8819_v63 = vrot.slane %v8744_v32, 1  ;;  %v8828_v32 = vrot.slane %v8751_v13, 1 }
 0x5b5   : > { %9061 = vmatpush1.bf16.msra.mxu0 %v13694_v31  ;;  %v8738_v31 = vld [vmem:[#allocation4 + $0xa8] sm:$0xfe] }
 0x5b6   : > { %9062 = vmatprep.subr.bf16.mxu0 %v13699_v42  ;;  %v8740_v42 = vld [vmem:[#allocation4 + $0xb8] sm:$0x1] }
 0x5b8   : > { %8695 = vmatmul.mubr.bf16.gmra.mrb[44].mxu0 %v8437_v40  ;;  %v8798_v40 = vrot.slane %v8731_v53, 1  ;;  %v13742_v53 = vld [vmem:[%s17185_s7 + $0x550] ss:$8 sps:$4 sm:$0xff]  }
 0x5b9   : > { %9063 = vmatpush1.bf16.msra.mxu0 %v13697_v15  ;;  %9082 = vmatprep.mubr.bf16.mxu0 %v8850_v17  ;;  %v8797_v15 = vrot.slane %v8729_v59, 1  ;;  %v8813_v17 = vrot.slane %v8740_v42, 1  ;;  %v9213_v59 = vrot.slane %v9146_v43, 2  ;;  %v9207_v42 = vrot.slane %v9142_v20, 2 }
 0x5ba   : > { %9064 = vmatprep.subr.bf16.mxu0 %v13702_v7  ;;  %v8812_v7 = vrot.slane %v8738_v31, 1 }
 0x5bd   : > { %9065 = vmatpush1.bf16.msra.mxu0 %v13700_v34  ;;  %v8805_v34 = vsel %vm2904_vm3, %v8803_v48, %v8804_v36  ;;  %v8822_v48 = vrot.slane %v8747_v54, 1  ;;  %v13747_v36 = vld [vmem:[%s17185_s7 + $0x564] ss:$8 sps:$4 sm:$0xff]  }
 0x5be   : > { %9066 = vmatprep.subr.bf16.mxu0 %v13705_v35  ;;  %v8820_v35 = vsel %vm2904_vm3, %v8818_v57, %v8819_v63 }
 0x5c1   : > { %9067 = vmatpush1.bf16.msra.mxu0 %v13703_v4  ;;  %v8741_v4 = vld [vmem:[#allocation4 + $0xc0] sm:$0xfe] }
 0x5c2   : > { %9068 = vmatprep.subr.bf16.mxu0 %v13708_v29  ;;  %v8743_v29 = vld [vmem:[#allocation4 + $0xd0] sm:$0x1]  ;;  %v8815_v5 = vrot.slane %v8741_v4, 1  ;;  %v13751_v4 = vld [vmem:[%s17185_s7 + $0x580] ss:$8 sps:$4 sm:$0xff]  }
 0x5c3   : > { %v8816_v16 = vrot.slane %v8743_v29, 1  ;;  %v13756_v29 = vld [vmem:[%s17185_s7 + $0x594] ss:$8 sps:$4 sm:$0xff]  }
 0x5c5   : > { %9069 = vmatpush1.bf16.msra.mxu0 %v13706_v3  ;;  %v8799_v3 = vsel %vm2904_vm3, %v8797_v15, %v8798_v40  ;;  %v8817_v0 = vsel %vm2904_vm3, %v8815_v5, %v8816_v16  ;;  %v13745_v15 = vld [vmem:[%s17185_s7 + $0x560] ss:$8 sps:$4 sm:$0xff]   ;;  %v9145_v16 = vld [vmem:[#allocation4 + $0x50] sm:$0x3] }
 0x5c6   : > { %9070 = vmatprep.subr.bf16.mxu0 %v13711_v8  ;;  %v13733_v8 = vld [vmem:[%s17185_s7 + $0x520] ss:$8 sps:$4 sm:$0xff]  }
 0x5c7   : > { %v9143_v5 = vld [vmem:[#allocation4 + $0x40] sm:$0xfc] }
 0x5c9   : > { %9071 = vmatpush1.bf16.msra.mxu0 %v13709_v47  ;;  %v8750_v47 = vld [vmem:[#allocation4 + $0x108] sm:$0xfe] }
 0x5ca   : > { %9072 = vmatprep.subr.bf16.mxu0 %v13714_v11  ;;  %v8752_v11 = vld [vmem:[#allocation4 + $0x118] sm:$0x1]  ;;  %v8830_v24 = vrot.slane %v8750_v47, 1  ;;  %v13757_v47 = vld [vmem:[%s17185_s7 + $0x5a0] ss:$8 sps:$4 sm:$0xff]  }
 0x5cd   : > { %9073 = vmatpush1.bf16.msra.mxu0 %v13712_v9  ;;  %v8851_v9 = vpack.c.bf16 %v8805_v34, %v8799_v3  ;;  %v13748_v34 = vld [vmem:[%s17185_s7 + $0x570] ss:$8 sps:$4 sm:$0xff]  }
 0x5ce   : > { %9074 = vmatprep.subr.bf16.mxu0 %v13717_v6  ;;  %v8814_v6 = vsel %vm2904_vm3, %v8812_v7, %v8813_v17  ;;  %v13750_v7 = vld [vmem:[%s17185_s7 + $0x574] ss:$8 sps:$4 sm:$0xff]   ;;  %v13754_v3 = vld [vmem:[%s17185_s7 + $0x590] ss:$8 sps:$4 sm:$0xff]  }
 0x5d1   : > { %9075 = vmatpush1.bf16.msra.mxu0 %v13715_v61  ;;  %v13738_v61 = vld [vmem:[%s17185_s7 + $0x534] ss:$8 sps:$4 sm:$0xff]  }
 0x5d2   : > { %9076 = vmatprep.subr.bf16.mxu0 %v13720_v14  ;;  %v8737_v14 = vld [vmem:[#allocation4 + $0xa0] sm:$0xfe] }
 0x5d3   : > { %v8809_v30 = vrot.slane %v8737_v14, 1  ;;  %v13768_v14 = vld [vmem:[%s17185_s7 + $0x5d4] ss:$8 sps:$4 sm:$0xff]  }
 0x5d5   : > { %9077 = vmatpush1.bf16.msra.mxu0 %v13718_v58  ;;  %v8739_v58 = vld [vmem:[#allocation4 + $0xb0] sm:$0x1] }
 0x5d6   : > { %9078 = vmatprep.subr.bf16.mxu0 %v13723_v12  ;;  %v8854_v12 = vpack.c.bf16 %v8820_v35, %v8814_v6  ;;  %v8810_v21 = vrot.slane %v8739_v58, 1  ;;  %v13753_v35 = vld [vmem:[%s17185_s7 + $0x584] ss:$8 sps:$4 sm:$0xff]   ;;  %v13766_v58 = vld [vmem:[%s17185_s7 + $0x5d0] ss:$8 sps:$4 sm:$0xff]  }
 0x5d7   : > { %v13765_v6 = vld [vmem:[%s17185_s7 + $0x5c4] ss:$8 sps:$4 sm:$0xff]  }
 0x5d8   : > { %v8811_v52 = vsel %vm2904_vm3, %v8809_v30, %v8810_v21  ;;  %v9141_v30 = vld [vmem:[#allocation4 + $0x30] sm:$0x3]  ;;  %v9209_v21 = vrot.slane %v9143_v5, 2 }
 0x5d9   : > { %9079 = vmatpush1.bf16.msra.mxu0 %v13721_v56  ;;  %v8746_v56 = vld [vmem:[#allocation4 + $0xe8] sm:$0xfe]  ;;  %v8853_v60 = vpack.c.bf16 %v8817_v0, %v8811_v52  ;;  %v9224_v0 = vrot.slane %v9152_v10, 2  ;;  %v9204_v52 = vrot.slane %v9141_v30, 2  ;;  %v9166_v10 = vld [vmem:[#allocation4 + $0xf8] sm:$0x3] }
 0x5da   : > { %9080 = vmatprep.subr.bf16.mxu0 %v13726_v23  ;;  %v8831_v23 = vrot.slane %v8752_v11, 1  ;;  %v8824_v22 = vrot.slane %v8746_v56, 1  ;;  %v13762_v11 = vld [vmem:[%s17185_s7 + $0x5b4] ss:$8 sps:$4 sm:$0xff]   ;;  %v13769_v56 = vld [vmem:[%s17185_s7 + $0x5e0] ss:$8 sps:$4 sm:$0xff]  }
 0x5dc   : > { %v8832_v27 = vsel %vm2904_vm3, %v8830_v24, %v8831_v23  ;;  %v8826_v1 = vsel %vm2904_vm3, %v8824_v22, %v8825_v26  ;;  %v9154_v24 = vld [vmem:[#allocation4 + $0x98] sm:$0x3]  ;;  %v13774_v23 = vld [vmem:[%s17185_s7 + $0x5f4] ss:$8 sps:$4 sm:$0xff]   ;;  %v9148_v22 = vld [vmem:[#allocation4 + $0x68] sm:$0xfc] }
 0x5dd   : > { %9081 = vmatpush1.bf16.msra.mxu0 %v13724_v46  ;;  %v8749_v46 = vld [vmem:[#allocation4 + $0x100] sm:$0xfe]  ;;  %v9150_v26 = vld [vmem:[#allocation4 + $0x78] sm:$0x3] }
 0x5de   : > { %9468 = vmatprep.subr.bf16.mxu0 %v13729_v41  ;;  %v13739_v41 = vld [vmem:[%s17185_s7 + $0x540] ss:$8 sps:$4 sm:$0xff]   ;;  %v8827_v38 = vrot.slane %v8749_v46, 1  ;;  %v13772_v46 = vld [vmem:[%s17185_s7 + $0x5f0] ss:$8 sps:$4 sm:$0xff]   ;;  %v9219_v43 = vrot.slane %v9150_v26, 2 }
 0x5df   : > { %v9243_v26 = vrot.slane %v9166_v10, 2 }
 0x5e0   : > { %9083 = vmatmul.mubr.bf16.vlgmr.msra.gmra.mrb[32].mxu0 %v8849_v39  ;;  %v9140_v39 = vld [vmem:[#allocation4 + $0x28] sm:$0xfc]  ;;  %v8829_v57 = vsel %vm2904_vm3, %v8827_v38, %v8828_v32  ;;  %v9162_v32 = vld [vmem:[#allocation4 + $0xd8] sm:$0x3] }
 0x5e1   : > { %9092 = vmatprep.mubr.bf16.mxu0 %v8852_v18  ;;  %9469 = vmatpush1.bf16.msra.mxu0 %v13727_v19  ;;  %v8856_v19 = vpack.c.bf16 %v8832_v27, %v8826_v1  ;;  %v8821_v18 = vrot.slane %v8745_v37, 1  ;;  %v9206_v31 = vrot.slane %v9140_v39, 2  ;;  %v9225_v27 = vrot.slane %v9154_v24, 2  ;;  %v9153_v37 = vld [vmem:[#allocation4 + $0x90] sm:$0x3] }
 0x5e2   : > { %9470 = vmatprep.subr.bf16.mxu0 %v13732_v2  ;;  %v9212_v2 = vrot.slane %v9144_v33, 2  ;;  %v9218_v33 = vrot.slane %v9148_v22, 2  ;;  %v9160_v38 = vld [vmem:[#allocation4 + $0xc8] sm:$0xfc] }
 0x5e3   : > { %v9226_v1 = vsel %vm3473_vm4, %v9224_v0, %v9225_v27 }
 0x5e4   : > { %v9214_v63 = vsel %vm3473_vm4, %v9212_v2, %v9213_v59  ;;  %v9220_v20 = vsel %vm3473_vm4, %v9218_v33, %v9219_v43  ;;  %v13780_v2 = vld [vmem:[%s17185_s7 + $0x614] ss:$8 sps:$4 sm:$0xff]   ;;  %v9147_v59 = vld [vmem:[#allocation4 + $0x60] sm:$0xfc] }
 0x5e5   : > { %9471 = vmatpush1.bf16.msra.mxu0 %v13730_v55  ;;  %v8823_v55 = vsel %vm2904_vm3, %v8821_v18, %v8822_v48  ;;  %v9270_v18 = vpack.c.bf16 %v9226_v1, %v9220_v20  ;;  %v9163_v1 = vld [vmem:[#allocation4 + $0xe0] sm:$0xfc] }
 0x5e6   : > { %9472 = vmatprep.subr.bf16.mxu0 %v13735_v51  ;;  %v8855_v40 = vpack.c.bf16 %v8829_v57, %v8823_v55  ;;  %v9208_v51 = vsel %vm3473_vm4, %v9206_v31, %v9207_v42  ;;  %v9156_v31 = vld [vmem:[#allocation4 + $0xa8] sm:$0xfc]  ;;  %v9158_v42 = vld [vmem:[#allocation4 + $0xb8] sm:$0x3]  ;;  %v9236_v57 = vrot.slane %v9160_v38, 2 }
 0x5e7   : > { %v9268_v17 = vpack.c.bf16 %v9214_v63, %v9208_v51  ;;  %v9237_v63 = vrot.slane %v9162_v32, 2  ;;  %v13778_v55 = vld [vmem:[%s17185_s7 + $0x610] ss:$8 sps:$4 sm:$0xff]   ;;  %v13783_v51 = vld [vmem:[%s17185_s7 + $0x624] ss:$8 sps:$4 sm:$0xff]   ;;  %v9239_v32 = vrot.slane %v9163_v1, 2 }
 0x5e8   : > { %9093 = vmatmul.mubr.bf16.gmra.mrb[36].mxu0 %v8851_v9  ;;  %v13760_v9 = vld [vmem:[%s17185_s7 + $0x5b0] ss:$8 sps:$4 sm:$0xff]   ;;  %v13795_v20 = vld [vmem:[%s17185_s7 + $0x664] ss:$8 sps:$4 sm:$0xff]  }
 0x5e9   : > { %9102 = vmatprep.mubr.bf16.mxu0 %v8854_v12  ;;  %9473 = vmatpush1.bf16.msra.mxu0 %v13733_v8  ;;  %v13759_v8 = vld [vmem:[%s17185_s7 + $0x5a4] ss:$8 sps:$4 sm:$0xff]   ;;  %v13790_v38 = vld [vmem:[%s17185_s7 + $0x650] ss:$8 sps:$4 sm:$0xff]  }
 0x5ea   : > { %9474 = vmatprep.subr.bf16.mxu0 %v13738_v61  ;;  %v13763_v61 = vld [vmem:[%s17185_s7 + $0x5c0] ss:$8 sps:$4 sm:$0xff]   ;;  %v13771_v12 = vld [vmem:[%s17185_s7 + $0x5e4] ss:$8 sps:$4 sm:$0xff]  }
 0x5ed   : > { %9475 = vmatpush1.bf16.msra.mxu0 %v13736_v62  ;;  %v9139_v62 = vld [vmem:[#allocation4 + $0x20] sm:$0xfc] }
 0x5ee   : > { %9476 = vmatprep.subr.bf16.mxu0 %v13741_v25  ;;  %v9210_v25 = vrot.slane %v9145_v16, 2  ;;  %v9203_v13 = vrot.slane %v9139_v62, 2  ;;  %v13784_v62 = vld [vmem:[%s17185_s7 + $0x630] ss:$8 sps:$4 sm:$0xff]  }
 0x5f0   : > { %9103 = vmatmul.mubr.bf16.gmra.mrb[40].mxu0 %v8853_v60  ;;  %v9211_v60 = vsel %vm3473_vm4, %v9209_v21, %v9210_v25  ;;  %v9205_v54 = vsel %vm3473_vm4, %v9203_v13, %v9204_v52  ;;  %v13789_v25 = vld [vmem:[%s17185_s7 + $0x644] ss:$8 sps:$4 sm:$0xff]   ;;  %v9169_v13 = vld [vmem:[#allocation4 + $0x110] sm:$0x3] }
 0x5f1   : > { %9112 = vmatprep.mubr.bf16.mxu0 %v8856_v19  ;;  %9477 = vmatpush1.bf16.msra.mxu0 %v13739_v41  ;;  %v13777_v41 = vld [vmem:[%s17185_s7 + $0x604] ss:$8 sps:$4 sm:$0xff]   ;;  %v13775_v19 = vld [vmem:[%s17185_s7 + $0x600] ss:$8 sps:$4 sm:$0xff]   ;;  %v9267_v39 = vpack.c.bf16 %v9211_v60, %v9205_v54  ;;  %v13792_v60 = vld [vmem:[%s17185_s7 + $0x654] ss:$8 sps:$4 sm:$0xff]  }
 0x5f2   : > { %9478 = vmatprep.subr.bf16.mxu0 %v13744_v45  ;;  %v9151_v45 = vld [vmem:[#allocation4 + $0x80] sm:$0xfc] }
 0x5f3   : > { %v9221_v48 = vrot.slane %v9151_v45, 2  ;;  %v9165_v45 = vld [vmem:[#allocation4 + $0xf0] sm:$0x3] }
 0x5f5   : > { %9479 = vmatpush1.bf16.msra.mxu0 %v13742_v53  ;;  %v9149_v53 = vld [vmem:[#allocation4 + $0x70] sm:$0x3] }
 0x5f6   : > { %9480 = vmatprep.subr.bf16.mxu0 %v13747_v36  ;;  %v9222_v36 = vrot.slane %v9153_v37, 2 }
 0x5f8   : > { %9113 = vmatmul.mubr.bf16.gmra.mrb[44].mxu0 %v8855_v40  ;;  %v9216_v40 = vrot.slane %v9149_v53, 2 }
 0x5f9   : > { %9481 = vmatpush1.bf16.msra.mxu0 %v13745_v15  ;;  %9500 = vmatprep.mubr.bf16.mxu0 %v9268_v17  ;;  %v9215_v15 = vrot.slane %v9147_v59, 2  ;;  %v9231_v17 = vrot.slane %v9158_v42, 2  ;;  %v9561_v59 = vld [vmem:[#allocation4 + $0x68] sm:$0xff] }
 0x5fa   : > { %9482 = vmatprep.subr.bf16.mxu0 %v13750_v7  ;;  %v9230_v7 = vrot.slane %v9156_v31, 2  ;;  %v13798_v31 = vld [vmem:[%s17185_s7 + $0x674] ss:$8 sps:$4 sm:$0xff]  }
 0x5fd   : > { %9483 = vmatpush1.bf16.msra.mxu0 %v13748_v34  ;;  %v9223_v34 = vsel %vm3473_vm4, %v9221_v48, %v9222_v36  ;;  %v9559_v36 = vld [vmem:[#allocation4 + $0x48] sm:$0xff] }
 0x5fe   : > { %9484 = vmatprep.subr.bf16.mxu0 %v13753_v35  ;;  %v9238_v35 = vsel %vm3473_vm4, %v9236_v57, %v9237_v63  ;;  %v9575_v42 = vpack.c.bf16 %v9561_v59, %v9559_v36  ;;  %v13796_v57 = vld [vmem:[%s17185_s7 + $0x670] ss:$8 sps:$4 sm:$0xff]   ;;  %v13801_v63 = vld [vmem:[%s17185_s7 + $0x684] ss:$8 sps:$4 sm:$0xff]  }
 0x601   : > { %9485 = vmatpush1.bf16.msra.mxu0 %v13751_v4  ;;  %v9159_v4 = vld [vmem:[#allocation4 + $0xc0] sm:$0xfc] }
 0x602   : > { %9486 = vmatprep.subr.bf16.mxu0 %v13756_v29  ;;  %v9161_v29 = vld [vmem:[#allocation4 + $0xd0] sm:$0x3]  ;;  %v9233_v5 = vrot.slane %v9159_v4, 2  ;;  %v13811_v4 = vld [vmem:[%s17185_s7 + $0x6c0] ss:$8 sps:$4 sm:$0xff]  }
 0x603   : > { %v9234_v16 = vrot.slane %v9161_v29, 2  ;;  %v13816_v29 = vld [vmem:[%s17185_s7 + $0x6d4] ss:$8 sps:$4 sm:$0xff]  }
 0x605   : > { %9487 = vmatpush1.bf16.msra.mxu0 %v13754_v3  ;;  %v9217_v3 = vsel %vm3473_vm4, %v9215_v15, %v9216_v40  ;;  %v9235_v0 = vsel %vm3473_vm4, %v9233_v5, %v9234_v16  ;;  %v13804_v15 = vld [vmem:[%s17185_s7 + $0x694] ss:$8 sps:$4 sm:$0xff]   ;;  %v13802_v40 = vld [vmem:[%s17185_s7 + $0x690] ss:$8 sps:$4 sm:$0xff]   ;;  %v9563_v16 = vld [vmem:[#allocation4 + $0x88] sm:$0xff] }
 0x606   : > { %9488 = vmatprep.subr.bf16.mxu0 %v13759_v8  ;;  %v13781_v8 = vld [vmem:[%s17185_s7 + $0x620] ss:$8 sps:$4 sm:$0xff]  }
 0x609   : > { %9489 = vmatpush1.bf16.msra.mxu0 %v13757_v47  ;;  %v9168_v47 = vld [vmem:[#allocation4 + $0x108] sm:$0xfc] }
 0x60a   : > { %9490 = vmatprep.subr.bf16.mxu0 %v13762_v11  ;;  %v9170_v11 = vld [vmem:[#allocation4 + $0x118] sm:$0x3]  ;;  %v9248_v24 = vrot.slane %v9168_v47, 2  ;;  %v13817_v47 = vld [vmem:[%s17185_s7 + $0x6e0] ss:$8 sps:$4 sm:$0xff]  }
 0x60d   : > { %9491 = vmatpush1.bf16.msra.mxu0 %v13760_v9  ;;  %v9269_v9 = vpack.c.bf16 %v9223_v34, %v9217_v3  ;;  %v13808_v34 = vld [vmem:[%s17185_s7 + $0x6b0] ss:$8 sps:$4 sm:$0xff]  }
 0x60e   : > { %9492 = vmatprep.subr.bf16.mxu0 %v13765_v6  ;;  %v9232_v6 = vsel %vm3473_vm4, %v9230_v7, %v9231_v17  ;;  %v13805_v7 = vld [vmem:[%s17185_s7 + $0x6a0] ss:$8 sps:$4 sm:$0xff]   ;;  %v13810_v17 = vld [vmem:[%s17185_s7 + $0x6b4] ss:$8 sps:$4 sm:$0xff]   ;;  %v13814_v3 = vld [vmem:[%s17185_s7 + $0x6d0] ss:$8 sps:$4 sm:$0xff]  }
 0x611   : > { %9493 = vmatpush1.bf16.msra.mxu0 %v13763_v61  ;;  %v13786_v61 = vld [vmem:[%s17185_s7 + $0x634] ss:$8 sps:$4 sm:$0xff]  }
 0x612   : > { %9494 = vmatprep.subr.bf16.mxu0 %v13768_v14  ;;  %v9155_v14 = vld [vmem:[#allocation4 + $0xa0] sm:$0xfc] }
 0x613   : > { %v9227_v30 = vrot.slane %v9155_v14, 2  ;;  %v9565_v14 = vld [vmem:[#allocation4 + $0xa8] sm:$0xff] }
 0x614   : > { %v9577_v10 = vpack.c.bf16 %v9565_v14, %v9563_v16  ;;  %v9864_v14 = vld [vmem:[#allocation4 + $0x40] sm:$0xfe]  ;;  %v9873_v16 = vld [vmem:[#allocation4 + $0x88] sm:$0xfe] }
 0x615   : > { %9495 = vmatpush1.bf16.msra.mxu0 %v13766_v58  ;;  %v9157_v58 = vld [vmem:[#allocation4 + $0xb0] sm:$0x3] }
 0x616   : > { %9496 = vmatprep.subr.bf16.mxu0 %v13771_v12  ;;  %v9272_v12 = vpack.c.bf16 %v9238_v35, %v9232_v6  ;;  %v9228_v21 = vrot.slane %v9157_v58, 2  ;;  %v13813_v35 = vld [vmem:[%s17185_s7 + $0x6c4] ss:$8 sps:$4 sm:$0xff]  }
 0x617   : > { %v13825_v6 = vld [vmem:[%s17185_s7 + $0x704] ss:$8 sps:$4 sm:$0xff]  }
 0x618   : > { %v9229_v52 = vsel %vm3473_vm4, %v9227_v30, %v9228_v21  ;;  %v9558_v58 = vld [vmem:[#allocation4 + $0x40] sm:$0xff]  ;;  %v9569_v30 = vld [vmem:[#allocation4 + $0xe8] sm:$0xff] }
 0x619   : > { %9497 = vmatpush1.bf16.msra.mxu0 %v13769_v56  ;;  %v9164_v56 = vld [vmem:[#allocation4 + $0xe8] sm:$0xfc]  ;;  %v9271_v33 = vpack.c.bf16 %v9235_v0, %v9229_v52  ;;  %v9562_v21 = vld [vmem:[#allocation4 + $0x80] sm:$0xff]  ;;  %v13834_v0 = vld [vmem:[%s17185_s7 + $0x734] ss:$8 sps:$4 sm:$0xff]  }
 0x61a   : > { %9498 = vmatprep.subr.bf16.mxu0 %v13774_v23  ;;  %v9249_v23 = vrot.slane %v9170_v11, 2  ;;  %v9242_v22 = vrot.slane %v9164_v56, 2  ;;  %v13822_v11 = vld [vmem:[%s17185_s7 + $0x6f4] ss:$8 sps:$4 sm:$0xff]   ;;  %v9568_v52 = vld [vmem:[#allocation4 + $0xe0] sm:$0xff] }
 0x61b   : > { %v13828_v56 = vld [vmem:[%s17185_s7 + $0x714] ss:$8 sps:$4 sm:$0xff]  }
 0x61c   : > { %v9250_v27 = vsel %vm3473_vm4, %v9248_v24, %v9249_v23  ;;  %v9244_v43 = vsel %vm3473_vm4, %v9242_v22, %v9243_v26  ;;  %v13826_v24 = vld [vmem:[%s17185_s7 + $0x710] ss:$8 sps:$4 sm:$0xff]   ;;  %v13831_v23 = vld [vmem:[%s17185_s7 + $0x724] ss:$8 sps:$4 sm:$0xff]  }
 0x61d   : > { %9499 = vmatpush1.bf16.msra.mxu0 %v13772_v46  ;;  %v9167_v46 = vld [vmem:[#allocation4 + $0x100] sm:$0xfc]  ;;  %v9274_v37 = vpack.c.bf16 %v9250_v27, %v9244_v43  ;;  %v9567_v26 = vld [vmem:[#allocation4 + $0xc8] sm:$0xff] }
 0x61e   : > { %9775 = vmatprep.subr.bf16.mxu0 %v13777_v41  ;;  %v13787_v41 = vld [vmem:[%s17185_s7 + $0x640] ss:$8 sps:$4 sm:$0xff]   ;;  %v9245_v54 = vrot.slane %v9167_v46, 2  ;;  %v9579_v27 = vpack.c.bf16 %v9569_v30, %v9567_v26  ;;  %v13832_v46 = vld [vmem:[%s17185_s7 + $0x730] ss:$8 sps:$4 sm:$0xff]  }
 0x61f   : > { %v9869_v43 = vld [vmem:[#allocation4 + $0x68] sm:$0xfe] }
 0x620   : > { %9501 = vmatmul.mubr.bf16.vlgmr.msra.gmra.mrb[32].mxu0 %v9267_v39  ;;  %v9240_v39 = vrot.slane %v9165_v45, 2  ;;  %v13840_v45 = vld [vmem:[%s17185_s7 + $0x754] ss:$8 sps:$4 sm:$0xff]  }
 0x621   : > { %9510 = vmatprep.mubr.bf16.mxu0 %v9270_v18  ;;  %9776 = vmatpush1.bf16.msra.mxu0 %v13775_v19  ;;  %v9246_v19 = vrot.slane %v9169_v13, 2  ;;  %v13793_v18 = vld [vmem:[%s17185_s7 + $0x660] ss:$8 sps:$4 sm:$0xff]   ;;  %v13837_v13 = vld [vmem:[%s17185_s7 + $0x744] ss:$8 sps:$4 sm:$0xff]  }
 0x622   : > { %9777 = vmatprep.subr.bf16.mxu0 %v13780_v2  ;;  %v9241_v53 = vsel %vm3473_vm4, %v9239_v32, %v9240_v39  ;;  %v9937_v32 = vrot.slane %v9869_v43, 1 }
 0x623   : > { %v9247_v2 = vsel %vm3473_vm4, %v9245_v54, %v9246_v19  ;;  %v9865_v19 = vld [vmem:[#allocation4 + $0x48] sm:$0xfe] }
 0x624   : > { %v9273_v48 = vpack.c.bf16 %v9247_v2, %v9241_v53  ;;  %v13843_v2 = vld [vmem:[%s17185_s7 + $0x764] ss:$8 sps:$4 sm:$0xff]   ;;  %v9931_v59 = vrot.slane %v9865_v19, 1 }
 0x625   : > { %9778 = vmatpush1.bf16.msra.mxu0 %v13778_v55  ;;  %v13799_v55 = vld [vmem:[%s17185_s7 + $0x680] ss:$8 sps:$4 sm:$0xff]  }
 0x626   : > { %9779 = vmatprep.subr.bf16.mxu0 %v13783_v51  ;;  %v13807_v51 = vld [vmem:[%s17185_s7 + $0x6a4] ss:$8 sps:$4 sm:$0xff]  }
 0x628   : > { %9511 = vmatmul.mubr.bf16.gmra.mrb[36].mxu0 %v9269_v9  ;;  %v13820_v9 = vld [vmem:[%s17185_s7 + $0x6f0] ss:$8 sps:$4 sm:$0xff]  }
 0x629   : > { %9520 = vmatprep.mubr.bf16.mxu0 %v9272_v12  ;;  %9780 = vmatpush1.bf16.msra.mxu0 %v13781_v8  ;;  %v13819_v8 = vld [vmem:[%s17185_s7 + $0x6e4] ss:$8 sps:$4 sm:$0xff]   ;;  %v13823_v12 = vld [vmem:[%s17185_s7 + $0x700] ss:$8 sps:$4 sm:$0xff]  }
 0x62a   : > { %9781 = vmatprep.subr.bf16.mxu0 %v13786_v61  ;;  %v9560_v61 = vld [vmem:[#allocation4 + $0x60] sm:$0xff] }
 0x62b   : > { %v9574_v5 = vpack.c.bf16 %v9560_v61, %v9558_v58  ;;  %v13870_v61 = vld [vmem:[%s17185_s7 + $0x7f4] ss:$8 sps:$4 sm:$0xff]   ;;  %v9866_v58 = vld [vmem:[#allocation4 + $0x50] sm:$0x1] }
 0x62c   : > { %v9929_v30 = vrot.slane %v9866_v58, 1 }
 0x62d   : > { %9782 = vmatpush1.bf16.msra.mxu0 %v13784_v62  ;;  %v9564_v62 = vld [vmem:[#allocation4 + $0xa0] sm:$0xff] }
 0x62e   : > { %9783 = vmatprep.subr.bf16.mxu0 %v13789_v25  ;;  %v13829_v25 = vld [vmem:[%s17185_s7 + $0x720] ss:$8 sps:$4 sm:$0xff]   ;;  %v9576_v22 = vpack.c.bf16 %v9564_v62, %v9562_v21  ;;  %v9928_v62 = vrot.slane %v9864_v14, 1  ;;  %v13873_v21 = vld [vmem:[%s17185_s7 + $0x804] ss:$8 sps:$4 sm:$0xff]  }
 0x62f   : > { %v13880_v14 = vld [vmem:[%s17185_s7 + $0x830] ss:$8 sps:$4 sm:$0xff]  }
 0x630   : > { %9521 = vmatmul.mubr.bf16.gmra.mrb[40].mxu0 %v9271_v33  ;;  %v13835_v33 = vld [vmem:[%s17185_s7 + $0x740] ss:$8 sps:$4 sm:$0xff]  }
 0x631   : > { %9530 = vmatprep.mubr.bf16.mxu0 %v9274_v37  ;;  %9784 = vmatpush1.bf16.msra.mxu0 %v13787_v41  ;;  %v9566_v41 = vld [vmem:[#allocation4 + $0xc0] sm:$0xff]  ;;  %v13941_v37 = vld [vmem:[#allocation3 + $0x8] sm:$0xff] }
 0x632   : > { %9785 = vmatprep.subr.bf16.mxu0 %v13792_v60  ;;  %v9871_v60 = vld [vmem:[#allocation4 + $0x78] sm:$0x1]  ;;  %v9578_v1 = vpack.c.bf16 %v9568_v52, %v9566_v41  ;;  %v9581_v54 = vpack.c.bf16 %v13941_v37, %v16532_v44  ;;  %v13871_v52 = vld [vmem:[%s17185_s7 + $0x800] ss:$8 sps:$4 sm:$0xff]  }
 0x633   : > { %v9938_v39 = vrot.slane %v9871_v60, 1  ;;  %v9885_v41 = vld [vmem:[#allocation4 + $0xe8] sm:$0xfe] }
 0x635   : > { %9786 = vmatpush1.bf16.msra.mxu0 %v13790_v38  ;;  %v9867_v38 = vld [vmem:[#allocation4 + $0x58] sm:$0x1]  ;;  %v9939_v44 = vsel %vm2904_vm3, %v9937_v32, %v9938_v39  ;;  %v9881_v32 = vld [vmem:[#allocation4 + $0xc8] sm:$0xfe] }
 0x636   : > { %9787 = vmatprep.subr.bf16.mxu0 %v13795_v20  ;;  %v13838_v20 = vld [vmem:[%s17185_s7 + $0x750] ss:$8 sps:$4 sm:$0xff]   ;;  %v9932_v53 = vrot.slane %v9867_v38, 1 }
 0x637   : > { %v9883_v39 = vld [vmem:[#allocation4 + $0xd8] sm:$0x1] }
 0x638   : > { %9531 = vmatmul.mubr.bf16.gmra.mrb[44].mxu0 %v9273_v48  ;;  %v9580_v48 = vpack.c.bf16 %v13941_v37, %v16551_v28  ;;  %v9933_v36 = vsel %vm2904_vm3, %v9931_v59, %v9932_v53  ;;  %v13849_v28 = vld [vmem:[%s17185_s7 + $0x784] ss:$8 sps:$4 sm:$0xff]   ;;  %v9874_v37 = vld [vmem:[#allocation4 + $0x90] sm:$0x1] }
 0x639   : > { %9788 = vmatpush1.bf16.msra.mxu0 %v13793_v18  ;;  %9807 = vmatprep.mubr.bf16.mxu0 %v9575_v42  ;;  %v13841_v18 = vld [vmem:[%s17185_s7 + $0x760] ss:$8 sps:$4 sm:$0xff]   ;;  %v9993_v42 = vpack.c.bf16 %v9939_v44, %v9933_v36  ;;  %v13874_v59 = vld [vmem:[%s17185_s7 + $0x810] ss:$8 sps:$4 sm:$0xff]   ;;  %v9941_v44 = vrot.slane %v9874_v37, 1  ;;  %v9956_v36 = vrot.slane %v9883_v39, 1 }
 0x63a   : > { %9789 = vmatprep.subr.bf16.mxu0 %v13798_v31  ;;  %v13846_v31 = vld [vmem:[%s17185_s7 + $0x774] ss:$8 sps:$4 sm:$0xff]   ;;  %v13886_v37 = vld [vmem:[%s17185_s7 + $0x850] ss:$8 sps:$4 sm:$0xff]  }
 0x63d   : > { %9790 = vmatpush1.bf16.msra.mxu0 %v13796_v57  ;;  %v13844_v57 = vld [vmem:[%s17185_s7 + $0x770] ss:$8 sps:$4 sm:$0xff]  }
 0x63e   : > { %9791 = vmatprep.subr.bf16.mxu0 %v13801_v63  ;;  %v13847_v63 = vld [vmem:[%s17185_s7 + $0x780] ss:$8 sps:$4 sm:$0xff]  }
 0x641   : > { %9792 = vmatpush1.bf16.msra.mxu0 %v13799_v55  ;;  %v13852_v55 = vld [vmem:[%s17185_s7 + $0x794] ss:$8 sps:$4 sm:$0xff]  }
 0x642   : > { %9793 = vmatprep.subr.bf16.mxu0 %v13804_v15  ;;  %v13850_v15 = vld [vmem:[%s17185_s7 + $0x790] ss:$8 sps:$4 sm:$0xff]  }
 0x645   : > { %9794 = vmatpush1.bf16.msra.mxu0 %v13802_v40  ;;  %v13855_v40 = vld [vmem:[%s17185_s7 + $0x7a4] ss:$8 sps:$4 sm:$0xff]  }
 0x646   : > { %9795 = vmatprep.subr.bf16.mxu0 %v13807_v51  ;;  %v13853_v51 = vld [vmem:[%s17185_s7 + $0x7a0] ss:$8 sps:$4 sm:$0xff]  }
 0x649   : > { %9796 = vmatpush1.bf16.msra.mxu0 %v13805_v7  ;;  %v13858_v7 = vld [vmem:[%s17185_s7 + $0x7b4] ss:$8 sps:$4 sm:$0xff]  }
 0x64a   : > { %9797 = vmatprep.subr.bf16.mxu0 %v13810_v17  ;;  %v13856_v17 = vld [vmem:[%s17185_s7 + $0x7b0] ss:$8 sps:$4 sm:$0xff]  }
 0x64d   : > { %9798 = vmatpush1.bf16.msra.mxu0 %v13808_v34  ;;  %v13861_v34 = vld [vmem:[%s17185_s7 + $0x7c4] ss:$8 sps:$4 sm:$0xff]  }
 0x64e   : > { %9799 = vmatprep.subr.bf16.mxu0 %v13813_v35  ;;  %v13859_v35 = vld [vmem:[%s17185_s7 + $0x7c0] ss:$8 sps:$4 sm:$0xff]  }
 0x651   : > { %9800 = vmatpush1.bf16.msra.mxu0 %v13811_v4  ;;  %v13864_v4 = vld [vmem:[%s17185_s7 + $0x7d4] ss:$8 sps:$4 sm:$0xff]  }
 0x652   : > { %9801 = vmatprep.subr.bf16.mxu0 %v13816_v29  ;;  %v13862_v29 = vld [vmem:[%s17185_s7 + $0x7d0] ss:$8 sps:$4 sm:$0xff]  }
 0x655   : > { %9802 = vmatpush1.bf16.msra.mxu0 %v13814_v3  ;;  %v13867_v3 = vld [vmem:[%s17185_s7 + $0x7e4] ss:$8 sps:$4 sm:$0xff]  }
 0x656   : > { %9803 = vmatprep.subr.bf16.mxu0 %v13819_v8  ;;  %v9868_v8 = vld [vmem:[#allocation4 + $0x60] sm:$0xfe] }
 0x659   : > { %9804 = vmatpush1.bf16.msra.mxu0 %v13817_v47  ;;  %v9870_v47 = vld [vmem:[#allocation4 + $0x70] sm:$0x1] }
 0x65a   : > { %9805 = vmatprep.subr.bf16.mxu0 %v13822_v11  ;;  %v13865_v11 = vld [vmem:[%s17185_s7 + $0x7e0] ss:$8 sps:$4 sm:$0xff]  }
 0x65d   : > { %9806 = vmatpush1.bf16.msra.mxu0 %v13820_v9  ;;  %v9877_v9 = vld [vmem:[#allocation4 + $0xa8] sm:$0xfe] }
 0x65e   : > { %10193 = vmatprep.subr.bf16.mxu0 %v13825_v6  ;;  %v9879_v6 = vld [vmem:[#allocation4 + $0xb8] sm:$0x1] }
 0x660   : > { %9808 = vmatmul.mubr.bf16.vlgmr.msra.gmra.mrb[32].mxu0 %v9574_v5  ;;  %v9935_v5 = vrot.slane %v9870_v47, 1 }
 0x661   : > { %9817 = vmatprep.mubr.bf16.mxu0 %v9577_v10  ;;  %10194 = vmatpush1.bf16.msra.mxu0 %v13823_v12  ;;  %v9934_v12 = vrot.slane %v9868_v8, 1  ;;  %v9949_v10 = vrot.slane %v9877_v9, 1 }
 0x662   : > { %10195 = vmatprep.subr.bf16.mxu0 %v13828_v56  ;;  %v9875_v56 = vld [vmem:[#allocation4 + $0x98] sm:$0x1] }
 0x663   : > { %v9936_v26 = vsel %vm2904_vm3, %v9934_v12, %v9935_v5  ;;  %v13885_v5 = vld [vmem:[%s17185_s7 + $0x844] ss:$8 sps:$4 sm:$0xff]  }
 0x665   : > { %10196 = vmatpush1.bf16.msra.mxu0 %v13826_v24  ;;  %v9950_v24 = vrot.slane %v9879_v6, 1 }
 0x666   : > { %10197 = vmatprep.subr.bf16.mxu0 %v13831_v23  ;;  %v13868_v23 = vld [vmem:[%s17185_s7 + $0x7f0] ss:$8 sps:$4 sm:$0xff]  }
 0x668   : > { %9818 = vmatmul.mubr.bf16.gmra.mrb[36].mxu0 %v9576_v22  ;;  %v9944_v22 = vrot.slane %v9875_v56, 1  ;;  %v9892_v56 = vld [vmem:[#allocation4 + $0x120] sm:$0xfe] }
 0x669   : > { %9827 = vmatprep.mubr.bf16.mxu0 %v9579_v27  ;;  %10198 = vmatpush1.bf16.msra.mxu0 %v13829_v25  ;;  %v9943_v25 = vrot.slane %v9873_v16, 1  ;;  %v9876_v27 = vld [vmem:[#allocation4 + $0xa0] sm:$0xfe] }
 0x66a   : > { %10199 = vmatprep.subr.bf16.mxu0 %v13834_v0  ;;  %v9951_v0 = vsel %vm2904_vm3, %v9949_v10, %v9950_v24  ;;  %v9946_v19 = vrot.slane %v9876_v27, 1  ;;  %v9894_v10 = vld [vmem:[#allocation4 + $0x130] sm:$0x1]  ;;  %v13888_v27 = vld [vmem:[%s17185_s7 + $0x854] ss:$8 sps:$4 sm:$0xff]  }
 0x66b   : > { %v9945_v60 = vsel %vm2904_vm3, %v9943_v25, %v9944_v22  ;;  %v13883_v25 = vld [vmem:[%s17185_s7 + $0x840] ss:$8 sps:$4 sm:$0xff]  }
 0x66c   : > { %v10287_v22 = vld [vmem:[#allocation4 + $0x68] sm:$0xfc] }
 0x66d   : > { %10200 = vmatpush1.bf16.msra.mxu0 %v13832_v46  ;;  %v9878_v46 = vld [vmem:[#allocation4 + $0xb0] sm:$0x1] }
 0x66e   : > { %10201 = vmatprep.subr.bf16.mxu0 %v13837_v13  ;;  %v9930_v13 = vsel %vm2904_vm3, %v9928_v62, %v9929_v30  ;;  %v9947_v38 = vrot.slane %v9878_v46, 1  ;;  %v9888_v62 = vld [vmem:[#allocation4 + $0x100] sm:$0xfe]  ;;  %v9890_v30 = vld [vmem:[#allocation4 + $0x110] sm:$0x1]  ;;  %v9970_v46 = vrot.slane %v9892_v56, 1 }
 0x66f   : > { %v9992_v43 = vpack.c.bf16 %v9936_v26, %v9930_v13  ;;  %v10289_v26 = vld [vmem:[#allocation4 + $0x78] sm:$0x3]  ;;  %v9971_v13 = vrot.slane %v9894_v10, 1 }
 0x670   : > { %9828 = vmatmul.mubr.bf16.gmra.mrb[40].mxu0 %v9578_v1  ;;  %v13876_v1 = vld [vmem:[%s17185_s7 + $0x814] ss:$8 sps:$4 sm:$0xff]  }
 0x671   : > { %9837 = vmatprep.mubr.bf16.mxu0 %v9581_v54  ;;  %10202 = vmatpush1.bf16.msra.mxu0 %v13835_v33  ;;  %v9887_v33 = vld [vmem:[#allocation4 + $0xf8] sm:$0x1]  ;;  %v9995_v54 = vpack.c.bf16 %v9951_v0, %v9945_v60  ;;  %v9972_v39 = vsel %vm2904_vm3, %v9970_v46, %v9971_v13  ;;  %v13920_v46 = vld [vmem:[%s17187_s9] sm:$0xff]  }
 0x672   : > { %10203 = vmatprep.subr.bf16.mxu0 %v13840_v45  ;;  %v9872_v45 = vld [vmem:[#allocation4 + $0x80] sm:$0xfe]  ;;  %v10285_v60 = vld [vmem:[#allocation4 + $0x58] sm:$0x3] }
 0x673   : > { %v9940_v53 = vrot.slane %v9872_v45, 1  ;;  %v10356_v45 = vrot.slane %v10289_v26, 2 }
 0x675   : > { %10204 = vmatpush1.bf16.msra.mxu0 %v13838_v20  ;;  %v9961_v20 = vrot.slane %v9885_v41, 1  ;;  %v9964_v41 = vrot.slane %v9888_v62, 1  ;;  %v13919_v62 = vld [vmem:[%s17187_s9 + $0x40] sm:$0xff]  }
 0x676   : > { %10205 = vmatprep.subr.bf16.mxu0 %v13843_v2  ;;  %v9962_v2 = vrot.slane %v9887_v33, 1  ;;  %v9965_v33 = vrot.slane %v9890_v30, 1 }
 0x678   : > { %9838 = vmatmul.mubr.bf16.gmra.mrb[44].mxu0 %v9580_v48  ;;  %v9955_v48 = vrot.slane %v9881_v32, 1  ;;  %v9966_v32 = vsel %vm2904_vm3, %v9964_v41, %v9965_v33  ;;  %v10290_v41 = vld [vmem:[#allocation4 + $0x80] sm:$0xfc]  ;;  %v10292_v33 = vld [vmem:[#allocation4 + $0x90] sm:$0x3] }
 0x679   : > { %10206 = vmatpush1.bf16.msra.mxu0 %v13841_v18  ;;  %10225 = vmatprep.mubr.bf16.mxu0 %v9993_v42  ;;  %v13879_v18 = vld [vmem:[%s17185_s7 + $0x824] ss:$8 sps:$4 sm:$0xff]  }
 0x67a   : > { %10207 = vmatprep.subr.bf16.mxu0 %v13846_v31  ;;  %v9948_v31 = vsel %vm2904_vm3, %v9946_v19, %v9947_v38  ;;  %v9893_v42 = vld [vmem:[#allocation4 + $0x128] sm:$0xfe]  ;;  %v10350_v38 = vrot.slane %v10285_v60, 2 }
 0x67b   : > { %v9973_v6 = vrot.slane %v9893_v42, 1  ;;  %v13900_v42 = vld [vmem:[%s17185_s7 + $0x894] ss:$8 sps:$4 sm:$0xff]  }
 0x67d   : > { %10208 = vmatpush1.bf16.msra.mxu0 %v13844_v57  ;;  %v9963_v57 = vsel %vm2904_vm3, %v9961_v20, %v9962_v2  ;;  %v13889_v2 = vld [vmem:[%s17185_s7 + $0x860] ss:$8 sps:$4 sm:$0xff]  }
 0x67e   : > { %10209 = vmatprep.subr.bf16.mxu0 %v13849_v28  ;;  %v9884_v28 = vld [vmem:[#allocation4 + $0xe0] sm:$0xfe] }
 0x67f   : > { %v9958_v8 = vrot.slane %v9884_v28, 1  ;;  %v13903_v28 = vld [vmem:[%s17185_s7 + $0x8a4] ss:$8 sps:$4 sm:$0xff]  }
 0x681   : > { %10210 = vmatpush1.bf16.msra.mxu0 %v13847_v63  ;;  %v9886_v63 = vld [vmem:[#allocation4 + $0xf0] sm:$0x1] }
 0x682   : > { %10211 = vmatprep.subr.bf16.mxu0 %v13852_v55  ;;  %v9895_v55 = vld [vmem:[#allocation4 + $0x138] sm:$0x1]  ;;  %v9959_v47 = vrot.slane %v9886_v63, 1  ;;  %v13901_v63 = vld [vmem:[%s17185_s7 + $0x8a0] ss:$8 sps:$4 sm:$0xff]  }
 0x684   : > { %v9960_v16 = vsel %vm2904_vm3, %v9958_v8, %v9959_v47  ;;  %v10297_v8 = vld [vmem:[#allocation4 + $0xb8] sm:$0x3]  ;;  %v13918_v47 = vld [vmem:[%s17185_s7 + $0x8f4] ss:$8 sps:$4 sm:$0xff]  }
 0x685   : > { %10212 = vmatpush1.bf16.msra.mxu0 %v13850_v15  ;;  %v9942_v15 = vsel %vm2904_vm3, %v9940_v53, %v9941_v44  ;;  %v13894_v44 = vld [vmem:[%s17185_s7 + $0x874] ss:$8 sps:$4 sm:$0xff]  }
 0x686   : > { %10213 = vmatprep.subr.bf16.mxu0 %v13855_v40  ;;  %v13877_v40 = vld [vmem:[%s17185_s7 + $0x820] ss:$8 sps:$4 sm:$0xff]  }
 0x689   : > { %10214 = vmatpush1.bf16.msra.mxu0 %v13853_v51  ;;  %v9889_v51 = vld [vmem:[#allocation4 + $0x108] sm:$0xfe] }
 0x68a   : > { %10215 = vmatprep.subr.bf16.mxu0 %v13858_v7  ;;  %v9891_v7 = vld [vmem:[#allocation4 + $0x118] sm:$0x1] }
 0x68b   : > { %v9968_v9 = vrot.slane %v9891_v7, 1  ;;  %v13912_v7 = vld [vmem:[%s17185_s7 + $0x8d4] ss:$8 sps:$4 sm:$0xff]  }
 0x68d   : > { %10216 = vmatpush1.bf16.msra.mxu0 %v13856_v17  ;;  %v9994_v17 = vpack.c.bf16 %v9948_v31, %v9942_v15  ;;  %v13895_v31 = vld [vmem:[%s17185_s7 + $0x880] ss:$8 sps:$4 sm:$0xff]   ;;  %v13904_v15 = vld [vmem:[%s17185_s7 + $0x8b0] ss:$8 sps:$4 sm:$0xff]  }
 0x68e   : > { %10217 = vmatprep.subr.bf16.mxu0 %v13861_v34  ;;  %v9957_v34 = vsel %vm2904_vm3, %v9955_v48, %v9956_v36  ;;  %v13892_v48 = vld [vmem:[%s17185_s7 + $0x870] ss:$8 sps:$4 sm:$0xff]   ;;  %v13897_v36 = vld [vmem:[%s17185_s7 + $0x884] ss:$8 sps:$4 sm:$0xff]  }
 0x691   : > { %10218 = vmatpush1.bf16.msra.mxu0 %v13859_v35  ;;  %v13882_v35 = vld [vmem:[%s17185_s7 + $0x834] ss:$8 sps:$4 sm:$0xff]  }
 0x692   : > { %10219 = vmatprep.subr.bf16.mxu0 %v13864_v4  ;;  %v9880_v4 = vld [vmem:[#allocation4 + $0xc0] sm:$0xfe] }
 0x693   : > { %v9952_v58 = vrot.slane %v9880_v4, 1  ;;  %v10288_v4 = vld [vmem:[#allocation4 + $0x70] sm:$0x3] }
 0x695   : > { %10220 = vmatpush1.bf16.msra.mxu0 %v13862_v29  ;;  %v9882_v29 = vld [vmem:[#allocation4 + $0xd0] sm:$0x1] }
 0x696   : > { %10221 = vmatprep.subr.bf16.mxu0 %v13867_v3  ;;  %v9997_v3 = vpack.c.bf16 %v9963_v57, %v9957_v34  ;;  %v9953_v12 = vrot.slane %v9882_v29, 1  ;;  %v13898_v57 = vld [vmem:[%s17185_s7 + $0x890] ss:$8 sps:$4 sm:$0xff]   ;;  %v13915_v34 = vld [vmem:[%s17185_s7 + $0x8e4] ss:$8 sps:$4 sm:$0xff]  }
 0x697   : > { %v13913_v29 = vld [vmem:[%s17185_s7 + $0x8e0] ss:$8 sps:$4 sm:$0xff]  }
 0x699   : > { %10222 = vmatpush1.bf16.msra.mxu0 %v13865_v11  ;;  %v9967_v11 = vrot.slane %v9889_v51, 1  ;;  %v13907_v51 = vld [vmem:[%s17185_s7 + $0x8c0] ss:$8 sps:$4 sm:$0xff]  }
 0x69a   : > { %10223 = vmatprep.subr.bf16.mxu0 %v13870_v61  ;;  %v9974_v61 = vrot.slane %v9895_v55, 1  ;;  %v13906_v55 = vld [vmem:[%s17185_s7 + $0x8b4] ss:$8 sps:$4 sm:$0xff]  }
 0x69b   : > { %v9969_v24 = vsel %vm2904_vm3, %v9967_v11, %v9968_v9  ;;  %v10282_v11 = vld [vmem:[#allocation4 + $0x40] sm:$0xfc]  ;;  %v10284_v9 = vld [vmem:[#allocation4 + $0x50] sm:$0x3] }
 0x69c   : > { %v10346_v56 = vrot.slane %v10282_v11, 2  ;;  %v10347_v10 = vrot.slane %v10284_v9, 2 }
 0x69d   : > { %10224 = vmatpush1.bf16.msra.mxu0 %v13868_v23  ;;  %v9975_v23 = vsel %vm2904_vm3, %v9973_v6, %v9974_v61  ;;  %v10353_v61 = vrot.slane %v10288_v4, 2 }
 0x69e   : > { %10611 = vmatprep.subr.bf16.mxu0 %v13873_v21  ;;  %v9954_v21 = vsel %vm2904_vm3, %v9952_v58, %v9953_v12  ;;  %v10293_v58 = vld [vmem:[#allocation4 + $0x98] sm:$0x3]  ;;  %v10348_v26 = vsel %vm3473_vm4, %v10346_v56, %v10347_v10  ;;  %v10310_v56 = vld [vmem:[#allocation4 + $0x120] sm:$0xfc]  ;;  %v10312_v10 = vld [vmem:[#allocation4 + $0x130] sm:$0x3] }
 0x69f   : > { %v9996_v0 = vpack.c.bf16 %v9960_v16, %v9954_v21  ;;  %v13916_v16 = vld [vmem:[%s17185_s7 + $0x8f0] ss:$8 sps:$4 sm:$0xff]  }
 0x6a0   : > { %10226 = vmatmul.mubr.bf16.vlgmr.msra.gmra.mrb[32].mxu0 %v9992_v43  ;;  %v10283_v43 = vld [vmem:[#allocation4 + $0x48] sm:$0xfc] }
 0x6a1   : > { %10235 = vmatprep.mubr.bf16.mxu0 %v9995_v54  ;;  %10612 = vmatpush1.bf16.msra.mxu0 %v13871_v52  ;;  %v9999_v52 = vpack.c.bf16 %v9975_v23, %v9969_v24  ;;  %v13891_v54 = vld [vmem:[%s17185_s7 + $0x864] ss:$8 sps:$4 sm:$0xff]   ;;  %v10349_v19 = vrot.slane %v10283_v43, 2  ;;  %v10362_v23 = vrot.slane %v10293_v58, 2 }
 0x6a2   : > { %10613 = vmatprep.subr.bf16.mxu0 %v13876_v1  ;;  %v10355_v1 = vrot.slane %v10287_v22, 2  ;;  %v10296_v22 = vld [vmem:[#allocation4 + $0xb0] sm:$0x3]  ;;  %v13921_v43 = vld [vmem:[%s17187_s9 + $0x48] sm:$0xff]   ;;  %v10306_v58 = vld [vmem:[#allocation4 + $0x100] sm:$0xfc] }
 0x6a3   : > { %v10351_v53 = vsel %vm3473_vm4, %v10349_v19, %v10350_v38 }
 0x6a4   : > { %v10357_v20 = vsel %vm3473_vm4, %v10355_v1, %v10356_v45  ;;  %v10365_v45 = vrot.slane %v10296_v22, 2  ;;  %v10388_v22 = vrot.slane %v10310_v56, 2 }
 0x6a5   : > { %10614 = vmatpush1.bf16.msra.mxu0 %v13874_v59  ;;  %v9998_v59 = vpack.c.bf16 %v9972_v39, %v9966_v32  ;;  %v10358_v32 = vrot.slane %v10290_v41, 2  ;;  %v10359_v39 = vrot.slane %v10292_v33, 2  ;;  %v13931_v41 = vld [vmem:[%s17187_s9 + $0x70] sm:$0xff]  }
 0x6a6   : > { %10615 = vmatprep.subr.bf16.mxu0 %v13879_v18  ;;  %v10411_v18 = vpack.c.bf16 %v10357_v20, %v10351_v53  ;;  %v13922_v20 = vld [vmem:[%s17187_s9 + $0x8] sm:$0xff]   ;;  %v13923_v53 = vld [vmem:[%s17187_s9 + $0x50] sm:$0xff]  }
 0x6a7   : > { %v13932_v33 = vld [vmem:[%s17187_s9 + $0x30] sm:$0xff]  }
 0x6a8   : > { %10236 = vmatmul.mubr.bf16.gmra.mrb[36].mxu0 %v9994_v17  ;;  %v13910_v17 = vld [vmem:[%s17185_s7 + $0x8d0] ss:$8 sps:$4 sm:$0xff]  }
 0x6a9   : > { %10245 = vmatprep.mubr.bf16.mxu0 %v9997_v3  ;;  %10616 = vmatpush1.bf16.msra.mxu0 %v13877_v40  ;;  %v13909_v40 = vld [vmem:[%s17185_s7 + $0x8c4] ss:$8 sps:$4 sm:$0xff]  }
 0x6aa   : > { %10617 = vmatprep.subr.bf16.mxu0 %v13882_v35  ;;  %v10286_v35 = vld [vmem:[#allocation4 + $0x60] sm:$0xfc]  ;;  %v10295_v3 = vld [vmem:[#allocation4 + $0xa8] sm:$0xfc] }
 0x6ab   : > { %v10352_v6 = vrot.slane %v10286_v35, 2  ;;  %v10367_v12 = vrot.slane %v10295_v3, 2 }
 0x6ad   : > { %10618 = vmatpush1.bf16.msra.mxu0 %v13880_v14  ;;  %v10291_v14 = vld [vmem:[#allocation4 + $0x88] sm:$0xfc]  ;;  %v10354_v30 = vsel %vm3473_vm4, %v10352_v6, %v10353_v61  ;;  %v13926_v6 = vld [vmem:[%s17187_s9 + $0x18] sm:$0xff]   ;;  %v13927_v61 = vld [vmem:[%s17187_s9 + $0x60] sm:$0xff]  }
 0x6ae   : > { %10619 = vmatprep.subr.bf16.mxu0 %v13885_v5  ;;  %v10368_v5 = vrot.slane %v10297_v8, 2  ;;  %v10361_v24 = vrot.slane %v10291_v14, 2  ;;  %v10410_v13 = vpack.c.bf16 %v10354_v30, %v10348_v26  ;;  %v10382_v30 = vrot.slane %v10306_v58, 2 }
 0x6af   : > { %v10389_v26 = vrot.slane %v10312_v10, 2 }
 0x6b0   : > { %10246 = vmatmul.mubr.bf16.gmra.mrb[40].mxu0 %v9996_v0  ;;  %v10369_v21 = vsel %vm3473_vm4, %v10367_v12, %v10368_v5  ;;  %v10303_v0 = vld [vmem:[#allocation4 + $0xe8] sm:$0xfc] }
 0x6b1   : > { %10255 = vmatprep.mubr.bf16.mxu0 %v9999_v52  ;;  %10620 = vmatpush1.bf16.msra.mxu0 %v13883_v25  ;;  %v10294_v25 = vld [vmem:[#allocation4 + $0xa0] sm:$0xfc]  ;;  %v10363_v52 = vsel %vm3473_vm4, %v10361_v24, %v10362_v23  ;;  %v10379_v19 = vrot.slane %v10303_v0, 2 }
 0x6b2   : > { %10621 = vmatprep.subr.bf16.mxu0 %v13888_v27  ;;  %v10305_v27 = vld [vmem:[#allocation4 + $0xf8] sm:$0x3]  ;;  %v10413_v60 = vpack.c.bf16 %v10369_v21, %v10363_v52  ;;  %v10364_v1 = vrot.slane %v10294_v25, 2  ;;  %v13928_v23 = vld [vmem:[%s17187_s9 + $0x20] sm:$0xff]   ;;  %v13930_v52 = vld [vmem:[%s17187_s9 + $0x28] sm:$0xff]  }
 0x6b3   : > { %v10380_v38 = vrot.slane %v10305_v27, 2  ;;  %v10390_v27 = vsel %vm3473_vm4, %v10388_v22, %v10389_v26 }
 0x6b5   : > { %10622 = vmatpush1.bf16.msra.mxu0 %v13886_v37  ;;  %v10299_v37 = vld [vmem:[#allocation4 + $0xc8] sm:$0xfc] }
 0x6b6   : > { %10623 = vmatprep.subr.bf16.mxu0 %v13891_v54  ;;  %v10301_v54 = vld [vmem:[#allocation4 + $0xd8] sm:$0x3] }
 0x6b8   : > { %10256 = vmatmul.mubr.bf16.gmra.mrb[44].mxu0 %v9998_v59  ;;  %v10374_v59 = vrot.slane %v10301_v54, 2 }
 0x6b9   : > { %10624 = vmatpush1.bf16.msra.mxu0 %v13889_v2  ;;  %10643 = vmatprep.mubr.bf16.mxu0 %v10411_v18  ;;  %v10373_v2 = vrot.slane %v10299_v37, 2  ;;  %v10302_v18 = vld [vmem:[#allocation4 + $0xe0] sm:$0xfc] }
 0x6ba   : > { %10625 = vmatprep.subr.bf16.mxu0 %v13894_v44  ;;  %v10366_v44 = vsel %vm3473_vm4, %v10364_v1, %v10365_v45  ;;  %v10376_v35 = vrot.slane %v10302_v18, 2  ;;  %v10700_v1 = vld [vmem:[%s17186_s8] ss:$2 sm:$0x3] }
 0x6bb   : > { %v12433_v45 = vld [vmem:[%s17186_s8 + $0x1] ss:$2 sm:$0x3]  ;;  %v17117_v37 = vrot.slane %v10700_v1, %v16048_v49  ;;  %v17120_v54 = vrot.slane %v10700_v1, %v16054_v50 }
 0x6bd   : > { %10626 = vmatpush1.bf16.msra.mxu0 %v13892_v48  ;;  %v10381_v48 = vsel %vm3473_vm4, %v10379_v19, %v10380_v38  ;;  %v17123_v19 = vrot.slane %v12433_v45, %v16048_v49 }
 0x6be   : > { %10627 = vmatprep.subr.bf16.mxu0 %v13897_v36  ;;  %v10304_v36 = vld [vmem:[#allocation4 + $0xf0] sm:$0x3] }
 0x6bf   : > { %v10377_v4 = vrot.slane %v10304_v36, 2 }
 0x6c1   : > { %10628 = vmatpush1.bf16.msra.mxu0 %v13895_v31  ;;  %v10307_v31 = vld [vmem:[#allocation4 + $0x108] sm:$0xfc]  ;;  %v10378_v14 = vsel %vm3473_vm4, %v10376_v35, %v10377_v4 }
 0x6c2   : > { %10629 = vmatprep.subr.bf16.mxu0 %v13900_v42  ;;  %v10309_v42 = vld [vmem:[#allocation4 + $0x118] sm:$0x3] }
 0x6c3   : > { %v10386_v3 = vrot.slane %v10309_v42, 2 }
 0x6c5   : > { %10630 = vmatpush1.bf16.msra.mxu0 %v13898_v57  ;;  %v10360_v57 = vsel %vm3473_vm4, %v10358_v32, %v10359_v39  ;;  %v17126_v32 = vrot.slane %v12433_v45, %v16054_v50 }
 0x6c6   : > { %10631 = vmatprep.subr.bf16.mxu0 %v13903_v28  ;;  %v10311_v28 = vld [vmem:[#allocation4 + $0x128] sm:$0xfc] }
 0x6c7   : > { %v10391_v8 = vrot.slane %v10311_v28, 2 }
 0x6c9   : > { %10632 = vmatpush1.bf16.msra.mxu0 %v13901_v63  ;;  %v10313_v63 = vld [vmem:[#allocation4 + $0x138] sm:$0x3] }
 0x6ca   : > { %10633 = vmatprep.subr.bf16.mxu0 %v13906_v55  ;;  %v13924_v55 = vld [vmem:[%s17187_s9 + $0x10] sm:$0xff]  }
 0x6cd   : > { %10634 = vmatpush1.bf16.msra.mxu0 %v13904_v15  ;;  %v10412_v15 = vpack.c.bf16 %v10366_v44, %v10360_v57 }
 0x6ce   : > { %10635 = vmatprep.subr.bf16.mxu0 %v13909_v40  ;;  %v10375_v40 = vsel %vm3473_vm4, %v10373_v2, %v10374_v59 }
 0x6d1   : > { %10636 = vmatpush1.bf16.msra.mxu0 %v13907_v51  ;;  %v10298_v51 = vld [vmem:[#allocation4 + $0xc0] sm:$0xfc] }
 0x6d2   : > { %10637 = vmatprep.subr.bf16.mxu0 %v13912_v7  ;;  %v10300_v7 = vld [vmem:[#allocation4 + $0xd0] sm:$0x3]  ;;  %v10370_v11 = vrot.slane %v10298_v51, 2 }
 0x6d3   : > { %v10371_v9 = vrot.slane %v10300_v7, 2 }
 0x6d5   : > { %10638 = vmatpush1.bf16.msra.mxu0 %v13910_v17  ;;  %v13925_v17 = vld [vmem:[%s17187_s9 + $0x58] sm:$0xff]   ;;  %v10372_v24 = vsel %vm3473_vm4, %v10370_v11, %v10371_v9 }
 0x6d6   : > { %10639 = vmatprep.subr.bf16.mxu0 %v13915_v34  ;;  %v10415_v34 = vpack.c.bf16 %v10381_v48, %v10375_v40 }
 0x6d9   : > { %10640 = vmatpush1.bf16.msra.mxu0 %v13913_v29  ;;  %v10385_v29 = vrot.slane %v10307_v31, 2 }
 0x6da   : > { %10641 = vmatprep.subr.bf16.mxu0 %v13918_v47  ;;  %v10392_v47 = vrot.slane %v10313_v63, 2 }
 0x6db   : > { %v10387_v12 = vsel %vm3473_vm4, %v10385_v29, %v10386_v3 }
 0x6dc   : > { %v10393_v5 = vsel %vm3473_vm4, %v10391_v8, %v10392_v47 }
 0x6dd   : > { %10642 = vmatpush1.bf16.msra.mxu0 %v13916_v16  ;;  %v10308_v16 = vld [vmem:[#allocation4 + $0x110] sm:$0x3]  ;;  %v10417_v21 = vpack.c.bf16 %v10393_v5, %v10387_v12 }
 0x6de   : > { %12495 = vmatprep.subr.bf16.mxu0 %v13919_v62  ;;  %v10414_v62 = vpack.c.bf16 %v10378_v14, %v10372_v24  ;;  %v10383_v25 = vrot.slane %v10308_v16, 2 }
 0x6e0   : > { %10644 = vmatmul.mubr.bf16.vlgmr.msra.gmra.mrb[32].mxu0 %v10410_v13  ;;  %v10384_v0 = vsel %vm3473_vm4, %v10382_v30, %v10383_v25  ;;  %v13929_v13 = vld [vmem:[%s17187_s9 + $0x68] sm:$0xff]  }
 0x6e1   : > { %10653 = vmatprep.mubr.bf16.mxu0 %v10413_v60  ;;  %12496 = vmatpush3.bf16.msra.mxu0 %v13920_v46  ;;  %v10416_v46 = vpack.c.bf16 %v10390_v27, %v10384_v0  ;;  %v13934_v60 = vld [vmem:[%s17187_s9 + $0x38] sm:$0xff]  }
 0x6e2   : > { %12497 = vmatprep.subr.bf16.mxu0 %v13921_v43  ;;  %v13933_v43 = vld [vmem:[%s17187_s9 + $0x78] sm:$0xff]  }
 0x6e5   : > { %12498 = vmatpush3.bf16.msra.mxu0 %v13922_v20 }
 0x6e6   : > { %12499 = vmatprep.subr.bf16.mxu0 %v13923_v53 }
 0x6e8   : > { %10654 = vmatmul.mubr.bf16.gmra.mrb[36].mxu0 %v10412_v15 }
 0x6e9   : > { %10663 = vmatprep.mubr.bf16.mxu0 %v10415_v34  ;;  %12500 = vmatpush3.bf16.msra.mxu0 %v13924_v55 }
 0x6ea   : > { %12501 = vmatprep.subr.bf16.mxu0 %v13925_v17 }
 0x6ed   : > { %12502 = vmatpush3.bf16.msra.mxu0 %v13926_v6 }
 0x6ee   : > { %12503 = vmatprep.subr.bf16.mxu0 %v13927_v61 }
 0x6f0   : > { %10664 = vmatmul.mubr.bf16.gmra.mrb[40].mxu0 %v10414_v62 }
 0x6f1   : > { %10673 = vmatprep.mubr.bf16.mxu0 %v10417_v21  ;;  %12504 = vmatpush3.bf16.msra.mxu0 %v13928_v23 }
 0x6f2   : > { %12505 = vmatprep.subr.bf16.mxu0 %v13929_v13 }
 0x6f5   : > { %12506 = vmatpush3.bf16.msra.mxu0 %v13930_v52 }
 0x6f6   : > { %12507 = vmatprep.subr.bf16.mxu0 %v13931_v41 }
 0x6f8   : > { %10674 = vmatmul.mubr.bf16.gmra.mrb[44].mxu0 %v10416_v46 }
 0x6f9   : > { %12508 = vmatpush3.bf16.msra.mxu0 %v13932_v33 }
 0x6fa   : > { %12509 = vmatprep.subr.bf16.mxu0 %v13933_v43 }
 0x6fd   : > { %12510 = vmatpush3.bf16.msra.mxu0 %v13934_v60 }
 0x7b3   : > { %v10645_v38 = vpop.f32.mrb[32].mxu0 }
 0x7b4   : > { %v10712_v39 = vmul.f32 %v17117_v37, %v10645_v38  ;;  %v10647_v20 = vpop.f32.mrb[33].mxu0 }
 0x7b5   : > { %v10713_v2 = vmul.f32 %v17120_v54, %v10647_v20  ;;  %v10649_v59 = vpop.f32.mrb[34].mxu0 }
 0x7b6   : > { %v10741_v53 = vadd.f32 %v17123_v19, %v10712_v39  ;;  %v10714_v44 = vmul.f32 %v17117_v37, %v10649_v59  ;;  %v10651_v18 = vpop.f32.mrb[35].mxu0 }
 0x7b7   : > { %v10742_v48 = vadd.f32 %v17126_v32, %v10713_v2  ;;  %v10715_v49 = vmul.f32 %v17120_v54, %v10651_v18 }
 0x7b8   : > { %v10743_v36 = vadd.f32 %v17123_v19, %v10714_v44  ;;  %v10757_v31 = vmax.f32 %v10741_v53, 0.0 }
 0x7b9   : > { %v10744_v50 = vadd.f32 %v17126_v32, %v10715_v49  ;;  %v10758_v57 = vmax.f32 %v10742_v48, 0.0 }
 0x7ba   : > { %v10759_v42 = vmax.f32 %v10743_v36, 0.0 }
 0x7bb   : > { %v10760_v28 = vmax.f32 %v10744_v50, 0.0  ;;  %v10655_v63 = vpop.f32.mrb[36].mxu0 }
 0x7bc   : > { %v10773_v55 = vpack.c.bf16 %v10759_v42, %v10757_v31  ;;  %v10716_v15 = vmul.f32 %v17117_v37, %v10655_v63  ;;  %v10657_v40 = vpop.f32.mrb[37].mxu0 }
 0x7bd   : > { %v10717_v51 = vmul.f32 %v17120_v54, %v10657_v40  ;;  %v10659_v7 = vpop.f32.mrb[38].mxu0  ;;  %v10774_v17 = vpack.c.bf16 %v10760_v28, %v10758_v57 }
 0x7be   : > { %v10745_v34 = vadd.f32 %v17123_v19, %v10716_v15  ;;  %v10718_v35 = vmul.f32 %v17117_v37, %v10659_v7  ;;  %v10661_v4 = vpop.f32.mrb[39].mxu0 }
 0x7bf   : > { %v10746_v29 = vadd.f32 %v17126_v32, %v10717_v51  ;;  %v10719_v3 = vmul.f32 %v17120_v54, %v10661_v4  ;;  %10941 = vmatprep.mubr.bf16.mxu0 %v10774_v17 }
 0x7c0   : > { %v10747_v8 = vadd.f32 %v17123_v19, %v10718_v35  ;;  %10942 = vmatmul.mubr.bf16.vlgmr.msra.gmra.mrb[48].mxu0 %v10773_v55  ;;  %v10761_v11 = vmax.f32 %v10745_v34, 0.0 }
 0x7c1   : > { %v10748_v47 = vadd.f32 %v17126_v32, %v10719_v3  ;;  %v10762_v6 = vmax.f32 %v10746_v29, 0.0 }
 0x7c2   : > { %v10763_v9 = vmax.f32 %v10747_v8, 0.0 }
 0x7c3   : > { %v10764_v61 = vmax.f32 %v10748_v47, 0.0  ;;  %v10665_v14 = vpop.f32.mrb[40].mxu0 }
 0x7c4   : > { %v10720_v58 = vmul.f32 %v17117_v37, %v10665_v14  ;;  %v10667_v12 = vpop.f32.mrb[41].mxu0  ;;  %v10775_v5 = vpack.c.bf16 %v10763_v9, %v10761_v11 }
 0x7c5   : > { %v10721_v16 = vmul.f32 %v17120_v54, %v10667_v12  ;;  %v10669_v56 = vpop.f32.mrb[42].mxu0  ;;  %v10776_v10 = vpack.c.bf16 %v10764_v61, %v10762_v6 }
 0x7c6   : > { %v10749_v24 = vadd.f32 %v17123_v19, %v10720_v58  ;;  %v10722_v23 = vmul.f32 %v17117_v37, %v10669_v56  ;;  %v10671_v62 = vpop.f32.mrb[43].mxu0 }
 0x7c7   : > { %v10750_v30 = vadd.f32 %v17126_v32, %v10721_v16  ;;  %v10723_v21 = vmul.f32 %v17120_v54, %v10671_v62  ;;  %10949 = vmatprep.mubr.bf16.mxu0 %v10776_v10 }
 0x7c8   : > { %v10751_v25 = vadd.f32 %v17123_v19, %v10722_v23  ;;  %10950 = vmatmul.mubr.bf16.gmra.mrb[52].mxu0 %v10775_v5  ;;  %v10765_v26 = vmax.f32 %v10749_v24, 0.0 }
 0x7c9   : > { %v10752_v22 = vadd.f32 %v17126_v32, %v10723_v21  ;;  %v10766_v27 = vmax.f32 %v10750_v30, 0.0 }
 0x7ca   : > { %v10767_v0 = vmax.f32 %v10751_v25, 0.0 }
 0x7cb   : > { %v10768_v46 = vmax.f32 %v10752_v22, 0.0  ;;  %v10675_v13 = vpop.f32.mrb[44].mxu0 }
 0x7cc   : > { %v10724_v52 = vmul.f32 %v17117_v37, %v10675_v13  ;;  %v10677_v41 = vpop.f32.mrb[45].mxu0  ;;  %v10777_v33 = vpack.c.bf16 %v10767_v0, %v10765_v26 }
 0x7cd   : > { %v10725_v43 = vmul.f32 %v17120_v54, %v10677_v41  ;;  %v10679_v60 = vpop.f32.mrb[46].mxu0  ;;  %v10778_v1 = vpack.c.bf16 %v10768_v46, %v10766_v27 }
 0x7ce   : > { %v10753_v45 = vadd.f32 %v17123_v19, %v10724_v52  ;;  %v10726_v38 = vmul.f32 %v17117_v37, %v10679_v60  ;;  %v10681_v39 = vpop.f32.mrb[47].mxu0 }
 0x7cf   : > { %v10754_v20 = vadd.f32 %v17126_v32, %v10725_v43  ;;  %v10727_v2 = vmul.f32 %v17120_v54, %v10681_v39  ;;  %10957 = vmatprep.mubr.bf16.mxu0 %v10778_v1 }
 0x7d0   : > { %v10755_v59 = vadd.f32 %v17123_v19, %v10726_v38  ;;  %10958 = vmatmul.mubr.bf16.gmra.mrb[56].mxu0 %v10777_v33  ;;  %v10769_v44 = vmax.f32 %v10753_v45, 0.0 }
 0x7d1   : > { %v10756_v53 = vadd.f32 %v17126_v32, %v10727_v2  ;;  %v10770_v48 = vmax.f32 %v10754_v20, 0.0 }
 0x7d2   : > { %v10771_v18 = vmax.f32 %v10755_v59, 0.0 }
 0x7d3   : > { %v10772_v49 = vmax.f32 %v10756_v53, 0.0 }
 0x7d4   : > { %v10779_v36 = vpack.c.bf16 %v10771_v18, %v10769_v44 }
 0x7d5   : > { %v10780_v50 = vpack.c.bf16 %v10772_v49, %v10770_v48 }
 0x7d7   : > { %10965 = vmatprep.mubr.bf16.mxu0 %v10780_v50 }
 0x7d8   : > { %10966 = vmatmul.mubr.bf16.gmra.mrb[60].mxu0 %v10779_v36 }
 0x893   : > { %v12511_v37 = vpop.f32.mrb[48].mxu0 }
 0x894   : > { %v12512_v54 = vpop.f32.mrb[49].mxu0 }
 0x895   : > { %v12513_v19 = vadd.f32 %v12512_v54, %v12511_v37  ;;  %v12514_v32 = vpop.f32.mrb[50].mxu0 }
 0x896   : > { %v12515_v31 = vpop.f32.mrb[51].mxu0 }
 0x897   : > { %10974 = vst [vmem:[%s17165_s16] sm:$0xff] %v12513_v19  ;;  %v12516_v42 = vadd.f32 %v12515_v31, %v12514_v32 }
 0x899   : > { %10975 = vst [vmem:[%s17165_s16 + $0x8] sm:$0xff] %v12516_v42 }
 0x89b   : > { %v12517_v57 = vpop.f32.mrb[52].mxu0 }
 0x89c   : > { %v12518_v28 = vpop.f32.mrb[53].mxu0 }
 0x89d   : > { %v12519_v63 = vadd.f32 %v12518_v28, %v12517_v57  ;;  %v12520_v55 = vpop.f32.mrb[54].mxu0 }
 0x89e   : > { %v12521_v15 = vpop.f32.mrb[55].mxu0 }
 0x89f   : > { %10976 = vst [vmem:[%s17165_s16 + $0x10] sm:$0xff] %v12519_v63  ;;  %v12522_v40 = vadd.f32 %v12521_v15, %v12520_v55 }
 0x8a1   : > { %10977 = vst [vmem:[%s17165_s16 + $0x18] sm:$0xff] %v12522_v40 }
 0x8a3   : > { %v12523_v51 = vpop.f32.mrb[56].mxu0 }
 0x8a4   : > { %v12524_v7 = vpop.f32.mrb[57].mxu0 }
 0x8a5   : > { %v12525_v17 = vadd.f32 %v12524_v7, %v12523_v51  ;;  %v12526_v34 = vpop.f32.mrb[58].mxu0 }
 0x8a6   : > { %v12527_v35 = vpop.f32.mrb[59].mxu0 }
 0x8a7   : > { %10978 = vst [vmem:[%s17165_s16 + $0x20] sm:$0xff] %v12525_v17  ;;  %v12528_v4 = vadd.f32 %v12527_v35, %v12526_v34 }
 0x8a9   : > { %10979 = vst [vmem:[%s17165_s16 + $0x28] sm:$0xff] %v12528_v4 }
 0x8ab   : > { %v12529_v29 = vpop.f32.mrb[60].mxu0 }
 0x8ac   : > { %v12530_v3 = vpop.f32.mrb[61].mxu0 }
 0x8ad   : > { %v12531_v8 = vadd.f32 %v12530_v3, %v12529_v29  ;;  %v12532_v47 = vpop.f32.mrb[62].mxu0 }
 0x8ae   : > { %v12533_v11 = vpop.f32.mrb[63].mxu0 }
 0x8af   : > { %10980 = vst [vmem:[%s17165_s16 + $0x30] sm:$0xff] %v12531_v8  ;;  %v12534_v9 = vadd.f32 %v12533_v11, %v12532_v47 }
 0x8b1   : > { %10981 = vst [vmem:[%s17165_s16 + $0x38] sm:$0xff] %v12534_v9 }
 0x8b2 PF: > { %s20_s13 = sadd.s32 1, %s13948_s13  }
 0x8b3   : > { %p17_p4 = scmp.ge.s32.totalorder %s20_s13, 4  }
 0x8b5   :  { %19 = sbr.rel (!%p17_p4) target bundleno = 1 (0x1), region = 189 }

</bundles_post_ra>
